<compile_context>
chip_gen: v7x
topology: tpu7x:2x2x1
jax: 0.10.0
libtpu: 0.0.40
codegen_flags: <defaults>
</compile_context>

<pallas_src>
import jax
import jax.numpy as jnp
from jax.experimental import pallas as pl
from jax.experimental.pallas import tpu as pltpu


def _round_up(x, m):
    return (x + m - 1) // m * m


# ---------------------------------------------------------------------------
# Pallas kernels
# ---------------------------------------------------------------------------
def _conv_relu_pool_kernel(a00_ref, a01_ref, a10_ref, a11_ref, w_ref, b_ref, o_ref):
    """Fused conv (im2col matmul) + bias + ReLU + 2x2 max-pool, batch-merged rows.

    a??_ref: (tm, K) bf16 pool-corner patch tiles (rows = (n, ph, pw) flattened)
    w_ref  : (K, Cout) bf16   b_ref: (1, Cout) f32   o_ref: (tm, Cout)
    relu(max(y00,y01,y10,y11) + b) == max over corners of relu(conv + b).
    """
    w = w_ref[...]
    y = jnp.maximum(
        jnp.maximum(
            jnp.dot(a00_ref[...], w, preferred_element_type=jnp.float32),
            jnp.dot(a01_ref[...], w, preferred_element_type=jnp.float32)),
        jnp.maximum(
            jnp.dot(a10_ref[...], w, preferred_element_type=jnp.float32),
            jnp.dot(a11_ref[...], w, preferred_element_type=jnp.float32)))
    o_ref[...] = jnp.maximum(y + b_ref[...], 0.0).astype(o_ref.dtype)


def _conv2_fc_fused_kernel(a00_ref, a01_ref, a10_ref, a11_ref, wc_ref, bc_ref,
                           w1_ref, b1_ref, w2_ref, b2_ref, w3_ref, b3_ref, o_ref):
    """conv2 + bias + ReLU + 2x2 pool + fc1(+ReLU) + fc2(+ReLU) + fc3 for a batch tile.

    a??_ref: (P=25, tb, K) bf16 pool-corner patches, spatial-position major.
    wc_ref : (K, 128) bf16, bc_ref: (1, 128) f32 (conv2 Cout zero-padded 112->128).
    w1_ref : (25, 128, 128) bf16 per-position fc1 weights; fc1 is accumulated over
             the 25 pooled positions so no in-kernel flatten/reshape is needed.
    w2_ref : (128, 128) bf16, w3_ref: (128, 31) bf16; biases f32.
    o_ref  : (tb, 31) f32.
    """
    n_pos = a00_ref.shape[0]                     # 25
    tb = a00_ref.shape[1]
    wc = wc_ref[...]
    bc = bc_ref[...]
    h1 = jnp.zeros((tb, w1_ref.shape[2]), jnp.float32)
    for p in range(n_pos):                       # static, fully unrolled
        y = jnp.maximum(
            jnp.maximum(
                jnp.dot(a00_ref[p], wc, preferred_element_type=jnp.float32),
                jnp.dot(a01_ref[p], wc, preferred_element_type=jnp.float32)),
            jnp.maximum(
                jnp.dot(a10_ref[p], wc, preferred_element_type=jnp.float32),
                jnp.dot(a11_ref[p], wc, preferred_element_type=jnp.float32)))
        pooled = jnp.maximum(y + bc, 0.0)                        # (tb, 128) f32
        h1 = h1 + jnp.dot(pooled.astype(jnp.bfloat16), w1_ref[p],
                          preferred_element_type=jnp.float32)
    h1 = jnp.maximum(h1 + b1_ref[...], 0.0)
    h2 = jnp.dot(h1.astype(jnp.bfloat16), w2_ref[...],
                 preferred_element_type=jnp.float32)
    h2 = jnp.maximum(h2 + b2_ref[...], 0.0)
    h3 = jnp.dot(h2.astype(jnp.bfloat16), w3_ref[...],
                 preferred_element_type=jnp.float32)
    o_ref[...] = (h3 + b3_ref[...]).astype(o_ref.dtype)


# ---------------------------------------------------------------------------
# Wrappers (XLA glue: patch extraction, padding, reshapes)
# ---------------------------------------------------------------------------
def _pool_corner_patches(x, kh, kw, spatial_major):
    """x: (N, H, W, Cin) NHWC -> 4 bf16 patch arrays, one per 2x2 pool corner.

    spatial_major=False: (N*Hp*Wp, K) rows ordered (n, ph, pw)   [conv1 path]
    spatial_major=True : (Hp*Wp, N, K) position-major            [fused conv2 path]
    Feature order within K is (kh, kw, Cin), matching the prepared weight matrices.
    Assumes the conv output height/width are even (true for the 32x32 LeNet sizes).
    """
    N, H, W, Cin = x.shape
    Ho, Wo = H - kh + 1, W - kw + 1
    Hp, Wp = Ho // 2, Wo // 2
    K = kh * kw * Cin
    p = jnp.stack(
        [x[:, i:i + Ho, j:j + Wo, :] for i in range(kh) for j in range(kw)],
        axis=3).reshape(N, Ho, Wo, K)
    corners = []
    for di in (0, 1):
        for dj in (0, 1):
            c = p[:, di::2, dj::2, :].reshape(N, Hp * Wp, K)
            if spatial_major:
                c = c.transpose(1, 0, 2)                  # (Hp*Wp, N, K)
            else:
                c = c.reshape(N * Hp * Wp, K)
            corners.append(c.astype(jnp.bfloat16))
    return corners, Hp, Wp


def conv_relu_pool_pallas(x_nhwc, w_mat, b_row, kh=5, kw=5, row_tile=512):
    """Fused conv(stride 1, valid) + bias + ReLU + 2x2 max-pool, batch-merged rows.

    x_nhwc: (N, H, W, Cin)   w_mat: (kh*kw*Cin, Cout) bf16   b_row: (1, Cout) f32
    returns (N, Hp, Wp, Cout) bf16 channels-last.
    """
    N = x_nhwc.shape[0]
    K, Cout = w_mat.shape
    corners, Hp, Wp = _pool_corner_patches(x_nhwc, kh, kw, spatial_major=False)
    M = N * Hp * Wp
    tm = min(row_tile, _round_up(M, 8))
    Mp = _round_up(M, tm)                         # never a single full-M block
    if Mp != M:                                   # zero rows, sliced off below
        corners = [jnp.pad(c, ((0, Mp - M), (0, 0))) for c in corners]
    out = pl.pallas_call(
        _conv_relu_pool_kernel,
        out_shape=jax.ShapeDtypeStruct((Mp, Cout), jnp.bfloat16),
        grid=(Mp // tm,),
        in_specs=[pl.BlockSpec((tm, K), lambda i: (i, 0))] * 4 + [
            pl.BlockSpec((K, Cout), lambda i: (0, 0)),    # weight resident
            pl.BlockSpec((1, Cout), lambda i: (0, 0)),    # bias resident
        ],
        out_specs=pl.BlockSpec((tm, Cout), lambda i: (i, 0)),
        compiler_params=pltpu.CompilerParams(dimension_semantics=("parallel",)),
    )(*corners, w_mat, b_row)
    return out[:M].reshape(N, Hp, Wp, Cout)


def conv2_fc_fused_pallas(x_nhwc, params, tb):
    """Fused conv2+ReLU+pool+fc1+fc2+fc3 for x_nhwc (Np, 14, 14, 6), Np % tb == 0."""
    Np = x_nhwc.shape[0]
    corners, Hp, Wp = _pool_corner_patches(x_nhwc, 5, 5, spatial_major=True)
    P = Hp * Wp                                   # 25 pooled spatial positions
    K = corners[0].shape[-1]                      # 150
    wc, bc = params["conv2_w"], params["conv2_b"]
    w1, b1 = params["fc1_w"], params["fc1_b"]
    w2, b2 = params["fc2_w"], params["fc2_b"]
    w3, b3 = params["fc3_w"], params["fc3_b"]
    n_out = w3.shape[1]
    return pl.pallas_call(
        _conv2_fc_fused_kernel,
        out_shape=jax.ShapeDtypeStruct((Np, n_out), jnp.float32),
        grid=(Np // tb,),
        in_specs=[pl.BlockSpec((P, tb, K), lambda b: (0, b, 0))] * 4 + [
            pl.BlockSpec(wc.shape, lambda b: (0, 0)),       # all weights resident
            pl.BlockSpec(bc.shape, lambda b: (0, 0)),
            pl.BlockSpec(w1.shape, lambda b: (0, 0, 0)),
            pl.BlockSpec(b1.shape, lambda b: (0, 0)),
            pl.BlockSpec(w2.shape, lambda b: (0, 0)),
            pl.BlockSpec(b2.shape, lambda b: (0, 0)),
            pl.BlockSpec(w3.shape, lambda b: (0, 0)),
            pl.BlockSpec(b3.shape, lambda b: (0, 0)),
        ],
        out_specs=pl.BlockSpec((tb, n_out), lambda b: (b, 0)),
        compiler_params=pltpu.CompilerParams(dimension_semantics=("parallel",)),
    )(*corners, wc, bc, w1, b1, w2, b2, w3, b3)


# ---------------------------------------------------------------------------
# Parameters: PyTorch-style init, then ONE-TIME layout prep (outside jit)
# ---------------------------------------------------------------------------
def init_params(key):
    ks = jax.random.split(key, 10)

    def u(k, shape, fan_in):
        bound = 1.0 / float(fan_in) ** 0.5
        return jax.random.uniform(k, shape, jnp.float32, -bound, bound)

    return {
        "conv1_w": u(ks[0], (6, 1, 5, 5), 1 * 25),
        "conv1_b": u(ks[1], (6,), 1 * 25),
        "conv2_w": u(ks[2], (112, 6, 5, 5), 6 * 25),
        "conv2_b": u(ks[3], (112,), 6 * 25),
        # LazyLinear resolves to in_features = 112 * 5 * 5 = 2800 for 32x32 input
        "fc1_w": u(ks[4], (120, 2800), 2800),
        "fc1_b": u(ks[5], (120,), 2800),
        "fc2_w": u(ks[6], (84, 120), 120),
        "fc2_b": u(ks[7], (84,), 120),
        "fc3_w": u(ks[8], (31, 84), 84),
        "fc3_b": u(ks[9], (31,), 84),
    }


def prepare_params(p):
    """One-time layout/padding prep so the jit'd forward has zero weight transposes:
    - conv weights (Cout,Cin,kh,kw) -> (kh*kw*Cin, Cout) matmul matrices, bf16.
    - conv2 Cout zero-padded 112->128 (lane-dense stores); fc widths 120/84 -> 128.
    - fc1 reorganized from PyTorch's (C,H,W) flatten order into per-pooled-position
      weights (25, Cpad=128, 128) so fc1 fuses into the conv2 kernel with no flatten.
    Padded rows/cols are zeros, so results are numerically identical."""
    f32, bf16 = jnp.float32, jnp.bfloat16

    conv1_w = p["conv1_w"].transpose(2, 3, 1, 0).reshape(25, 6).astype(bf16)
    conv1_b = p["conv1_b"].reshape(1, 6).astype(f32)

    conv2_w = p["conv2_w"].transpose(2, 3, 1, 0).reshape(150, 112)
    conv2_w = jnp.pad(conv2_w, ((0, 0), (0, 16))).astype(bf16)        # (150, 128)
    conv2_b = jnp.pad(p["conv2_b"], (0, 16)).reshape(1, 128).astype(f32)

    # fc1_w (120, 2800) with feature index c*25 + (ph*5 + pw) -> (25, 128, 128)
    fc1_w = p["fc1_w"].reshape(120, 112, 25).transpose(2, 1, 0)       # (25, 112, 120)
    fc1_w = jnp.pad(fc1_w, ((0, 0), (0, 16), (0, 8))).astype(bf16)    # (25, 128, 128)
    fc1_b = jnp.pad(p["fc1_b"], (0, 8)).reshape(1, 128).astype(f32)

    fc2_w = jnp.pad(p["fc2_w"].T, ((0, 8), (0, 44))).astype(bf16)     # (128, 128)
    fc2_b = jnp.pad(p["fc2_b"], (0, 44)).reshape(1, 128).astype(f32)

    fc3_w = jnp.pad(p["fc3_w"].T, ((0, 44), (0, 0))).astype(bf16)     # (128, 31)
    fc3_b = p["fc3_b"].reshape(1, 31).astype(f32)

    return {
        "conv1_w": conv1_w, "conv1_b": conv1_b,
        "conv2_w": conv2_w, "conv2_b": conv2_b,
        "fc1_w": fc1_w, "fc1_b": fc1_b,
        "fc2_w": fc2_w, "fc2_b": fc2_b,
        "fc3_w": fc3_w, "fc3_b": fc3_b,
    }


# ---------------------------------------------------------------------------
# Forward pass (2 pallas_calls total: conv1+pool, conv2+pool+fc1+fc2+fc3)
# ---------------------------------------------------------------------------
def _batch_tiling(n, cap=32):
    """Pad batch to a multiple of 8 and pick the largest batch tile <= cap that
    divides it (always terminates at 8)."""
    n_pad = _round_up(n, 8)
    tb = next(t for t in range(min(cap, n_pad), 7, -8) if n_pad % t == 0)
    return n_pad, tb


def net_forward(params, x):
    # x: (N, 1, 32, 32) NCHW float32 -> NHWC once, channels-last throughout.
    n = x.shape[0]
    n_pad, tb = _batch_tiling(n)
    x = x.transpose(0, 2, 3, 1)                                          # (N, 32, 32, 1)
    if n_pad != n:
        x = jnp.pad(x, ((0, n_pad - n), (0, 0), (0, 0), (0, 0)))
    x = conv_relu_pool_pallas(x, params["conv1_w"], params["conv1_b"])   # (Np, 14, 14, 6) bf16
    out = conv2_fc_fused_pallas(x, params, tb)                           # (Np, 31) f32
    return out[:n]


if __name__ == "__main__":
    key = jax.random.PRNGKey(0)
    pkey, xkey = jax.random.split(key)
    params = prepare_params(init_params(pkey))      # layout/padding prep, outside jit
    x = jax.random.normal(xkey, (2, 1, 32, 32), jnp.float32)

    out = jax.jit(net_forward)(params, x)
    out = jax.block_until_ready(out)

    assert out.shape == (2, 31), out.shape
    assert out.dtype == jnp.float32
    print("KERNEL_OK")
</pallas_src>

<mosaic_0001>
module attributes {stable_mosaic.version = 11 : i64} {
  func.func @_conv_relu_pool_kernel(%arg0: i32, %arg1: memref<512x25xbf16, #tpu.memory_space<vmem>>, %arg2: memref<512x25xbf16, #tpu.memory_space<vmem>>, %arg3: memref<512x25xbf16, #tpu.memory_space<vmem>>, %arg4: memref<512x25xbf16, #tpu.memory_space<vmem>>, %arg5: memref<25x6xbf16, #tpu.memory_space<vmem>>, %arg6: memref<1x6xf32, #tpu.memory_space<vmem>>, %arg7: memref<512x6xbf16, #tpu.memory_space<vmem>>) attributes {dimension_semantics = [#tpu.dimension_semantics<parallel>], iteration_bounds = array<i64: 4>, scalar_prefetch = 0 : i64, scratch_operands = 0 : i64, tpu.core_type = #tpu.core_type<tc>, window_params = [{transform_indices = @transform_0, window_bounds = array<i64: 512, 25>}, {transform_indices = @transform_1, window_bounds = array<i64: 512, 25>}, {transform_indices = @transform_2, window_bounds = array<i64: 512, 25>}, {transform_indices = @transform_3, window_bounds = array<i64: 512, 25>}, {pipeline_mode = #tpu.pipeline_mode<synchronous>, transform_indices = @transform_4, window_bounds = array<i64: 25, 6>}, {pipeline_mode = #tpu.pipeline_mode<synchronous>, transform_indices = @transform_5, window_bounds = array<i64: 1, 6>}, {transform_indices = @transform_6, window_bounds = array<i64: 512, 6>}]} {
    %c0 = arith.constant 0 : index
    %c0_0 = arith.constant 0 : index
    %0 = vector.load %arg5[%c0, %c0_0] : memref<25x6xbf16, #tpu.memory_space<vmem>>, vector<25x6xbf16>
    %c0_1 = arith.constant 0 : index
    %c0_2 = arith.constant 0 : index
    %1 = vector.load %arg1[%c0_1, %c0_2] : memref<512x25xbf16, #tpu.memory_space<vmem>>, vector<512x25xbf16>
    %cst = arith.constant dense<0.000000e+00> : vector<512x6xf32>
    %2 = tpu.matmul %1, %0, %cst {dimension_numbers = #tpu.dot_dimension_numbers<[1], [0], [0], [1], [0, 0, 1, 1], [], []>} : vector<512x25xbf16>, vector<25x6xbf16>, vector<512x6xf32> -> vector<512x6xf32>
    %c0_3 = arith.constant 0 : index
    %c0_4 = arith.constant 0 : index
    %3 = vector.load %arg2[%c0_3, %c0_4] : memref<512x25xbf16, #tpu.memory_space<vmem>>, vector<512x25xbf16>
    %cst_5 = arith.constant dense<0.000000e+00> : vector<512x6xf32>
    %4 = tpu.matmul %3, %0, %cst_5 {dimension_numbers = #tpu.dot_dimension_numbers<[1], [0], [0], [1], [0, 0, 1, 1], [], []>} : vector<512x25xbf16>, vector<25x6xbf16>, vector<512x6xf32> -> vector<512x6xf32>
    %5 = arith.maximumf %2, %4 : vector<512x6xf32>
    %c0_6 = arith.constant 0 : index
    %c0_7 = arith.constant 0 : index
    %6 = vector.load %arg3[%c0_6, %c0_7] : memref<512x25xbf16, #tpu.memory_space<vmem>>, vector<512x25xbf16>
    %cst_8 = arith.constant dense<0.000000e+00> : vector<512x6xf32>
    %7 = tpu.matmul %6, %0, %cst_8 {dimension_numbers = #tpu.dot_dimension_numbers<[1], [0], [0], [1], [0, 0, 1, 1], [], []>} : vector<512x25xbf16>, vector<25x6xbf16>, vector<512x6xf32> -> vector<512x6xf32>
    %c0_9 = arith.constant 0 : index
    %c0_10 = arith.constant 0 : index
    %8 = vector.load %arg4[%c0_9, %c0_10] : memref<512x25xbf16, #tpu.memory_space<vmem>>, vector<512x25xbf16>
    %cst_11 = arith.constant dense<0.000000e+00> : vector<512x6xf32>
    %9 = tpu.matmul %8, %0, %cst_11 {dimension_numbers = #tpu.dot_dimension_numbers<[1], [0], [0], [1], [0, 0, 1, 1], [], []>} : vector<512x25xbf16>, vector<25x6xbf16>, vector<512x6xf32> -> vector<512x6xf32>
    %10 = arith.maximumf %7, %9 : vector<512x6xf32>
    %11 = arith.maximumf %5, %10 : vector<512x6xf32>
    %c0_12 = arith.constant 0 : index
    %c0_13 = arith.constant 0 : index
    %12 = vector.load %arg6[%c0_12, %c0_13] : memref<1x6xf32, #tpu.memory_space<vmem>>, vector<1x6xf32>
    %13 = vector.broadcast %12 : vector<1x6xf32> to vector<512x6xf32>
    %14 = arith.addf %11, %13 : vector<512x6xf32>
    %cst_14 = arith.constant 0.000000e+00 : f32
    %15 = vector.broadcast %cst_14 : f32 to vector<512x6xf32>
    %16 = arith.maximumf %14, %15 : vector<512x6xf32>
    %17 = arith.truncf %16 : vector<512x6xf32> to vector<512x6xbf16>
    %c0_15 = arith.constant 0 : index
    %c0_16 = arith.constant 0 : index
    %18 = vector.load %arg7[%c0_15, %c0_16] : memref<512x6xbf16, #tpu.memory_space<vmem>>, vector<512x6xbf16>
    tpu.vector_store %arg7[%c0_15, %c0_16], %17 {strides = array<i32>} : memref<512x6xbf16, #tpu.memory_space<vmem>>, vector<512x6xbf16>,
    return
  }
  func.func @transform_0(%arg0: i32) -> (i32, i32) {
    %c0_i32 = arith.constant 0 : i32
    %c0_i32_0 = arith.constant 0 : i32
    return %arg0, %c0_i32 : i32, i32
  }
  func.func @transform_1(%arg0: i32) -> (i32, i32) {
    %c0_i32 = arith.constant 0 : i32
    %c0_i32_0 = arith.constant 0 : i32
    return %arg0, %c0_i32 : i32, i32
  }
  func.func @transform_2(%arg0: i32) -> (i32, i32) {
    %c0_i32 = arith.constant 0 : i32
    %c0_i32_0 = arith.constant 0 : i32
    return %arg0, %c0_i32 : i32, i32
  }
  func.func @transform_3(%arg0: i32) -> (i32, i32) {
    %c0_i32 = arith.constant 0 : i32
    %c0_i32_0 = arith.constant 0 : i32
    return %arg0, %c0_i32 : i32, i32
  }
  func.func @transform_4(%arg0: i32) -> (i32, i32) {
    %c0_i32 = arith.constant 0 : i32
    %c0_i32_0 = arith.constant 0 : i32
    %c0_i32_1 = arith.constant 0 : i32
    return %c0_i32, %c0_i32_0 : i32, i32
  }
  func.func @transform_5(%arg0: i32) -> (i32, i32) {
    %c0_i32 = arith.constant 0 : i32
    %c0_i32_0 = arith.constant 0 : i32
    %c0_i32_1 = arith.constant 0 : i32
    return %c0_i32, %c0_i32_0 : i32, i32
  }
  func.func @transform_6(%arg0: i32) -> (i32, i32) {
    %c0_i32 = arith.constant 0 : i32
    %c0_i32_0 = arith.constant 0 : i32
    return %arg0, %c0_i32 : i32, i32
  }
}

module attributes {stable_mosaic.version = 11 : i64} {
  func.func @_conv2_fc_fused_kernel(%arg0: i32, %arg1: memref<25x8x150xbf16, #tpu.memory_space<vmem>>, %arg2: memref<25x8x150xbf16, #tpu.memory_space<vmem>>, %arg3: memref<25x8x150xbf16, #tpu.memory_space<vmem>>, %arg4: memref<25x8x150xbf16, #tpu.memory_space<vmem>>, %arg5: memref<150x128xbf16, #tpu.memory_space<vmem>>, %arg6: memref<1x128xf32, #tpu.memory_space<vmem>>, %arg7: memref<25x128x128xbf16, #tpu.memory_space<vmem>>, %arg8: memref<1x128xf32, #tpu.memory_space<vmem>>, %arg9: memref<128x128xbf16, #tpu.memory_space<vmem>>, %arg10: memref<1x128xf32, #tpu.memory_space<vmem>>, %arg11: memref<128x31xbf16, #tpu.memory_space<vmem>>, %arg12: memref<1x31xf32, #tpu.memory_space<vmem>>, %arg13: memref<8x31xf32, #tpu.memory_space<vmem>>) attributes {dimension_semantics = [#tpu.dimension_semantics<parallel>], iteration_bounds = array<i64: 1>, scalar_prefetch = 0 : i64, scratch_operands = 0 : i64, tpu.core_type = #tpu.core_type<tc>, window_params = [{transform_indices = @transform_0, window_bounds = array<i64: 25, 8, 150>}, {transform_indices = @transform_1, window_bounds = array<i64: 25, 8, 150>}, {transform_indices = @transform_2, window_bounds = array<i64: 25, 8, 150>}, {transform_indices = @transform_3, window_bounds = array<i64: 25, 8, 150>}, {pipeline_mode = #tpu.pipeline_mode<synchronous>, transform_indices = @transform_4, window_bounds = array<i64: 150, 128>}, {pipeline_mode = #tpu.pipeline_mode<synchronous>, transform_indices = @transform_5, window_bounds = array<i64: 1, 128>}, {pipeline_mode = #tpu.pipeline_mode<synchronous>, transform_indices = @transform_6, window_bounds = array<i64: 25, 128, 128>}, {pipeline_mode = #tpu.pipeline_mode<synchronous>, transform_indices = @transform_7, window_bounds = array<i64: 1, 128>}, {pipeline_mode = #tpu.pipeline_mode<synchronous>, transform_indices = @transform_8, window_bounds = array<i64: 128, 128>}, {pipeline_mode = #tpu.pipeline_mode<synchronous>, transform_indices = @transform_9, window_bounds = array<i64: 1, 128>}, {pipeline_mode = #tpu.pipeline_mode<synchronous>, transform_indices = @transform_10, window_bounds = array<i64: 128, 31>}, {pipeline_mode = #tpu.pipeline_mode<synchronous>, transform_indices = @transform_11, window_bounds = array<i64: 1, 31>}, {transform_indices = @transform_12, window_bounds = array<i64: 8, 31>}]} {
    %c0 = arith.constant 0 : index
    %c0_0 = arith.constant 0 : index
    %0 = vector.load %arg5[%c0, %c0_0] : memref<150x128xbf16, #tpu.memory_space<vmem>>, vector<150x128xbf16>
    %c0_1 = arith.constant 0 : index
    %c0_2 = arith.constant 0 : index
    %1 = vector.load %arg6[%c0_1, %c0_2] : memref<1x128xf32, #tpu.memory_space<vmem>>, vector<1x128xf32>
    %cst = arith.constant 0.000000e+00 : f32
    %2 = vector.broadcast %cst : f32 to vector<8x128xf32>
    %c0_3 = arith.constant 0 : index
    %c0_4 = arith.constant 0 : index
    %c0_5 = arith.constant 0 : index
    %3 = vector.load %arg1[%c0_3, %c0_4, %c0_5] : memref<25x8x150xbf16, #tpu.memory_space<vmem>>, vector<1x8x150xbf16>
    %4 = vector.shape_cast %3 : vector<1x8x150xbf16> to vector<8x150xbf16>
    %cst_6 = arith.constant dense<0.000000e+00> : vector<8x128xf32>
    %5 = tpu.matmul %4, %0, %cst_6 {dimension_numbers = #tpu.dot_dimension_numbers<[1], [0], [0], [1], [0, 0, 1, 1], [], []>} : vector<8x150xbf16>, vector<150x128xbf16>, vector<8x128xf32> -> vector<8x128xf32>
    %c0_7 = arith.constant 0 : index
    %c0_8 = arith.constant 0 : index
    %c0_9 = arith.constant 0 : index
    %6 = vector.load %arg2[%c0_7, %c0_8, %c0_9] : memref<25x8x150xbf16, #tpu.memory_space<vmem>>, vector<1x8x150xbf16>
    %7 = vector.shape_cast %6 : vector<1x8x150xbf16> to vector<8x150xbf16>
    %cst_10 = arith.constant dense<0.000000e+00> : vector<8x128xf32>
    %8 = tpu.matmul %7, %0, %cst_10 {dimension_numbers = #tpu.dot_dimension_numbers<[1], [0], [0], [1], [0, 0, 1, 1], [], []>} : vector<8x150xbf16>, vector<150x128xbf16>, vector<8x128xf32> -> vector<8x128xf32>
    %9 = arith.maximumf %5, %8 : vector<8x128xf32>
    %c0_11 = arith.constant 0 : index
    %c0_12 = arith.constant 0 : index
    %c0_13 = arith.constant 0 : index
    %10 = vector.load %arg3[%c0_11, %c0_12, %c0_13] : memref<25x8x150xbf16, #tpu.memory_space<vmem>>, vector<1x8x150xbf16>
    %11 = vector.shape_cast %10 : vector<1x8x150xbf16> to vector<8x150xbf16>
    %cst_14 = arith.constant dense<0.000000e+00> : vector<8x128xf32>
    %12 = tpu.matmul %11, %0, %cst_14 {dimension_numbers = #tpu.dot_dimension_numbers<[1], [0], [0], [1], [0, 0, 1, 1], [], []>} : vector<8x150xbf16>, vector<150x128xbf16>, vector<8x128xf32> -> vector<8x128xf32>
    %c0_15 = arith.constant 0 : index
    %c0_16 = arith.constant 0 : index
    %c0_17 = arith.constant 0 : index
    %13 = vector.load %arg4[%c0_15, %c0_16, %c0_17] : memref<25x8x150xbf16, #tpu.memory_space<vmem>>, vector<1x8x150xbf16>
    %14 = vector.shape_cast %13 : vector<1x8x150xbf16> to vector<8x150xbf16>
    %cst_18 = arith.constant dense<0.000000e+00> : vector<8x128xf32>
    %15 = tpu.matmul %14, %0, %cst_18 {dimension_numbers = #tpu.dot_dimension_numbers<[1], [0], [0], [1], [0, 0, 1, 1], [], []>} : vector<8x150xbf16>, vector<150x128xbf16>, vector<8x128xf32> -> vector<8x128xf32>
    %16 = arith.maximumf %12, %15 : vector<8x128xf32>
    %17 = arith.maximumf %9, %16 : vector<8x128xf32>
    %18 = vector.broadcast %1 : vector<1x128xf32> to vector<8x128xf32>
    %19 = arith.addf %17, %18 : vector<8x128xf32>
    %cst_19 = arith.constant 0.000000e+00 : f32
    %20 = vector.broadcast %cst_19 : f32 to vector<8x128xf32>
    %21 = arith.maximumf %19, %20 : vector<8x128xf32>
    %22 = arith.truncf %21 : vector<8x128xf32> to vector<8x128xbf16>
    %c0_20 = arith.constant 0 : index
    %c0_21 = arith.constant 0 : index
    %c0_22 = arith.constant 0 : index
    %23 = vector.load %arg7[%c0_20, %c0_21, %c0_22] : memref<25x128x128xbf16, #tpu.memory_space<vmem>>, vector<1x128x128xbf16>
    %24 = vector.shape_cast %23 : vector<1x128x128xbf16> to vector<128x128xbf16>
    %cst_23 = arith.constant dense<0.000000e+00> : vector<8x128xf32>
    %25 = tpu.matmul %22, %24, %cst_23 {dimension_numbers = #tpu.dot_dimension_numbers<[1], [0], [0], [1], [0, 0, 1, 1], [], []>} : vector<8x128xbf16>, vector<128x128xbf16>, vector<8x128xf32> -> vector<8x128xf32>
    %26 = arith.addf %2, %25 : vector<8x128xf32>
    %c1 = arith.constant 1 : index
    %c0_24 = arith.constant 0 : index
    %c0_25 = arith.constant 0 : index
    %27 = vector.load %arg1[%c1, %c0_24, %c0_25] : memref<25x8x150xbf16, #tpu.memory_space<vmem>>, vector<1x8x150xbf16>
    %28 = vector.shape_cast %27 : vector<1x8x150xbf16> to vector<8x150xbf16>
    %cst_26 = arith.constant dense<0.000000e+00> : vector<8x128xf32>
    %29 = tpu.matmul %28, %0, %cst_26 {dimension_numbers = #tpu.dot_dimension_numbers<[1], [0], [0], [1], [0, 0, 1, 1], [], []>} : vector<8x150xbf16>, vector<150x128xbf16>, vector<8x128xf32> -> vector<8x128xf32>
    %c1_27 = arith.constant 1 : index
    %c0_28 = arith.constant 0 : index
    %c0_29 = arith.constant 0 : index
    %30 = vector.load %arg2[%c1_27, %c0_28, %c0_29] : memref<25x8x150xbf16, #tpu.memory_space<vmem>>, vector<1x8x150xbf16>
    %31 = vector.shape_cast %30 : vector<1x8x150xbf16> to vector<8x150xbf16>
    %cst_30 = arith.constant dense<0.000000e+00> : vector<8x128xf32>
    %32 = tpu.matmul %31, %0, %cst_30 {dimension_numbers = #tpu.dot_dimension_numbers<[1], [0], [0], [1], [0, 0, 1, 1], [], []>} : vector<8x150xbf16>, vector<150x128xbf16>, vector<8x128xf32> -> vector<8x128xf32>
    %33 = arith.maximumf %29, %32 : vector<8x128xf32>
    %c1_31 = arith.constant 1 : index
    %c0_32 = arith.constant 0 : index
    %c0_33 = arith.constant 0 : index
    %34 = vector.load %arg3[%c1_31, %c0_32, %c0_33] : memref<25x8x150xbf16, #tpu.memory_space<vmem>>, vector<1x8x150xbf16>
    %35 = vector.shape_cast %34 : vector<1x8x150xbf16> to vector<8x150xbf16>
    %cst_34 = arith.constant dense<0.000000e+00> : vector<8x128xf32>
    %36 = tpu.matmul %35, %0, %cst_34 {dimension_numbers = #tpu.dot_dimension_numbers<[1], [0], [0], [1], [0, 0, 1, 1], [], []>} : vector<8x150xbf16>, vector<150x128xbf16>, vector<8x128xf32> -> vector<8x128xf32>
    %c1_35 = arith.constant 1 : index
    %c0_36 = arith.constant 0 : index
    %c0_37 = arith.constant 0 : index
    %37 = vector.load %arg4[%c1_35, %c0_36, %c0_37] : memref<25x8x150xbf16, #tpu.memory_space<vmem>>, vector<1x8x150xbf16>
    %38 = vector.shape_cast %37 : vector<1x8x150xbf16> to vector<8x150xbf16>
    %cst_38 = arith.constant dense<0.000000e+00> : vector<8x128xf32>
    %39 = tpu.matmul %38, %0, %cst_38 {dimension_numbers = #tpu.dot_dimension_numbers<[1], [0], [0], [1], [0, 0, 1, 1], [], []>} : vector<8x150xbf16>, vector<150x128xbf16>, vector<8x128xf32> -> vector<8x128xf32>
    %40 = arith.maximumf %36, %39 : vector<8x128xf32>
    %41 = arith.maximumf %33, %40 : vector<8x128xf32>
    %42 = vector.broadcast %1 : vector<1x128xf32> to vector<8x128xf32>
    %43 = arith.addf %41, %42 : vector<8x128xf32>
    %cst_39 = arith.constant 0.000000e+00 : f32
    %44 = vector.broadcast %cst_39 : f32 to vector<8x128xf32>
    %45 = arith.maximumf %43, %44 : vector<8x128xf32>
    %46 = arith.truncf %45 : vector<8x128xf32> to vector<8x128xbf16>
    %c1_40 = arith.constant 1 : index
    %c0_41 = arith.constant 0 : index
    %c0_42 = arith.constant 0 : index
    %47 = vector.load %arg7[%c1_40, %c0_41, %c0_42] : memref<25x128x128xbf16, #tpu.memory_space<vmem>>, vector<1x128x128xbf16>
    %48 = vector.shape_cast %47 : vector<1x128x128xbf16> to vector<128x128xbf16>
    %cst_43 = arith.constant dense<0.000000e+00> : vector<8x128xf32>
    %49 = tpu.matmul %46, %48, %cst_43 {dimension_numbers = #tpu.dot_dimension_numbers<[1], [0], [0], [1], [0, 0, 1, 1], [], []>} : vector<8x128xbf16>, vector<128x128xbf16>, vector<8x128xf32> -> vector<8x128xf32>
    %50 = arith.addf %26, %49 : vector<8x128xf32>
    %c2 = arith.constant 2 : index
    %c0_44 = arith.constant 0 : index
    %c0_45 = arith.constant 0 : index
    %51 = vector.load %arg1[%c2, %c0_44, %c0_45] : memref<25x8x150xbf16, #tpu.memory_space<vmem>>, vector<1x8x150xbf16>
    %52 = vector.shape_cast %51 : vector<1x8x150xbf16> to vector<8x150xbf16>
    %cst_46 = arith.constant dense<0.000000e+00> : vector<8x128xf32>
    %53 = tpu.matmul %52, %0, %cst_46 {dimension_numbers = #tpu.dot_dimension_numbers<[1], [0], [0], [1], [0, 0, 1, 1], [], []>} : vector<8x150xbf16>, vector<150x128xbf16>, vector<8x128xf32> -> vector<8x128xf32>
    %c2_47 = arith.constant 2 : index
    %c0_48 = arith.constant 0 : index
    %c0_49 = arith.constant 0 : index
    %54 = vector.load %arg2[%c2_47, %c0_48, %c0_49] : memref<25x8x150xbf16, #tpu.memory_space<vmem>>, vector<1x8x150xbf16>
    %55 = vector.shape_cast %54 : vector<1x8x150xbf16> to vector<8x150xbf16>
    %cst_50 = arith.constant dense<0.000000e+00> : vector<8x128xf32>
    %56 = tpu.matmul %55, %0, %cst_50 {dimension_numbers = #tpu.dot_dimension_numbers<[1], [0], [0], [1], [0, 0, 1, 1], [], []>} : vector<8x150xbf16>, vector<150x128xbf16>, vector<8x128xf32> -> vector<8x128xf32>
    %57 = arith.maximumf %53, %56 : vector<8x128xf32>
    %c2_51 = arith.constant 2 : index
    %c0_52 = arith.constant 0 : index
    %c0_53 = arith.constant 0 : index
    %58 = vector.load %arg3[%c2_51, %c0_52, %c0_53] : memref<25x8x150xbf16, #tpu.memory_space<vmem>>, vector<1x8x150xbf16>
    %59 = vector.shape_cast %58 : vector<1x8x150xbf16> to vector<8x150xbf16>
    %cst_54 = arith.constant dense<0.000000e+00> : vector<8x128xf32>
    %60 = tpu.matmul %59, %0, %cst_54 {dimension_numbers = #tpu.dot_dimension_numbers<[1], [0], [0], [1], [0, 0, 1, 1], [], []>} : vector<8x150xbf16>, vector<150x128xbf16>, vector<8x128xf32> -> vector<8x128xf32>
    %c2_55 = arith.constant 2 : index
    %c0_56 = arith.constant 0 : index
    %c0_57 = arith.constant 0 : index
    %61 = vector.load %arg4[%c2_55, %c0_56, %c0_57] : memref<25x8x150xbf16, #tpu.memory_space<vmem>>, vector<1x8x150xbf16>
    %62 = vector.shape_cast %61 : vector<1x8x150xbf16> to vector<8x150xbf16>
    %cst_58 = arith.constant dense<0.000000e+00> : vector<8x128xf32>
    %63 = tpu.matmul %62, %0, %cst_58 {dimension_numbers = #tpu.dot_dimension_numbers<[1], [0], [0], [1], [0, 0, 1, 1], [], []>} : vector<8x150xbf16>, vector<150x128xbf16>, vector<8x128xf32> -> vector<8x128xf32>
    %64 = arith.maximumf %60, %63 : vector<8x128xf32>
    %65 = arith.maximumf %57, %64 : vector<8x128xf32>
    %66 = vector.broadcast %1 : vector<1x128xf32> to vector<8x128xf32>
    %67 = arith.addf %65, %66 : vector<8x128xf32>
    %cst_59 = arith.constant 0.000000e+00 : f32
    %68 = vector.broadcast %cst_59 : f32 to vector<8x128xf32>
    %69 = arith.maximumf %67, %68 : vector<8x128xf32>
    %70 = arith.truncf %69 : vector<8x128xf32> to vector<8x128xbf16>
    %c2_60 = arith.constant 2 : index
    %c0_61 = arith.constant 0 : index
    %c0_62 = arith.constant 0 : index
    %71 = vector.load %arg7[%c2_60, %c0_61, %c0_62] : memref<25x128x128xbf16, #tpu.memory_space<vmem>>, vector<1x128x128xbf16>
    %72 = vector.shape_cast %71 : vector<1x128x128xbf16> to vector<128x128xbf16>
    %cst_63 = arith.constant dense<0.000000e+00> : vector<8x128xf32>
    %73 = tpu.matmul %70, %72, %cst_63 {dimension_numbers = #tpu.dot_dimension_numbers<[1], [0], [0], [1], [0, 0, 1, 1], [], []>} : vector<8x128xbf16>, vector<128x128xbf16>, vector<8x128xf32> -> vector<8x128xf32>
    %74 = arith.addf %50, %73 : vector<8x128xf32>
    %c3 = arith.constant 3 : index
    %c0_64 = arith.constant 0 : index
    %c0_65 = arith.constant 0 : index
    %75 = vector.load %arg1[%c3, %c0_64, %c0_65] : memref<25x8x150xbf16, #tpu.memory_space<vmem>>, vector<1x8x150xbf16>
    %76 = vector.shape_cast %75 : vector<1x8x150xbf16> to vector<8x150xbf16>
    %cst_66 = arith.constant dense<0.000000e+00> : vector<8x128xf32>
    %77 = tpu.matmul %76, %0, %cst_66 {dimension_numbers = #tpu.dot_dimension_numbers<[1], [0], [0], [1], [0, 0, 1, 1], [], []>} : vector<8x150xbf16>, vector<150x128xbf16>, vector<8x128xf32> -> vector<8x128xf32>
    %c3_67 = arith.constant 3 : index
    %c0_68 = arith.constant 0 : index
    %c0_69 = arith.constant 0 : index
    %78 = vector.load %arg2[%c3_67, %c0_68, %c0_69] : memref<25x8x150xbf16, #tpu.memory_space<vmem>>, vector<1x8x150xbf16>
    %79 = vector.shape_cast %78 : vector<1x8x150xbf16> to vector<8x150xbf16>
    %cst_70 = arith.constant dense<0.000000e+00> : vector<8x128xf32>
    %80 = tpu.matmul %79, %0, %cst_70 {dimension_numbers = #tpu.dot_dimension_numbers<[1], [0], [0], [1], [0, 0, 1, 1], [], []>} : vector<8x150xbf16>, vector<150x128xbf16>, vector<8x128xf32> -> vector<8x128xf32>
    %81 = arith.maximumf %77, %80 : vector<8x128xf32>
    %c3_71 = arith.constant 3 : index
    %c0_72 = arith.constant 0 : index
    %c0_73 = arith.constant 0 : index
    %82 = vector.load %arg3[%c3_71, %c0_72, %c0_73] : memref<25x8x150xbf16, #tpu.memory_space<vmem>>, vector<1x8x150xbf16>
    %83 = vector.shape_cast %82 : vector<1x8x150xbf16> to vector<8x150xbf16>
    %cst_74 = arith.constant dense<0.000000e+00> : vector<8x128xf32>
    %84 = tpu.matmul %83, %0, %cst_74 {dimension_numbers = #tpu.dot_dimension_numbers<[1], [0], [0], [1], [0, 0, 1, 1], [], []>} : vector<8x150xbf16>, vector<150x128xbf16>, vector<8x128xf32> -> vector<8x128xf32>
    %c3_75 = arith.constant 3 : index
    %c0_76 = arith.constant 0 : index
    %c0_77 = arith.constant 0 : index
    %85 = vector.load %arg4[%c3_75, %c0_76, %c0_77] : memref<25x8x150xbf16, #tpu.memory_space<vmem>>, vector<1x8x150xbf16>
    %86 = vector.shape_cast %85 : vector<1x8x150xbf16> to vector<8x150xbf16>
    %cst_78 = arith.constant dense<0.000000e+00> : vector<8x128xf32>
    %87 = tpu.matmul %86, %0, %cst_78 {dimension_numbers = #tpu.dot_dimension_numbers<[1], [0], [0], [1], [0, 0, 1, 1], [], []>} : vector<8x150xbf16>, vector<150x128xbf16>, vector<8x128xf32> -> vector<8x128xf32>
    %88 = arith.maximumf %84, %87 : vector<8x128xf32>
    %89 = arith.maximumf %81, %88 : vector<8x128xf32>
    %90 = vector.broadcast %1 : vector<1x128xf32> to vector<8x128xf32>
    %91 = arith.addf %89, %90 : vector<8x128xf32>
    %cst_79 = arith.constant 0.000000e+00 : f32
    %92 = vector.broadcast %cst_79 : f32 to vector<8x128xf32>
    %93 = arith.maximumf %91, %92 : vector<8x128xf32>
    %94 = arith.truncf %93 : vector<8x128xf32> to vector<8x128xbf16>
    %c3_80 = arith.constant 3 : index
    %c0_81 = arith.constant 0 : index
    %c0_82 = arith.constant 0 : index
    %95 = vector.load %arg7[%c3_80, %c0_81, %c0_82] : memref<25x128x128xbf16, #tpu.memory_space<vmem>>, vector<1x128x128xbf16>
    %96 = vector.shape_cast %95 : vector<1x128x128xbf16> to vector<128x128xbf16>
    %cst_83 = arith.constant dense<0.000000e+00> : vector<8x128xf32>
    %97 = tpu.matmul %94, %96, %cst_83 {dimension_numbers = #tpu.dot_dimension_numbers<[1], [0], [0], [1], [0, 0, 1, 1], [], []>} : vector<8x128xbf16>, vector<128x128xbf16>, vector<8x128xf32> -> vector<8x128xf32>
    %98 = arith.addf %74, %97 : vector<8x128xf32>
    %c4 = arith.constant 4 : index
    %c0_84 = arith.constant 0 : index
    %c0_85 = arith.constant 0 : index
    %99 = vector.load %arg1[%c4, %c0_84, %c0_85] : memref<25x8x150xbf16, #tpu.memory_space<vmem>>, vector<1x8x150xbf16>
    %100 = vector.shape_cast %99 : vector<1x8x150xbf16> to vector<8x150xbf16>
    %cst_86 = arith.constant dense<0.000000e+00> : vector<8x128xf32>
    %101 = tpu.matmul %100, %0, %cst_86 {dimension_numbers = #tpu.dot_dimension_numbers<[1], [0], [0], [1], [0, 0, 1, 1], [], []>} : vector<8x150xbf16>, vector<150x128xbf16>, vector<8x128xf32> -> vector<8x128xf32>
    %c4_87 = arith.constant 4 : index
    %c0_88 = arith.constant 0 : index
    %c0_89 = arith.constant 0 : index
    %102 = vector.load %arg2[%c4_87, %c0_88, %c0_89] : memref<25x8x150xbf16, #tpu.memory_space<vmem>>, vector<1x8x150xbf16>
    %103 = vector.shape_cast %102 : vector<1x8x150xbf16> to vector<8x150xbf16>
    %cst_90 = arith.constant dense<0.000000e+00> : vector<8x128xf32>
    %104 = tpu.matmul %103, %0, %cst_90 {dimension_numbers = #tpu.dot_dimension_numbers<[1], [0], [0], [1], [0, 0, 1, 1], [], []>} : vector<8x150xbf16>, vector<150x128xbf16>, vector<8x128xf32> -> vector<8x128xf32>
    %105 = arith.maximumf %101, %104 : vector<8x128xf32>
    %c4_91 = arith.constant 4 : index
    %c0_92 = arith.constant 0 : index
    %c0_93 = arith.constant 0 : index
    %106 = vector.load %arg3[%c4_91, %c0_92, %c0_93] : memref<25x8x150xbf16, #tpu.memory_space<vmem>>, vector<1x8x150xbf16>
    %107 = vector.shape_cast %106 : vector<1x8x150xbf16> to vector<8x150xbf16>
    %cst_94 = arith.constant dense<0.000000e+00> : vector<8x128xf32>
    %108 = tpu.matmul %107, %0, %cst_94 {dimension_numbers = #tpu.dot_dimension_numbers<[1], [0], [0], [1], [0, 0, 1, 1], [], []>} : vector<8x150xbf16>, vector<150x128xbf16>, vector<8x128xf32> -> vector<8x128xf32>
    %c4_95 = arith.constant 4 : index
    %c0_96 = arith.constant 0 : index
    %c0_97 = arith.constant 0 : index
    %109 = vector.load %arg4[%c4_95, %c0_96, %c0_97] : memref<25x8x150xbf16, #tpu.memory_space<vmem>>, vector<1x8x150xbf16>
    %110 = vector.shape_cast %109 : vector<1x8x150xbf16> to vector<8x150xbf16>
    %cst_98 = arith.constant dense<0.000000e+00> : vector<8x128xf32>
    %111 = tpu.matmul %110, %0, %cst_98 {dimension_numbers = #tpu.dot_dimension_numbers<[1], [0], [0], [1], [0, 0, 1, 1], [], []>} : vector<8x150xbf16>, vector<150x128xbf16>, vector<8x128xf32> -> vector<8x128xf32>
    %112 = arith.maximumf %108, %111 : vector<8x128xf32>
    %113 = arith.maximumf %105, %112 : vector<8x128xf32>
    %114 = vector.broadcast %1 : vector<1x128xf32> to vector<8x128xf32>
    %115 = arith.addf %113, %114 : vector<8x128xf32>
    %cst_99 = arith.constant 0.000000e+00 : f32
    %116 = vector.broadcast %cst_99 : f32 to vector<8x128xf32>
    %117 = arith.maximumf %115, %116 : vector<8x128xf32>
    %118 = arith.truncf %117 : vector<8x128xf32> to vector<8x128xbf16>
    %c4_100 = arith.constant 4 : index
    %c0_101 = arith.constant 0 : index
    %c0_102 = arith.constant 0 : index
    %119 = vector.load %arg7[%c4_100, %c0_101, %c0_102] : memref<25x128x128xbf16, #tpu.memory_space<vmem>>, vector<1x128x128xbf16>
    %120 = vector.shape_cast %119 : vector<1x128x128xbf16> to vector<128x128xbf16>
    %cst_103 = arith.constant dense<0.000000e+00> : vector<8x128xf32>
    %121 = tpu.matmul %118, %120, %cst_103 {dimension_numbers = #tpu.dot_dimension_numbers<[1], [0], [0], [1], [0, 0, 1, 1], [], []>} : vector<8x128xbf16>, vector<128x128xbf16>, vector<8x128xf32> -> vector<8x128xf32>
    %122 = arith.addf %98, %121 : vector<8x128xf32>
    %c5 = arith.constant 5 : index
    %c0_104 = arith.constant 0 : index
    %c0_105 = arith.constant 0 : index
    %123 = vector.load %arg1[%c5, %c0_104, %c0_105] : memref<25x8x150xbf16, #tpu.memory_space<vmem>>, vector<1x8x150xbf16>
    %124 = vector.shape_cast %123 : vector<1x8x150xbf16> to vector<8x150xbf16>
    %cst_106 = arith.constant dense<0.000000e+00> : vector<8x128xf32>
    %125 = tpu.matmul %124, %0, %cst_106 {dimension_numbers = #tpu.dot_dimension_numbers<[1], [0], [0], [1], [0, 0, 1, 1], [], []>} : vector<8x150xbf16>, vector<150x128xbf16>, vector<8x128xf32> -> vector<8x128xf32>
    %c5_107 = arith.constant 5 : index
    %c0_108 = arith.constant 0 : index
    %c0_109 = arith.constant 0 : index
    %126 = vector.load %arg2[%c5_107, %c0_108, %c0_109] : memref<25x8x150xbf16, #tpu.memory_space<vmem>>, vector<1x8x150xbf16>
    %127 = vector.shape_cast %126 : vector<1x8x150xbf16> to vector<8x150xbf16>
    %cst_110 = arith.constant dense<0.000000e+00> : vector<8x128xf32>
    %128 = tpu.matmul %127, %0, %cst_110 {dimension_numbers = #tpu.dot_dimension_numbers<[1], [0], [0], [1], [0, 0, 1, 1], [], []>} : vector<8x150xbf16>, vector<150x128xbf16>, vector<8x128xf32> -> vector<8x128xf32>
    %129 = arith.maximumf %125, %128 : vector<8x128xf32>
    %c5_111 = arith.constant 5 : index
    %c0_112 = arith.constant 0 : index
    %c0_113 = arith.constant 0 : index
    %130 = vector.load %arg3[%c5_111, %c0_112, %c0_113] : memref<25x8x150xbf16, #tpu.memory_space<vmem>>, vector<1x8x150xbf16>
    %131 = vector.shape_cast %130 : vector<1x8x150xbf16> to vector<8x150xbf16>
    %cst_114 = arith.constant dense<0.000000e+00> : vector<8x128xf32>
    %132 = tpu.matmul %131, %0, %cst_114 {dimension_numbers = #tpu.dot_dimension_numbers<[1], [0], [0], [1], [0, 0, 1, 1], [], []>} : vector<8x150xbf16>, vector<150x128xbf16>, vector<8x128xf32> -> vector<8x128xf32>
    %c5_115 = arith.constant 5 : index
    %c0_116 = arith.constant 0 : index
    %c0_117 = arith.constant 0 : index
    %133 = vector.load %arg4[%c5_115, %c0_116, %c0_117] : memref<25x8x150xbf16, #tpu.memory_space<vmem>>, vector<1x8x150xbf16>
    %134 = vector.shape_cast %133 : vector<1x8x150xbf16> to vector<8x150xbf16>
    %cst_118 = arith.constant dense<0.000000e+00> : vector<8x128xf32>
    %135 = tpu.matmul %134, %0, %cst_118 {dimension_numbers = #tpu.dot_dimension_numbers<[1], [0], [0], [1], [0, 0, 1, 1], [], []>} : vector<8x150xbf16>, vector<150x128xbf16>, vector<8x128xf32> -> vector<8x128xf32>
    %136 = arith.maximumf %132, %135 : vector<8x128xf32>
    %137 = arith.maximumf %129, %136 : vector<8x128xf32>
    %138 = vector.broadcast %1 : vector<1x128xf32> to vector<8x128xf32>
    %139 = arith.addf %137, %138 : vector<8x128xf32>
    %cst_119 = arith.constant 0.000000e+00 : f32
    %140 = vector.broadcast %cst_119 : f32 to vector<8x128xf32>
    %141 = arith.maximumf %139, %140 : vector<8x128xf32>
    %142 = arith.truncf %141 : vector<8x128xf32> to vector<8x128xbf16>
    %c5_120 = arith.constant 5 : index
    %c0_121 = arith.constant 0 : index
    %c0_122 = arith.constant 0 : index
    %143 = vector.load %arg7[%c5_120, %c0_121, %c0_122] : memref<25x128x128xbf16, #tpu.memory_space<vmem>>, vector<1x128x128xbf16>
    %144 = vector.shape_cast %143 : vector<1x128x128xbf16> to vector<128x128xbf16>
    %cst_123 = arith.constant dense<0.000000e+00> : vector<8x128xf32>
    %145 = tpu.matmul %142, %144, %cst_123 {dimension_numbers = #tpu.dot_dimension_numbers<[1], [0], [0], [1], [0, 0, 1, 1], [], []>} : vector<8x128xbf16>, vector<128x128xbf16>, vector<8x128xf32> -> vector<8x128xf32>
    %146 = arith.addf %122, %145 : vector<8x128xf32>
    %c6 = arith.constant 6 : index
    %c0_124 = arith.constant 0 : index
    %c0_125 = arith.constant 0 : index
    %147 = vector.load %arg1[%c6, %c0_124, %c0_125] : memref<25x8x150xbf16, #tpu.memory_space<vmem>>, vector<1x8x150xbf16>
    %148 = vector.shape_cast %147 : vector<1x8x150xbf16> to vector<8x150xbf16>
    %cst_126 = arith.constant dense<0.000000e+00> : vector<8x128xf32>
    %149 = tpu.matmul %148, %0, %cst_126 {dimension_numbers = #tpu.dot_dimension_numbers<[1], [0], [0], [1], [0, 0, 1, 1], [], []>} : vector<8x150xbf16>, vector<150x128xbf16>, vector<8x128xf32> -> vector<8x128xf32>
    %c6_127 = arith.constant 6 : index
    %c0_128 = arith.constant 0 : index
    %c0_129 = arith.constant 0 : index
    %150 = vector.load %arg2[%c6_127, %c0_128, %c0_129] : memref<25x8x150xbf16, #tpu.memory_space<vmem>>, vector<1x8x150xbf16>
    %151 = vector.shape_cast %150 : vector<1x8x150xbf16> to vector<8x150xbf16>
    %cst_130 = arith.constant dense<0.000000e+00> : vector<8x128xf32>
    %152 = tpu.matmul %151, %0, %cst_130 {dimension_numbers = #tpu.dot_dimension_numbers<[1], [0], [0], [1], [0, 0, 1, 1], [], []>} : vector<8x150xbf16>, vector<150x128xbf16>, vector<8x128xf32> -> vector<8x128xf32>
    %153 = arith.maximumf %149, %152 : vector<8x128xf32>
    %c6_131 = arith.constant 6 : index
    %c0_132 = arith.constant 0 : index
    %c0_133 = arith.constant 0 : index
    %154 = vector.load %arg3[%c6_131, %c0_132, %c0_133] : memref<25x8x150xbf16, #tpu.memory_space<vmem>>, vector<1x8x150xbf16>
    %155 = vector.shape_cast %154 : vector<1x8x150xbf16> to vector<8x150xbf16>
    %cst_134 = arith.constant dense<0.000000e+00> : vector<8x128xf32>
    %156 = tpu.matmul %155, %0, %cst_134 {dimension_numbers = #tpu.dot_dimension_numbers<[1], [0], [0], [1], [0, 0, 1, 1], [], []>} : vector<8x150xbf16>, vector<150x128xbf16>, vector<8x128xf32> -> vector<8x128xf32>
    %c6_135 = arith.constant 6 : index
    %c0_136 = arith.constant 0 : index
    %c0_137 = arith.constant 0 : index
    %157 = vector.load %arg4[%c6_135, %c0_136, %c0_137] : memref<25x8x150xbf16, #tpu.memory_space<vmem>>, vector<1x8x150xbf16>
    %158 = vector.shape_cast %157 : vector<1x8x150xbf16> to vector<8x150xbf16>
    %cst_138 = arith.constant dense<0.000000e+00> : vector<8x128xf32>
    %159 = tpu.matmul %158, %0, %cst_138 {dimension_numbers = #tpu.dot_dimension_numbers<[1], [0], [0], [1], [0, 0, 1, 1], [], []>} : vector<8x150xbf16>, vector<150x128xbf16>, vector<8x128xf32> -> vector<8x128xf32>
    %160 = arith.maximumf %156, %159 : vector<8x128xf32>
    %161 = arith.maximumf %153, %160 : vector<8x128xf32>
    %162 = vector.broadcast %1 : vector<1x128xf32> to vector<8x128xf32>
    %163 = arith.addf %161, %162 : vector<8x128xf32>
    %cst_139 = arith.constant 0.000000e+00 : f32
    %164 = vector.broadcast %cst_139 : f32 to vector<8x128xf32>
    %165 = arith.maximumf %163, %164 : vector<8x128xf32>
    %166 = arith.truncf %165 : vector<8x128xf32> to vector<8x128xbf16>
    %c6_140 = arith.constant 6 : index
    %c0_141 = arith.constant 0 : index
    %c0_142 = arith.constant 0 : index
    %167 = vector.load %arg7[%c6_140, %c0_141, %c0_142] : memref<25x128x128xbf16, #tpu.memory_space<vmem>>, vector<1x128x128xbf16>
    %168 = vector.shape_cast %167 : vector<1x128x128xbf16> to vector<128x128xbf16>
    %cst_143 = arith.constant dense<0.000000e+00> : vector<8x128xf32>
    %169 = tpu.matmul %166, %168, %cst_143 {dimension_numbers = #tpu.dot_dimension_numbers<[1], [0], [0], [1], [0, 0, 1, 1], [], []>} : vector<8x128xbf16>, vector<128x128xbf16>, vector<8x128xf32> -> vector<8x128xf32>
    %170 = arith.addf %146, %169 : vector<8x128xf32>
    %c7 = arith.constant 7 : index
    %c0_144 = arith.constant 0 : index
    %c0_145 = arith.constant 0 : index
    %171 = vector.load %arg1[%c7, %c0_144, %c0_145] : memref<25x8x150xbf16, #tpu.memory_space<vmem>>, vector<1x8x150xbf16>
    %172 = vector.shape_cast %171 : vector<1x8x150xbf16> to vector<8x150xbf16>
    %cst_146 = arith.constant dense<0.000000e+00> : vector<8x128xf32>
    %173 = tpu.matmul %172, %0, %cst_146 {dimension_numbers = #tpu.dot_dimension_numbers<[1], [0], [0], [1], [0, 0, 1, 1], [], []>} : vector<8x150xbf16>, vector<150x128xbf16>, vector<8x128xf32> -> vector<8x128xf32>
    %c7_147 = arith.constant 7 : index
    %c0_148 = arith.constant 0 : index
    %c0_149 = arith.constant 0 : index
    %174 = vector.load %arg2[%c7_147, %c0_148, %c0_149] : memref<25x8x150xbf16, #tpu.memory_space<vmem>>, vector<1x8x150xbf16>
    %175 = vector.shape_cast %174 : vector<1x8x150xbf16> to vector<8x150xbf16>
    %cst_150 = arith.constant dense<0.000000e+00> : vector<8x128xf32>
    %176 = tpu.matmul %175, %0, %cst_150 {dimension_numbers = #tpu.dot_dimension_numbers<[1], [0], [0], [1], [0, 0, 1, 1], [], []>} : vector<8x150xbf16>, vector<150x128xbf16>, vector<8x128xf32> -> vector<8x128xf32>
    %177 = arith.maximumf %173, %176 : vector<8x128xf32>
    %c7_151 = arith.constant 7 : index
    %c0_152 = arith.constant 0 : index
    %c0_153 = arith.constant 0 : index
    %178 = vector.load %arg3[%c7_151, %c0_152, %c0_153] : memref<25x8x150xbf16, #tpu.memory_space<vmem>>, vector<1x8x150xbf16>
    %179 = vector.shape_cast %178 : vector<1x8x150xbf16> to vector<8x150xbf16>
    %cst_154 = arith.constant dense<0.000000e+00> : vector<8x128xf32>
    %180 = tpu.matmul %179, %0, %cst_154 {dimension_numbers = #tpu.dot_dimension_numbers<[1], [0], [0], [1], [0, 0, 1, 1], [], []>} : vector<8x150xbf16>, vector<150x128xbf16>, vector<8x128xf32> -> vector<8x128xf32>
    %c7_155 = arith.constant 7 : index
    %c0_156 = arith.constant 0 : index
    %c0_157 = arith.constant 0 : index
    %181 = vector.load %arg4[%c7_155, %c0_156, %c0_157] : memref<25x8x150xbf16, #tpu.memory_space<vmem>>, vector<1x8x150xbf16>
    %182 = vector.shape_cast %181 : vector<1x8x150xbf16> to vector<8x150xbf16>
    %cst_158 = arith.constant dense<0.000000e+00> : vector<8x128xf32>
    %183 = tpu.matmul %182, %0, %cst_158 {dimension_numbers = #tpu.dot_dimension_numbers<[1], [0], [0], [1], [0, 0, 1, 1], [], []>} : vector<8x150xbf16>, vector<150x128xbf16>, vector<8x128xf32> -> vector<8x128xf32>
    %184 = arith.maximumf %180, %183 : vector<8x128xf32>
    %185 = arith.maximumf %177, %184 : vector<8x128xf32>
    %186 = vector.broadcast %1 : vector<1x128xf32> to vector<8x128xf32>
    %187 = arith.addf %185, %186 : vector<8x128xf32>
    %cst_159 = arith.constant 0.000000e+00 : f32
    %188 = vector.broadcast %cst_159 : f32 to vector<8x128xf32>
    %189 = arith.maximumf %187, %188 : vector<8x128xf32>
    %190 = arith.truncf %189 : vector<8x128xf32> to vector<8x128xbf16>
    %c7_160 = arith.constant 7 : index
    %c0_161 = arith.constant 0 : index
    %c0_162 = arith.constant 0 : index
    %191 = vector.load %arg7[%c7_160, %c0_161, %c0_162] : memref<25x128x128xbf16, #tpu.memory_space<vmem>>, vector<1x128x128xbf16>
    %192 = vector.shape_cast %191 : vector<1x128x128xbf16> to vector<128x128xbf16>
    %cst_163 = arith.constant dense<0.000000e+00> : vector<8x128xf32>
    %193 = tpu.matmul %190, %192, %cst_163 {dimension_numbers = #tpu.dot_dimension_numbers<[1], [0], [0], [1], [0, 0, 1, 1], [], []>} : vector<8x128xbf16>, vector<128x128xbf16>, vector<8x128xf32> -> vector<8x128xf32>
    %194 = arith.addf %170, %193 : vector<8x128xf32>
    %c8 = arith.constant 8 : index
    %c0_164 = arith.constant 0 : index
    %c0_165 = arith.constant 0 : index
    %195 = vector.load %arg1[%c8, %c0_164, %c0_165] : memref<25x8x150xbf16, #tpu.memory_space<vmem>>, vector<1x8x150xbf16>
    %196 = vector.shape_cast %195 : vector<1x8x150xbf16> to vector<8x150xbf16>
    %cst_166 = arith.constant dense<0.000000e+00> : vector<8x128xf32>
    %197 = tpu.matmul %196, %0, %cst_166 {dimension_numbers = #tpu.dot_dimension_numbers<[1], [0], [0], [1], [0, 0, 1, 1], [], []>} : vector<8x150xbf16>, vector<150x128xbf16>, vector<8x128xf32> -> vector<8x128xf32>
    %c8_167 = arith.constant 8 : index
    %c0_168 = arith.constant 0 : index
    %c0_169 = arith.constant 0 : index
    %198 = vector.load %arg2[%c8_167, %c0_168, %c0_169] : memref<25x8x150xbf16, #tpu.memory_space<vmem>>, vector<1x8x150xbf16>
    %199 = vector.shape_cast %198 : vector<1x8x150xbf16> to vector<8x150xbf16>
    %cst_170 = arith.constant dense<0.000000e+00> : vector<8x128xf32>
    %200 = tpu.matmul %199, %0, %cst_170 {dimension_numbers = #tpu.dot_dimension_numbers<[1], [0], [0], [1], [0, 0, 1, 1], [], []>} : vector<8x150xbf16>, vector<150x128xbf16>, vector<8x128xf32> -> vector<8x128xf32>
    %201 = arith.maximumf %197, %200 : vector<8x128xf32>
    %c8_171 = arith.constant 8 : index
    %c0_172 = arith.constant 0 : index
    %c0_173 = arith.constant 0 : index
    %202 = vector.load %arg3[%c8_171, %c0_172, %c0_173] : memref<25x8x150xbf16, #tpu.memory_space<vmem>>, vector<1x8x150xbf16>
    %203 = vector.shape_cast %202 : vector<1x8x150xbf16> to vector<8x150xbf16>
    %cst_174 = arith.constant dense<0.000000e+00> : vector<8x128xf32>
    %204 = tpu.matmul %203, %0, %cst_174 {dimension_numbers = #tpu.dot_dimension_numbers<[1], [0], [0], [1], [0, 0, 1, 1], [], []>} : vector<8x150xbf16>, vector<150x128xbf16>, vector<8x128xf32> -> vector<8x128xf32>
    %c8_175 = arith.constant 8 : index
    %c0_176 = arith.constant 0 : index
    %c0_177 = arith.constant 0 : index
    %205 = vector.load %arg4[%c8_175, %c0_176, %c0_177] : memref<25x8x150xbf16, #tpu.memory_space<vmem>>, vector<1x8x150xbf16>
    %206 = vector.shape_cast %205 : vector<1x8x150xbf16> to vector<8x150xbf16>
    %cst_178 = arith.constant dense<0.000000e+00> : vector<8x128xf32>
    %207 = tpu.matmul %206, %0, %cst_178 {dimension_numbers = #tpu.dot_dimension_numbers<[1], [0], [0], [1], [0, 0, 1, 1], [], []>} : vector<8x150xbf16>, vector<150x128xbf16>, vector<8x128xf32> -> vector<8x128xf32>
    %208 = arith.maximumf %204, %207 : vector<8x128xf32>
    %209 = arith.maximumf %201, %208 : vector<8x128xf32>
    %210 = vector.broadcast %1 : vector<1x128xf32> to vector<8x128xf32>
    %211 = arith.addf %209, %210 : vector<8x128xf32>
    %cst_179 = arith.constant 0.000000e+00 : f32
    %212 = vector.broadcast %cst_179 : f32 to vector<8x128xf32>
    %213 = arith.maximumf %211, %212 : vector<8x128xf32>
    %214 = arith.truncf %213 : vector<8x128xf32> to vector<8x128xbf16>
    %c8_180 = arith.constant 8 : index
    %c0_181 = arith.constant 0 : index
    %c0_182 = arith.constant 0 : index
    %215 = vector.load %arg7[%c8_180, %c0_181, %c0_182] : memref<25x128x128xbf16, #tpu.memory_space<vmem>>, vector<1x128x128xbf16>
    %216 = vector.shape_cast %215 : vector<1x128x128xbf16> to vector<128x128xbf16>
    %cst_183 = arith.constant dense<0.000000e+00> : vector<8x128xf32>
    %217 = tpu.matmul %214, %216, %cst_183 {dimension_numbers = #tpu.dot_dimension_numbers<[1], [0], [0], [1], [0, 0, 1, 1], [], []>} : vector<8x128xbf16>, vector<128x128xbf16>, vector<8x128xf32> -> vector<8x128xf32>
    %218 = arith.addf %194, %217 : vector<8x128xf32>
    %c9 = arith.constant 9 : index
    %c0_184 = arith.constant 0 : index
    %c0_185 = arith.constant 0 : index
    %219 = vector.load %arg1[%c9, %c0_184, %c0_185] : memref<25x8x150xbf16, #tpu.memory_space<vmem>>, vector<1x8x150xbf16>
    %220 = vector.shape_cast %219 : vector<1x8x150xbf16> to vector<8x150xbf16>
    %cst_186 = arith.constant dense<0.000000e+00> : vector<8x128xf32>
    %221 = tpu.matmul %220, %0, %cst_186 {dimension_numbers = #tpu.dot_dimension_numbers<[1], [0], [0], [1], [0, 0, 1, 1], [], []>} : vector<8x150xbf16>, vector<150x128xbf16>, vector<8x128xf32> -> vector<8x128xf32>
    %c9_187 = arith.constant 9 : index
    %c0_188 = arith.constant 0 : index
    %c0_189 = arith.constant 0 : index
    %222 = vector.load %arg2[%c9_187, %c0_188, %c0_189] : memref<25x8x150xbf16, #tpu.memory_space<vmem>>, vector<1x8x150xbf16>
    %223 = vector.shape_cast %222 : vector<1x8x150xbf16> to vector<8x150xbf16>
    %cst_190 = arith.constant dense<0.000000e+00> : vector<8x128xf32>
    %224 = tpu.matmul %223, %0, %cst_190 {dimension_numbers = #tpu.dot_dimension_numbers<[1], [0], [0], [1], [0, 0, 1, 1], [], []>} : vector<8x150xbf16>, vector<150x128xbf16>, vector<8x128xf32> -> vector<8x128xf32>
    %225 = arith.maximumf %221, %224 : vector<8x128xf32>
    %c9_191 = arith.constant 9 : index
    %c0_192 = arith.constant 0 : index
    %c0_193 = arith.constant 0 : index
    %226 = vector.load %arg3[%c9_191, %c0_192, %c0_193] : memref<25x8x150xbf16, #tpu.memory_space<vmem>>, vector<1x8x150xbf16>
    %227 = vector.shape_cast %226 : vector<1x8x150xbf16> to vector<8x150xbf16>
    %cst_194 = arith.constant dense<0.000000e+00> : vector<8x128xf32>
    %228 = tpu.matmul %227, %0, %cst_194 {dimension_numbers = #tpu.dot_dimension_numbers<[1], [0], [0], [1], [0, 0, 1, 1], [], []>} : vector<8x150xbf16>, vector<150x128xbf16>, vector<8x128xf32> -> vector<8x128xf32>
    %c9_195 = arith.constant 9 : index
    %c0_196 = arith.constant 0 : index
    %c0_197 = arith.constant 0 : index
    %229 = vector.load %arg4[%c9_195, %c0_196, %c0_197] : memref<25x8x150xbf16, #tpu.memory_space<vmem>>, vector<1x8x150xbf16>
    %230 = vector.shape_cast %229 : vector<1x8x150xbf16> to vector<8x150xbf16>
    %cst_198 = arith.constant dense<0.000000e+00> : vector<8x128xf32>
    %231 = tpu.matmul %230, %0, %cst_198 {dimension_numbers = #tpu.dot_dimension_numbers<[1], [0], [0], [1], [0, 0, 1, 1], [], []>} : vector<8x150xbf16>, vector<150x128xbf16>, vector<8x128xf32> -> vector<8x128xf32>
    %232 = arith.maximumf %228, %231 : vector<8x128xf32>
    %233 = arith.maximumf %225, %232 : vector<8x128xf32>
    %234 = vector.broadcast %1 : vector<1x128xf32> to vector<8x128xf32>
    %235 = arith.addf %233, %234 : vector<8x128xf32>
    %cst_199 = arith.constant 0.000000e+00 : f32
    %236 = vector.broadcast %cst_199 : f32 to vector<8x128xf32>
    %237 = arith.maximumf %235, %236 : vector<8x128xf32>
    %238 = arith.truncf %237 : vector<8x128xf32> to vector<8x128xbf16>
    %c9_200 = arith.constant 9 : index
    %c0_201 = arith.constant 0 : index
    %c0_202 = arith.constant 0 : index
    %239 = vector.load %arg7[%c9_200, %c0_201, %c0_202] : memref<25x128x128xbf16, #tpu.memory_space<vmem>>, vector<1x128x128xbf16>
    %240 = vector.shape_cast %239 : vector<1x128x128xbf16> to vector<128x128xbf16>
    %cst_203 = arith.constant dense<0.000000e+00> : vector<8x128xf32>
    %241 = tpu.matmul %238, %240, %cst_203 {dimension_numbers = #tpu.dot_dimension_numbers<[1], [0], [0], [1], [0, 0, 1, 1], [], []>} : vector<8x128xbf16>, vector<128x128xbf16>, vector<8x128xf32> -> vector<8x128xf32>
    %242 = arith.addf %218, %241 : vector<8x128xf32>
    %c10 = arith.constant 10 : index
    %c0_204 = arith.constant 0 : index
    %c0_205 = arith.constant 0 : index
    %243 = vector.load %arg1[%c10, %c0_204, %c0_205] : memref<25x8x150xbf16, #tpu.memory_space<vmem>>, vector<1x8x150xbf16>
    %244 = vector.shape_cast %243 : vector<1x8x150xbf16> to vector<8x150xbf16>
    %cst_206 = arith.constant dense<0.000000e+00> : vector<8x128xf32>
    %245 = tpu.matmul %244, %0, %cst_206 {dimension_numbers = #tpu.dot_dimension_numbers<[1], [0], [0], [1], [0, 0, 1, 1], [], []>} : vector<8x150xbf16>, vector<150x128xbf16>, vector<8x128xf32> -> vector<8x128xf32>
    %c10_207 = arith.constant 10 : index
    %c0_208 = arith.constant 0 : index
    %c0_209 = arith.constant 0 : index
    %246 = vector.load %arg2[%c10_207, %c0_208, %c0_209] : memref<25x8x150xbf16, #tpu.memory_space<vmem>>, vector<1x8x150xbf16>
    %247 = vector.shape_cast %246 : vector<1x8x150xbf16> to vector<8x150xbf16>
    %cst_210 = arith.constant dense<0.000000e+00> : vector<8x128xf32>
    %248 = tpu.matmul %247, %0, %cst_210 {dimension_numbers = #tpu.dot_dimension_numbers<[1], [0], [0], [1], [0, 0, 1, 1], [], []>} : vector<8x150xbf16>, vector<150x128xbf16>, vector<8x128xf32> -> vector<8x128xf32>
    %249 = arith.maximumf %245, %248 : vector<8x128xf32>
    %c10_211 = arith.constant 10 : index
    %c0_212 = arith.constant 0 : index
    %c0_213 = arith.constant 0 : index
    %250 = vector.load %arg3[%c10_211, %c0_212, %c0_213] : memref<25x8x150xbf16, #tpu.memory_space<vmem>>, vector<1x8x150xbf16>
    %251 = vector.shape_cast %250 : vector<1x8x150xbf16> to vector<8x150xbf16>
    %cst_214 = arith.constant dense<0.000000e+00> : vector<8x128xf32>
    %252 = tpu.matmul %251, %0, %cst_214 {dimension_numbers = #tpu.dot_dimension_numbers<[1], [0], [0], [1], [0, 0, 1, 1], [], []>} : vector<8x150xbf16>, vector<150x128xbf16>, vector<8x128xf32> -> vector<8x128xf32>
    %c10_215 = arith.constant 10 : index
    %c0_216 = arith.constant 0 : index
    %c0_217 = arith.constant 0 : index
    %253 = vector.load %arg4[%c10_215, %c0_216, %c0_217] : memref<25x8x150xbf16, #tpu.memory_space<vmem>>, vector<1x8x150xbf16>
    %254 = vector.shape_cast %253 : vector<1x8x150xbf16> to vector<8x150xbf16>
    %cst_218 = arith.constant dense<0.000000e+00> : vector<8x128xf32>
    %255 = tpu.matmul %254, %0, %cst_218 {dimension_numbers = #tpu.dot_dimension_numbers<[1], [0], [0], [1], [0, 0, 1, 1], [], []>} : vector<8x150xbf16>, vector<150x128xbf16>, vector<8x128xf32> -> vector<8x128xf32>
    %256 = arith.maximumf %252, %255 : vector<8x128xf32>
    %257 = arith.maximumf %249, %256 : vector<8x128xf32>
    %258 = vector.broadcast %1 : vector<1x128xf32> to vector<8x128xf32>
    %259 = arith.addf %257, %258 : vector<8x128xf32>
    %cst_219 = arith.constant 0.000000e+00 : f32
    %260 = vector.broadcast %cst_219 : f32 to vector<8x128xf32>
    %261 = arith.maximumf %259, %260 : vector<8x128xf32>
    %262 = arith.truncf %261 : vector<8x128xf32> to vector<8x128xbf16>
    %c10_220 = arith.constant 10 : index
    %c0_221 = arith.constant 0 : index
    %c0_222 = arith.constant 0 : index
    %263 = vector.load %arg7[%c10_220, %c0_221, %c0_222] : memref<25x128x128xbf16, #tpu.memory_space<vmem>>, vector<1x128x128xbf16>
    %264 = vector.shape_cast %263 : vector<1x128x128xbf16> to vector<128x128xbf16>
    %cst_223 = arith.constant dense<0.000000e+00> : vector<8x128xf32>
    %265 = tpu.matmul %262, %264, %cst_223 {dimension_numbers = #tpu.dot_dimension_numbers<[1], [0], [0], [1], [0, 0, 1, 1], [], []>} : vector<8x128xbf16>, vector<128x128xbf16>, vector<8x128xf32> -> vector<8x128xf32>
    %266 = arith.addf %242, %265 : vector<8x128xf32>
    %c11 = arith.constant 11 : index
    %c0_224 = arith.constant 0 : index
    %c0_225 = arith.constant 0 : index
    %267 = vector.load %arg1[%c11, %c0_224, %c0_225] : memref<25x8x150xbf16, #tpu.memory_space<vmem>>, vector<1x8x150xbf16>
    %268 = vector.shape_cast %267 : vector<1x8x150xbf16> to vector<8x150xbf16>
    %cst_226 = arith.constant dense<0.000000e+00> : vector<8x128xf32>
    %269 = tpu.matmul %268, %0, %cst_226 {dimension_numbers = #tpu.dot_dimension_numbers<[1], [0], [0], [1], [0, 0, 1, 1], [], []>} : vector<8x150xbf16>, vector<150x128xbf16>, vector<8x128xf32> -> vector<8x128xf32>
    %c11_227 = arith.constant 11 : index
    %c0_228 = arith.constant 0 : index
    %c0_229 = arith.constant 0 : index
    %270 = vector.load %arg2[%c11_227, %c0_228, %c0_229] : memref<25x8x150xbf16, #tpu.memory_space<vmem>>, vector<1x8x150xbf16>
    %271 = vector.shape_cast %270 : vector<1x8x150xbf16> to vector<8x150xbf16>
    %cst_230 = arith.constant dense<0.000000e+00> : vector<8x128xf32>
    %272 = tpu.matmul %271, %0, %cst_230 {dimension_numbers = #tpu.dot_dimension_numbers<[1], [0], [0], [1], [0, 0, 1, 1], [], []>} : vector<8x150xbf16>, vector<150x128xbf16>, vector<8x128xf32> -> vector<8x128xf32>
    %273 = arith.maximumf %269, %272 : vector<8x128xf32>
    %c11_231 = arith.constant 11 : index
    %c0_232 = arith.constant 0 : index
    %c0_233 = arith.constant 0 : index
    %274 = vector.load %arg3[%c11_231, %c0_232, %c0_233] : memref<25x8x150xbf16, #tpu.memory_space<vmem>>, vector<1x8x150xbf16>
    %275 = vector.shape_cast %274 : vector<1x8x150xbf16> to vector<8x150xbf16>
    %cst_234 = arith.constant dense<0.000000e+00> : vector<8x128xf32>
    %276 = tpu.matmul %275, %0, %cst_234 {dimension_numbers = #tpu.dot_dimension_numbers<[1], [0], [0], [1], [0, 0, 1, 1], [], []>} : vector<8x150xbf16>, vector<150x128xbf16>, vector<8x128xf32> -> vector<8x128xf32>
    %c11_235 = arith.constant 11 : index
    %c0_236 = arith.constant 0 : index
    %c0_237 = arith.constant 0 : index
    %277 = vector.load %arg4[%c11_235, %c0_236, %c0_237] : memref<25x8x150xbf16, #tpu.memory_space<vmem>>, vector<1x8x150xbf16>
    %278 = vector.shape_cast %277 : vector<1x8x150xbf16> to vector<8x150xbf16>
    %cst_238 = arith.constant dense<0.000000e+00> : vector<8x128xf32>
    %279 = tpu.matmul %278, %0, %cst_238 {dimension_numbers = #tpu.dot_dimension_numbers<[1], [0], [0], [1], [0, 0, 1, 1], [], []>} : vector<8x150xbf16>, vector<150x128xbf16>, vector<8x128xf32> -> vector<8x128xf32>
    %280 = arith.maximumf %276, %279 : vector<8x128xf32>
    %281 = arith.maximumf %273, %280 : vector<8x128xf32>
    %282 = vector.broadcast %1 : vector<1x128xf32> to vector<8x128xf32>
    %283 = arith.addf %281, %282 : vector<8x128xf32>
    %cst_239 = arith.constant 0.000000e+00 : f32
    %284 = vector.broadcast %cst_239 : f32 to vector<8x128xf32>
    %285 = arith.maximumf %283, %284 : vector<8x128xf32>
    %286 = arith.truncf %285 : vector<8x128xf32> to vector<8x128xbf16>
    %c11_240 = arith.constant 11 : index
    %c0_241 = arith.constant 0 : index
    %c0_242 = arith.constant 0 : index
    %287 = vector.load %arg7[%c11_240, %c0_241, %c0_242] : memref<25x128x128xbf16, #tpu.memory_space<vmem>>, vector<1x128x128xbf16>
    %288 = vector.shape_cast %287 : vector<1x128x128xbf16> to vector<128x128xbf16>
    %cst_243 = arith.constant dense<0.000000e+00> : vector<8x128xf32>
    %289 = tpu.matmul %286, %288, %cst_243 {dimension_numbers = #tpu.dot_dimension_numbers<[1], [0], [0], [1], [0, 0, 1, 1], [], []>} : vector<8x128xbf16>, vector<128x128xbf16>, vector<8x128xf32> -> vector<8x128xf32>
    %290 = arith.addf %266, %289 : vector<8x128xf32>
    %c12 = arith.constant 12 : index
    %c0_244 = arith.constant 0 : index
    %c0_245 = arith.constant 0 : index
    %291 = vector.load %arg1[%c12, %c0_244, %c0_245] : memref<25x8x150xbf16, #tpu.memory_space<vmem>>, vector<1x8x150xbf16>
    %292 = vector.shape_cast %291 : vector<1x8x150xbf16> to vector<8x150xbf16>
    %cst_246 = arith.constant dense<0.000000e+00> : vector<8x128xf32>
    %293 = tpu.matmul %292, %0, %cst_246 {dimension_numbers = #tpu.dot_dimension_numbers<[1], [0], [0], [1], [0, 0, 1, 1], [], []>} : vector<8x150xbf16>, vector<150x128xbf16>, vector<8x128xf32> -> vector<8x128xf32>
    %c12_247 = arith.constant 12 : index
    %c0_248 = arith.constant 0 : index
    %c0_249 = arith.constant 0 : index
    %294 = vector.load %arg2[%c12_247, %c0_248, %c0_249] : memref<25x8x150xbf16, #tpu.memory_space<vmem>>, vector<1x8x150xbf16>
    %295 = vector.shape_cast %294 : vector<1x8x150xbf16> to vector<8x150xbf16>
    %cst_250 = arith.constant dense<0.000000e+00> : vector<8x128xf32>
    %296 = tpu.matmul %295, %0, %cst_250 {dimension_numbers = #tpu.dot_dimension_numbers<[1], [0], [0], [1], [0, 0, 1, 1], [], []>} : vector<8x150xbf16>, vector<150x128xbf16>, vector<8x128xf32> -> vector<8x128xf32>
    %297 = arith.maximumf %293, %296 : vector<8x128xf32>
    %c12_251 = arith.constant 12 : index
    %c0_252 = arith.constant 0 : index
    %c0_253 = arith.constant 0 : index
    %298 = vector.load %arg3[%c12_251, %c0_252, %c0_253] : memref<25x8x150xbf16, #tpu.memory_space<vmem>>, vector<1x8x150xbf16>
    %299 = vector.shape_cast %298 : vector<1x8x150xbf16> to vector<8x150xbf16>
    %cst_254 = arith.constant dense<0.000000e+00> : vector<8x128xf32>
    %300 = tpu.matmul %299, %0, %cst_254 {dimension_numbers = #tpu.dot_dimension_numbers<[1], [0], [0], [1], [0, 0, 1, 1], [], []>} : vector<8x150xbf16>, vector<150x128xbf16>, vector<8x128xf32> -> vector<8x128xf32>
    %c12_255 = arith.constant 12 : index
    %c0_256 = arith.constant 0 : index
    %c0_257 = arith.constant 0 : index
    %301 = vector.load %arg4[%c12_255, %c0_256, %c0_257] : memref<25x8x150xbf16, #tpu.memory_space<vmem>>, vector<1x8x150xbf16>
    %302 = vector.shape_cast %301 : vector<1x8x150xbf16> to vector<8x150xbf16>
    %cst_258 = arith.constant dense<0.000000e+00> : vector<8x128xf32>
    %303 = tpu.matmul %302, %0, %cst_258 {dimension_numbers = #tpu.dot_dimension_numbers<[1], [0], [0], [1], [0, 0, 1, 1], [], []>} : vector<8x150xbf16>, vector<150x128xbf16>, vector<8x128xf32> -> vector<8x128xf32>
    %304 = arith.maximumf %300, %303 : vector<8x128xf32>
    %305 = arith.maximumf %297, %304 : vector<8x128xf32>
    %306 = vector.broadcast %1 : vector<1x128xf32> to vector<8x128xf32>
    %307 = arith.addf %305, %306 : vector<8x128xf32>
    %cst_259 = arith.constant 0.000000e+00 : f32
    %308 = vector.broadcast %cst_259 : f32 to vector<8x128xf32>
    %309 = arith.maximumf %307, %308 : vector<8x128xf32>
    %310 = arith.truncf %309 : vector<8x128xf32> to vector<8x128xbf16>
    %c12_260 = arith.constant 12 : index
    %c0_261 = arith.constant 0 : index
    %c0_262 = arith.constant 0 : index
    %311 = vector.load %arg7[%c12_260, %c0_261, %c0_262] : memref<25x128x128xbf16, #tpu.memory_space<vmem>>, vector<1x128x128xbf16>
    %312 = vector.shape_cast %311 : vector<1x128x128xbf16> to vector<128x128xbf16>
    %cst_263 = arith.constant dense<0.000000e+00> : vector<8x128xf32>
    %313 = tpu.matmul %310, %312, %cst_263 {dimension_numbers = #tpu.dot_dimension_numbers<[1], [0], [0], [1], [0, 0, 1, 1], [], []>} : vector<8x128xbf16>, vector<128x128xbf16>, vector<8x128xf32> -> vector<8x128xf32>
    %314 = arith.addf %290, %313 : vector<8x128xf32>
    %c13 = arith.constant 13 : index
    %c0_264 = arith.constant 0 : index
    %c0_265 = arith.constant 0 : index
    %315 = vector.load %arg1[%c13, %c0_264, %c0_265] : memref<25x8x150xbf16, #tpu.memory_space<vmem>>, vector<1x8x150xbf16>
    %316 = vector.shape_cast %315 : vector<1x8x150xbf16> to vector<8x150xbf16>
    %cst_266 = arith.constant dense<0.000000e+00> : vector<8x128xf32>
    %317 = tpu.matmul %316, %0, %cst_266 {dimension_numbers = #tpu.dot_dimension_numbers<[1], [0], [0], [1], [0, 0, 1, 1], [], []>} : vector<8x150xbf16>, vector<150x128xbf16>, vector<8x128xf32> -> vector<8x128xf32>
    %c13_267 = arith.constant 13 : index
    %c0_268 = arith.constant 0 : index
    %c0_269 = arith.constant 0 : index
    %318 = vector.load %arg2[%c13_267, %c0_268, %c0_269] : memref<25x8x150xbf16, #tpu.memory_space<vmem>>, vector<1x8x150xbf16>
    %319 = vector.shape_cast %318 : vector<1x8x150xbf16> to vector<8x150xbf16>
    %cst_270 = arith.constant dense<0.000000e+00> : vector<8x128xf32>
    %320 = tpu.matmul %319, %0, %cst_270 {dimension_numbers = #tpu.dot_dimension_numbers<[1], [0], [0], [1], [0, 0, 1, 1], [], []>} : vector<8x150xbf16>, vector<150x128xbf16>, vector<8x128xf32> -> vector<8x128xf32>
    %321 = arith.maximumf %317, %320 : vector<8x128xf32>
    %c13_271 = arith.constant 13 : index
    %c0_272 = arith.constant 0 : index
    %c0_273 = arith.constant 0 : index
    %322 = vector.load %arg3[%c13_271, %c0_272, %c0_273] : memref<25x8x150xbf16, #tpu.memory_space<vmem>>, vector<1x8x150xbf16>
    %323 = vector.shape_cast %322 : vector<1x8x150xbf16> to vector<8x150xbf16>
    %cst_274 = arith.constant dense<0.000000e+00> : vector<8x128xf32>
    %324 = tpu.matmul %323, %0, %cst_274 {dimension_numbers = #tpu.dot_dimension_numbers<[1], [0], [0], [1], [0, 0, 1, 1], [], []>} : vector<8x150xbf16>, vector<150x128xbf16>, vector<8x128xf32> -> vector<8x128xf32>
    %c13_275 = arith.constant 13 : index
    %c0_276 = arith.constant 0 : index
    %c0_277 = arith.constant 0 : index
    %325 = vector.load %arg4[%c13_275, %c0_276, %c0_277] : memref<25x8x150xbf16, #tpu.memory_space<vmem>>, vector<1x8x150xbf16>
    %326 = vector.shape_cast %325 : vector<1x8x150xbf16> to vector<8x150xbf16>
    %cst_278 = arith.constant dense<0.000000e+00> : vector<8x128xf32>
    %327 = tpu.matmul %326, %0, %cst_278 {dimension_numbers = #tpu.dot_dimension_numbers<[1], [0], [0], [1], [0, 0, 1, 1], [], []>} : vector<8x150xbf16>, vector<150x128xbf16>, vector<8x128xf32> -> vector<8x128xf32>
    %328 = arith.maximumf %324, %327 : vector<8x128xf32>
    %329 = arith.maximumf %321, %328 : vector<8x128xf32>
    %330 = vector.broadcast %1 : vector<1x128xf32> to vector<8x128xf32>
    %331 = arith.addf %329, %330 : vector<8x128xf32>
    %cst_279 = arith.constant 0.000000e+00 : f32
    %332 = vector.broadcast %cst_279 : f32 to vector<8x128xf32>
    %333 = arith.maximumf %331, %332 : vector<8x128xf32>
    %334 = arith.truncf %333 : vector<8x128xf32> to vector<8x128xbf16>
    %c13_280 = arith.constant 13 : index
    %c0_281 = arith.constant 0 : index
    %c0_282 = arith.constant 0 : index
    %335 = vector.load %arg7[%c13_280, %c0_281, %c0_282] : memref<25x128x128xbf16, #tpu.memory_space<vmem>>, vector<1x128x128xbf16>
    %336 = vector.shape_cast %335 : vector<1x128x128xbf16> to vector<128x128xbf16>
    %cst_283 = arith.constant dense<0.000000e+00> : vector<8x128xf32>
    %337 = tpu.matmul %334, %336, %cst_283 {dimension_numbers = #tpu.dot_dimension_numbers<[1], [0], [0], [1], [0, 0, 1, 1], [], []>} : vector<8x128xbf16>, vector<128x128xbf16>, vector<8x128xf32> -> vector<8x128xf32>
    %338 = arith.addf %314, %337 : vector<8x128xf32>
    %c14 = arith.constant 14 : index
    %c0_284 = arith.constant 0 : index
    %c0_285 = arith.constant 0 : index
    %339 = vector.load %arg1[%c14, %c0_284, %c0_285] : memref<25x8x150xbf16, #tpu.memory_space<vmem>>, vector<1x8x150xbf16>
    %340 = vector.shape_cast %339 : vector<1x8x150xbf16> to vector<8x150xbf16>
    %cst_286 = arith.constant dense<0.000000e+00> : vector<8x128xf32>
    %341 = tpu.matmul %340, %0, %cst_286 {dimension_numbers = #tpu.dot_dimension_numbers<[1], [0], [0], [1], [0, 0, 1, 1], [], []>} : vector<8x150xbf16>, vector<150x128xbf16>, vector<8x128xf32> -> vector<8x128xf32>
    %c14_287 = arith.constant 14 : index
    %c0_288 = arith.constant 0 : index
    %c0_289 = arith.constant 0 : index
    %342 = vector.load %arg2[%c14_287, %c0_288, %c0_289] : memref<25x8x150xbf16, #tpu.memory_space<vmem>>, vector<1x8x150xbf16>
    %343 = vector.shape_cast %342 : vector<1x8x150xbf16> to vector<8x150xbf16>
    %cst_290 = arith.constant dense<0.000000e+00> : vector<8x128xf32>
    %344 = tpu.matmul %343, %0, %cst_290 {dimension_numbers = #tpu.dot_dimension_numbers<[1], [0], [0], [1], [0, 0, 1, 1], [], []>} : vector<8x150xbf16>, vector<150x128xbf16>, vector<8x128xf32> -> vector<8x128xf32>
    %345 = arith.maximumf %341, %344 : vector<8x128xf32>
    %c14_291 = arith.constant 14 : index
    %c0_292 = arith.constant 0 : index
    %c0_293 = arith.constant 0 : index
    %346 = vector.load %arg3[%c14_291, %c0_292, %c0_293] : memref<25x8x150xbf16, #tpu.memory_space<vmem>>, vector<1x8x150xbf16>
    %347 = vector.shape_cast %346 : vector<1x8x150xbf16> to vector<8x150xbf16>
    %cst_294 = arith.constant dense<0.000000e+00> : vector<8x128xf32>
    %348 = tpu.matmul %347, %0, %cst_294 {dimension_numbers = #tpu.dot_dimension_numbers<[1], [0], [0], [1], [0, 0, 1, 1], [], []>} : vector<8x150xbf16>, vector<150x128xbf16>, vector<8x128xf32> -> vector<8x128xf32>
    %c14_295 = arith.constant 14 : index
    %c0_296 = arith.constant 0 : index
    %c0_297 = arith.constant 0 : index
    %349 = vector.load %arg4[%c14_295, %c0_296, %c0_297] : memref<25x8x150xbf16, #tpu.memory_space<vmem>>, vector<1x8x150xbf16>
    %350 = vector.shape_cast %349 : vector<1x8x150xbf16> to vector<8x150xbf16>
    %cst_298 = arith.constant dense<0.000000e+00> : vector<8x128xf32>
    %351 = tpu.matmul %350, %0, %cst_298 {dimension_numbers = #tpu.dot_dimension_numbers<[1], [0], [0], [1], [0, 0, 1, 1], [], []>} : vector<8x150xbf16>, vector<150x128xbf16>, vector<8x128xf32> -> vector<8x128xf32>
    %352 = arith.maximumf %348, %351 : vector<8x128xf32>
    %353 = arith.maximumf %345, %352 : vector<8x128xf32>
    %354 = vector.broadcast %1 : vector<1x128xf32> to vector<8x128xf32>
    %355 = arith.addf %353, %354 : vector<8x128xf32>
    %cst_299 = arith.constant 0.000000e+00 : f32
    %356 = vector.broadcast %cst_299 : f32 to vector<8x128xf32>
    %357 = arith.maximumf %355, %356 : vector<8x128xf32>
    %358 = arith.truncf %357 : vector<8x128xf32> to vector<8x128xbf16>
    %c14_300 = arith.constant 14 : index
    %c0_301 = arith.constant 0 : index
    %c0_302 = arith.constant 0 : index
    %359 = vector.load %arg7[%c14_300, %c0_301, %c0_302] : memref<25x128x128xbf16, #tpu.memory_space<vmem>>, vector<1x128x128xbf16>
    %360 = vector.shape_cast %359 : vector<1x128x128xbf16> to vector<128x128xbf16>
    %cst_303 = arith.constant dense<0.000000e+00> : vector<8x128xf32>
    %361 = tpu.matmul %358, %360, %cst_303 {dimension_numbers = #tpu.dot_dimension_numbers<[1], [0], [0], [1], [0, 0, 1, 1], [], []>} : vector<8x128xbf16>, vector<128x128xbf16>, vector<8x128xf32> -> vector<8x128xf32>
    %362 = arith.addf %338, %361 : vector<8x128xf32>
    %c15 = arith.constant 15 : index
    %c0_304 = arith.constant 0 : index
    %c0_305 = arith.constant 0 : index
    %363 = vector.load %arg1[%c15, %c0_304, %c0_305] : memref<25x8x150xbf16, #tpu.memory_space<vmem>>, vector<1x8x150xbf16>
    %364 = vector.shape_cast %363 : vector<1x8x150xbf16> to vector<8x150xbf16>
    %cst_306 = arith.constant dense<0.000000e+00> : vector<8x128xf32>
    %365 = tpu.matmul %364, %0, %cst_306 {dimension_numbers = #tpu.dot_dimension_numbers<[1], [0], [0], [1], [0, 0, 1, 1], [], []>} : vector<8x150xbf16>, vector<150x128xbf16>, vector<8x128xf32> -> vector<8x128xf32>
    %c15_307 = arith.constant 15 : index
    %c0_308 = arith.constant 0 : index
    %c0_309 = arith.constant 0 : index
    %366 = vector.load %arg2[%c15_307, %c0_308, %c0_309] : memref<25x8x150xbf16, #tpu.memory_space<vmem>>, vector<1x8x150xbf16>
    %367 = vector.shape_cast %366 : vector<1x8x150xbf16> to vector<8x150xbf16>
    %cst_310 = arith.constant dense<0.000000e+00> : vector<8x128xf32>
    %368 = tpu.matmul %367, %0, %cst_310 {dimension_numbers = #tpu.dot_dimension_numbers<[1], [0], [0], [1], [0, 0, 1, 1], [], []>} : vector<8x150xbf16>, vector<150x128xbf16>, vector<8x128xf32> -> vector<8x128xf32>
    %369 = arith.maximumf %365, %368 : vector<8x128xf32>
    %c15_311 = arith.constant 15 : index
    %c0_312 = arith.constant 0 : index
    %c0_313 = arith.constant 0 : index
    %370 = vector.load %arg3[%c15_311, %c0_312, %c0_313] : memref<25x8x150xbf16, #tpu.memory_space<vmem>>, vector<1x8x150xbf16>
    %371 = vector.shape_cast %370 : vector<1x8x150xbf16> to vector<8x150xbf16>
    %cst_314 = arith.constant dense<0.000000e+00> : vector<8x128xf32>
    %372 = tpu.matmul %371, %0, %cst_314 {dimension_numbers = #tpu.dot_dimension_numbers<[1], [0], [0], [1], [0, 0, 1, 1], [], []>} : vector<8x150xbf16>, vector<150x128xbf16>, vector<8x128xf32> -> vector<8x128xf32>
    %c15_315 = arith.constant 15 : index
    %c0_316 = arith.constant 0 : index
    %c0_317 = arith.constant 0 : index
    %373 = vector.load %arg4[%c15_315, %c0_316, %c0_317] : memref<25x8x150xbf16, #tpu.memory_space<vmem>>, vector<1x8x150xbf16>
    %374 = vector.shape_cast %373 : vector<1x8x150xbf16> to vector<8x150xbf16>
    %cst_318 = arith.constant dense<0.000000e+00> : vector<8x128xf32>
    %375 = tpu.matmul %374, %0, %cst_318 {dimension_numbers = #tpu.dot_dimension_numbers<[1], [0], [0], [1], [0, 0, 1, 1], [], []>} : vector<8x150xbf16>, vector<150x128xbf16>, vector<8x128xf32> -> vector<8x128xf32>
    %376 = arith.maximumf %372, %375 : vector<8x128xf32>
    %377 = arith.maximumf %369, %376 : vector<8x128xf32>
    %378 = vector.broadcast %1 : vector<1x128xf32> to vector<8x128xf32>
    %379 = arith.addf %377, %378 : vector<8x128xf32>
    %cst_319 = arith.constant 0.000000e+00 : f32
    %380 = vector.broadcast %cst_319 : f32 to vector<8x128xf32>
    %381 = arith.maximumf %379, %380 : vector<8x128xf32>
    %382 = arith.truncf %381 : vector<8x128xf32> to vector<8x128xbf16>
    %c15_320 = arith.constant 15 : index
    %c0_321 = arith.constant 0 : index
    %c0_322 = arith.constant 0 : index
    %383 = vector.load %arg7[%c15_320, %c0_321, %c0_322] : memref<25x128x128xbf16, #tpu.memory_space<vmem>>, vector<1x128x128xbf16>
    %384 = vector.shape_cast %383 : vector<1x128x128xbf16> to vector<128x128xbf16>
    %cst_323 = arith.constant dense<0.000000e+00> : vector<8x128xf32>
    %385 = tpu.matmul %382, %384, %cst_323 {dimension_numbers = #tpu.dot_dimension_numbers<[1], [0], [0], [1], [0, 0, 1, 1], [], []>} : vector<8x128xbf16>, vector<128x128xbf16>, vector<8x128xf32> -> vector<8x128xf32>
    %386 = arith.addf %362, %385 : vector<8x128xf32>
    %c16 = arith.constant 16 : index
    %c0_324 = arith.constant 0 : index
    %c0_325 = arith.constant 0 : index
    %387 = vector.load %arg1[%c16, %c0_324, %c0_325] : memref<25x8x150xbf16, #tpu.memory_space<vmem>>, vector<1x8x150xbf16>
    %388 = vector.shape_cast %387 : vector<1x8x150xbf16> to vector<8x150xbf16>
    %cst_326 = arith.constant dense<0.000000e+00> : vector<8x128xf32>
    %389 = tpu.matmul %388, %0, %cst_326 {dimension_numbers = #tpu.dot_dimension_numbers<[1], [0], [0], [1], [0, 0, 1, 1], [], []>} : vector<8x150xbf16>, vector<150x128xbf16>, vector<8x128xf32> -> vector<8x128xf32>
    %c16_327 = arith.constant 16 : index
    %c0_328 = arith.constant 0 : index
    %c0_329 = arith.constant 0 : index
    %390 = vector.load %arg2[%c16_327, %c0_328, %c0_329] : memref<25x8x150xbf16, #tpu.memory_space<vmem>>, vector<1x8x150xbf16>
    %391 = vector.shape_cast %390 : vector<1x8x150xbf16> to vector<8x150xbf16>
    %cst_330 = arith.constant dense<0.000000e+00> : vector<8x128xf32>
    %392 = tpu.matmul %391, %0, %cst_330 {dimension_numbers = #tpu.dot_dimension_numbers<[1], [0], [0], [1], [0, 0, 1, 1], [], []>} : vector<8x150xbf16>, vector<150x128xbf16>, vector<8x128xf32> -> vector<8x128xf32>
    %393 = arith.maximumf %389, %392 : vector<8x128xf32>
    %c16_331 = arith.constant 16 : index
    %c0_332 = arith.constant 0 : index
    %c0_333 = arith.constant 0 : index
    %394 = vector.load %arg3[%c16_331, %c0_332, %c0_333] : memref<25x8x150xbf16, #tpu.memory_space<vmem>>, vector<1x8x150xbf16>
    %395 = vector.shape_cast %394 : vector<1x8x150xbf16> to vector<8x150xbf16>
    %cst_334 = arith.constant dense<0.000000e+00> : vector<8x128xf32>
    %396 = tpu.matmul %395, %0, %cst_334 {dimension_numbers = #tpu.dot_dimension_numbers<[1], [0], [0], [1], [0, 0, 1, 1], [], []>} : vector<8x150xbf16>, vector<150x128xbf16>, vector<8x128xf32> -> vector<8x128xf32>
    %c16_335 = arith.constant 16 : index
    %c0_336 = arith.constant 0 : index
    %c0_337 = arith.constant 0 : index
    %397 = vector.load %arg4[%c16_335, %c0_336, %c0_337] : memref<25x8x150xbf16, #tpu.memory_space<vmem>>, vector<1x8x150xbf16>
    %398 = vector.shape_cast %397 : vector<1x8x150xbf16> to vector<8x150xbf16>
    %cst_338 = arith.constant dense<0.000000e+00> : vector<8x128xf32>
    %399 = tpu.matmul %398, %0, %cst_338 {dimension_numbers = #tpu.dot_dimension_numbers<[1], [0], [0], [1], [0, 0, 1, 1], [], []>} : vector<8x150xbf16>, vector<150x128xbf16>, vector<8x128xf32> -> vector<8x128xf32>
    %400 = arith.maximumf %396, %399 : vector<8x128xf32>
    %401 = arith.maximumf %393, %400 : vector<8x128xf32>
    %402 = vector.broadcast %1 : vector<1x128xf32> to vector<8x128xf32>
    %403 = arith.addf %401, %402 : vector<8x128xf32>
    %cst_339 = arith.constant 0.000000e+00 : f32
    %404 = vector.broadcast %cst_339 : f32 to vector<8x128xf32>
    %405 = arith.maximumf %403, %404 : vector<8x128xf32>
    %406 = arith.truncf %405 : vector<8x128xf32> to vector<8x128xbf16>
    %c16_340 = arith.constant 16 : index
    %c0_341 = arith.constant 0 : index
    %c0_342 = arith.constant 0 : index
    %407 = vector.load %arg7[%c16_340, %c0_341, %c0_342] : memref<25x128x128xbf16, #tpu.memory_space<vmem>>, vector<1x128x128xbf16>
    %408 = vector.shape_cast %407 : vector<1x128x128xbf16> to vector<128x128xbf16>
    %cst_343 = arith.constant dense<0.000000e+00> : vector<8x128xf32>
    %409 = tpu.matmul %406, %408, %cst_343 {dimension_numbers = #tpu.dot_dimension_numbers<[1], [0], [0], [1], [0, 0, 1, 1], [], []>} : vector<8x128xbf16>, vector<128x128xbf16>, vector<8x128xf32> -> vector<8x128xf32>
    %410 = arith.addf %386, %409 : vector<8x128xf32>
    %c17 = arith.constant 17 : index
    %c0_344 = arith.constant 0 : index
    %c0_345 = arith.constant 0 : index
    %411 = vector.load %arg1[%c17, %c0_344, %c0_345] : memref<25x8x150xbf16, #tpu.memory_space<vmem>>, vector<1x8x150xbf16>
    %412 = vector.shape_cast %411 : vector<1x8x150xbf16> to vector<8x150xbf16>
    %cst_346 = arith.constant dense<0.000000e+00> : vector<8x128xf32>
    %413 = tpu.matmul %412, %0, %cst_346 {dimension_numbers = #tpu.dot_dimension_numbers<[1], [0], [0], [1], [0, 0, 1, 1], [], []>} : vector<8x150xbf16>, vector<150x128xbf16>, vector<8x128xf32> -> vector<8x128xf32>
    %c17_347 = arith.constant 17 : index
    %c0_348 = arith.constant 0 : index
    %c0_349 = arith.constant 0 : index
    %414 = vector.load %arg2[%c17_347, %c0_348, %c0_349] : memref<25x8x150xbf16, #tpu.memory_space<vmem>>, vector<1x8x150xbf16>
    %415 = vector.shape_cast %414 : vector<1x8x150xbf16> to vector<8x150xbf16>
    %cst_350 = arith.constant dense<0.000000e+00> : vector<8x128xf32>
    %416 = tpu.matmul %415, %0, %cst_350 {dimension_numbers = #tpu.dot_dimension_numbers<[1], [0], [0], [1], [0, 0, 1, 1], [], []>} : vector<8x150xbf16>, vector<150x128xbf16>, vector<8x128xf32> -> vector<8x128xf32>
    %417 = arith.maximumf %413, %416 : vector<8x128xf32>
    %c17_351 = arith.constant 17 : index
    %c0_352 = arith.constant 0 : index
    %c0_353 = arith.constant 0 : index
    %418 = vector.load %arg3[%c17_351, %c0_352, %c0_353] : memref<25x8x150xbf16, #tpu.memory_space<vmem>>, vector<1x8x150xbf16>
    %419 = vector.shape_cast %418 : vector<1x8x150xbf16> to vector<8x150xbf16>
    %cst_354 = arith.constant dense<0.000000e+00> : vector<8x128xf32>
    %420 = tpu.matmul %419, %0, %cst_354 {dimension_numbers = #tpu.dot_dimension_numbers<[1], [0], [0], [1], [0, 0, 1, 1], [], []>} : vector<8x150xbf16>, vector<150x128xbf16>, vector<8x128xf32> -> vector<8x128xf32>
    %c17_355 = arith.constant 17 : index
    %c0_356 = arith.constant 0 : index
    %c0_357 = arith.constant 0 : index
    %421 = vector.load %arg4[%c17_355, %c0_356, %c0_357] : memref<25x8x150xbf16, #tpu.memory_space<vmem>>, vector<1x8x150xbf16>
    %422 = vector.shape_cast %421 : vector<1x8x150xbf16> to vector<8x150xbf16>
    %cst_358 = arith.constant dense<0.000000e+00> : vector<8x128xf32>
    %423 = tpu.matmul %422, %0, %cst_358 {dimension_numbers = #tpu.dot_dimension_numbers<[1], [0], [0], [1], [0, 0, 1, 1], [], []>} : vector<8x150xbf16>, vector<150x128xbf16>, vector<8x128xf32> -> vector<8x128xf32>
    %424 = arith.maximumf %420, %423 : vector<8x128xf32>
    %425 = arith.maximumf %417, %424 : vector<8x128xf32>
    %426 = vector.broadcast %1 : vector<1x128xf32> to vector<8x128xf32>
    %427 = arith.addf %425, %426 : vector<8x128xf32>
    %cst_359 = arith.constant 0.000000e+00 : f32
    %428 = vector.broadcast %cst_359 : f32 to vector<8x128xf32>
    %429 = arith.maximumf %427, %428 : vector<8x128xf32>
    %430 = arith.truncf %429 : vector<8x128xf32> to vector<8x128xbf16>
    %c17_360 = arith.constant 17 : index
    %c0_361 = arith.constant 0 : index
    %c0_362 = arith.constant 0 : index
    %431 = vector.load %arg7[%c17_360, %c0_361, %c0_362] : memref<25x128x128xbf16, #tpu.memory_space<vmem>>, vector<1x128x128xbf16>
    %432 = vector.shape_cast %431 : vector<1x128x128xbf16> to vector<128x128xbf16>
    %cst_363 = arith.constant dense<0.000000e+00> : vector<8x128xf32>
    %433 = tpu.matmul %430, %432, %cst_363 {dimension_numbers = #tpu.dot_dimension_numbers<[1], [0], [0], [1], [0, 0, 1, 1], [], []>} : vector<8x128xbf16>, vector<128x128xbf16>, vector<8x128xf32> -> vector<8x128xf32>
    %434 = arith.addf %410, %433 : vector<8x128xf32>
    %c18 = arith.constant 18 : index
    %c0_364 = arith.constant 0 : index
    %c0_365 = arith.constant 0 : index
    %435 = vector.load %arg1[%c18, %c0_364, %c0_365] : memref<25x8x150xbf16, #tpu.memory_space<vmem>>, vector<1x8x150xbf16>
    %436 = vector.shape_cast %435 : vector<1x8x150xbf16> to vector<8x150xbf16>
    %cst_366 = arith.constant dense<0.000000e+00> : vector<8x128xf32>
    %437 = tpu.matmul %436, %0, %cst_366 {dimension_numbers = #tpu.dot_dimension_numbers<[1], [0], [0], [1], [0, 0, 1, 1], [], []>} : vector<8x150xbf16>, vector<150x128xbf16>, vector<8x128xf32> -> vector<8x128xf32>
    %c18_367 = arith.constant 18 : index
    %c0_368 = arith.constant 0 : index
    %c0_369 = arith.constant 0 : index
    %438 = vector.load %arg2[%c18_367, %c0_368, %c0_369] : memref<25x8x150xbf16, #tpu.memory_space<vmem>>, vector<1x8x150xbf16>
    %439 = vector.shape_cast %438 : vector<1x8x150xbf16> to vector<8x150xbf16>
    %cst_370 = arith.constant dense<0.000000e+00> : vector<8x128xf32>
    %440 = tpu.matmul %439, %0, %cst_370 {dimension_numbers = #tpu.dot_dimension_numbers<[1], [0], [0], [1], [0, 0, 1, 1], [], []>} : vector<8x150xbf16>, vector<150x128xbf16>, vector<8x128xf32> -> vector<8x128xf32>
    %441 = arith.maximumf %437, %440 : vector<8x128xf32>
    %c18_371 = arith.constant 18 : index
    %c0_372 = arith.constant 0 : index
    %c0_373 = arith.constant 0 : index
    %442 = vector.load %arg3[%c18_371, %c0_372, %c0_373] : memref<25x8x150xbf16, #tpu.memory_space<vmem>>, vector<1x8x150xbf16>
    %443 = vector.shape_cast %442 : vector<1x8x150xbf16> to vector<8x150xbf16>
    %cst_374 = arith.constant dense<0.000000e+00> : vector<8x128xf32>
    %444 = tpu.matmul %443, %0, %cst_374 {dimension_numbers = #tpu.dot_dimension_numbers<[1], [0], [0], [1], [0, 0, 1, 1], [], []>} : vector<8x150xbf16>, vector<150x128xbf16>, vector<8x128xf32> -> vector<8x128xf32>
    %c18_375 = arith.constant 18 : index
    %c0_376 = arith.constant 0 : index
    %c0_377 = arith.constant 0 : index
    %445 = vector.load %arg4[%c18_375, %c0_376, %c0_377] : memref<25x8x150xbf16, #tpu.memory_space<vmem>>, vector<1x8x150xbf16>
    %446 = vector.shape_cast %445 : vector<1x8x150xbf16> to vector<8x150xbf16>
    %cst_378 = arith.constant dense<0.000000e+00> : vector<8x128xf32>
    %447 = tpu.matmul %446, %0, %cst_378 {dimension_numbers = #tpu.dot_dimension_numbers<[1], [0], [0], [1], [0, 0, 1, 1], [], []>} : vector<8x150xbf16>, vector<150x128xbf16>, vector<8x128xf32> -> vector<8x128xf32>
    %448 = arith.maximumf %444, %447 : vector<8x128xf32>
    %449 = arith.maximumf %441, %448 : vector<8x128xf32>
    %450 = vector.broadcast %1 : vector<1x128xf32> to vector<8x128xf32>
    %451 = arith.addf %449, %450 : vector<8x128xf32>
    %cst_379 = arith.constant 0.000000e+00 : f32
    %452 = vector.broadcast %cst_379 : f32 to vector<8x128xf32>
    %453 = arith.maximumf %451, %452 : vector<8x128xf32>
    %454 = arith.truncf %453 : vector<8x128xf32> to vector<8x128xbf16>
    %c18_380 = arith.constant 18 : index
    %c0_381 = arith.constant 0 : index
    %c0_382 = arith.constant 0 : index
    %455 = vector.load %arg7[%c18_380, %c0_381, %c0_382] : memref<25x128x128xbf16, #tpu.memory_space<vmem>>, vector<1x128x128xbf16>
    %456 = vector.shape_cast %455 : vector<1x128x128xbf16> to vector<128x128xbf16>
    %cst_383 = arith.constant dense<0.000000e+00> : vector<8x128xf32>
    %457 = tpu.matmul %454, %456, %cst_383 {dimension_numbers = #tpu.dot_dimension_numbers<[1], [0], [0], [1], [0, 0, 1, 1], [], []>} : vector<8x128xbf16>, vector<128x128xbf16>, vector<8x128xf32> -> vector<8x128xf32>
    %458 = arith.addf %434, %457 : vector<8x128xf32>
    %c19 = arith.constant 19 : index
    %c0_384 = arith.constant 0 : index
    %c0_385 = arith.constant 0 : index
    %459 = vector.load %arg1[%c19, %c0_384, %c0_385] : memref<25x8x150xbf16, #tpu.memory_space<vmem>>, vector<1x8x150xbf16>
    %460 = vector.shape_cast %459 : vector<1x8x150xbf16> to vector<8x150xbf16>
    %cst_386 = arith.constant dense<0.000000e+00> : vector<8x128xf32>
    %461 = tpu.matmul %460, %0, %cst_386 {dimension_numbers = #tpu.dot_dimension_numbers<[1], [0], [0], [1], [0, 0, 1, 1], [], []>} : vector<8x150xbf16>, vector<150x128xbf16>, vector<8x128xf32> -> vector<8x128xf32>
    %c19_387 = arith.constant 19 : index
    %c0_388 = arith.constant 0 : index
    %c0_389 = arith.constant 0 : index
    %462 = vector.load %arg2[%c19_387, %c0_388, %c0_389] : memref<25x8x150xbf16, #tpu.memory_space<vmem>>, vector<1x8x150xbf16>
    %463 = vector.shape_cast %462 : vector<1x8x150xbf16> to vector<8x150xbf16>
    %cst_390 = arith.constant dense<0.000000e+00> : vector<8x128xf32>
    %464 = tpu.matmul %463, %0, %cst_390 {dimension_numbers = #tpu.dot_dimension_numbers<[1], [0], [0], [1], [0, 0, 1, 1], [], []>} : vector<8x150xbf16>, vector<150x128xbf16>, vector<8x128xf32> -> vector<8x128xf32>
    %465 = arith.maximumf %461, %464 : vector<8x128xf32>
    %c19_391 = arith.constant 19 : index
    %c0_392 = arith.constant 0 : index
    %c0_393 = arith.constant 0 : index
    %466 = vector.load %arg3[%c19_391, %c0_392, %c0_393] : memref<25x8x150xbf16, #tpu.memory_space<vmem>>, vector<1x8x150xbf16>
    %467 = vector.shape_cast %466 : vector<1x8x150xbf16> to vector<8x150xbf16>
    %cst_394 = arith.constant dense<0.000000e+00> : vector<8x128xf32>
    %468 = tpu.matmul %467, %0, %cst_394 {dimension_numbers = #tpu.dot_dimension_numbers<[1], [0], [0], [1], [0, 0, 1, 1], [], []>} : vector<8x150xbf16>, vector<150x128xbf16>, vector<8x128xf32> -> vector<8x128xf32>
    %c19_395 = arith.constant 19 : index
    %c0_396 = arith.constant 0 : index
    %c0_397 = arith.constant 0 : index
    %469 = vector.load %arg4[%c19_395, %c0_396, %c0_397] : memref<25x8x150xbf16, #tpu.memory_space<vmem>>, vector<1x8x150xbf16>
    %470 = vector.shape_cast %469 : vector<1x8x150xbf16> to vector<8x150xbf16>
    %cst_398 = arith.constant dense<0.000000e+00> : vector<8x128xf32>
    %471 = tpu.matmul %470, %0, %cst_398 {dimension_numbers = #tpu.dot_dimension_numbers<[1], [0], [0], [1], [0, 0, 1, 1], [], []>} : vector<8x150xbf16>, vector<150x128xbf16>, vector<8x128xf32> -> vector<8x128xf32>
    %472 = arith.maximumf %468, %471 : vector<8x128xf32>
    %473 = arith.maximumf %465, %472 : vector<8x128xf32>
    %474 = vector.broadcast %1 : vector<1x128xf32> to vector<8x128xf32>
    %475 = arith.addf %473, %474 : vector<8x128xf32>
    %cst_399 = arith.constant 0.000000e+00 : f32
    %476 = vector.broadcast %cst_399 : f32 to vector<8x128xf32>
    %477 = arith.maximumf %475, %476 : vector<8x128xf32>
    %478 = arith.truncf %477 : vector<8x128xf32> to vector<8x128xbf16>
    %c19_400 = arith.constant 19 : index
    %c0_401 = arith.constant 0 : index
    %c0_402 = arith.constant 0 : index
    %479 = vector.load %arg7[%c19_400, %c0_401, %c0_402] : memref<25x128x128xbf16, #tpu.memory_space<vmem>>, vector<1x128x128xbf16>
    %480 = vector.shape_cast %479 : vector<1x128x128xbf16> to vector<128x128xbf16>
    %cst_403 = arith.constant dense<0.000000e+00> : vector<8x128xf32>
    %481 = tpu.matmul %478, %480, %cst_403 {dimension_numbers = #tpu.dot_dimension_numbers<[1], [0], [0], [1], [0, 0, 1, 1], [], []>} : vector<8x128xbf16>, vector<128x128xbf16>, vector<8x128xf32> -> vector<8x128xf32>
    %482 = arith.addf %458, %481 : vector<8x128xf32>
    %c20 = arith.constant 20 : index
    %c0_404 = arith.constant 0 : index
    %c0_405 = arith.constant 0 : index
    %483 = vector.load %arg1[%c20, %c0_404, %c0_405] : memref<25x8x150xbf16, #tpu.memory_space<vmem>>, vector<1x8x150xbf16>
    %484 = vector.shape_cast %483 : vector<1x8x150xbf16> to vector<8x150xbf16>
    %cst_406 = arith.constant dense<0.000000e+00> : vector<8x128xf32>
    %485 = tpu.matmul %484, %0, %cst_406 {dimension_numbers = #tpu.dot_dimension_numbers<[1], [0], [0], [1], [0, 0, 1, 1], [], []>} : vector<8x150xbf16>, vector<150x128xbf16>, vector<8x128xf32> -> vector<8x128xf32>
    %c20_407 = arith.constant 20 : index
    %c0_408 = arith.constant 0 : index
    %c0_409 = arith.constant 0 : index
    %486 = vector.load %arg2[%c20_407, %c0_408, %c0_409] : memref<25x8x150xbf16, #tpu.memory_space<vmem>>, vector<1x8x150xbf16>
    %487 = vector.shape_cast %486 : vector<1x8x150xbf16> to vector<8x150xbf16>
    %cst_410 = arith.constant dense<0.000000e+00> : vector<8x128xf32>
    %488 = tpu.matmul %487, %0, %cst_410 {dimension_numbers = #tpu.dot_dimension_numbers<[1], [0], [0], [1], [0, 0, 1, 1], [], []>} : vector<8x150xbf16>, vector<150x128xbf16>, vector<8x128xf32> -> vector<8x128xf32>
    %489 = arith.maximumf %485, %488 : vector<8x128xf32>
    %c20_411 = arith.constant 20 : index
    %c0_412 = arith.constant 0 : index
    %c0_413 = arith.constant 0 : index
    %490 = vector.load %arg3[%c20_411, %c0_412, %c0_413] : memref<25x8x150xbf16, #tpu.memory_space<vmem>>, vector<1x8x150xbf16>
    %491 = vector.shape_cast %490 : vector<1x8x150xbf16> to vector<8x150xbf16>
    %cst_414 = arith.constant dense<0.000000e+00> : vector<8x128xf32>
    %492 = tpu.matmul %491, %0, %cst_414 {dimension_numbers = #tpu.dot_dimension_numbers<[1], [0], [0], [1], [0, 0, 1, 1], [], []>} : vector<8x150xbf16>, vector<150x128xbf16>, vector<8x128xf32> -> vector<8x128xf32>
    %c20_415 = arith.constant 20 : index
    %c0_416 = arith.constant 0 : index
    %c0_417 = arith.constant 0 : index
    %493 = vector.load %arg4[%c20_415, %c0_416, %c0_417] : memref<25x8x150xbf16, #tpu.memory_space<vmem>>, vector<1x8x150xbf16>
    %494 = vector.shape_cast %493 : vector<1x8x150xbf16> to vector<8x150xbf16>
    %cst_418 = arith.constant dense<0.000000e+00> : vector<8x128xf32>
    %495 = tpu.matmul %494, %0, %cst_418 {dimension_numbers = #tpu.dot_dimension_numbers<[1], [0], [0], [1], [0, 0, 1, 1], [], []>} : vector<8x150xbf16>, vector<150x128xbf16>, vector<8x128xf32> -> vector<8x128xf32>
    %496 = arith.maximumf %492, %495 : vector<8x128xf32>
    %497 = arith.maximumf %489, %496 : vector<8x128xf32>
    %498 = vector.broadcast %1 : vector<1x128xf32> to vector<8x128xf32>
    %499 = arith.addf %497, %498 : vector<8x128xf32>
    %cst_419 = arith.constant 0.000000e+00 : f32
    %500 = vector.broadcast %cst_419 : f32 to vector<8x128xf32>
    %501 = arith.maximumf %499, %500 : vector<8x128xf32>
    %502 = arith.truncf %501 : vector<8x128xf32> to vector<8x128xbf16>
    %c20_420 = arith.constant 20 : index
    %c0_421 = arith.constant 0 : index
    %c0_422 = arith.constant 0 : index
    %503 = vector.load %arg7[%c20_420, %c0_421, %c0_422] : memref<25x128x128xbf16, #tpu.memory_space<vmem>>, vector<1x128x128xbf16>
    %504 = vector.shape_cast %503 : vector<1x128x128xbf16> to vector<128x128xbf16>
    %cst_423 = arith.constant dense<0.000000e+00> : vector<8x128xf32>
    %505 = tpu.matmul %502, %504, %cst_423 {dimension_numbers = #tpu.dot_dimension_numbers<[1], [0], [0], [1], [0, 0, 1, 1], [], []>} : vector<8x128xbf16>, vector<128x128xbf16>, vector<8x128xf32> -> vector<8x128xf32>
    %506 = arith.addf %482, %505 : vector<8x128xf32>
    %c21 = arith.constant 21 : index
    %c0_424 = arith.constant 0 : index
    %c0_425 = arith.constant 0 : index
    %507 = vector.load %arg1[%c21, %c0_424, %c0_425] : memref<25x8x150xbf16, #tpu.memory_space<vmem>>, vector<1x8x150xbf16>
    %508 = vector.shape_cast %507 : vector<1x8x150xbf16> to vector<8x150xbf16>
    %cst_426 = arith.constant dense<0.000000e+00> : vector<8x128xf32>
    %509 = tpu.matmul %508, %0, %cst_426 {dimension_numbers = #tpu.dot_dimension_numbers<[1], [0], [0], [1], [0, 0, 1, 1], [], []>} : vector<8x150xbf16>, vector<150x128xbf16>, vector<8x128xf32> -> vector<8x128xf32>
    %c21_427 = arith.constant 21 : index
    %c0_428 = arith.constant 0 : index
    %c0_429 = arith.constant 0 : index
    %510 = vector.load %arg2[%c21_427, %c0_428, %c0_429] : memref<25x8x150xbf16, #tpu.memory_space<vmem>>, vector<1x8x150xbf16>
    %511 = vector.shape_cast %510 : vector<1x8x150xbf16> to vector<8x150xbf16>
    %cst_430 = arith.constant dense<0.000000e+00> : vector<8x128xf32>
    %512 = tpu.matmul %511, %0, %cst_430 {dimension_numbers = #tpu.dot_dimension_numbers<[1], [0], [0], [1], [0, 0, 1, 1], [], []>} : vector<8x150xbf16>, vector<150x128xbf16>, vector<8x128xf32> -> vector<8x128xf32>
    %513 = arith.maximumf %509, %512 : vector<8x128xf32>
    %c21_431 = arith.constant 21 : index
    %c0_432 = arith.constant 0 : index
    %c0_433 = arith.constant 0 : index
    %514 = vector.load %arg3[%c21_431, %c0_432, %c0_433] : memref<25x8x150xbf16, #tpu.memory_space<vmem>>, vector<1x8x150xbf16>
    %515 = vector.shape_cast %514 : vector<1x8x150xbf16> to vector<8x150xbf16>
    %cst_434 = arith.constant dense<0.000000e+00> : vector<8x128xf32>
    %516 = tpu.matmul %515, %0, %cst_434 {dimension_numbers = #tpu.dot_dimension_numbers<[1], [0], [0], [1], [0, 0, 1, 1], [], []>} : vector<8x150xbf16>, vector<150x128xbf16>, vector<8x128xf32> -> vector<8x128xf32>
    %c21_435 = arith.constant 21 : index
    %c0_436 = arith.constant 0 : index
    %c0_437 = arith.constant 0 : index
    %517 = vector.load %arg4[%c21_435, %c0_436, %c0_437] : memref<25x8x150xbf16, #tpu.memory_space<vmem>>, vector<1x8x150xbf16>
    %518 = vector.shape_cast %517 : vector<1x8x150xbf16> to vector<8x150xbf16>
    %cst_438 = arith.constant dense<0.000000e+00> : vector<8x128xf32>
    %519 = tpu.matmul %518, %0, %cst_438 {dimension_numbers = #tpu.dot_dimension_numbers<[1], [0], [0], [1], [0, 0, 1, 1], [], []>} : vector<8x150xbf16>, vector<150x128xbf16>, vector<8x128xf32> -> vector<8x128xf32>
    %520 = arith.maximumf %516, %519 : vector<8x128xf32>
    %521 = arith.maximumf %513, %520 : vector<8x128xf32>
    %522 = vector.broadcast %1 : vector<1x128xf32> to vector<8x128xf32>
    %523 = arith.addf %521, %522 : vector<8x128xf32>
    %cst_439 = arith.constant 0.000000e+00 : f32
    %524 = vector.broadcast %cst_439 : f32 to vector<8x128xf32>
    %525 = arith.maximumf %523, %524 : vector<8x128xf32>
    %526 = arith.truncf %525 : vector<8x128xf32> to vector<8x128xbf16>
    %c21_440 = arith.constant 21 : index
    %c0_441 = arith.constant 0 : index
    %c0_442 = arith.constant 0 : index
    %527 = vector.load %arg7[%c21_440, %c0_441, %c0_442] : memref<25x128x128xbf16, #tpu.memory_space<vmem>>, vector<1x128x128xbf16>
    %528 = vector.shape_cast %527 : vector<1x128x128xbf16> to vector<128x128xbf16>
    %cst_443 = arith.constant dense<0.000000e+00> : vector<8x128xf32>
    %529 = tpu.matmul %526, %528, %cst_443 {dimension_numbers = #tpu.dot_dimension_numbers<[1], [0], [0], [1], [0, 0, 1, 1], [], []>} : vector<8x128xbf16>, vector<128x128xbf16>, vector<8x128xf32> -> vector<8x128xf32>
    %530 = arith.addf %506, %529 : vector<8x128xf32>
    %c22 = arith.constant 22 : index
    %c0_444 = arith.constant 0 : index
    %c0_445 = arith.constant 0 : index
    %531 = vector.load %arg1[%c22, %c0_444, %c0_445] : memref<25x8x150xbf16, #tpu.memory_space<vmem>>, vector<1x8x150xbf16>
    %532 = vector.shape_cast %531 : vector<1x8x150xbf16> to vector<8x150xbf16>
    %cst_446 = arith.constant dense<0.000000e+00> : vector<8x128xf32>
    %533 = tpu.matmul %532, %0, %cst_446 {dimension_numbers = #tpu.dot_dimension_numbers<[1], [0], [0], [1], [0, 0, 1, 1], [], []>} : vector<8x150xbf16>, vector<150x128xbf16>, vector<8x128xf32> -> vector<8x128xf32>
    %c22_447 = arith.constant 22 : index
    %c0_448 = arith.constant 0 : index
    %c0_449 = arith.constant 0 : index
    %534 = vector.load %arg2[%c22_447, %c0_448, %c0_449] : memref<25x8x150xbf16, #tpu.memory_space<vmem>>, vector<1x8x150xbf16>
    %535 = vector.shape_cast %534 : vector<1x8x150xbf16> to vector<8x150xbf16>
    %cst_450 = arith.constant dense<0.000000e+00> : vector<8x128xf32>
    %536 = tpu.matmul %535, %0, %cst_450 {dimension_numbers = #tpu.dot_dimension_numbers<[1], [0], [0], [1], [0, 0, 1, 1], [], []>} : vector<8x150xbf16>, vector<150x128xbf16>, vector<8x128xf32> -> vector<8x128xf32>
    %537 = arith.maximumf %533, %536 : vector<8x128xf32>
    %c22_451 = arith.constant 22 : index
    %c0_452 = arith.constant 0 : index
    %c0_453 = arith.constant 0 : index
    %538 = vector.load %arg3[%c22_451, %c0_452, %c0_453] : memref<25x8x150xbf16, #tpu.memory_space<vmem>>, vector<1x8x150xbf16>
    %539 = vector.shape_cast %538 : vector<1x8x150xbf16> to vector<8x150xbf16>
    %cst_454 = arith.constant dense<0.000000e+00> : vector<8x128xf32>
    %540 = tpu.matmul %539, %0, %cst_454 {dimension_numbers = #tpu.dot_dimension_numbers<[1], [0], [0], [1], [0, 0, 1, 1], [], []>} : vector<8x150xbf16>, vector<150x128xbf16>, vector<8x128xf32> -> vector<8x128xf32>
    %c22_455 = arith.constant 22 : index
    %c0_456 = arith.constant 0 : index
    %c0_457 = arith.constant 0 : index
    %541 = vector.load %arg4[%c22_455, %c0_456, %c0_457] : memref<25x8x150xbf16, #tpu.memory_space<vmem>>, vector<1x8x150xbf16>
    %542 = vector.shape_cast %541 : vector<1x8x150xbf16> to vector<8x150xbf16>
    %cst_458 = arith.constant dense<0.000000e+00> : vector<8x128xf32>
    %543 = tpu.matmul %542, %0, %cst_458 {dimension_numbers = #tpu.dot_dimension_numbers<[1], [0], [0], [1], [0, 0, 1, 1], [], []>} : vector<8x150xbf16>, vector<150x128xbf16>, vector<8x128xf32> -> vector<8x128xf32>
    %544 = arith.maximumf %540, %543 : vector<8x128xf32>
    %545 = arith.maximumf %537, %544 : vector<8x128xf32>
    %546 = vector.broadcast %1 : vector<1x128xf32> to vector<8x128xf32>
    %547 = arith.addf %545, %546 : vector<8x128xf32>
    %cst_459 = arith.constant 0.000000e+00 : f32
    %548 = vector.broadcast %cst_459 : f32 to vector<8x128xf32>
    %549 = arith.maximumf %547, %548 : vector<8x128xf32>
    %550 = arith.truncf %549 : vector<8x128xf32> to vector<8x128xbf16>
    %c22_460 = arith.constant 22 : index
    %c0_461 = arith.constant 0 : index
    %c0_462 = arith.constant 0 : index
    %551 = vector.load %arg7[%c22_460, %c0_461, %c0_462] : memref<25x128x128xbf16, #tpu.memory_space<vmem>>, vector<1x128x128xbf16>
    %552 = vector.shape_cast %551 : vector<1x128x128xbf16> to vector<128x128xbf16>
    %cst_463 = arith.constant dense<0.000000e+00> : vector<8x128xf32>
    %553 = tpu.matmul %550, %552, %cst_463 {dimension_numbers = #tpu.dot_dimension_numbers<[1], [0], [0], [1], [0, 0, 1, 1], [], []>} : vector<8x128xbf16>, vector<128x128xbf16>, vector<8x128xf32> -> vector<8x128xf32>
    %554 = arith.addf %530, %553 : vector<8x128xf32>
    %c23 = arith.constant 23 : index
    %c0_464 = arith.constant 0 : index
    %c0_465 = arith.constant 0 : index
    %555 = vector.load %arg1[%c23, %c0_464, %c0_465] : memref<25x8x150xbf16, #tpu.memory_space<vmem>>, vector<1x8x150xbf16>
    %556 = vector.shape_cast %555 : vector<1x8x150xbf16> to vector<8x150xbf16>
    %cst_466 = arith.constant dense<0.000000e+00> : vector<8x128xf32>
    %557 = tpu.matmul %556, %0, %cst_466 {dimension_numbers = #tpu.dot_dimension_numbers<[1], [0], [0], [1], [0, 0, 1, 1], [], []>} : vector<8x150xbf16>, vector<150x128xbf16>, vector<8x128xf32> -> vector<8x128xf32>
    %c23_467 = arith.constant 23 : index
    %c0_468 = arith.constant 0 : index
    %c0_469 = arith.constant 0 : index
    %558 = vector.load %arg2[%c23_467, %c0_468, %c0_469] : memref<25x8x150xbf16, #tpu.memory_space<vmem>>, vector<1x8x150xbf16>
    %559 = vector.shape_cast %558 : vector<1x8x150xbf16> to vector<8x150xbf16>
    %cst_470 = arith.constant dense<0.000000e+00> : vector<8x128xf32>
    %560 = tpu.matmul %559, %0, %cst_470 {dimension_numbers = #tpu.dot_dimension_numbers<[1], [0], [0], [1], [0, 0, 1, 1], [], []>} : vector<8x150xbf16>, vector<150x128xbf16>, vector<8x128xf32> -> vector<8x128xf32>
    %561 = arith.maximumf %557, %560 : vector<8x128xf32>
    %c23_471 = arith.constant 23 : index
    %c0_472 = arith.constant 0 : index
    %c0_473 = arith.constant 0 : index
    %562 = vector.load %arg3[%c23_471, %c0_472, %c0_473] : memref<25x8x150xbf16, #tpu.memory_space<vmem>>, vector<1x8x150xbf16>
    %563 = vector.shape_cast %562 : vector<1x8x150xbf16> to vector<8x150xbf16>
    %cst_474 = arith.constant dense<0.000000e+00> : vector<8x128xf32>
    %564 = tpu.matmul %563, %0, %cst_474 {dimension_numbers = #tpu.dot_dimension_numbers<[1], [0], [0], [1], [0, 0, 1, 1], [], []>} : vector<8x150xbf16>, vector<150x128xbf16>, vector<8x128xf32> -> vector<8x128xf32>
    %c23_475 = arith.constant 23 : index
    %c0_476 = arith.constant 0 : index
    %c0_477 = arith.constant 0 : index
    %565 = vector.load %arg4[%c23_475, %c0_476, %c0_477] : memref<25x8x150xbf16, #tpu.memory_space<vmem>>, vector<1x8x150xbf16>
    %566 = vector.shape_cast %565 : vector<1x8x150xbf16> to vector<8x150xbf16>
    %cst_478 = arith.constant dense<0.000000e+00> : vector<8x128xf32>
    %567 = tpu.matmul %566, %0, %cst_478 {dimension_numbers = #tpu.dot_dimension_numbers<[1], [0], [0], [1], [0, 0, 1, 1], [], []>} : vector<8x150xbf16>, vector<150x128xbf16>, vector<8x128xf32> -> vector<8x128xf32>
    %568 = arith.maximumf %564, %567 : vector<8x128xf32>
    %569 = arith.maximumf %561, %568 : vector<8x128xf32>
    %570 = vector.broadcast %1 : vector<1x128xf32> to vector<8x128xf32>
    %571 = arith.addf %569, %570 : vector<8x128xf32>
    %cst_479 = arith.constant 0.000000e+00 : f32
    %572 = vector.broadcast %cst_479 : f32 to vector<8x128xf32>
    %573 = arith.maximumf %571, %572 : vector<8x128xf32>
    %574 = arith.truncf %573 : vector<8x128xf32> to vector<8x128xbf16>
    %c23_480 = arith.constant 23 : index
    %c0_481 = arith.constant 0 : index
    %c0_482 = arith.constant 0 : index
    %575 = vector.load %arg7[%c23_480, %c0_481, %c0_482] : memref<25x128x128xbf16, #tpu.memory_space<vmem>>, vector<1x128x128xbf16>
    %576 = vector.shape_cast %575 : vector<1x128x128xbf16> to vector<128x128xbf16>
    %cst_483 = arith.constant dense<0.000000e+00> : vector<8x128xf32>
    %577 = tpu.matmul %574, %576, %cst_483 {dimension_numbers = #tpu.dot_dimension_numbers<[1], [0], [0], [1], [0, 0, 1, 1], [], []>} : vector<8x128xbf16>, vector<128x128xbf16>, vector<8x128xf32> -> vector<8x128xf32>
    %578 = arith.addf %554, %577 : vector<8x128xf32>
    %c24 = arith.constant 24 : index
    %c0_484 = arith.constant 0 : index
    %c0_485 = arith.constant 0 : index
    %579 = vector.load %arg1[%c24, %c0_484, %c0_485] : memref<25x8x150xbf16, #tpu.memory_space<vmem>>, vector<1x8x150xbf16>
    %580 = vector.shape_cast %579 : vector<1x8x150xbf16> to vector<8x150xbf16>
    %cst_486 = arith.constant dense<0.000000e+00> : vector<8x128xf32>
    %581 = tpu.matmul %580, %0, %cst_486 {dimension_numbers = #tpu.dot_dimension_numbers<[1], [0], [0], [1], [0, 0, 1, 1], [], []>} : vector<8x150xbf16>, vector<150x128xbf16>, vector<8x128xf32> -> vector<8x128xf32>
    %c24_487 = arith.constant 24 : index
    %c0_488 = arith.constant 0 : index
    %c0_489 = arith.constant 0 : index
    %582 = vector.load %arg2[%c24_487, %c0_488, %c0_489] : memref<25x8x150xbf16, #tpu.memory_space<vmem>>, vector<1x8x150xbf16>
    %583 = vector.shape_cast %582 : vector<1x8x150xbf16> to vector<8x150xbf16>
    %cst_490 = arith.constant dense<0.000000e+00> : vector<8x128xf32>
    %584 = tpu.matmul %583, %0, %cst_490 {dimension_numbers = #tpu.dot_dimension_numbers<[1], [0], [0], [1], [0, 0, 1, 1], [], []>} : vector<8x150xbf16>, vector<150x128xbf16>, vector<8x128xf32> -> vector<8x128xf32>
    %585 = arith.maximumf %581, %584 : vector<8x128xf32>
    %c24_491 = arith.constant 24 : index
    %c0_492 = arith.constant 0 : index
    %c0_493 = arith.constant 0 : index
    %586 = vector.load %arg3[%c24_491, %c0_492, %c0_493] : memref<25x8x150xbf16, #tpu.memory_space<vmem>>, vector<1x8x150xbf16>
    %587 = vector.shape_cast %586 : vector<1x8x150xbf16> to vector<8x150xbf16>
    %cst_494 = arith.constant dense<0.000000e+00> : vector<8x128xf32>
    %588 = tpu.matmul %587, %0, %cst_494 {dimension_numbers = #tpu.dot_dimension_numbers<[1], [0], [0], [1], [0, 0, 1, 1], [], []>} : vector<8x150xbf16>, vector<150x128xbf16>, vector<8x128xf32> -> vector<8x128xf32>
    %c24_495 = arith.constant 24 : index
    %c0_496 = arith.constant 0 : index
    %c0_497 = arith.constant 0 : index
    %589 = vector.load %arg4[%c24_495, %c0_496, %c0_497] : memref<25x8x150xbf16, #tpu.memory_space<vmem>>, vector<1x8x150xbf16>
    %590 = vector.shape_cast %589 : vector<1x8x150xbf16> to vector<8x150xbf16>
    %cst_498 = arith.constant dense<0.000000e+00> : vector<8x128xf32>
    %591 = tpu.matmul %590, %0, %cst_498 {dimension_numbers = #tpu.dot_dimension_numbers<[1], [0], [0], [1], [0, 0, 1, 1], [], []>} : vector<8x150xbf16>, vector<150x128xbf16>, vector<8x128xf32> -> vector<8x128xf32>
    %592 = arith.maximumf %588, %591 : vector<8x128xf32>
    %593 = arith.maximumf %585, %592 : vector<8x128xf32>
    %594 = vector.broadcast %1 : vector<1x128xf32> to vector<8x128xf32>
    %595 = arith.addf %593, %594 : vector<8x128xf32>
    %cst_499 = arith.constant 0.000000e+00 : f32
    %596 = vector.broadcast %cst_499 : f32 to vector<8x128xf32>
    %597 = arith.maximumf %595, %596 : vector<8x128xf32>
    %598 = arith.truncf %597 : vector<8x128xf32> to vector<8x128xbf16>
    %c24_500 = arith.constant 24 : index
    %c0_501 = arith.constant 0 : index
    %c0_502 = arith.constant 0 : index
    %599 = vector.load %arg7[%c24_500, %c0_501, %c0_502] : memref<25x128x128xbf16, #tpu.memory_space<vmem>>, vector<1x128x128xbf16>
    %600 = vector.shape_cast %599 : vector<1x128x128xbf16> to vector<128x128xbf16>
    %cst_503 = arith.constant dense<0.000000e+00> : vector<8x128xf32>
    %601 = tpu.matmul %598, %600, %cst_503 {dimension_numbers = #tpu.dot_dimension_numbers<[1], [0], [0], [1], [0, 0, 1, 1], [], []>} : vector<8x128xbf16>, vector<128x128xbf16>, vector<8x128xf32> -> vector<8x128xf32>
    %602 = arith.addf %578, %601 : vector<8x128xf32>
    %c0_504 = arith.constant 0 : index
    %c0_505 = arith.constant 0 : index
    %603 = vector.load %arg8[%c0_504, %c0_505] : memref<1x128xf32, #tpu.memory_space<vmem>>, vector<1x128xf32>
    %604 = vector.broadcast %603 : vector<1x128xf32> to vector<8x128xf32>
    %605 = arith.addf %602, %604 : vector<8x128xf32>
    %cst_506 = arith.constant 0.000000e+00 : f32
    %606 = vector.broadcast %cst_506 : f32 to vector<8x128xf32>
    %607 = arith.maximumf %605, %606 : vector<8x128xf32>
    %608 = arith.truncf %607 : vector<8x128xf32> to vector<8x128xbf16>
    %c0_507 = arith.constant 0 : index
    %c0_508 = arith.constant 0 : index
    %609 = vector.load %arg9[%c0_507, %c0_508] : memref<128x128xbf16, #tpu.memory_space<vmem>>, vector<128x128xbf16>
    %cst_509 = arith.constant dense<0.000000e+00> : vector<8x128xf32>
    %610 = tpu.matmul %608, %609, %cst_509 {dimension_numbers = #tpu.dot_dimension_numbers<[1], [0], [0], [1], [0, 0, 1, 1], [], []>} : vector<8x128xbf16>, vector<128x128xbf16>, vector<8x128xf32> -> vector<8x128xf32>
    %c0_510 = arith.constant 0 : index
    %c0_511 = arith.constant 0 : index
    %611 = vector.load %arg10[%c0_510, %c0_511] : memref<1x128xf32, #tpu.memory_space<vmem>>, vector<1x128xf32>
    %612 = vector.broadcast %611 : vector<1x128xf32> to vector<8x128xf32>
    %613 = arith.addf %610, %612 : vector<8x128xf32>
    %cst_512 = arith.constant 0.000000e+00 : f32
    %614 = vector.broadcast %cst_512 : f32 to vector<8x128xf32>
    %615 = arith.maximumf %613, %614 : vector<8x128xf32>
    %616 = arith.truncf %615 : vector<8x128xf32> to vector<8x128xbf16>
    %c0_513 = arith.constant 0 : index
    %c0_514 = arith.constant 0 : index
    %617 = vector.load %arg11[%c0_513, %c0_514] : memref<128x31xbf16, #tpu.memory_space<vmem>>, vector<128x31xbf16>
    %cst_515 = arith.constant dense<0.000000e+00> : vector<8x31xf32>
    %618 = tpu.matmul %616, %617, %cst_515 {dimension_numbers = #tpu.dot_dimension_numbers<[1], [0], [0], [1], [0, 0, 1, 1], [], []>} : vector<8x128xbf16>, vector<128x31xbf16>, vector<8x31xf32> -> vector<8x31xf32>
    %c0_516 = arith.constant 0 : index
    %c0_517 = arith.constant 0 : index
    %619 = vector.load %arg12[%c0_516, %c0_517] : memref<1x31xf32, #tpu.memory_space<vmem>>, vector<1x31xf32>
    %620 = vector.broadcast %619 : vector<1x31xf32> to vector<8x31xf32>
    %621 = arith.addf %618, %620 : vector<8x31xf32>
    %c0_518 = arith.constant 0 : index
    %c0_519 = arith.constant 0 : index
    %622 = vector.load %arg13[%c0_518, %c0_519] : memref<8x31xf32, #tpu.memory_space<vmem>>, vector<8x31xf32>
    tpu.vector_store %arg13[%c0_518, %c0_519], %621 {strides = array<i32>} : memref<8x31xf32, #tpu.memory_space<vmem>>, vector<8x31xf32>,
    return
  }
  func.func @transform_0(%arg0: i32) -> (i32, i32, i32) {
    %c0_i32 = arith.constant 0 : i32
    %c0_i32_0 = arith.constant 0 : i32
    %c0_i32_1 = arith.constant 0 : i32
    return %c0_i32, %arg0, %c0_i32_0 : i32, i32, i32
  }
  func.func @transform_1(%arg0: i32) -> (i32, i32, i32) {
    %c0_i32 = arith.constant 0 : i32
    %c0_i32_0 = arith.constant 0 : i32
    %c0_i32_1 = arith.constant 0 : i32
    return %c0_i32, %arg0, %c0_i32_0 : i32, i32, i32
  }
  func.func @transform_2(%arg0: i32) -> (i32, i32, i32) {
    %c0_i32 = arith.constant 0 : i32
    %c0_i32_0 = arith.constant 0 : i32
    %c0_i32_1 = arith.constant 0 : i32
    return %c0_i32, %arg0, %c0_i32_0 : i32, i32, i32
  }
  func.func @transform_3(%arg0: i32) -> (i32, i32, i32) {
    %c0_i32 = arith.constant 0 : i32
    %c0_i32_0 = arith.constant 0 : i32
    %c0_i32_1 = arith.constant 0 : i32
    return %c0_i32, %arg0, %c0_i32_0 : i32, i32, i32
  }
  func.func @transform_4(%arg0: i32) -> (i32, i32) {
    %c0_i32 = arith.constant 0 : i32
    %c0_i32_0 = arith.constant 0 : i32
    %c0_i32_1 = arith.constant 0 : i32
    return %c0_i32, %c0_i32_0 : i32, i32
  }
  func.func @transform_5(%arg0: i32) -> (i32, i32) {
    %c0_i32 = arith.constant 0 : i32
    %c0_i32_0 = arith.constant 0 : i32
    %c0_i32_1 = arith.constant 0 : i32
    return %c0_i32, %c0_i32_0 : i32, i32
  }
  func.func @transform_6(%arg0: i32) -> (i32, i32, i32) {
    %c0_i32 = arith.constant 0 : i32
    %c0_i32_0 = arith.constant 0 : i32
    %c0_i32_1 = arith.constant 0 : i32
    %c0_i32_2 = arith.constant 0 : i32
    return %c0_i32, %c0_i32_0, %c0_i32_1 : i32, i32, i32
  }
  func.func @transform_7(%arg0: i32) -> (i32, i32) {
    %c0_i32 = arith.constant 0 : i32
    %c0_i32_0 = arith.constant 0 : i32
    %c0_i32_1 = arith.constant 0 : i32
    return %c0_i32, %c0_i32_0 : i32, i32
  }
  func.func @transform_8(%arg0: i32) -> (i32, i32) {
    %c0_i32 = arith.constant 0 : i32
    %c0_i32_0 = arith.constant 0 : i32
    %c0_i32_1 = arith.constant 0 : i32
    return %c0_i32, %c0_i32_0 : i32, i32
  }
  func.func @transform_9(%arg0: i32) -> (i32, i32) {
    %c0_i32 = arith.constant 0 : i32
    %c0_i32_0 = arith.constant 0 : i32
    %c0_i32_1 = arith.constant 0 : i32
    return %c0_i32, %c0_i32_0 : i32, i32
  }
  func.func @transform_10(%arg0: i32) -> (i32, i32) {
    %c0_i32 = arith.constant 0 : i32
    %c0_i32_0 = arith.constant 0 : i32
    %c0_i32_1 = arith.constant 0 : i32
    return %c0_i32, %c0_i32_0 : i32, i32
  }
  func.func @transform_11(%arg0: i32) -> (i32, i32) {
    %c0_i32 = arith.constant 0 : i32
    %c0_i32_0 = arith.constant 0 : i32
    %c0_i32_1 = arith.constant 0 : i32
    return %c0_i32, %c0_i32_0 : i32, i32
  }
  func.func @transform_12(%arg0: i32) -> (i32, i32) {
    %c0_i32 = arith.constant 0 : i32
    %c0_i32_0 = arith.constant 0 : i32
    return %arg0, %c0_i32 : i32, i32
  }
}

</mosaic_0001>

<bundles_post_ra>
// kernel: net_forward.2
= control target key start
LH: loop header
LB: loop body
LE: loop exit
PB: predicated region body
PF: predicated region fallthrough
CT: control target
= control target key end

     0   :  { %s4516_s21 = smov 0   ;;  %s5594_s0 = inlined_call_operand.vmem [shape: bf16[2048,25], index: 0, kind: input, shape index: {}]   ;;  %s5595_s1 = inlined_call_operand.vmem [shape: bf16[2048,25], index: 1, kind: input, shape index: {}]   ;;  %s5596_s2 = inlined_call_operand.vmem [shape: bf16[2048,25], index: 2, kind: input, shape index: {}]   ;;  %s5597_s3 = inlined_call_operand.vmem [shape: bf16[2048,25], index: 3, kind: input, shape index: {}]   ;;  %s5598_s4 = inlined_call_operand.vmem [shape: bf16[25,6], index: 4, kind: input, shape index: {}]   ;;  %s5599_s5 = inlined_call_operand.vmem [shape: f32[1,6], index: 5, kind: input, shape index: {}]   ;;  %s5600_s6 = inlined_call_operand.vmem [shape: bf16[2048,6], index: 6, kind: output, shape index: {}]  }
   0x1 LB: > { %s3521_s22 = sadd.s32 4294967295, %s4478_s21   ;;  %p3525_p0 = scmp.ge.s32.totalorder %s4478_s21, 1  ;;  %s4478_s21 = sphi %s4516_s21, %s16_s21  }
   0x2   : > { %p246_p1 = scmp.lt.s32.totalorder %s4478_s21, 5 }
   0x4   : > { %p247_p2 = pnand %p3525_p0, %p246_p1 }
   0x6   : > { %250 = sbr.rel (%p247_p2) target bundleno = 497 (0x1f1), region = 44 }
   0xd   : > { %v4342_v0 = vld [vmem:[%s5598_s4] sm:$0xff]   ;;  %vm658_vm0 = vcmask 1043456   ;;  %v4343_v1 = vld [vmem:[%s5598_s4 + $0x8] sm:$0x1f]   ;;  %vm659_vm1 = vcmask 1044480   ;;  %s3526_s27 = sshll.u32 %s3521_s22, 6 }
   0xe   : > { %4061 = vmatprep.subr.bf16.mxu0 %v4342_v0  ;;  %4129 = vmatprep.subr.bf16.mxu1 %v4342_v0  ;;  %v4480_v2 = vmov 65535   ;;  %p292_p3 = scmp.lt.s32.totalorder %s3526_s27, 255  ;;  %vm561_vm2 = vcmask 203776   ;;  %vm3364_vm3 = vcmask 44032  }
   0xf   : > { %4062 = vmatpush3.bf16.msra.mxu0 %v4342_v0  ;;  %4130 = vmatpush3.bf16.msra.mxu1 %v4342_v0  ;;  %v660_v3 = vsel %vm658_vm0, 4294967295, %v4480_v2 }
  0x10   : > { %v661_v4 = vsel %vm659_vm1, %v660_v3, 0  ;;  %s5912_s27 = smov (!%p292_p3, %s3526_s27), 255 }
  0x11   : > { %v663_v5 = vand.u32 %v4343_v1, %v661_v4  ;;  %s4530_s28 = sshll.u32 %s5912_s27, 2 }
  0x12   : > { %s4536_s7 = scalar_lea.vmem %s5594_s0, %s4530_s28  ;;  %s4542_s10 = scalar_lea.vmem %s5595_s1, %s4530_s28 }
  0x13   : > { %4063 = vmatprep.subr.bf16.mxu0 %v663_v5  ;;  %4131 = vmatprep.subr.bf16.mxu1 %v663_v5  ;;  %v4344_v6 = vld [vmem:[%s4536_s7] sm:$0xff]   ;;  %v4346_v8 = vld [vmem:[%s4536_s7 + $0x8] sm:$0xff]   ;;  %v4348_v10 = vld [vmem:[%s4536_s7 + $0x10] sm:$0xff]   ;;  %s4617_s13 = scalar_lea.vmem %s5596_s2, %s4530_s28  ;;  %s4624_s16 = scalar_lea.vmem %s5597_s3, %s4530_s28 }
  0x14   : > { %4064 = vmatpush3.bf16.msra.mxu0 %v663_v5  ;;  %4132 = vmatpush3.bf16.msra.mxu1 %v663_v5  ;;  %v4345_v7 = vld [vmem:[%s4542_s10] sm:$0xff]   ;;  %v4347_v9 = vld [vmem:[%s4542_s10 + $0x8] sm:$0xff]   ;;  %v4349_v11 = vld [vmem:[%s4542_s10 + $0x10] sm:$0xff]   ;;  %s5220_s22 = scalar_lea.vmem %s5600_s6, %s4530_s28 }
  0x15   : > { %4197 = vmatprep.subr.bf16.mxu0 %v4342_v0  ;;  %4265 = vmatprep.subr.bf16.mxu1 %v4342_v0  ;;  %v4350_v12 = vld [vmem:[%s4536_s7 + $0x18] sm:$0xff]   ;;  %v4352_v14 = vld [vmem:[%s4536_s7 + $0x20] sm:$0xff]   ;;  %v4354_v16 = vld [vmem:[%s4536_s7 + $0x28] sm:$0xff]  }
  0x16   : > { %4065 = vmatprep.mubr.msk.bf16.mxu0 %vm561_vm2, %v4344_v6  ;;  %4133 = vmatprep.mubr.msk.bf16.mxu1 %vm561_vm2, %v4345_v7  ;;  %v4351_v13 = vld [vmem:[%s4542_s10 + $0x18] sm:$0xff]   ;;  %v4353_v15 = vld [vmem:[%s4542_s10 + $0x20] sm:$0xff]   ;;  %v4355_v17 = vld [vmem:[%s4542_s10 + $0x28] sm:$0xff]  }
  0x17   : > { %4066 = vmatmul.mubr.msk.bf16.vlgmr.msra.gmra.mrb[0].mxu0 %vm561_vm2, %v4346_v8  ;;  %4134 = vmatmul.mubr.msk.bf16.vlgmr.msra.gmra.mrb[0].mxu1 %vm561_vm2, %v4347_v9  ;;  %v4356_v18 = vld [vmem:[%s4536_s7 + $0x30] sm:$0xff]   ;;  %v4358_v20 = vld [vmem:[%s4536_s7 + $0x38] sm:$0xff]   ;;  %v4360_v22 = vld [vmem:[%s4536_s7 + $0x40] sm:$0xff]  }
  0x18   : > { %4198 = vmatpush3.bf16.msra.mxu0 %v4342_v0  ;;  %4266 = vmatpush3.bf16.msra.mxu1 %v4342_v0  ;;  %v4357_v19 = vld [vmem:[%s4542_s10 + $0x30] sm:$0xff]   ;;  %v4359_v21 = vld [vmem:[%s4542_s10 + $0x38] sm:$0xff]   ;;  %v4361_v23 = vld [vmem:[%s4542_s10 + $0x40] sm:$0xff]  }
  0x19   : > { %4069 = vmatprep.mubr.msk.bf16.mxu0 %vm561_vm2, %v4348_v10  ;;  %4137 = vmatprep.mubr.msk.bf16.mxu1 %vm561_vm2, %v4349_v11  ;;  %v4362_v24 = vld [vmem:[%s4536_s7 + $0x48] sm:$0xff]   ;;  %v4364_v26 = vld [vmem:[%s4536_s7 + $0x50] sm:$0xff]   ;;  %v4366_v28 = vld [vmem:[%s4536_s7 + $0x58] sm:$0xff]  }
  0x1a   : > { %4199 = vmatprep.subr.bf16.mxu0 %v663_v5  ;;  %4267 = vmatprep.subr.bf16.mxu1 %v663_v5  ;;  %v4363_v25 = vld [vmem:[%s4542_s10 + $0x48] sm:$0xff]   ;;  %v4365_v27 = vld [vmem:[%s4542_s10 + $0x50] sm:$0xff]   ;;  %v4367_v29 = vld [vmem:[%s4542_s10 + $0x58] sm:$0xff]  }
  0x1b   : > { %v4368_v30 = vld [vmem:[%s4536_s7 + $0x60] sm:$0xff]   ;;  %v4370_v32 = vld [vmem:[%s4536_s7 + $0x68] sm:$0xff]   ;;  %v4372_v34 = vld [vmem:[%s4536_s7 + $0x70] sm:$0xff]  }
  0x1c   : > { %4200 = vmatpush3.bf16.msra.mxu0 %v663_v5  ;;  %4268 = vmatpush3.bf16.msra.mxu1 %v663_v5  ;;  %v4369_v31 = vld [vmem:[%s4542_s10 + $0x60] sm:$0xff]   ;;  %v4371_v33 = vld [vmem:[%s4542_s10 + $0x68] sm:$0xff]   ;;  %v4373_v35 = vld [vmem:[%s4542_s10 + $0x70] sm:$0xff]  }
  0x1d   : > { %v4374_v36 = vld [vmem:[%s4536_s7 + $0x78] sm:$0xff]   ;;  %v4376_v38 = vld [vmem:[%s4536_s7 + $0x80] sm:$0xff]   ;;  %v4378_v40 = vld [vmem:[%s4536_s7 + $0x88] sm:$0xff]  }
  0x1e   : > { %v4375_v37 = vld [vmem:[%s4542_s10 + $0x78] sm:$0xff]   ;;  %v4377_v39 = vld [vmem:[%s4542_s10 + $0x80] sm:$0xff]   ;;  %v4379_v41 = vld [vmem:[%s4542_s10 + $0x88] sm:$0xff]  }
  0x1f   : > { %4070 = vmatmul.mubr.msk.bf16.gmra.mrb[4].mxu0 %vm561_vm2, %v4350_v12  ;;  %4138 = vmatmul.mubr.msk.bf16.gmra.mrb[4].mxu1 %vm561_vm2, %v4351_v13  ;;  %v4380_v42 = vld [vmem:[%s4536_s7 + $0x90] sm:$0xff]   ;;  %v4382_v44 = vld [vmem:[%s4536_s7 + $0x98] sm:$0xff]   ;;  %v4384_v46 = vld [vmem:[%s4536_s7 + $0xa0] sm:$0xff]  }
  0x20   : > { %4073 = vmatprep.mubr.msk.bf16.mxu0 %vm561_vm2, %v4352_v14  ;;  %4141 = vmatprep.mubr.msk.bf16.mxu1 %vm561_vm2, %v4353_v15  ;;  %v4381_v43 = vld [vmem:[%s4542_s10 + $0x90] sm:$0xff]   ;;  %v4383_v45 = vld [vmem:[%s4542_s10 + $0x98] sm:$0xff]   ;;  %v4385_v47 = vld [vmem:[%s4542_s10 + $0xa0] sm:$0xff]  }
  0x21   : > { %v4386_v48 = vld [vmem:[%s4536_s7 + $0xa8] sm:$0xff]   ;;  %v4388_v50 = vld [vmem:[%s4536_s7 + $0xb0] sm:$0xff]   ;;  %v4390_v52 = vld [vmem:[%s4536_s7 + $0xb8] sm:$0xff]  }
  0x22   : > { %v4387_v49 = vld [vmem:[%s4542_s10 + $0xa8] sm:$0xff]   ;;  %v4389_v51 = vld [vmem:[%s4542_s10 + $0xb0] sm:$0xff]   ;;  %v4391_v53 = vld [vmem:[%s4542_s10 + $0xb8] sm:$0xff]  }
  0x23   : > { %v4392_v54 = vld [vmem:[%s4536_s7 + $0xc0] sm:$0xff]   ;;  %v4394_v56 = vld [vmem:[%s4536_s7 + $0xc8] sm:$0xff]   ;;  %v4396_v58 = vld [vmem:[%s4536_s7 + $0xd0] sm:$0xff]  }
  0x24   : > { %v4393_v55 = vld [vmem:[%s4542_s10 + $0xc0] sm:$0xff]   ;;  %v4395_v57 = vld [vmem:[%s4542_s10 + $0xc8] sm:$0xff]   ;;  %v4397_v59 = vld [vmem:[%s4542_s10 + $0xd0] sm:$0xff]  }
  0x25   : > { %v4398_v60 = vld [vmem:[%s4536_s7 + $0xd8] sm:$0xff]   ;;  %v4400_v62 = vld [vmem:[%s4536_s7 + $0xe0] sm:$0xff]   ;;  %v4402_v0 = vld [vmem:[%s4536_s7 + $0xe8] sm:$0xff]  }
  0x26   : > { %v4399_v61 = vld [vmem:[%s4542_s10 + $0xd8] sm:$0xff]   ;;  %v4401_v63 = vld [vmem:[%s4542_s10 + $0xe0] sm:$0xff]   ;;  %v4403_v1 = vld [vmem:[%s4542_s10 + $0xe8] sm:$0xff]  }
  0x27   : > { %4074 = vmatmul.mubr.msk.bf16.gmra.mrb[8].mxu0 %vm561_vm2, %v4354_v16  ;;  %4142 = vmatmul.mubr.msk.bf16.gmra.mrb[8].mxu1 %vm561_vm2, %v4355_v17  ;;  %v4404_v2 = vld [vmem:[%s4536_s7 + $0xf0] sm:$0xff]   ;;  %v4406_v4 = vld [vmem:[%s4536_s7 + $0xf8] sm:$0xff]   ;;  %v4408_v6 = vld [vmem:[%s4617_s13] sm:$0xff]  }
  0x28   : > { %4077 = vmatprep.mubr.msk.bf16.mxu0 %vm561_vm2, %v4356_v18  ;;  %4145 = vmatprep.mubr.msk.bf16.mxu1 %vm561_vm2, %v4357_v19  ;;  %v4405_v3 = vld [vmem:[%s4542_s10 + $0xf0] sm:$0xff]   ;;  %v4407_v5 = vld [vmem:[%s4542_s10 + $0xf8] sm:$0xff]   ;;  %v4409_v7 = vld [vmem:[%s4624_s16] sm:$0xff]  }
  0x29   : > { %v4410_v8 = vld [vmem:[%s4617_s13 + $0x8] sm:$0xff]   ;;  %v4412_v10 = vld [vmem:[%s4617_s13 + $0x10] sm:$0xff]   ;;  %v4414_v12 = vld [vmem:[%s4617_s13 + $0x18] sm:$0xff]  }
  0x2a   : > { %v4411_v9 = vld [vmem:[%s4624_s16 + $0x8] sm:$0xff]   ;;  %v4413_v11 = vld [vmem:[%s4624_s16 + $0x10] sm:$0xff]   ;;  %v4415_v13 = vld [vmem:[%s4624_s16 + $0x18] sm:$0xff]  }
  0x2b   : > { %v4416_v14 = vld [vmem:[%s4617_s13 + $0x20] sm:$0xff]   ;;  %v4418_v16 = vld [vmem:[%s4617_s13 + $0x28] sm:$0xff]   ;;  %v4420_v18 = vld [vmem:[%s4617_s13 + $0x30] sm:$0xff]  }
  0x2c   : > { %v4417_v15 = vld [vmem:[%s4624_s16 + $0x20] sm:$0xff]   ;;  %v4419_v17 = vld [vmem:[%s4624_s16 + $0x28] sm:$0xff]   ;;  %v4421_v19 = vld [vmem:[%s4624_s16 + $0x30] sm:$0xff]  }
  0x2f   : > { %4078 = vmatmul.mubr.msk.bf16.gmra.mrb[12].mxu0 %vm561_vm2, %v4358_v20  ;;  %4146 = vmatmul.mubr.msk.bf16.gmra.mrb[12].mxu1 %vm561_vm2, %v4359_v21  ;;  %v4422_v20 = vld [vmem:[%s4617_s13 + $0x38] sm:$0xff]  }
  0x30   : > { %4081 = vmatprep.mubr.msk.bf16.mxu0 %vm561_vm2, %v4360_v22  ;;  %4149 = vmatprep.mubr.msk.bf16.mxu1 %vm561_vm2, %v4361_v23  ;;  %v4423_v21 = vld [vmem:[%s4624_s16 + $0x38] sm:$0xff]   ;;  %v4424_v22 = vld [vmem:[%s4617_s13 + $0x40] sm:$0xff]  }
  0x31   : > { %v4425_v23 = vld [vmem:[%s4624_s16 + $0x40] sm:$0xff]  }
  0x37   : > { %4082 = vmatmul.mubr.msk.bf16.gmra.mrb[16].mxu0 %vm561_vm2, %v4362_v24  ;;  %4150 = vmatmul.mubr.msk.bf16.gmra.mrb[16].mxu1 %vm561_vm2, %v4363_v25  ;;  %v4426_v24 = vld [vmem:[%s4617_s13 + $0x48] sm:$0xff]  }
  0x38   : > { %4085 = vmatprep.mubr.msk.bf16.mxu0 %vm561_vm2, %v4364_v26  ;;  %4153 = vmatprep.mubr.msk.bf16.mxu1 %vm561_vm2, %v4365_v27  ;;  %v4427_v25 = vld [vmem:[%s4624_s16 + $0x48] sm:$0xff]   ;;  %v4428_v26 = vld [vmem:[%s4617_s13 + $0x50] sm:$0xff]  }
  0x39   : > { %v4429_v27 = vld [vmem:[%s4624_s16 + $0x50] sm:$0xff]  }
  0x3f   : > { %4086 = vmatmul.mubr.msk.bf16.gmra.mrb[20].mxu0 %vm561_vm2, %v4366_v28  ;;  %4154 = vmatmul.mubr.msk.bf16.gmra.mrb[20].mxu1 %vm561_vm2, %v4367_v29  ;;  %v4430_v28 = vld [vmem:[%s4617_s13 + $0x58] sm:$0xff]  }
  0x40   : > { %4089 = vmatprep.mubr.msk.bf16.mxu0 %vm561_vm2, %v4368_v30  ;;  %4157 = vmatprep.mubr.msk.bf16.mxu1 %vm561_vm2, %v4369_v31  ;;  %v4431_v29 = vld [vmem:[%s4624_s16 + $0x58] sm:$0xff]   ;;  %v4432_v30 = vld [vmem:[%s4617_s13 + $0x60] sm:$0xff]  }
  0x41   : > { %v4433_v31 = vld [vmem:[%s4624_s16 + $0x60] sm:$0xff]  }
  0x47   : > { %4090 = vmatmul.mubr.msk.bf16.gmra.mrb[24].mxu0 %vm561_vm2, %v4370_v32  ;;  %4158 = vmatmul.mubr.msk.bf16.gmra.mrb[24].mxu1 %vm561_vm2, %v4371_v33  ;;  %v4434_v32 = vld [vmem:[%s4617_s13 + $0x68] sm:$0xff]  }
  0x48   : > { %4093 = vmatprep.mubr.msk.bf16.mxu0 %vm561_vm2, %v4372_v34  ;;  %4161 = vmatprep.mubr.msk.bf16.mxu1 %vm561_vm2, %v4373_v35  ;;  %v4435_v33 = vld [vmem:[%s4624_s16 + $0x68] sm:$0xff]   ;;  %v4436_v34 = vld [vmem:[%s4617_s13 + $0x70] sm:$0xff]  }
  0x49   : > { %v4437_v35 = vld [vmem:[%s4624_s16 + $0x70] sm:$0xff]  }
  0x4f   : > { %4094 = vmatmul.mubr.msk.bf16.gmra.mrb[28].mxu0 %vm561_vm2, %v4374_v36  ;;  %4162 = vmatmul.mubr.msk.bf16.gmra.mrb[28].mxu1 %vm561_vm2, %v4375_v37  ;;  %v4438_v36 = vld [vmem:[%s4617_s13 + $0x78] sm:$0xff]  }
  0x50   : > { %4097 = vmatprep.mubr.msk.bf16.mxu0 %vm561_vm2, %v4376_v38  ;;  %4165 = vmatprep.mubr.msk.bf16.mxu1 %vm561_vm2, %v4377_v39  ;;  %v4439_v37 = vld [vmem:[%s4624_s16 + $0x78] sm:$0xff]   ;;  %v4440_v38 = vld [vmem:[%s4617_s13 + $0x80] sm:$0xff]  }
  0x51   : > { %v4441_v39 = vld [vmem:[%s4624_s16 + $0x80] sm:$0xff]  }
  0x57   : > { %4098 = vmatmul.mubr.msk.bf16.gmra.mrb[32].mxu0 %vm561_vm2, %v4378_v40  ;;  %4166 = vmatmul.mubr.msk.bf16.gmra.mrb[32].mxu1 %vm561_vm2, %v4379_v41  ;;  %v4442_v40 = vld [vmem:[%s4617_s13 + $0x88] sm:$0xff]  }
  0x58   : > { %4101 = vmatprep.mubr.msk.bf16.mxu0 %vm561_vm2, %v4380_v42  ;;  %4169 = vmatprep.mubr.msk.bf16.mxu1 %vm561_vm2, %v4381_v43  ;;  %v4443_v41 = vld [vmem:[%s4624_s16 + $0x88] sm:$0xff]   ;;  %v4444_v42 = vld [vmem:[%s4617_s13 + $0x90] sm:$0xff]  }
  0x59   : > { %v4445_v43 = vld [vmem:[%s4624_s16 + $0x90] sm:$0xff]  }
  0x5f   : > { %4102 = vmatmul.mubr.msk.bf16.gmra.mrb[36].mxu0 %vm561_vm2, %v4382_v44  ;;  %4170 = vmatmul.mubr.msk.bf16.gmra.mrb[36].mxu1 %vm561_vm2, %v4383_v45  ;;  %v4446_v44 = vld [vmem:[%s4617_s13 + $0x98] sm:$0xff]  }
  0x60   : > { %4105 = vmatprep.mubr.msk.bf16.mxu0 %vm561_vm2, %v4384_v46  ;;  %4173 = vmatprep.mubr.msk.bf16.mxu1 %vm561_vm2, %v4385_v47  ;;  %v4447_v45 = vld [vmem:[%s4624_s16 + $0x98] sm:$0xff]   ;;  %v4448_v46 = vld [vmem:[%s4617_s13 + $0xa0] sm:$0xff]  }
  0x61   : > { %v4449_v47 = vld [vmem:[%s4624_s16 + $0xa0] sm:$0xff]  }
  0x67   : > { %4106 = vmatmul.mubr.msk.bf16.gmra.mrb[40].mxu0 %vm561_vm2, %v4386_v48  ;;  %4174 = vmatmul.mubr.msk.bf16.gmra.mrb[40].mxu1 %vm561_vm2, %v4387_v49  ;;  %v4450_v48 = vld [vmem:[%s4617_s13 + $0xa8] sm:$0xff]  }
  0x68   : > { %4109 = vmatprep.mubr.msk.bf16.mxu0 %vm561_vm2, %v4388_v50  ;;  %4177 = vmatprep.mubr.msk.bf16.mxu1 %vm561_vm2, %v4389_v51  ;;  %v4451_v49 = vld [vmem:[%s4624_s16 + $0xa8] sm:$0xff]   ;;  %v4452_v50 = vld [vmem:[%s4617_s13 + $0xb0] sm:$0xff]  }
  0x69   : > { %v4453_v51 = vld [vmem:[%s4624_s16 + $0xb0] sm:$0xff]  }
  0x6f   : > { %4110 = vmatmul.mubr.msk.bf16.gmra.mrb[44].mxu0 %vm561_vm2, %v4390_v52  ;;  %4178 = vmatmul.mubr.msk.bf16.gmra.mrb[44].mxu1 %vm561_vm2, %v4391_v53 }
  0x70   : > { %4113 = vmatprep.mubr.msk.bf16.mxu0 %vm561_vm2, %v4392_v54  ;;  %4181 = vmatprep.mubr.msk.bf16.mxu1 %vm561_vm2, %v4393_v55  ;;  %v4454_v55 = vld [vmem:[%s4617_s13 + $0xb8] sm:$0xff]  }
  0x77   : > { %4114 = vmatmul.mubr.msk.bf16.gmra.mrb[48].mxu0 %vm561_vm2, %v4394_v56  ;;  %4182 = vmatmul.mubr.msk.bf16.gmra.mrb[48].mxu1 %vm561_vm2, %v4395_v57 }
  0x78   : > { %4117 = vmatprep.mubr.msk.bf16.mxu0 %vm561_vm2, %v4396_v58  ;;  %4185 = vmatprep.mubr.msk.bf16.mxu1 %vm561_vm2, %v4397_v59  ;;  %v4455_v59 = vld [vmem:[%s4624_s16 + $0xb8] sm:$0xff]  }
  0x7f   : > { %4118 = vmatmul.mubr.msk.bf16.gmra.mrb[52].mxu0 %vm561_vm2, %v4398_v60  ;;  %4186 = vmatmul.mubr.msk.bf16.gmra.mrb[52].mxu1 %vm561_vm2, %v4399_v61  ;;  %v4456_v60 = vld [vmem:[%s4617_s13 + $0xc0] sm:$0xff]  }
  0x80   : > { %4121 = vmatprep.mubr.msk.bf16.mxu0 %vm561_vm2, %v4400_v62  ;;  %4189 = vmatprep.mubr.msk.bf16.mxu1 %vm561_vm2, %v4401_v63 }
  0x87   : > { %4122 = vmatmul.mubr.msk.bf16.gmra.mrb[56].mxu0 %vm561_vm2, %v4402_v0  ;;  %4190 = vmatmul.mubr.msk.bf16.gmra.mrb[56].mxu1 %vm561_vm2, %v4403_v1  ;;  %v4457_v0 = vld [vmem:[%s4624_s16 + $0xc0] sm:$0xff]  }
  0x88   : > { %4125 = vmatprep.mubr.msk.bf16.mxu0 %vm561_vm2, %v4404_v2  ;;  %4193 = vmatprep.mubr.msk.bf16.mxu1 %vm561_vm2, %v4405_v3 }
  0x8f   : > { %4126 = vmatmul.mubr.msk.bf16.gmra.mrb[60].mxu0 %vm561_vm2, %v4406_v4  ;;  %4194 = vmatmul.mubr.msk.bf16.gmra.mrb[60].mxu1 %vm561_vm2, %v4407_v5 }
  0x90   : > { %4201 = vmatprep.mubr.msk.bf16.mxu0 %vm561_vm2, %v4408_v6  ;;  %4269 = vmatprep.mubr.msk.bf16.mxu1 %vm561_vm2, %v4409_v7  ;;  %v4458_v7 = vld [vmem:[%s4617_s13 + $0xc8] sm:$0xff]  }
  0x97   : > { %4202 = vmatmul.mubr.msk.bf16.vlgmr.msra.gmra.mrb[64].mxu0 %vm561_vm2, %v4410_v8  ;;  %4270 = vmatmul.mubr.msk.bf16.vlgmr.msra.gmra.mrb[64].mxu1 %vm561_vm2, %v4411_v9 }
  0x98   : > { %4205 = vmatprep.mubr.msk.bf16.mxu0 %vm561_vm2, %v4412_v10  ;;  %4273 = vmatprep.mubr.msk.bf16.mxu1 %vm561_vm2, %v4413_v11  ;;  %v4459_v11 = vld [vmem:[%s4624_s16 + $0xc8] sm:$0xff]  }
  0x9f   : > { %4206 = vmatmul.mubr.msk.bf16.gmra.mrb[68].mxu0 %vm561_vm2, %v4414_v12  ;;  %4274 = vmatmul.mubr.msk.bf16.gmra.mrb[68].mxu1 %vm561_vm2, %v4415_v13  ;;  %v4460_v12 = vld [vmem:[%s4617_s13 + $0xd0] sm:$0xff]  }
  0xa0   : > { %4209 = vmatprep.mubr.msk.bf16.mxu0 %vm561_vm2, %v4416_v14  ;;  %4277 = vmatprep.mubr.msk.bf16.mxu1 %vm561_vm2, %v4417_v15 }
  0xa7   : > { %4210 = vmatmul.mubr.msk.bf16.gmra.mrb[72].mxu0 %vm561_vm2, %v4418_v16  ;;  %4278 = vmatmul.mubr.msk.bf16.gmra.mrb[72].mxu1 %vm561_vm2, %v4419_v17  ;;  %v4461_v16 = vld [vmem:[%s4624_s16 + $0xd0] sm:$0xff]  }
  0xa8   : > { %4213 = vmatprep.mubr.msk.bf16.mxu0 %vm561_vm2, %v4420_v18  ;;  %4281 = vmatprep.mubr.msk.bf16.mxu1 %vm561_vm2, %v4421_v19 }
  0xaf   : > { %4214 = vmatmul.mubr.msk.bf16.gmra.mrb[76].mxu0 %vm561_vm2, %v4422_v20  ;;  %4282 = vmatmul.mubr.msk.bf16.gmra.mrb[76].mxu1 %vm561_vm2, %v4423_v21 }
  0xb0   : > { %4217 = vmatprep.mubr.msk.bf16.mxu0 %vm561_vm2, %v4424_v22  ;;  %4285 = vmatprep.mubr.msk.bf16.mxu1 %vm561_vm2, %v4425_v23  ;;  %v4462_v23 = vld [vmem:[%s4617_s13 + $0xd8] sm:$0xff]  }
  0xb7   : > { %4218 = vmatmul.mubr.msk.bf16.gmra.mrb[80].mxu0 %vm561_vm2, %v4426_v24  ;;  %4286 = vmatmul.mubr.msk.bf16.gmra.mrb[80].mxu1 %vm561_vm2, %v4427_v25 }
  0xb8   : > { %4221 = vmatprep.mubr.msk.bf16.mxu0 %vm561_vm2, %v4428_v26  ;;  %4289 = vmatprep.mubr.msk.bf16.mxu1 %vm561_vm2, %v4429_v27  ;;  %v4463_v27 = vld [vmem:[%s4624_s16 + $0xd8] sm:$0xff]  }
  0xbf   : > { %4222 = vmatmul.mubr.msk.bf16.gmra.mrb[84].mxu0 %vm561_vm2, %v4430_v28  ;;  %4290 = vmatmul.mubr.msk.bf16.gmra.mrb[84].mxu1 %vm561_vm2, %v4431_v29  ;;  %v4464_v28 = vld [vmem:[%s4617_s13 + $0xe0] sm:$0xff]  }
  0xc0   : > { %4225 = vmatprep.mubr.msk.bf16.mxu0 %vm561_vm2, %v4432_v30  ;;  %4293 = vmatprep.mubr.msk.bf16.mxu1 %vm561_vm2, %v4433_v31 }
  0xc7   : > { %4226 = vmatmul.mubr.msk.bf16.gmra.mrb[88].mxu0 %vm561_vm2, %v4434_v32  ;;  %4294 = vmatmul.mubr.msk.bf16.gmra.mrb[88].mxu1 %vm561_vm2, %v4435_v33  ;;  %v4465_v32 = vld [vmem:[%s4624_s16 + $0xe0] sm:$0xff]  }
  0xc8   : > { %4229 = vmatprep.mubr.msk.bf16.mxu0 %vm561_vm2, %v4436_v34  ;;  %4297 = vmatprep.mubr.msk.bf16.mxu1 %vm561_vm2, %v4437_v35 }
  0xcf   : > { %4230 = vmatmul.mubr.msk.bf16.gmra.mrb[92].mxu0 %vm561_vm2, %v4438_v36  ;;  %4298 = vmatmul.mubr.msk.bf16.gmra.mrb[92].mxu1 %vm561_vm2, %v4439_v37 }
  0xd0   : > { %4233 = vmatprep.mubr.msk.bf16.mxu0 %vm561_vm2, %v4440_v38  ;;  %4301 = vmatprep.mubr.msk.bf16.mxu1 %vm561_vm2, %v4441_v39  ;;  %v4466_v39 = vld [vmem:[%s4617_s13 + $0xe8] sm:$0xff]  }
  0xd7   : > { %4234 = vmatmul.mubr.msk.bf16.gmra.mrb[96].mxu0 %vm561_vm2, %v4442_v40  ;;  %4302 = vmatmul.mubr.msk.bf16.gmra.mrb[96].mxu1 %vm561_vm2, %v4443_v41 }
  0xd8   : > { %4237 = vmatprep.mubr.msk.bf16.mxu0 %vm561_vm2, %v4444_v42  ;;  %4305 = vmatprep.mubr.msk.bf16.mxu1 %vm561_vm2, %v4445_v43  ;;  %v4467_v43 = vld [vmem:[%s4624_s16 + $0xe8] sm:$0xff]  }
  0xdf   : > { %4238 = vmatmul.mubr.msk.bf16.gmra.mrb[100].mxu0 %vm561_vm2, %v4446_v44  ;;  %4306 = vmatmul.mubr.msk.bf16.gmra.mrb[100].mxu1 %vm561_vm2, %v4447_v45  ;;  %v4468_v44 = vld [vmem:[%s4617_s13 + $0xf0] sm:$0xff]  }
  0xe0   : > { %4241 = vmatprep.mubr.msk.bf16.mxu0 %vm561_vm2, %v4448_v46  ;;  %4309 = vmatprep.mubr.msk.bf16.mxu1 %vm561_vm2, %v4449_v47 }
  0xe7   : > { %4242 = vmatmul.mubr.msk.bf16.gmra.mrb[104].mxu0 %vm561_vm2, %v4450_v48  ;;  %4310 = vmatmul.mubr.msk.bf16.gmra.mrb[104].mxu1 %vm561_vm2, %v4451_v49  ;;  %v4469_v48 = vld [vmem:[%s4624_s16 + $0xf0] sm:$0xff]  }
  0xe8   : > { %4245 = vmatprep.mubr.msk.bf16.mxu0 %vm561_vm2, %v4452_v50  ;;  %4313 = vmatprep.mubr.msk.bf16.mxu1 %vm561_vm2, %v4453_v51 }
  0xea   : > { %v4776_v52 = vpop.f32.mrb[0].mxu0  ;;  %v4778_v53 = vpop.f32.mrb[0].mxu1 }
  0xeb   : > { %v4780_v54 = vpop.f32.mrb[1].mxu0  ;;  %v4785_v57 = vpop.f32.mrb[1].mxu1 }
  0xec   : > { %v4787_v58 = vpop.f32.mrb[2].mxu0  ;;  %v4793_v62 = vpop.f32.mrb[2].mxu1 }
  0xed   : > { %v4795_v63 = vpop.f32.mrb[3].mxu0  ;;  %v4800_v2 = vpop.f32.mrb[3].mxu1 }
  0xef   : > { %4246 = vmatmul.mubr.msk.bf16.gmra.mrb[108].mxu0 %vm561_vm2, %v4454_v55  ;;  %4314 = vmatmul.mubr.msk.bf16.gmra.mrb[108].mxu1 %vm561_vm2, %v4455_v59 }
  0xf0   : > { %4249 = vmatprep.mubr.msk.bf16.mxu0 %vm561_vm2, %v4456_v60  ;;  %4317 = vmatprep.mubr.msk.bf16.mxu1 %vm561_vm2, %v4457_v0  ;;  %v4470_v0 = vld [vmem:[%s4617_s13 + $0xf8] sm:$0xff]  }
  0xf2   : > { %v4808_v4 = vpop.f32.mrb[4].mxu0  ;;  %v4810_v5 = vpop.f32.mrb[4].mxu1 }
  0xf3   : > { %v4812_v6 = vpop.f32.mrb[5].mxu0  ;;  %v4817_v9 = vpop.f32.mrb[5].mxu1 }
  0xf4   : > { %v4819_v10 = vpop.f32.mrb[6].mxu0  ;;  %v4825_v14 = vpop.f32.mrb[6].mxu1 }
  0xf5   : > { %v4827_v15 = vpop.f32.mrb[7].mxu0  ;;  %v4832_v18 = vpop.f32.mrb[7].mxu1 }
  0xf7   : > { %4250 = vmatmul.mubr.msk.bf16.gmra.mrb[112].mxu0 %vm561_vm2, %v4458_v7  ;;  %4318 = vmatmul.mubr.msk.bf16.gmra.mrb[112].mxu1 %vm561_vm2, %v4459_v11 }
  0xf8   : > { %4253 = vmatprep.mubr.msk.bf16.mxu0 %vm561_vm2, %v4460_v12  ;;  %4321 = vmatprep.mubr.msk.bf16.mxu1 %vm561_vm2, %v4461_v16  ;;  %v4471_v16 = vld [vmem:[%s4624_s16 + $0xf8] sm:$0xff]  }
  0xfa   : > { %v4840_v20 = vpop.f32.mrb[8].mxu0  ;;  %v4842_v21 = vpop.f32.mrb[8].mxu1 }
  0xfb   : > { %v4844_v22 = vpop.f32.mrb[9].mxu0  ;;  %v4849_v25 = vpop.f32.mrb[9].mxu1 }
  0xfc   : > { %v4851_v26 = vpop.f32.mrb[10].mxu0  ;;  %v4857_v30 = vpop.f32.mrb[10].mxu1 }
  0xfd   : > { %v4859_v31 = vpop.f32.mrb[11].mxu0  ;;  %v4864_v34 = vpop.f32.mrb[11].mxu1 }
  0xff   : > { %4254 = vmatmul.mubr.msk.bf16.gmra.mrb[116].mxu0 %vm561_vm2, %v4462_v23  ;;  %4322 = vmatmul.mubr.msk.bf16.gmra.mrb[116].mxu1 %vm561_vm2, %v4463_v27 }
 0x100   : > { %4257 = vmatprep.mubr.msk.bf16.mxu0 %vm561_vm2, %v4464_v28  ;;  %4325 = vmatprep.mubr.msk.bf16.mxu1 %vm561_vm2, %v4465_v32 }
 0x102   : > { %v4872_v36 = vpop.f32.mrb[12].mxu0  ;;  %v4874_v37 = vpop.f32.mrb[12].mxu1 }
 0x103   : > { %v4876_v38 = vpop.f32.mrb[13].mxu0  ;;  %v4881_v41 = vpop.f32.mrb[13].mxu1 }
 0x104   : > { %v4883_v42 = vpop.f32.mrb[14].mxu0  ;;  %v4889_v46 = vpop.f32.mrb[14].mxu1 }
 0x105   : > { %v4891_v47 = vpop.f32.mrb[15].mxu0  ;;  %v4896_v50 = vpop.f32.mrb[15].mxu1 }
 0x107   : > { %4258 = vmatmul.mubr.msk.bf16.gmra.mrb[120].mxu0 %vm561_vm2, %v4466_v39  ;;  %4326 = vmatmul.mubr.msk.bf16.gmra.mrb[120].mxu1 %vm561_vm2, %v4467_v43 }
 0x108   : > { %4261 = vmatprep.mubr.msk.bf16.mxu0 %vm561_vm2, %v4468_v44  ;;  %4329 = vmatprep.mubr.msk.bf16.mxu1 %vm561_vm2, %v4469_v48 }
 0x10a   : > { %v4904_v55 = vpop.f32.mrb[16].mxu0  ;;  %v4906_v59 = vpop.f32.mrb[16].mxu1 }
 0x10b   : > { %v4908_v60 = vpop.f32.mrb[17].mxu0  ;;  %v4913_v11 = vpop.f32.mrb[17].mxu1 }
 0x10c   : > { %v4915_v12 = vpop.f32.mrb[18].mxu0  ;;  %v4920_v27 = vpop.f32.mrb[18].mxu1 }
 0x10d   : > { %v4922_v28 = vpop.f32.mrb[19].mxu0  ;;  %v4926_v39 = vpop.f32.mrb[19].mxu1 }
 0x10f   : > { %4262 = vmatmul.mubr.msk.bf16.gmra.mrb[124].mxu0 %vm561_vm2, %v4470_v0  ;;  %4330 = vmatmul.mubr.msk.bf16.gmra.mrb[124].mxu1 %vm561_vm2, %v4471_v16 }
 0x112   : > { %v4932_v44 = vpop.f32.mrb[20].mxu0  ;;  %v4934_v48 = vpop.f32.mrb[20].mxu1 }
 0x113   : > { %v4936_v23 = vpop.f32.mrb[21].mxu0  ;;  %v4940_v51 = vpop.f32.mrb[21].mxu1 }
 0x114   : > { %v4942_v32 = vpop.f32.mrb[22].mxu0  ;;  %v4946_v49 = vpop.f32.mrb[22].mxu1 }
 0x115   : > { %v4948_v0 = vpop.f32.mrb[23].mxu0  ;;  %v4952_v45 = vpop.f32.mrb[23].mxu1 }
 0x116   : > { %5683 = vst [vmem:[#allocation2_spill] sm:$0xff] %v4948_v0  ;;  %5684 = vst [vmem:[#allocation3_spill] sm:$0xff] %v4952_v45  ;;  %v5767_v45 = vmax.f32 %v4787_v58, %v4793_v62 }
 0x11a   : > { %v4956_v7 = vpop.f32.mrb[24].mxu0  ;;  %v4958_v35 = vpop.f32.mrb[24].mxu1 }
 0x11b   : > { %5685 = vst [vmem:[#allocation4_spill] sm:$0xff] %v4956_v7  ;;  %5686 = vst [vmem:[#allocation5_spill] sm:$0xff] %v4958_v35  ;;  %v4960_v33 = vpop.f32.mrb[25].mxu0  ;;  %v4964_v29 = vpop.f32.mrb[25].mxu1 }
 0x11c   : > { %5687 = vst [vmem:[#allocation6_spill] sm:$0xff] %v4960_v33  ;;  %5688 = vst [vmem:[#allocation7_spill] sm:$0xff] %v4964_v29  ;;  %v4966_v24 = vpop.f32.mrb[26].mxu0  ;;  %v4970_v19 = vpop.f32.mrb[26].mxu1 }
 0x11d   : > { %5689 = vst [vmem:[#allocation8_spill] sm:$0xff] %v4966_v24  ;;  %5690 = vst [vmem:[#allocation9_spill] sm:$0xff] %v4970_v19  ;;  %v4972_v17 = vpop.f32.mrb[27].mxu0  ;;  %v4976_v13 = vpop.f32.mrb[27].mxu1 }
 0x11e   : > { %5691 = vst [vmem:[#allocation10_spill] sm:$0xff] %v4972_v17  ;;  %5692 = vst [vmem:[#allocation11_spill] sm:$0xff] %v4976_v13 }
 0x122   : > { %v4980_v43 = vpop.f32.mrb[28].mxu0  ;;  %v4982_v3 = vpop.f32.mrb[28].mxu1 }
 0x123   : > { %5693 = vst [vmem:[#allocation12_spill] sm:$0xff] %v4980_v43  ;;  %5694 = vst [vmem:[#allocation13_spill] sm:$0xff] %v4982_v3  ;;  %v4984_v1 = vpop.f32.mrb[29].mxu0  ;;  %v4988_v61 = vpop.f32.mrb[29].mxu1 }
 0x124   : > { %5695 = vst [vmem:[#allocation14_spill] sm:$0xff] %v4984_v1  ;;  %5696 = vst [vmem:[#allocation15_spill] sm:$0xff] %v4988_v61  ;;  %v4990_v56 = vpop.f32.mrb[30].mxu0  ;;  %v4994_v19 = vpop.f32.mrb[30].mxu1 }
 0x125   : > { %5697 = vst [vmem:[#allocation16_spill] sm:$0xff] %v4990_v56  ;;  %5698 = vst [vmem:[#allocation17_spill] sm:$0xff] %v4994_v19  ;;  %v4996_v24 = vpop.f32.mrb[31].mxu0  ;;  %v5000_v13 = vpop.f32.mrb[31].mxu1 }
 0x126   : > { %5699 = vst [vmem:[#allocation18_spill] sm:$0xff] %v4996_v24  ;;  %5700 = vst [vmem:[#allocation19_spill] sm:$0xff] %v5000_v13 }
 0x12a   : > { %v5004_v16 = vpop.f32.mrb[32].mxu0  ;;  %v5006_v3 = vpop.f32.mrb[32].mxu1 }
 0x12b   : > { %5701 = vst [vmem:[#allocation20_spill] sm:$0xff] %v5004_v16  ;;  %5702 = vst [vmem:[#allocation21_spill] sm:$0xff] %v5006_v3  ;;  %v5008_v43 = vpop.f32.mrb[33].mxu0  ;;  %v5012_v61 = vpop.f32.mrb[33].mxu1 }
 0x12c   : > { %5703 = vst [vmem:[#allocation22_spill] sm:$0xff] %v5008_v43  ;;  %5704 = vst [vmem:[#allocation23_spill] sm:$0xff] %v5012_v61  ;;  %v5014_v1 = vpop.f32.mrb[34].mxu0  ;;  %v5018_v19 = vpop.f32.mrb[34].mxu1 }
 0x12d   : > { %5705 = vst [vmem:[#allocation24_spill] sm:$0xff] %v5014_v1  ;;  %5706 = vst [vmem:[#allocation25_spill] sm:$0xff] %v5018_v19  ;;  %v5020_v56 = vpop.f32.mrb[35].mxu0  ;;  %v5024_v13 = vpop.f32.mrb[35].mxu1 }
 0x12e   : > { %5707 = vst [vmem:[#allocation26_spill] sm:$0xff] %v5020_v56  ;;  %5708 = vst [vmem:[#allocation27_spill] sm:$0xff] %v5024_v13 }
 0x132   : > { %v5028_v40 = vpop.f32.mrb[36].mxu0  ;;  %v5030_v3 = vpop.f32.mrb[36].mxu1 }
 0x133   : > { %5709 = vst [vmem:[#allocation28_spill] sm:$0xff] %v5028_v40  ;;  %5710 = vst [vmem:[#allocation29_spill] sm:$0xff] %v5030_v3  ;;  %v5032_v16 = vpop.f32.mrb[37].mxu0  ;;  %v5036_v61 = vpop.f32.mrb[37].mxu1 }
 0x134   : > { %5711 = vst [vmem:[#allocation30_spill] sm:$0xff] %v5032_v16  ;;  %5712 = vst [vmem:[#allocation31_spill] sm:$0xff] %v5036_v61  ;;  %v5038_v43 = vpop.f32.mrb[38].mxu0  ;;  %v5042_v19 = vpop.f32.mrb[38].mxu1 }
 0x135   : > { %5713 = vst [vmem:[#allocation32_spill] sm:$0xff] %v5038_v43  ;;  %5714 = vst [vmem:[#allocation33_spill] sm:$0xff] %v5042_v19  ;;  %v5044_v1 = vpop.f32.mrb[39].mxu0  ;;  %v5048_v13 = vpop.f32.mrb[39].mxu1 }
 0x136   : > { %5715 = vst [vmem:[#allocation34_spill] sm:$0xff] %v5044_v1  ;;  %5716 = vst [vmem:[#allocation35_spill] sm:$0xff] %v5048_v13 }
 0x13a   : > { %v5052_v8 = vpop.f32.mrb[40].mxu0  ;;  %v5054_v3 = vpop.f32.mrb[40].mxu1 }
 0x13b   : > { %5717 = vst [vmem:[#allocation36_spill] sm:$0xff] %v5052_v8  ;;  %5718 = vst [vmem:[#allocation37_spill] sm:$0xff] %v5054_v3  ;;  %v5056_v40 = vpop.f32.mrb[41].mxu0  ;;  %v5060_v61 = vpop.f32.mrb[41].mxu1 }
 0x13c   : > { %5719 = vst [vmem:[#allocation38_spill] sm:$0xff] %v5056_v40  ;;  %5720 = vst [vmem:[#allocation39_spill] sm:$0xff] %v5060_v61  ;;  %v5062_v16 = vpop.f32.mrb[42].mxu0  ;;  %v5066_v19 = vpop.f32.mrb[42].mxu1 }
 0x13d   : > { %5721 = vst [vmem:[#allocation40_spill] sm:$0xff] %v5062_v16  ;;  %5722 = vst [vmem:[#allocation41_spill] sm:$0xff] %v5066_v19  ;;  %v5068_v43 = vpop.f32.mrb[43].mxu0  ;;  %v5072_v13 = vpop.f32.mrb[43].mxu1 }
 0x13e   : > { %5723 = vst [vmem:[#allocation42_spill] sm:$0xff] %v5068_v43  ;;  %5724 = vst [vmem:[#allocation43_spill] sm:$0xff] %v5072_v13 }
 0x142   : > { %v5076_v17 = vpop.f32.mrb[44].mxu0  ;;  %v5078_v3 = vpop.f32.mrb[44].mxu1 }
 0x143   : > { %5725 = vst [vmem:[#allocation44_spill] sm:$0xff] %v5076_v17  ;;  %5726 = vst [vmem:[#allocation45_spill] sm:$0xff] %v5078_v3  ;;  %v5080_v8 = vpop.f32.mrb[45].mxu0  ;;  %v5084_v61 = vpop.f32.mrb[45].mxu1 }
 0x144   : > { %5727 = vst [vmem:[#allocation46_spill] sm:$0xff] %v5080_v8  ;;  %5728 = vst [vmem:[#allocation47_spill] sm:$0xff] %v5084_v61  ;;  %v5086_v40 = vpop.f32.mrb[46].mxu0  ;;  %v5090_v19 = vpop.f32.mrb[46].mxu1 }
 0x145   : > { %5729 = vst [vmem:[#allocation48_spill] sm:$0xff] %v5086_v40  ;;  %5730 = vst [vmem:[#allocation49_spill] sm:$0xff] %v5090_v19  ;;  %v5092_v16 = vpop.f32.mrb[47].mxu0  ;;  %v5096_v13 = vpop.f32.mrb[47].mxu1 }
 0x146   : > { %5731 = vst [vmem:[#allocation50_spill] sm:$0xff] %v5092_v16  ;;  %5732 = vst [vmem:[#allocation51_spill] sm:$0xff] %v5096_v13 }
 0x14a   : > { %v5100_v24 = vpop.f32.mrb[48].mxu0  ;;  %v5102_v3 = vpop.f32.mrb[48].mxu1 }
 0x14b   : > { %5733 = vst [vmem:[#allocation52_spill] sm:$0xff] %v5100_v24  ;;  %5734 = vst [vmem:[#allocation53_spill] sm:$0xff] %v5102_v3  ;;  %v5104_v17 = vpop.f32.mrb[49].mxu0  ;;  %v5108_v61 = vpop.f32.mrb[49].mxu1 }
 0x14c   : > { %5735 = vst [vmem:[#allocation54_spill] sm:$0xff] %v5104_v17  ;;  %5736 = vst [vmem:[#allocation55_spill] sm:$0xff] %v5108_v61  ;;  %v5110_v8 = vpop.f32.mrb[50].mxu0  ;;  %v5114_v19 = vpop.f32.mrb[50].mxu1 }
 0x14d   : > { %5737 = vst [vmem:[#allocation56_spill] sm:$0xff] %v5110_v8  ;;  %5738 = vst [vmem:[#allocation57_spill] sm:$0xff] %v5114_v19  ;;  %v5116_v40 = vpop.f32.mrb[51].mxu0  ;;  %v5120_v13 = vpop.f32.mrb[51].mxu1 }
 0x14e   : > { %5739 = vst [vmem:[#allocation58_spill] sm:$0xff] %v5116_v40  ;;  %5740 = vst [vmem:[#allocation59_spill] sm:$0xff] %v5120_v13  ;;  %v5199_v40 = vld [vmem:[%s5599_s5] ss:$0 sm:$0xff] }
 0x152   : > { %v5124_v56 = vpop.f32.mrb[52].mxu0  ;;  %v5126_v3 = vpop.f32.mrb[52].mxu1 }
 0x153   : > { %5741 = vst [vmem:[#allocation60_spill] sm:$0xff] %v5124_v56  ;;  %5742 = vst [vmem:[#allocation61_spill] sm:$0xff] %v5126_v3  ;;  %v5128_v24 = vpop.f32.mrb[53].mxu0  ;;  %v5132_v61 = vpop.f32.mrb[53].mxu1 }
 0x154   : > { %5743 = vst [vmem:[#allocation62_spill] sm:$0xff] %v5128_v24  ;;  %5744 = vst [vmem:[#allocation63_spill] sm:$0xff] %v5132_v61  ;;  %v5134_v17 = vpop.f32.mrb[54].mxu0  ;;  %v5138_v19 = vpop.f32.mrb[54].mxu1 }
 0x155   : > { %5745 = vst [vmem:[#allocation64_spill] sm:$0xff] %v5134_v17  ;;  %5746 = vst [vmem:[#allocation65_spill] sm:$0xff] %v5138_v19  ;;  %v5140_v8 = vpop.f32.mrb[55].mxu0  ;;  %v5144_v13 = vpop.f32.mrb[55].mxu1 }
 0x156   : > { %5747 = vst [vmem:[#allocation66_spill] sm:$0xff] %v5140_v8  ;;  %5748 = vst [vmem:[#allocation67_spill] sm:$0xff] %v5144_v13 }
 0x15a   : > { %v5148_v1 = vpop.f32.mrb[56].mxu0  ;;  %v5150_v3 = vpop.f32.mrb[56].mxu1 }
 0x15b   : > { %5749 = vst [vmem:[#allocation68_spill] sm:$0xff] %v5148_v1  ;;  %5750 = vst [vmem:[#allocation69_spill] sm:$0xff] %v5150_v3  ;;  %v5152_v56 = vpop.f32.mrb[57].mxu0  ;;  %v5156_v61 = vpop.f32.mrb[57].mxu1 }
 0x15c   : > { %5751 = vst [vmem:[#allocation70_spill] sm:$0xff] %v5152_v56  ;;  %5752 = vst [vmem:[#allocation71_spill] sm:$0xff] %v5156_v61  ;;  %v5158_v24 = vpop.f32.mrb[58].mxu0  ;;  %v5162_v19 = vpop.f32.mrb[58].mxu1 }
 0x15d   : > { %5753 = vst [vmem:[#allocation72_spill] sm:$0xff] %v5158_v24  ;;  %5754 = vst [vmem:[#allocation73_spill] sm:$0xff] %v5162_v19  ;;  %v5164_v17 = vpop.f32.mrb[59].mxu0  ;;  %v5168_v13 = vpop.f32.mrb[59].mxu1 }
 0x15e   : > { %5755 = vst [vmem:[#allocation74_spill] sm:$0xff] %v5164_v17  ;;  %5756 = vst [vmem:[#allocation75_spill] sm:$0xff] %v5168_v13 }
 0x162   : > { %v5172_v43 = vpop.f32.mrb[60].mxu0  ;;  %v5174_v3 = vpop.f32.mrb[60].mxu1 }
 0x163   : > { %5757 = vst [vmem:[#allocation76_spill] sm:$0xff] %v5172_v43  ;;  %5758 = vst [vmem:[#allocation77_spill] sm:$0xff] %v5174_v3  ;;  %v5176_v1 = vpop.f32.mrb[61].mxu0  ;;  %v5180_v61 = vpop.f32.mrb[61].mxu1 }
 0x164   : > { %5759 = vst [vmem:[#allocation78_spill] sm:$0xff] %v5176_v1  ;;  %5760 = vst [vmem:[#allocation79_spill] sm:$0xff] %v5180_v61  ;;  %v5182_v56 = vpop.f32.mrb[62].mxu0  ;;  %v5186_v19 = vpop.f32.mrb[62].mxu1 }
 0x165   : > { %5761 = vst [vmem:[#allocation80_spill] sm:$0xff] %v5182_v56  ;;  %5762 = vst [vmem:[#allocation81_spill] sm:$0xff] %v5186_v19  ;;  %v5188_v24 = vpop.f32.mrb[63].mxu0  ;;  %v5192_v13 = vpop.f32.mrb[63].mxu1  ;;  %v5765_v19 = vmax.f32 %v4776_v52, %v4778_v53 }
 0x166   : > { %5763 = vst [vmem:[#allocation82_spill] sm:$0xff] %v5188_v24  ;;  %5764 = vst [vmem:[#allocation83_spill] sm:$0xff] %v5192_v13 }
 0x16a   : > { %v4203_v16 = vpop.f32.mrb[64].mxu0  ;;  %v4271_v3 = vpop.f32.mrb[64].mxu1 }
 0x16b   : > { %v1981_v43 = vpop.f32.mrb[65].mxu0  ;;  %v2847_v29 = vmax.f32 %v4203_v16, %v4271_v3  ;;  %v2590_v33 = vpop.f32.mrb[65].mxu1  ;;  %v5766_v3 = vmax.f32 %v4780_v54, %v4785_v57 }
 0x16c   : > { %v4204_v35 = vpop.f32.mrb[66].mxu0  ;;  %v2845_v61 = vmax.f32 %v1981_v43, %v2590_v33  ;;  %v4272_v1 = vpop.f32.mrb[66].mxu1  ;;  %v5768_v43 = vmax.f32 %v4795_v63, %v4800_v2 }
 0x16d   : > { %v1984_v8 = vpop.f32.mrb[67].mxu0  ;;  %v2911_v56 = vmax.f32 %v5765_v19, %v2847_v29  ;;  %v2848_v17 = vmax.f32 %v4204_v35, %v4272_v1  ;;  %v2593_v13 = vpop.f32.mrb[67].mxu1 }
 0x16e   : > { %v2909_v16 = vmax.f32 %v5766_v3, %v2845_v61  ;;  %v2846_v24 = vmax.f32 %v1984_v8, %v2593_v13 }
 0x16f   : > { %v2982_v7 = vadd.f32 %v5199_v40, %v2911_v56  ;;  %v2912_v0 = vmax.f32 %v5767_v45, %v2848_v17 }
 0x170   : > { %v2980_v33 = vadd.f32 %v5199_v40, %v2909_v16  ;;  %v2910_v52 = vmax.f32 %v5768_v43, %v2846_v24  ;;  %v5770_v43 = vmax.f32 %v4812_v6, %v4817_v9 }
 0x171   : > { %v3046_v53 = vmax.f32 %v2982_v7, 0.0  ;;  %v2983_v1 = vadd.f32 %v5199_v40, %v2912_v0  ;;  %v5769_v7 = vmax.f32 %v4808_v4, %v4810_v5  ;;  %v5772_v5 = vmax.f32 %v4827_v15, %v4832_v18 }
 0x172   : > { %v4207_v19 = vpop.f32.mrb[68].mxu0  ;;  %v3044_v54 = vmax.f32 %v2980_v33, 0.0  ;;  %v2981_v56 = vadd.f32 %v5199_v40, %v2910_v52  ;;  %v4275_v57 = vpop.f32.mrb[68].mxu1 }
 0x173   : > { %v1997_v58 = vpop.f32.mrb[69].mxu0  ;;  %v3863_v61 = vpack.c.bf16 %v3046_v53, %v3046_v53  ;;  %v3047_v62 = vmax.f32 %v2983_v1, 0.0  ;;  %v2851_v63 = vmax.f32 %v4207_v19, %v4275_v57  ;;  %v2606_v2 = vpop.f32.mrb[69].mxu1  ;;  %v5771_v19 = vmax.f32 %v4819_v10, %v4825_v14 }
 0x174   : > { %v4208_v8 = vpop.f32.mrb[70].mxu0  ;;  %v3861_v13 = vpack.c.bf16 %v3044_v54, %v3044_v54  ;;  %v3045_v17 = vmax.f32 %v2981_v56, 0.0  ;;  %v2849_v24 = vmax.f32 %v1997_v58, %v2606_v2  ;;  %v4276_v29 = vpop.f32.mrb[70].mxu1 }
 0x175   : > { %v2000_v35 = vpop.f32.mrb[71].mxu0  ;;  %3367 = vst.msk [vmem:[%s5220_s22 + $0x8] sm:$0xf] %vm3364_vm3, %v3863_v61  ;;  %v3864_v45 = vpack.c.bf16 %v3047_v62, %v3047_v62  ;;  %v2915_v0 = vmax.f32 %v5769_v7, %v2851_v63  ;;  %v2852_v3 = vmax.f32 %v4208_v8, %v4276_v29  ;;  %v2609_v16 = vpop.f32.mrb[71].mxu1 }
 0x176   : > { %3365 = vst.msk [vmem:[%s5220_s22] sm:$0xf] %vm3364_vm3, %v3861_v13  ;;  %v3862_v33 = vpack.c.bf16 %v3045_v17, %v3045_v17  ;;  %v2913_v52 = vmax.f32 %v5770_v43, %v2849_v24  ;;  %v2850_v53 = vmax.f32 %v2000_v35, %v2609_v16 }
 0x177   : > { %3368 = vst.msk [vmem:[%s5220_s22 + $0xc] sm:$0xf] %vm3364_vm3, %v3864_v45  ;;  %v2986_v1 = vadd.f32 %v5199_v40, %v2915_v0  ;;  %v2916_v54 = vmax.f32 %v5771_v19, %v2852_v3  ;;  %v5773_v45 = vmax.f32 %v4840_v20, %v4842_v21  ;;  %v5776_v21 = vmax.f32 %v4859_v31, %v4864_v34 }
 0x178   : > { %3366 = vst.msk [vmem:[%s5220_s22 + $0x4] sm:$0xf] %vm3364_vm3, %v3862_v33  ;;  %v2984_v4 = vadd.f32 %v5199_v40, %v2913_v52  ;;  %v2914_v56 = vmax.f32 %v5772_v5, %v2850_v53  ;;  %v5774_v33 = vmax.f32 %v4844_v22, %v4849_v25 }
 0x179   : > { %v3050_v57 = vmax.f32 %v2986_v1, 0.0  ;;  %v2987_v6 = vadd.f32 %v5199_v40, %v2916_v54  ;;  %v5775_v1 = vmax.f32 %v4851_v26, %v4857_v30 }
 0x17a   : > { %v4211_v9 = vpop.f32.mrb[72].mxu0  ;;  %v3048_v58 = vmax.f32 %v2984_v4, 0.0  ;;  %v2985_v61 = vadd.f32 %v5199_v40, %v2914_v56  ;;  %v4279_v62 = vpop.f32.mrb[72].mxu1 }
 0x17b   : > { %v2013_v63 = vpop.f32.mrb[73].mxu0  ;;  %v3867_v10 = vpack.c.bf16 %v3050_v57, %v3050_v57  ;;  %v3051_v14 = vmax.f32 %v2987_v6, 0.0  ;;  %v2855_v2 = vmax.f32 %v4211_v9, %v4279_v62  ;;  %v2622_v8 = vpop.f32.mrb[73].mxu1 }
 0x17c   : > { %v4212_v13 = vpop.f32.mrb[74].mxu0  ;;  %v3865_v17 = vpack.c.bf16 %v3048_v58, %v3048_v58  ;;  %v3049_v15 = vmax.f32 %v2985_v61, 0.0  ;;  %v2853_v18 = vmax.f32 %v2013_v63, %v2622_v8  ;;  %v4280_v24 = vpop.f32.mrb[74].mxu1 }
 0x17d   : > { %v2016_v29 = vpop.f32.mrb[75].mxu0  ;;  %3371 = vst.msk [vmem:[%s5220_s22 + $0x18] sm:$0xf] %vm3364_vm3, %v3867_v10  ;;  %v3868_v35 = vpack.c.bf16 %v3051_v14, %v3051_v14  ;;  %v2919_v7 = vmax.f32 %v5773_v45, %v2855_v2  ;;  %v2856_v0 = vmax.f32 %v4212_v13, %v4280_v24  ;;  %v2625_v3 = vpop.f32.mrb[75].mxu1  ;;  %v5777_v2 = vmax.f32 %v4872_v36, %v4874_v37 }
 0x17e   : > { %3369 = vst.msk [vmem:[%s5220_s22 + $0x10] sm:$0xf] %vm3364_vm3, %v3865_v17  ;;  %v3866_v16 = vpack.c.bf16 %v3049_v15, %v3049_v15  ;;  %v2917_v43 = vmax.f32 %v5774_v33, %v2853_v18  ;;  %v2854_v52 = vmax.f32 %v2016_v29, %v2625_v3  ;;  %v5778_v18 = vmax.f32 %v4876_v38, %v4881_v41 }
 0x17f   : > { %3372 = vst.msk [vmem:[%s5220_s22 + $0x1c] sm:$0xf] %vm3364_vm3, %v3868_v35  ;;  %v2990_v53 = vadd.f32 %v5199_v40, %v2919_v7  ;;  %v2920_v19 = vmax.f32 %v5775_v1, %v2856_v0  ;;  %v5779_v45 = vmax.f32 %v4883_v42, %v4889_v46  ;;  %v5780_v37 = vmax.f32 %v4891_v47, %v4896_v50 }
 0x180   : > { %3370 = vst.msk [vmem:[%s5220_s22 + $0x14] sm:$0xf] %vm3364_vm3, %v3866_v16  ;;  %v2988_v20 = vadd.f32 %v5199_v40, %v2917_v43  ;;  %v2918_v54 = vmax.f32 %v5776_v21, %v2854_v52 }
 0x181   : > { %v3054_v4 = vmax.f32 %v2990_v53, 0.0  ;;  %v2991_v22 = vadd.f32 %v5199_v40, %v2920_v19 }
 0x182   : > { %v4215_v25 = vpop.f32.mrb[76].mxu0  ;;  %v3052_v5 = vmax.f32 %v2988_v20, 0.0  ;;  %v2989_v56 = vadd.f32 %v5199_v40, %v2918_v54  ;;  %v4283_v57 = vpop.f32.mrb[76].mxu1 }
 0x183   : > { %v2029_v6 = vpop.f32.mrb[77].mxu0  ;;  %v3871_v26 = vpack.c.bf16 %v3054_v4, %v3054_v4  ;;  %v3055_v30 = vmax.f32 %v2991_v22, 0.0  ;;  %v2859_v9 = vmax.f32 %v4215_v25, %v4283_v57  ;;  %v2638_v58 = vpop.f32.mrb[77].mxu1  ;;  %v5781_v22 = vmax.f32 %v4904_v55, %v4906_v59 }
 0x184   : > { %v4216_v61 = vpop.f32.mrb[78].mxu0  ;;  %v3869_v62 = vpack.c.bf16 %v3052_v5, %v3052_v5  ;;  %v3053_v31 = vmax.f32 %v2989_v56, 0.0  ;;  %v2857_v34 = vmax.f32 %v2029_v6, %v2638_v58  ;;  %v4284_v63 = vpop.f32.mrb[78].mxu1  ;;  %v5782_v6 = vmax.f32 %v4908_v60, %v4913_v11 }
 0x185   : > { %v2032_v10 = vpop.f32.mrb[79].mxu0  ;;  %3375 = vst.msk [vmem:[%s5220_s22 + $0x28] sm:$0xf] %vm3364_vm3, %v3871_v26  ;;  %v3872_v14 = vpack.c.bf16 %v3055_v30, %v3055_v30  ;;  %v2923_v8 = vmax.f32 %v5777_v2, %v2859_v9  ;;  %v2860_v13 = vmax.f32 %v4216_v61, %v4284_v63  ;;  %v2641_v17 = vpop.f32.mrb[79].mxu1  ;;  %v5783_v58 = vmax.f32 %v4915_v12, %v4920_v27 }
 0x186   : > { %3373 = vst.msk [vmem:[%s5220_s22 + $0x20] sm:$0xf] %vm3364_vm3, %v3869_v62  ;;  %v3870_v15 = vpack.c.bf16 %v3053_v31, %v3053_v31  ;;  %v2921_v24 = vmax.f32 %v5778_v18, %v2857_v34  ;;  %v2858_v29 = vmax.f32 %v2032_v10, %v2641_v17  ;;  %v5784_v59 = vmax.f32 %v4922_v28, %v4926_v39 }
 0x187   : > { %3376 = vst.msk [vmem:[%s5220_s22 + $0x2c] sm:$0xf] %vm3364_vm3, %v3872_v14  ;;  %v2994_v35 = vadd.f32 %v5199_v40, %v2923_v8  ;;  %v2924_v7 = vmax.f32 %v5779_v45, %v2860_v13 }
 0x188   : > { %3374 = vst.msk [vmem:[%s5220_s22 + $0x24] sm:$0xf] %vm3364_vm3, %v3870_v15  ;;  %v2992_v36 = vadd.f32 %v5199_v40, %v2921_v24  ;;  %v2922_v0 = vmax.f32 %v5780_v37, %v2858_v29  ;;  %v5785_v29 = vmax.f32 %v4932_v44, %v4934_v48  ;;  %v5786_v37 = vmax.f32 %v4936_v23, %v4940_v51  ;;  %v5788_v48 = vld [vmem:[#allocation2_spill] sm:$0xff] }
 0x189   : > { %v3058_v3 = vmax.f32 %v2994_v35, 0.0  ;;  %v2995_v38 = vadd.f32 %v5199_v40, %v2924_v7 }
 0x18a   : > { %v4219_v41 = vpop.f32.mrb[80].mxu0  ;;  %v3056_v16 = vmax.f32 %v2992_v36, 0.0  ;;  %v2993_v33 = vadd.f32 %v5199_v40, %v2922_v0  ;;  %v4287_v43 = vpop.f32.mrb[80].mxu1 }
 0x18b   : > { %v2045_v52 = vpop.f32.mrb[81].mxu0  ;;  %v3875_v42 = vpack.c.bf16 %v3058_v3, %v3058_v3  ;;  %v3059_v46 = vmax.f32 %v2995_v38, 0.0  ;;  %v2863_v53 = vmax.f32 %v4219_v41, %v4287_v43  ;;  %v2654_v1 = vpop.f32.mrb[81].mxu1  ;;  %v5787_v41 = vmax.f32 %v4942_v32, %v4946_v49 }
 0x18c   : > { %v4220_v19 = vpop.f32.mrb[82].mxu0  ;;  %v3873_v20 = vpack.c.bf16 %v3056_v16, %v3056_v16  ;;  %v3057_v47 = vmax.f32 %v2993_v33, 0.0  ;;  %v2861_v50 = vmax.f32 %v2045_v52, %v2654_v1  ;;  %v4288_v21 = vpop.f32.mrb[82].mxu1  ;;  %v5789_v33 = vld [vmem:[#allocation3_spill] sm:$0xff] }
 0x18d   : > { %v2048_v54 = vpop.f32.mrb[83].mxu0  ;;  %3379 = vst.msk [vmem:[%s5220_s22 + $0x38] sm:$0xf] %vm3364_vm3, %v3875_v42  ;;  %v3876_v4 = vpack.c.bf16 %v3059_v46, %v3059_v46  ;;  %v2927_v25 = vmax.f32 %v5781_v22, %v2863_v53  ;;  %v2864_v5 = vmax.f32 %v4220_v19, %v4288_v21  ;;  %v2657_v56 = vpop.f32.mrb[83].mxu1  ;;  %v5790_v43 = vmax.f32 %v5788_v48, %v5789_v33  ;;  %v5804_v48 = vld [vmem:[#allocation13_spill] sm:$0xff] }
 0x18e   : > { %3377 = vst.msk [vmem:[%s5220_s22 + $0x30] sm:$0xf] %vm3364_vm3, %v3873_v20  ;;  %v3874_v57 = vpack.c.bf16 %v3057_v47, %v3057_v47  ;;  %v2925_v26 = vmax.f32 %v5782_v6, %v2861_v50  ;;  %v2862_v30 = vmax.f32 %v2048_v54, %v2657_v56  ;;  %v5791_v56 = vld [vmem:[#allocation4_spill] sm:$0xff] }
 0x18f   : > { %3380 = vst.msk [vmem:[%s5220_s22 + $0x3c] sm:$0xf] %vm3364_vm3, %v3876_v4  ;;  %v2998_v9 = vadd.f32 %v5199_v40, %v2927_v25  ;;  %v2928_v61 = vmax.f32 %v5783_v58, %v2864_v5 }
 0x190   : > { %3378 = vst.msk [vmem:[%s5220_s22 + $0x34] sm:$0xf] %vm3364_vm3, %v3874_v57  ;;  %v2996_v55 = vadd.f32 %v5199_v40, %v2925_v26  ;;  %v2926_v62 = vmax.f32 %v5784_v59, %v2862_v30  ;;  %v5792_v57 = vld [vmem:[#allocation5_spill] sm:$0xff] }
 0x191   : > { %v3062_v31 = vmax.f32 %v2998_v9, 0.0  ;;  %v2999_v60 = vadd.f32 %v5199_v40, %v2928_v61  ;;  %v5793_v6 = vmax.f32 %v5791_v56, %v5792_v57  ;;  %v5794_v61 = vld [vmem:[#allocation6_spill] sm:$0xff] }
 0x192   : > { %v4223_v11 = vpop.f32.mrb[84].mxu0  ;;  %v3060_v34 = vmax.f32 %v2996_v55, 0.0  ;;  %v2997_v63 = vadd.f32 %v5199_v40, %v2926_v62  ;;  %v4291_v10 = vpop.f32.mrb[84].mxu1  ;;  %v5795_v55 = vld [vmem:[#allocation7_spill] sm:$0xff] }
 0x193   : > { %v2061_v14 = vpop.f32.mrb[85].mxu0  ;;  %v3879_v12 = vpack.c.bf16 %v3062_v31, %v3062_v31  ;;  %v3063_v27 = vmax.f32 %v2999_v60, 0.0  ;;  %v2867_v2 = vmax.f32 %v4223_v11, %v4291_v10  ;;  %v2670_v8 = vpop.f32.mrb[85].mxu1  ;;  %v5796_v59 = vmax.f32 %v5794_v61, %v5795_v55  ;;  %v5797_v11 = vld [vmem:[#allocation8_spill] sm:$0xff] }
 0x194   : > { %v4224_v13 = vpop.f32.mrb[86].mxu0  ;;  %v3877_v17 = vpack.c.bf16 %v3060_v34, %v3060_v34  ;;  %v3061_v28 = vmax.f32 %v2997_v63, 0.0  ;;  %v2865_v39 = vmax.f32 %v2061_v14, %v2670_v8  ;;  %v4292_v15 = vpop.f32.mrb[86].mxu1  ;;  %v5798_v34 = vld [vmem:[#allocation9_spill] sm:$0xff] }
 0x195   : > { %v2064_v18 = vpop.f32.mrb[87].mxu0  ;;  %3383 = vst.msk [vmem:[%s5220_s22 + $0x48] sm:$0xf] %vm3364_vm3, %v3879_v12  ;;  %v3880_v24 = vpack.c.bf16 %v3063_v27, %v3063_v27  ;;  %v2931_v35 = vmax.f32 %v5785_v29, %v2867_v2  ;;  %v2868_v45 = vmax.f32 %v4224_v13, %v4292_v15  ;;  %v2673_v7 = vpop.f32.mrb[87].mxu1  ;;  %v5799_v63 = vmax.f32 %v5797_v11, %v5798_v34  ;;  %v5800_v12 = vld [vmem:[#allocation10_spill] sm:$0xff]  ;;  %v5801_v27 = vld [vmem:[#allocation11_spill] sm:$0xff] }
 0x196   : > { %3381 = vst.msk [vmem:[%s5220_s22 + $0x40] sm:$0xf] %vm3364_vm3, %v3877_v17  ;;  %v3878_v36 = vpack.c.bf16 %v3061_v28, %v3061_v28  ;;  %v2929_v0 = vmax.f32 %v5786_v37, %v2865_v39  ;;  %v2866_v3 = vmax.f32 %v2064_v18, %v2673_v7  ;;  %v5802_v2 = vmax.f32 %v5800_v12, %v5801_v27  ;;  %v5816_v12 = vld [vmem:[#allocation21_spill] sm:$0xff] }
 0x197   : > { %3384 = vst.msk [vmem:[%s5220_s22 + $0x4c] sm:$0xf] %vm3364_vm3, %v3880_v24  ;;  %v3002_v38 = vadd.f32 %v5199_v40, %v2931_v35  ;;  %v2932_v16 = vmax.f32 %v5787_v41, %v2868_v45 }
 0x198   : > { %3382 = vst.msk [vmem:[%s5220_s22 + $0x44] sm:$0xf] %vm3364_vm3, %v3878_v36  ;;  %v3000_v44 = vadd.f32 %v5199_v40, %v2929_v0  ;;  %v2930_v52 = vmax.f32 %v5790_v43, %v2866_v3 }
 0x199   : > { %v3066_v42 = vmax.f32 %v3002_v38, 0.0  ;;  %v3003_v51 = vadd.f32 %v5199_v40, %v2932_v16 }
 0x19a   : > { %v4227_v23 = vpop.f32.mrb[88].mxu0  ;;  %v3064_v46 = vmax.f32 %v3000_v44, 0.0  ;;  %v3001_v53 = vadd.f32 %v5199_v40, %v2930_v52  ;;  %v4295_v1 = vpop.f32.mrb[88].mxu1  ;;  %v5803_v44 = vld [vmem:[#allocation12_spill] sm:$0xff] }
 0x19b   : > { %v2077_v19 = vpop.f32.mrb[89].mxu0  ;;  %v3883_v49 = vpack.c.bf16 %v3066_v42, %v3066_v42  ;;  %v3067_v32 = vmax.f32 %v3003_v51, 0.0  ;;  %v2871_v20 = vmax.f32 %v4227_v23, %v4295_v1  ;;  %v2686_v47 = vpop.f32.mrb[89].mxu1  ;;  %v5805_v33 = vmax.f32 %v5803_v44, %v5804_v48  ;;  %v5806_v23 = vld [vmem:[#allocation14_spill] sm:$0xff] }
 0x19c   : > { %v4228_v50 = vpop.f32.mrb[90].mxu0  ;;  %v3881_v21 = vpack.c.bf16 %v3064_v46, %v3064_v46  ;;  %v3065_v54 = vmax.f32 %v3001_v53, 0.0  ;;  %v2869_v4 = vmax.f32 %v2077_v19, %v2686_v47  ;;  %v4296_v22 = vpop.f32.mrb[90].mxu1  ;;  %v5807_v46 = vld [vmem:[#allocation15_spill] sm:$0xff] }
 0x19d   : > { %v2080_v25 = vpop.f32.mrb[91].mxu0  ;;  %3387 = vst.msk [vmem:[%s5220_s22 + $0x58] sm:$0xf] %vm3364_vm3, %v3883_v49  ;;  %v3884_v5 = vpack.c.bf16 %v3067_v32, %v3067_v32  ;;  %v2935_v26 = vmax.f32 %v5793_v6, %v2871_v20  ;;  %v2872_v30 = vmax.f32 %v4228_v50, %v4296_v22  ;;  %v2689_v9 = vpop.f32.mrb[91].mxu1  ;;  %v5808_v53 = vmax.f32 %v5806_v23, %v5807_v46  ;;  %v5809_v32 = vld [vmem:[#allocation16_spill] sm:$0xff]  ;;  %v5810_v20 = vld [vmem:[#allocation17_spill] sm:$0xff] }
 0x19e   : > { %3385 = vst.msk [vmem:[%s5220_s22 + $0x50] sm:$0xf] %vm3364_vm3, %v3881_v21  ;;  %v3882_v58 = vpack.c.bf16 %v3065_v54, %v3065_v54  ;;  %v2933_v62 = vmax.f32 %v5796_v59, %v2869_v4  ;;  %v2870_v31 = vmax.f32 %v2080_v25, %v2689_v9  ;;  %v5811_v47 = vmax.f32 %v5809_v32, %v5810_v20  ;;  %v5812_v54 = vld [vmem:[#allocation18_spill] sm:$0xff]  ;;  %v5813_v4 = vld [vmem:[#allocation19_spill] sm:$0xff] }
 0x19f   : > { %3388 = vst.msk [vmem:[%s5220_s22 + $0x5c] sm:$0xf] %vm3364_vm3, %v3884_v5  ;;  %v3006_v60 = vadd.f32 %v5199_v40, %v2935_v26  ;;  %v2936_v10 = vmax.f32 %v5799_v63, %v2872_v30  ;;  %v5814_v22 = vmax.f32 %v5812_v54, %v5813_v4  ;;  %v5828_v54 = vld [vmem:[#allocation29_spill] sm:$0xff] }
 0x1a0   : > { %3386 = vst.msk [vmem:[%s5220_s22 + $0x54] sm:$0xf] %vm3364_vm3, %v3882_v58  ;;  %v3004_v14 = vadd.f32 %v5199_v40, %v2933_v62  ;;  %v2934_v8 = vmax.f32 %v5802_v2, %v2870_v31 }
 0x1a1   : > { %v3070_v13 = vmax.f32 %v3006_v60, 0.0  ;;  %v3007_v17 = vadd.f32 %v5199_v40, %v2936_v10 }
 0x1a2   : > { %v4231_v28 = vpop.f32.mrb[92].mxu0  ;;  %v3068_v39 = vmax.f32 %v3004_v14, 0.0  ;;  %v3005_v15 = vadd.f32 %v5199_v40, %v2934_v8  ;;  %v4299_v18 = vpop.f32.mrb[92].mxu1  ;;  %v5815_v14 = vld [vmem:[#allocation20_spill] sm:$0xff] }
 0x1a3   : > { %v2093_v24 = vpop.f32.mrb[93].mxu0  ;;  %v3887_v29 = vpack.c.bf16 %v3070_v13, %v3070_v13  ;;  %v3071_v35 = vmax.f32 %v3007_v17, 0.0  ;;  %v2875_v45 = vmax.f32 %v4231_v28, %v4299_v18  ;;  %v2702_v7 = vpop.f32.mrb[93].mxu1  ;;  %v5817_v27 = vmax.f32 %v5815_v14, %v5816_v12  ;;  %v5818_v28 = vld [vmem:[#allocation22_spill] sm:$0xff] }
 0x1a4   : > { %v4232_v36 = vpop.f32.mrb[94].mxu0  ;;  %v3885_v37 = vpack.c.bf16 %v3068_v39, %v3068_v39  ;;  %v3069_v0 = vmax.f32 %v3005_v15, 0.0  ;;  %v2873_v3 = vmax.f32 %v2093_v24, %v2702_v7  ;;  %v4300_v38 = vpop.f32.mrb[94].mxu1  ;;  %v5819_v39 = vld [vmem:[#allocation23_spill] sm:$0xff] }
 0x1a5   : > { %v2096_v41 = vpop.f32.mrb[95].mxu0  ;;  %3391 = vst.msk [vmem:[%s5220_s22 + $0x68] sm:$0xf] %vm3364_vm3, %v3887_v29  ;;  %v3888_v16 = vpack.c.bf16 %v3071_v35, %v3071_v35  ;;  %v2939_v43 = vmax.f32 %v5805_v33, %v2875_v45  ;;  %v2876_v52 = vmax.f32 %v4232_v36, %v4300_v38  ;;  %v2705_v42 = vpop.f32.mrb[95].mxu1  ;;  %v5820_v15 = vmax.f32 %v5818_v28, %v5819_v39  ;;  %v5821_v35 = vld [vmem:[#allocation24_spill] sm:$0xff]  ;;  %v5822_v45 = vld [vmem:[#allocation25_spill] sm:$0xff] }
 0x1a6   : > { %3389 = vst.msk [vmem:[%s5220_s22 + $0x60] sm:$0xf] %vm3364_vm3, %v3885_v37  ;;  %v3886_v51 = vpack.c.bf16 %v3069_v0, %v3069_v0  ;;  %v2937_v1 = vmax.f32 %v5808_v53, %v2873_v3  ;;  %v2874_v19 = vmax.f32 %v2096_v41, %v2705_v42  ;;  %v5823_v7 = vmax.f32 %v5821_v35, %v5822_v45  ;;  %v5824_v0 = vld [vmem:[#allocation26_spill] sm:$0xff]  ;;  %v5825_v3 = vld [vmem:[#allocation27_spill] sm:$0xff] }
 0x1a7   : > { %3392 = vst.msk [vmem:[%s5220_s22 + $0x6c] sm:$0xf] %vm3364_vm3, %v3888_v16  ;;  %v3010_v49 = vadd.f32 %v5199_v40, %v2939_v43  ;;  %v2940_v50 = vmax.f32 %v5811_v47, %v2876_v52  ;;  %v5826_v38 = vmax.f32 %v5824_v0, %v5825_v3  ;;  %v5840_v0 = vld [vmem:[#allocation37_spill] sm:$0xff] }
 0x1a8   : > { %3390 = vst.msk [vmem:[%s5220_s22 + $0x64] sm:$0xf] %vm3364_vm3, %v3886_v51  ;;  %v3008_v21 = vadd.f32 %v5199_v40, %v2937_v1  ;;  %v2938_v25 = vmax.f32 %v5814_v22, %v2874_v19 }
 0x1a9   : > { %v3074_v5 = vmax.f32 %v3010_v49, 0.0  ;;  %v3011_v56 = vadd.f32 %v5199_v40, %v2940_v50 }
 0x1aa   : > { %v4235_v57 = vpop.f32.mrb[96].mxu0  ;;  %v3072_v6 = vmax.f32 %v3008_v21, 0.0  ;;  %v3009_v26 = vadd.f32 %v5199_v40, %v2938_v25  ;;  %v4303_v30 = vpop.f32.mrb[96].mxu1  ;;  %v5827_v21 = vld [vmem:[#allocation28_spill] sm:$0xff] }
 0x1ab   : > { %v2109_v9 = vpop.f32.mrb[97].mxu0  ;;  %v3891_v58 = vpack.c.bf16 %v3074_v5, %v3074_v5  ;;  %v3075_v61 = vmax.f32 %v3011_v56, 0.0  ;;  %v2879_v55 = vmax.f32 %v4235_v57, %v4303_v30  ;;  %v2718_v59 = vpop.f32.mrb[97].mxu1  ;;  %v5829_v4 = vmax.f32 %v5827_v21, %v5828_v54  ;;  %v5830_v57 = vld [vmem:[#allocation30_spill] sm:$0xff] }
 0x1ac   : > { %v4236_v62 = vpop.f32.mrb[98].mxu0  ;;  %v3889_v31 = vpack.c.bf16 %v3072_v6, %v3072_v6  ;;  %v3073_v60 = vmax.f32 %v3009_v26, 0.0  ;;  %v2877_v11 = vmax.f32 %v2109_v9, %v2718_v59  ;;  %v4304_v34 = vpop.f32.mrb[98].mxu1  ;;  %v5831_v6 = vld [vmem:[#allocation31_spill] sm:$0xff] }
 0x1ad   : > { %v2112_v63 = vpop.f32.mrb[99].mxu0  ;;  %3395 = vst.msk [vmem:[%s5220_s22 + $0x78] sm:$0xf] %vm3364_vm3, %v3891_v58  ;;  %v3892_v10 = vpack.c.bf16 %v3075_v61, %v3075_v61  ;;  %v2943_v2 = vmax.f32 %v5817_v27, %v2879_v55  ;;  %v2880_v8 = vmax.f32 %v4236_v62, %v4304_v34  ;;  %v2721_v13 = vpop.f32.mrb[99].mxu1  ;;  %v5832_v26 = vmax.f32 %v5830_v57, %v5831_v6  ;;  %v5833_v61 = vld [vmem:[#allocation32_spill] sm:$0xff]  ;;  %v5834_v55 = vld [vmem:[#allocation33_spill] sm:$0xff] }
 0x1ae   : > { %3393 = vst.msk [vmem:[%s5220_s22 + $0x70] sm:$0xf] %vm3364_vm3, %v3889_v31  ;;  %v3890_v17 = vpack.c.bf16 %v3073_v60, %v3073_v60  ;;  %v2941_v18 = vmax.f32 %v5820_v15, %v2877_v11  ;;  %v2878_v24 = vmax.f32 %v2112_v63, %v2721_v13  ;;  %v5835_v59 = vmax.f32 %v5833_v61, %v5834_v55  ;;  %v5836_v60 = vld [vmem:[#allocation34_spill] sm:$0xff]  ;;  %v5837_v11 = vld [vmem:[#allocation35_spill] sm:$0xff] }
 0x1af   : > { %3396 = vst.msk [vmem:[%s5220_s22 + $0x7c] sm:$0xf] %vm3364_vm3, %v3892_v10  ;;  %v3014_v29 = vadd.f32 %v5199_v40, %v2943_v2  ;;  %v2944_v36 = vmax.f32 %v5823_v7, %v2880_v8  ;;  %v5838_v34 = vmax.f32 %v5836_v60, %v5837_v11  ;;  %v5852_v60 = vld [vmem:[#allocation45_spill] sm:$0xff] }
 0x1b0   : > { %3394 = vst.msk [vmem:[%s5220_s22 + $0x74] sm:$0xf] %vm3364_vm3, %v3890_v17  ;;  %v3012_v37 = vadd.f32 %v5199_v40, %v2941_v18  ;;  %v2942_v41 = vmax.f32 %v5826_v38, %v2878_v24 }
 0x1b1   : > { %v3078_v16 = vmax.f32 %v3014_v29, 0.0  ;;  %v3015_v44 = vadd.f32 %v5199_v40, %v2944_v36 }
 0x1b2   : > { %v4239_v48 = vpop.f32.mrb[100].mxu0  ;;  %v3076_v33 = vmax.f32 %v3012_v37, 0.0  ;;  %v3013_v43 = vadd.f32 %v5199_v40, %v2942_v41  ;;  %v4307_v52 = vpop.f32.mrb[100].mxu1  ;;  %v5839_v37 = vld [vmem:[#allocation36_spill] sm:$0xff] }
 0x1b3   : > { %v2125_v42 = vpop.f32.mrb[101].mxu0  ;;  %v3895_v51 = vpack.c.bf16 %v3078_v16, %v3078_v16  ;;  %v3079_v23 = vmax.f32 %v3015_v44, 0.0  ;;  %v2883_v46 = vmax.f32 %v4239_v48, %v4307_v52  ;;  %v2734_v53 = vpop.f32.mrb[101].mxu1  ;;  %v5841_v3 = vmax.f32 %v5839_v37, %v5840_v0  ;;  %v5842_v48 = vld [vmem:[#allocation38_spill] sm:$0xff] }
 0x1b4   : > { %v4240_v1 = vpop.f32.mrb[102].mxu0  ;;  %v3893_v19 = vpack.c.bf16 %v3076_v33, %v3076_v33  ;;  %v3077_v49 = vmax.f32 %v3013_v43, 0.0  ;;  %v2881_v32 = vmax.f32 %v2125_v42, %v2734_v53  ;;  %v4308_v20 = vpop.f32.mrb[102].mxu1  ;;  %v5843_v33 = vld [vmem:[#allocation39_spill] sm:$0xff] }
 0x1b5   : > { %v2128_v47 = vpop.f32.mrb[103].mxu0  ;;  %3399 = vst.msk [vmem:[%s5220_s22 + $0x88] sm:$0xf] %vm3364_vm3, %v3895_v51  ;;  %v3896_v50 = vpack.c.bf16 %v3079_v23, %v3079_v23  ;;  %v2947_v22 = vmax.f32 %v5829_v4, %v2883_v46  ;;  %v2884_v25 = vmax.f32 %v4240_v1, %v4308_v20  ;;  %v2737_v5 = vpop.f32.mrb[103].mxu1  ;;  %v5844_v43 = vmax.f32 %v5842_v48, %v5843_v33  ;;  %v5845_v23 = vld [vmem:[#allocation40_spill] sm:$0xff]  ;;  %v5846_v46 = vld [vmem:[#allocation41_spill] sm:$0xff] }
 0x1b6   : > { %3397 = vst.msk [vmem:[%s5220_s22 + $0x80] sm:$0xf] %vm3364_vm3, %v3893_v19  ;;  %v3894_v56 = vpack.c.bf16 %v3077_v49, %v3077_v49  ;;  %v2945_v30 = vmax.f32 %v5832_v26, %v2881_v32  ;;  %v2882_v9 = vmax.f32 %v2128_v47, %v2737_v5  ;;  %v5847_v53 = vmax.f32 %v5845_v23, %v5846_v46  ;;  %v5848_v49 = vld [vmem:[#allocation42_spill] sm:$0xff]  ;;  %v5849_v32 = vld [vmem:[#allocation43_spill] sm:$0xff] }
 0x1b7   : > { %3400 = vst.msk [vmem:[%s5220_s22 + $0x8c] sm:$0xf] %vm3364_vm3, %v3896_v50  ;;  %v3018_v58 = vadd.f32 %v5199_v40, %v2947_v22  ;;  %v2948_v62 = vmax.f32 %v5835_v59, %v2884_v25  ;;  %v5850_v20 = vmax.f32 %v5848_v49, %v5849_v32  ;;  %v5864_v49 = vld [vmem:[#allocation53_spill] sm:$0xff] }
 0x1b8   : > { %3398 = vst.msk [vmem:[%s5220_s22 + $0x84] sm:$0xf] %vm3364_vm3, %v3894_v56  ;;  %v3016_v31 = vadd.f32 %v5199_v40, %v2945_v30  ;;  %v2946_v63 = vmax.f32 %v5838_v34, %v2882_v9 }
 0x1b9   : > { %v3082_v10 = vmax.f32 %v3018_v58, 0.0  ;;  %v3019_v14 = vadd.f32 %v5199_v40, %v2948_v62 }
 0x1ba   : > { %v4243_v12 = vpop.f32.mrb[104].mxu0  ;;  %v3080_v27 = vmax.f32 %v3016_v31, 0.0  ;;  %v3017_v2 = vadd.f32 %v5199_v40, %v2946_v63  ;;  %v4311_v8 = vpop.f32.mrb[104].mxu1  ;;  %v5851_v31 = vld [vmem:[#allocation44_spill] sm:$0xff] }
 0x1bb   : > { %v2141_v13 = vpop.f32.mrb[105].mxu0  ;;  %v3899_v17 = vpack.c.bf16 %v3082_v10, %v3082_v10  ;;  %v3083_v28 = vmax.f32 %v3019_v14, 0.0  ;;  %v2887_v39 = vmax.f32 %v4243_v12, %v4311_v8  ;;  %v2750_v15 = vpop.f32.mrb[105].mxu1  ;;  %v5853_v11 = vmax.f32 %v5851_v31, %v5852_v60  ;;  %v5854_v12 = vld [vmem:[#allocation46_spill] sm:$0xff] }
 0x1bc   : > { %v4244_v18 = vpop.f32.mrb[106].mxu0  ;;  %v3897_v24 = vpack.c.bf16 %v3080_v27, %v3080_v27  ;;  %v3081_v29 = vmax.f32 %v3017_v2, 0.0  ;;  %v2885_v35 = vmax.f32 %v2141_v13, %v2750_v15  ;;  %v4312_v45 = vpop.f32.mrb[106].mxu1  ;;  %v5855_v27 = vld [vmem:[#allocation47_spill] sm:$0xff] }
 0x1bd   : > { %v2144_v7 = vpop.f32.mrb[107].mxu0  ;;  %3403 = vst.msk [vmem:[%s5220_s22 + $0x98] sm:$0xf] %vm3364_vm3, %v3899_v17  ;;  %v3900_v36 = vpack.c.bf16 %v3083_v28, %v3083_v28  ;;  %v2951_v38 = vmax.f32 %v5841_v3, %v2887_v39  ;;  %v2888_v41 = vmax.f32 %v4244_v18, %v4312_v45  ;;  %v2753_v16 = vpop.f32.mrb[107].mxu1  ;;  %v5856_v2 = vmax.f32 %v5854_v12, %v5855_v27  ;;  %v5857_v28 = vld [vmem:[#allocation48_spill] sm:$0xff]  ;;  %v5858_v39 = vld [vmem:[#allocation49_spill] sm:$0xff] }
 0x1be   : > { %3401 = vst.msk [vmem:[%s5220_s22 + $0x90] sm:$0xf] %vm3364_vm3, %v3897_v24  ;;  %v3898_v44 = vpack.c.bf16 %v3081_v29, %v3081_v29  ;;  %v2949_v52 = vmax.f32 %v5844_v43, %v2885_v35  ;;  %v2886_v42 = vmax.f32 %v2144_v7, %v2753_v16  ;;  %v5859_v15 = vmax.f32 %v5857_v28, %v5858_v39  ;;  %v5860_v29 = vld [vmem:[#allocation50_spill] sm:$0xff]  ;;  %v5861_v35 = vld [vmem:[#allocation51_spill] sm:$0xff] }
 0x1bf   : > { %3404 = vst.msk [vmem:[%s5220_s22 + $0x9c] sm:$0xf] %vm3364_vm3, %v3900_v36  ;;  %v3022_v51 = vadd.f32 %v5199_v40, %v2951_v38  ;;  %v2952_v1 = vmax.f32 %v5847_v53, %v2888_v41  ;;  %v5862_v45 = vmax.f32 %v5860_v29, %v5861_v35  ;;  %v5876_v29 = vld [vmem:[#allocation61_spill] sm:$0xff] }
 0x1c0   : > { %3402 = vst.msk [vmem:[%s5220_s22 + $0x94] sm:$0xf] %vm3364_vm3, %v3898_v44  ;;  %v3020_v19 = vadd.f32 %v5199_v40, %v2949_v52  ;;  %v2950_v47 = vmax.f32 %v5850_v20, %v2886_v42 }
 0x1c1   : > { %v3086_v50 = vmax.f32 %v3022_v51, 0.0  ;;  %v3023_v21 = vadd.f32 %v5199_v40, %v2952_v1 }
 0x1c2   : > { %v4247_v54 = vpop.f32.mrb[108].mxu0  ;;  %v3084_v4 = vmax.f32 %v3020_v19, 0.0  ;;  %v3021_v22 = vadd.f32 %v5199_v40, %v2950_v47  ;;  %v4315_v25 = vpop.f32.mrb[108].mxu1  ;;  %v5863_v19 = vld [vmem:[#allocation52_spill] sm:$0xff] }
 0x1c3   : > { %v2157_v5 = vpop.f32.mrb[109].mxu0  ;;  %v3903_v56 = vpack.c.bf16 %v3086_v50, %v3086_v50  ;;  %v3087_v57 = vmax.f32 %v3023_v21, 0.0  ;;  %v2891_v6 = vmax.f32 %v4247_v54, %v4315_v25  ;;  %v2766_v26 = vpop.f32.mrb[109].mxu1  ;;  %v5865_v32 = vmax.f32 %v5863_v19, %v5864_v49  ;;  %v5866_v54 = vld [vmem:[#allocation54_spill] sm:$0xff] }
 0x1c4   : > { %v4248_v30 = vpop.f32.mrb[110].mxu0  ;;  %v3901_v9 = vpack.c.bf16 %v3084_v4, %v3084_v4  ;;  %v3085_v58 = vmax.f32 %v3021_v22, 0.0  ;;  %v2889_v61 = vmax.f32 %v2157_v5, %v2766_v26  ;;  %v4316_v55 = vpop.f32.mrb[110].mxu1  ;;  %v5867_v4 = vld [vmem:[#allocation55_spill] sm:$0xff] }
 0x1c5   : > { %v2160_v59 = vpop.f32.mrb[111].mxu0  ;;  %3407 = vst.msk [vmem:[%s5220_s22 + $0xa8] sm:$0xf] %vm3364_vm3, %v3903_v56  ;;  %v3904_v62 = vpack.c.bf16 %v3087_v57, %v3087_v57  ;;  %v2955_v34 = vmax.f32 %v5853_v11, %v2891_v6  ;;  %v2892_v63 = vmax.f32 %v4248_v30, %v4316_v55  ;;  %v2769_v10 = vpop.f32.mrb[111].mxu1  ;;  %v5868_v22 = vmax.f32 %v5866_v54, %v5867_v4  ;;  %v5869_v57 = vld [vmem:[#allocation56_spill] sm:$0xff]  ;;  %v5870_v6 = vld [vmem:[#allocation57_spill] sm:$0xff] }
 0x1c6   : > { %3405 = vst.msk [vmem:[%s5220_s22 + $0xa0] sm:$0xf] %vm3364_vm3, %v3901_v9  ;;  %v3902_v14 = vpack.c.bf16 %v3085_v58, %v3085_v58  ;;  %v2953_v8 = vmax.f32 %v5856_v2, %v2889_v61  ;;  %v2890_v13 = vmax.f32 %v2160_v59, %v2769_v10  ;;  %v5871_v26 = vmax.f32 %v5869_v57, %v5870_v6  ;;  %v5872_v58 = vld [vmem:[#allocation58_spill] sm:$0xff]  ;;  %v5873_v61 = vld [vmem:[#allocation59_spill] sm:$0xff] }
 0x1c7   : > { %3408 = vst.msk [vmem:[%s5220_s22 + $0xac] sm:$0xf] %vm3364_vm3, %v3904_v62  ;;  %v3026_v17 = vadd.f32 %v5199_v40, %v2955_v34  ;;  %v2956_v18 = vmax.f32 %v5859_v15, %v2892_v63  ;;  %v5874_v55 = vmax.f32 %v5872_v58, %v5873_v61  ;;  %v5888_v58 = vld [vmem:[#allocation69_spill] sm:$0xff] }
 0x1c8   : > { %3406 = vst.msk [vmem:[%s5220_s22 + $0xa4] sm:$0xf] %vm3364_vm3, %v3902_v14  ;;  %v3024_v24 = vadd.f32 %v5199_v40, %v2953_v8  ;;  %v2954_v7 = vmax.f32 %v5862_v45, %v2890_v13 }
 0x1c9   : > { %v3090_v36 = vmax.f32 %v3026_v17, 0.0  ;;  %v3027_v37 = vadd.f32 %v5199_v40, %v2956_v18 }
 0x1ca   : > { %v4251_v0 = vpop.f32.mrb[112].mxu0  ;;  %v3088_v3 = vmax.f32 %v3024_v24, 0.0  ;;  %v3025_v38 = vadd.f32 %v5199_v40, %v2954_v7  ;;  %v4319_v41 = vpop.f32.mrb[112].mxu1  ;;  %v5875_v24 = vld [vmem:[#allocation60_spill] sm:$0xff] }
 0x1cb   : > { %v2173_v16 = vpop.f32.mrb[113].mxu0  ;;  %v3907_v44 = vpack.c.bf16 %v3090_v36, %v3090_v36  ;;  %v3091_v48 = vmax.f32 %v3027_v37, 0.0  ;;  %v2895_v33 = vmax.f32 %v4251_v0, %v4319_v41  ;;  %v2782_v43 = vpop.f32.mrb[113].mxu1  ;;  %v5877_v35 = vmax.f32 %v5875_v24, %v5876_v29  ;;  %v5878_v0 = vld [vmem:[#allocation62_spill] sm:$0xff] }
 0x1cc   : > { %v4252_v52 = vpop.f32.mrb[114].mxu0  ;;  %v3905_v42 = vpack.c.bf16 %v3088_v3, %v3088_v3  ;;  %v3089_v51 = vmax.f32 %v3025_v38, 0.0  ;;  %v2893_v23 = vmax.f32 %v2173_v16, %v2782_v43  ;;  %v4320_v46 = vpop.f32.mrb[114].mxu1  ;;  %v5879_v3 = vld [vmem:[#allocation63_spill] sm:$0xff] }
 0x1cd   : > { %v2176_v53 = vpop.f32.mrb[115].mxu0  ;;  %3411 = vst.msk [vmem:[%s5220_s22 + $0xb8] sm:$0xf] %vm3364_vm3, %v3907_v44  ;;  %v3908_v1 = vpack.c.bf16 %v3091_v48, %v3091_v48  ;;  %v2959_v20 = vmax.f32 %v5865_v32, %v2895_v33  ;;  %v2896_v47 = vmax.f32 %v4252_v52, %v4320_v46  ;;  %v2785_v50 = vpop.f32.mrb[115].mxu1  ;;  %v5880_v38 = vmax.f32 %v5878_v0, %v5879_v3  ;;  %v5881_v48 = vld [vmem:[#allocation64_spill] sm:$0xff]  ;;  %v5882_v33 = vld [vmem:[#allocation65_spill] sm:$0xff] }
 0x1ce   : > { %3409 = vst.msk [vmem:[%s5220_s22 + $0xb0] sm:$0xf] %vm3364_vm3, %v3905_v42  ;;  %v3906_v21 = vpack.c.bf16 %v3089_v51, %v3089_v51  ;;  %v2957_v25 = vmax.f32 %v5868_v22, %v2893_v23  ;;  %v2894_v5 = vmax.f32 %v2176_v53, %v2785_v50  ;;  %v5883_v43 = vmax.f32 %v5881_v48, %v5882_v33  ;;  %v5884_v51 = vld [vmem:[#allocation66_spill] sm:$0xff]  ;;  %v5885_v23 = vld [vmem:[#allocation67_spill] sm:$0xff] }
 0x1cf   : > { %3412 = vst.msk [vmem:[%s5220_s22 + $0xbc] sm:$0xf] %vm3364_vm3, %v3908_v1  ;;  %v3030_v56 = vadd.f32 %v5199_v40, %v2959_v20  ;;  %v2960_v30 = vmax.f32 %v5871_v26, %v2896_v47  ;;  %v5886_v46 = vmax.f32 %v5884_v51, %v5885_v23  ;;  %v5900_v51 = vld [vmem:[#allocation77_spill] sm:$0xff] }
 0x1d0   : > { %3410 = vst.msk [vmem:[%s5220_s22 + $0xb4] sm:$0xf] %vm3364_vm3, %v3906_v21  ;;  %v3028_v9 = vadd.f32 %v5199_v40, %v2957_v25  ;;  %v2958_v59 = vmax.f32 %v5874_v55, %v2894_v5 }
 0x1d1   : > { %v3094_v62 = vmax.f32 %v3030_v56, 0.0  ;;  %v3031_v31 = vadd.f32 %v5199_v40, %v2960_v30 }
 0x1d2   : > { %v4255_v60 = vpop.f32.mrb[116].mxu0  ;;  %v3092_v11 = vmax.f32 %v3028_v9, 0.0  ;;  %v3029_v34 = vadd.f32 %v5199_v40, %v2958_v59  ;;  %v4323_v63 = vpop.f32.mrb[116].mxu1  ;;  %v5887_v9 = vld [vmem:[#allocation68_spill] sm:$0xff] }
 0x1d3   : > { %v2189_v10 = vpop.f32.mrb[117].mxu0  ;;  %v3911_v14 = vpack.c.bf16 %v3094_v62, %v3094_v62  ;;  %v3095_v12 = vmax.f32 %v3031_v31, 0.0  ;;  %v2899_v27 = vmax.f32 %v4255_v60, %v4323_v63  ;;  %v2798_v2 = vpop.f32.mrb[117].mxu1  ;;  %v5889_v61 = vmax.f32 %v5887_v9, %v5888_v58  ;;  %v5890_v60 = vld [vmem:[#allocation70_spill] sm:$0xff] }
 0x1d4   : > { %v4256_v8 = vpop.f32.mrb[118].mxu0  ;;  %v3909_v13 = vpack.c.bf16 %v3092_v11, %v3092_v11  ;;  %v3093_v17 = vmax.f32 %v3029_v34, 0.0  ;;  %v2897_v28 = vmax.f32 %v2189_v10, %v2798_v2  ;;  %v4324_v39 = vpop.f32.mrb[118].mxu1  ;;  %v5891_v11 = vld [vmem:[#allocation71_spill] sm:$0xff] }
 0x1d5   : > { %v2192_v15 = vpop.f32.mrb[119].mxu0  ;;  %3415 = vst.msk [vmem:[%s5220_s22 + $0xc8] sm:$0xf] %vm3364_vm3, %v3911_v14  ;;  %v3912_v18 = vpack.c.bf16 %v3095_v12, %v3095_v12  ;;  %v2963_v45 = vmax.f32 %v5877_v35, %v2899_v27  ;;  %v2900_v7 = vmax.f32 %v4256_v8, %v4324_v39  ;;  %v2801_v36 = vpop.f32.mrb[119].mxu1  ;;  %v5892_v34 = vmax.f32 %v5890_v60, %v5891_v11  ;;  %v5893_v12 = vld [vmem:[#allocation72_spill] sm:$0xff]  ;;  %v5894_v27 = vld [vmem:[#allocation73_spill] sm:$0xff] }
 0x1d6   : > { %3413 = vst.msk [vmem:[%s5220_s22 + $0xc0] sm:$0xf] %vm3364_vm3, %v3909_v13  ;;  %v3910_v37 = vpack.c.bf16 %v3093_v17, %v3093_v17  ;;  %v2961_v41 = vmax.f32 %v5880_v38, %v2897_v28  ;;  %v2898_v16 = vmax.f32 %v2192_v15, %v2801_v36  ;;  %v5895_v2 = vmax.f32 %v5893_v12, %v5894_v27  ;;  %v5896_v17 = vld [vmem:[#allocation74_spill] sm:$0xff]  ;;  %v5897_v28 = vld [vmem:[#allocation75_spill] sm:$0xff] }
 0x1d7   : > { %3416 = vst.msk [vmem:[%s5220_s22 + $0xcc] sm:$0xf] %vm3364_vm3, %v3912_v18  ;;  %v3034_v44 = vadd.f32 %v5199_v40, %v2963_v45  ;;  %v2964_v52 = vmax.f32 %v5883_v43, %v2900_v7  ;;  %v5898_v39 = vmax.f32 %v5896_v17, %v5897_v28 }
 0x1d8   : > { %3414 = vst.msk [vmem:[%s5220_s22 + $0xc4] sm:$0xf] %vm3364_vm3, %v3910_v37  ;;  %v3032_v42 = vadd.f32 %v5199_v40, %v2961_v41  ;;  %v2962_v53 = vmax.f32 %v5886_v46, %v2898_v16 }
 0x1d9   : > { %v3098_v1 = vmax.f32 %v3034_v44, 0.0  ;;  %v3035_v19 = vadd.f32 %v5199_v40, %v2964_v52 }
 0x1da   : > { %v4259_v49 = vpop.f32.mrb[120].mxu0  ;;  %v3096_v32 = vmax.f32 %v3032_v42, 0.0  ;;  %v3033_v20 = vadd.f32 %v5199_v40, %v2962_v53  ;;  %v4327_v47 = vpop.f32.mrb[120].mxu1  ;;  %v5899_v42 = vld [vmem:[#allocation76_spill] sm:$0xff] }
 0x1db   : > { %v2205_v50 = vpop.f32.mrb[121].mxu0  ;;  %v3915_v21 = vpack.c.bf16 %v3098_v1, %v3098_v1  ;;  %v3099_v54 = vmax.f32 %v3035_v19, 0.0  ;;  %v2903_v4 = vmax.f32 %v4259_v49, %v4327_v47  ;;  %v2814_v22 = vpop.f32.mrb[121].mxu1  ;;  %v5901_v23 = vmax.f32 %v5899_v42, %v5900_v51  ;;  %v5902_v49 = vld [vmem:[#allocation78_spill] sm:$0xff] }
 0x1dc   : > { %v4260_v25 = vpop.f32.mrb[122].mxu0  ;;  %v3913_v5 = vpack.c.bf16 %v3096_v32, %v3096_v32  ;;  %v3097_v56 = vmax.f32 %v3033_v20, 0.0  ;;  %v2901_v57 = vmax.f32 %v2205_v50, %v2814_v22  ;;  %v4328_v6 = vpop.f32.mrb[122].mxu1  ;;  %v5903_v32 = vld [vmem:[#allocation79_spill] sm:$0xff] }
 0x1dd   : > { %v2208_v26 = vpop.f32.mrb[123].mxu0  ;;  %3419 = vst.msk [vmem:[%s5220_s22 + $0xd8] sm:$0xf] %vm3364_vm3, %v3915_v21  ;;  %v3916_v30 = vpack.c.bf16 %v3099_v54, %v3099_v54  ;;  %v2967_v55 = vmax.f32 %v5889_v61, %v2903_v4  ;;  %v2904_v59 = vmax.f32 %v4260_v25, %v4328_v6  ;;  %v2817_v62 = vpop.f32.mrb[123].mxu1  ;;  %v5904_v20 = vmax.f32 %v5902_v49, %v5903_v32  ;;  %v5905_v54 = vld [vmem:[#allocation80_spill] sm:$0xff]  ;;  %v5906_v4 = vld [vmem:[#allocation81_spill] sm:$0xff] }
 0x1de   : > { %3417 = vst.msk [vmem:[%s5220_s22 + $0xd0] sm:$0xf] %vm3364_vm3, %v3913_v5  ;;  %v3914_v31 = vpack.c.bf16 %v3097_v56, %v3097_v56  ;;  %v2965_v63 = vmax.f32 %v5892_v34, %v2901_v57  ;;  %v2902_v10 = vmax.f32 %v2208_v26, %v2817_v62  ;;  %v5907_v22 = vmax.f32 %v5905_v54, %v5906_v4  ;;  %v5908_v56 = vld [vmem:[#allocation82_spill] sm:$0xff]  ;;  %v5909_v57 = vld [vmem:[#allocation83_spill] sm:$0xff] }
 0x1df   : > { %3420 = vst.msk [vmem:[%s5220_s22 + $0xdc] sm:$0xf] %vm3364_vm3, %v3916_v30  ;;  %v3038_v14 = vadd.f32 %v5199_v40, %v2967_v55  ;;  %v2968_v8 = vmax.f32 %v5895_v2, %v2904_v59  ;;  %v5910_v6 = vmax.f32 %v5908_v56, %v5909_v57 }
 0x1e0   : > { %3418 = vst.msk [vmem:[%s5220_s22 + $0xd4] sm:$0xf] %vm3364_vm3, %v3914_v31  ;;  %v3036_v13 = vadd.f32 %v5199_v40, %v2965_v63  ;;  %v2966_v15 = vmax.f32 %v5898_v39, %v2902_v10 }
 0x1e1   : > { %v3102_v18 = vmax.f32 %v3038_v14, 0.0  ;;  %v3039_v24 = vadd.f32 %v5199_v40, %v2968_v8 }
 0x1e2   : > { %v4263_v29 = vpop.f32.mrb[124].mxu0  ;;  %v3100_v35 = vmax.f32 %v3036_v13, 0.0  ;;  %v3037_v45 = vadd.f32 %v5199_v40, %v2966_v15  ;;  %v4331_v7 = vpop.f32.mrb[124].mxu1 }
 0x1e3   : > { %v2221_v36 = vpop.f32.mrb[125].mxu0  ;;  %v3919_v37 = vpack.c.bf16 %v3102_v18, %v3102_v18  ;;  %v3103_v0 = vmax.f32 %v3039_v24, 0.0  ;;  %v2907_v3 = vmax.f32 %v4263_v29, %v4331_v7  ;;  %v2830_v38 = vpop.f32.mrb[125].mxu1 }
 0x1e4   : > { %v4264_v41 = vpop.f32.mrb[126].mxu0  ;;  %v3917_v16 = vpack.c.bf16 %v3100_v35, %v3100_v35  ;;  %v3101_v44 = vmax.f32 %v3037_v45, 0.0  ;;  %v2905_v48 = vmax.f32 %v2221_v36, %v2830_v38  ;;  %v4332_v33 = vpop.f32.mrb[126].mxu1 }
 0x1e5   : > { %v2224_v43 = vpop.f32.mrb[127].mxu0  ;;  %3423 = vst.msk [vmem:[%s5220_s22 + $0xe8] sm:$0xf] %vm3364_vm3, %v3919_v37  ;;  %v3920_v52 = vpack.c.bf16 %v3103_v0, %v3103_v0  ;;  %v2971_v46 = vmax.f32 %v5901_v23, %v2907_v3  ;;  %v2908_v53 = vmax.f32 %v4264_v41, %v4332_v33  ;;  %v2833_v1 = vpop.f32.mrb[127].mxu1 }
 0x1e6   : > { %3421 = vst.msk [vmem:[%s5220_s22 + $0xe0] sm:$0xf] %vm3364_vm3, %v3917_v16  ;;  %v3918_v19 = vpack.c.bf16 %v3101_v44, %v3101_v44  ;;  %v2969_v47 = vmax.f32 %v5904_v20, %v2905_v48  ;;  %v2906_v50 = vmax.f32 %v2224_v43, %v2833_v1 }
 0x1e7   : > { %3424 = vst.msk [vmem:[%s5220_s22 + $0xec] sm:$0xf] %vm3364_vm3, %v3920_v52  ;;  %v3042_v21 = vadd.f32 %v5199_v40, %v2971_v46  ;;  %v2972_v25 = vmax.f32 %v5907_v22, %v2908_v53 }
 0x1e8   : > { %3422 = vst.msk [vmem:[%s5220_s22 + $0xe4] sm:$0xf] %vm3364_vm3, %v3918_v19  ;;  %v3040_v5 = vadd.f32 %v5199_v40, %v2969_v47  ;;  %v2970_v26 = vmax.f32 %v5910_v6, %v2906_v50 }
 0x1e9   : > { %v3106_v30 = vmax.f32 %v3042_v21, 0.0  ;;  %v3043_v9 = vadd.f32 %v5199_v40, %v2972_v25 }
 0x1ea   : > { %v3104_v58 = vmax.f32 %v3040_v5, 0.0  ;;  %v3041_v61 = vadd.f32 %v5199_v40, %v2970_v26 }
 0x1eb   : > { %v3923_v55 = vpack.c.bf16 %v3106_v30, %v3106_v30  ;;  %v3107_v59 = vmax.f32 %v3043_v9, 0.0 }
 0x1ec   : > { %v3921_v62 = vpack.c.bf16 %v3104_v58, %v3104_v58  ;;  %v3105_v31 = vmax.f32 %v3041_v61, 0.0 }
 0x1ed   : > { %3427 = vst.msk [vmem:[%s5220_s22 + $0xf8] sm:$0xf] %vm3364_vm3, %v3923_v55  ;;  %v3924_v60 = vpack.c.bf16 %v3107_v59, %v3107_v59 }
 0x1ee   : > { %3425 = vst.msk [vmem:[%s5220_s22 + $0xf0] sm:$0xf] %vm3364_vm3, %v3921_v62  ;;  %v3922_v11 = vpack.c.bf16 %v3105_v31, %v3105_v31 }
 0x1ef   : > { %3428 = vst.msk [vmem:[%s5220_s22 + $0xfc] sm:$0xf] %vm3364_vm3, %v3924_v60 }
 0x1f0   : > { %3426 = vst.msk [vmem:[%s5220_s22 + $0xf4] sm:$0xf] %vm3364_vm3, %v3922_v11 }
 0x1f1 PF: > { %s16_s21 = sadd.s32 1, %s4478_s21  }
 0x1f2   : > { %p13_p4 = scmp.ge.s32.totalorder %s16_s21, 6  }
 0x1f4   :  { %15 = sbr.rel (!%p13_p4) target bundleno = 1 (0x1), region = 83 }

// kernel: net_forward.3
= control target key start
LH: loop header
LB: loop body
LE: loop exit
PB: predicated region body
PF: predicated region fallthrough
CT: control target
= control target key end

     0   :  { %v10554_v0 = vmov 0   ;;  %vm126_vm0 = vcmask 179200   ;;  %vm130_vm1 = vcmask 1042432   ;;  %v10555_v37 = vmov 0.0   ;;  %s14515_s4 = inlined_call_operand.vmem [shape: bf16[150,128], index: 4, kind: input, shape index: {}]   ;;  %s14516_s0 = inlined_call_operand.vmem [shape: bf16[25,8,150], index: 0, kind: input, shape index: {}]   ;;  %s14517_s1 = inlined_call_operand.vmem [shape: bf16[25,8,150], index: 1, kind: input, shape index: {}]   ;;  %s14518_s2 = inlined_call_operand.vmem [shape: bf16[25,8,150], index: 2, kind: input, shape index: {}]   ;;  %s14519_s3 = inlined_call_operand.vmem [shape: bf16[25,8,150], index: 3, kind: input, shape index: {}]   ;;  %s14520_s6 = inlined_call_operand.vmem [shape: bf16[25,128,128], index: 6, kind: input, shape index: {}]   ;;  %s14521_s5 = inlined_call_operand.vmem [shape: f32[1,128], index: 5, kind: input, shape index: {}]   ;;  %s14522_s8 = inlined_call_operand.vmem [shape: bf16[128,128], index: 8, kind: input, shape index: {}]   ;;  %s14523_s10 = inlined_call_operand.vmem [shape: bf16[128,31], index: 10, kind: input, shape index: {}]   ;;  %s14524_s7 = inlined_call_operand.vmem [shape: f32[1,128], index: 7, kind: input, shape index: {}]   ;;  %s14525_s9 = inlined_call_operand.vmem [shape: f32[1,128], index: 9, kind: input, shape index: {}]   ;;  %s14526_s11 = inlined_call_operand.vmem [shape: f32[1,31], index: 11, kind: input, shape index: {}]   ;;  %s14527_s12 = inlined_call_operand.vmem [shape: f32[8,31], index: 12, kind: output, shape index: {}]  }
   0x1   :  { %134 = vmatprep.subr.bf16.mxu0 %v10554_v0  ;;  %184 = vmatprep.subr.bf16.mxu1 %v10554_v0  ;;  %v10627_v1 = vld [vmem:[%s14515_s4] sm:$0xff]   ;;  %v10634_v2 = vld [vmem:[%s14515_s4 + $0x8] sm:$0xff]   ;;  %v10643_v3 = vld [vmem:[%s14515_s4 + $0x10] sm:$0xff]   ;;  %vm10556_vm2 = vmmov 0   ;;  %vm8257_vm3 = vcmask 252928  }
   0x2   :  { %135 = vmatpush1.bf16.msra.mxu0 %v10627_v1  ;;  %185 = vmatpush1.bf16.msra.mxu1 %v10627_v1  ;;  %v62_v4 = vld [vmem:[%s14516_s0] sm:$0xff]  ;;  %v10655_v5 = vld [vmem:[%s14515_s4 + $0x18] sm:$0xff]   ;;  %v10678_v10 = vld [vmem:[%s14515_s4 + $0x28] sm:$0xff]  }
   0x3   :  { %136 = vmatprep.subr.bf16.mxu0 %v10554_v0  ;;  %186 = vmatprep.subr.bf16.mxu1 %v10554_v0  ;;  %v8264_v6 = vcombine.high %v62_v4, %v62_v4  ;;  %v174_v7 = vld [vmem:[%s14517_s1] sm:$0xff]  ;;  %v10687_v11 = vld [vmem:[%s14515_s4 + $0x30] sm:$0xff]   ;;  %v10696_v12 = vld [vmem:[%s14515_s4 + $0x38] sm:$0xff]   ;;  %v8263_v16 = vcombine.low %v62_v4, %v62_v4 }
   0x4   :  { %v8277_v8 = vcombine.high %v174_v7, %v174_v7  ;;  %v10669_v9 = vld [vmem:[%s14515_s4 + $0x20] sm:$0xff]   ;;  %v10068_v14 = vld [vmem:[%s14515_s4 + $0x48] ss:$0 sps:$4 sm:$0x77]   ;;  %v8276_v17 = vcombine.low %v174_v7, %v174_v7  ;;  %v10087_v39 = vld [vmem:[%s14520_s6 + $0x10] sm:$0xff]  }
   0x5   :  { %8275 = vmatprep.mubr.msk.bf16.mxu0 %vm126_vm0, %v8264_v6  ;;  %v10705_v13 = vld [vmem:[%s14515_s4 + $0x40] sm:$0xff]   ;;  %v10716_v15 = vsel %vm130_vm1, %v10068_v14, 0  ;;  %v8286_v24 = vld [vmem:[%s14516_s0 + $0x8] sm:$0xff]  ;;  %v10088_v40 = vld [vmem:[%s14520_s6 + $0x18] sm:$0xff]  }
   0x6   :  { %137 = vmatpush1.bf16.msra.mxu0 %v10634_v2  ;;  %187 = vmatpush1.bf16.msra.mxu1 %v10634_v2  ;;  %v225_v18 = vld [vmem:[%s14518_s2] sm:$0xff]  ;;  %v8290_v25 = vld [vmem:[%s14517_s1 + $0x8] sm:$0xff]  ;;  %v8288_v26 = vcombine.high %v8286_v24, %v8286_v24  ;;  %v8287_v28 = vcombine.low %v8286_v24, %v8286_v24  ;;  %v10091_v43 = vld [vmem:[%s14520_s6 + $0x30] sm:$0xff]  }
   0x7   :  { %138 = vmatprep.subr.bf16.mxu0 %v10554_v0  ;;  %188 = vmatprep.subr.bf16.mxu1 %v10554_v0  ;;  %v275_v19 = vld [vmem:[%s14519_s3] sm:$0xff]  ;;  %v8280_v20 = vcombine.high %v225_v18, %v225_v18  ;;  %v8279_v22 = vcombine.low %v225_v18, %v225_v18  ;;  %v8292_v27 = vcombine.high %v8290_v25, %v8290_v25  ;;  %v8294_v30 = vld [vmem:[%s14518_s2 + $0x8] sm:$0xff]  ;;  %v10092_v44 = vld [vmem:[%s14520_s6 + $0x38] sm:$0xff]  }
   0x8   :  { %8278 = vmatprep.mubr.msk.bf16.mxu1 %vm126_vm0, %v8277_v8  ;;  %v8283_v21 = vcombine.high %v275_v19, %v275_v19  ;;  %v8282_v23 = vcombine.low %v275_v19, %v275_v19  ;;  %v8291_v29 = vcombine.low %v8290_v25, %v8290_v25  ;;  %v8298_v31 = vld [vmem:[%s14519_s3 + $0x8] sm:$0xff]  ;;  %v8296_v32 = vcombine.high %v8294_v30, %v8294_v30  ;;  %v10085_v34 = vld [vmem:[%s14520_s6] sm:$0xff]   ;;  %v10095_v47 = vld [vmem:[%s14520_s6 + $0x50] sm:$0xff]  }
   0x9   :  { %v8300_v33 = vcombine.high %v8298_v31, %v8298_v31  ;;  %v8295_v35 = vcombine.low %v8294_v30, %v8294_v30  ;;  %v8299_v36 = vcombine.low %v8298_v31, %v8298_v31  ;;  %v10086_v38 = vld [vmem:[%s14520_s6 + $0x8] sm:$0xff]   ;;  %v10089_v41 = vld [vmem:[%s14520_s6 + $0x20] sm:$0xff]   ;;  %v10096_v48 = vld [vmem:[%s14520_s6 + $0x58] sm:$0xff]  }
   0xa   :  { %139 = vmatpush1.bf16.msra.mxu0 %v10643_v3  ;;  %189 = vmatpush1.bf16.msra.mxu1 %v10643_v3  ;;  %v10090_v42 = vld [vmem:[%s14520_s6 + $0x28] sm:$0xff]   ;;  %v10093_v45 = vld [vmem:[%s14520_s6 + $0x40] sm:$0xff]   ;;  %v10099_v51 = vld [vmem:[%s14520_s6 + $0x70] sm:$0xff]  }
   0xb   :  { %140 = vmatprep.subr.bf16.mxu0 %v10554_v0  ;;  %190 = vmatprep.subr.bf16.mxu1 %v10554_v0  ;;  %v10094_v46 = vld [vmem:[%s14520_s6 + $0x48] sm:$0xff]   ;;  %v10097_v49 = vld [vmem:[%s14520_s6 + $0x60] sm:$0xff]   ;;  %v10100_v52 = vld [vmem:[%s14520_s6 + $0x78] sm:$0xff]  }
   0xc   :  { %v10098_v50 = vld [vmem:[%s14520_s6 + $0x68] sm:$0xff]   ;;  %v10937_v4 = vld [vmem:[%s14521_s5] ss:$0 sm:$0xff]  ;;  %v10961_v18 = vld [vmem:[%s14515_s4 + $0x10] sm:$0xff]  }
   0xd   :  { %v10968_v19 = vld [vmem:[%s14515_s4 + $0x18] sm:$0xff]  }
   0xe   :  { %141 = vmatpush1.bf16.msra.mxu0 %v10655_v5  ;;  %191 = vmatpush1.bf16.msra.mxu1 %v10655_v5  ;;  %v10996_v25 = vld [vmem:[%s14515_s4 + $0x38] sm:$0xff]  }
   0xf   :  { %142 = vmatprep.subr.bf16.mxu0 %v10554_v0  ;;  %192 = vmatprep.subr.bf16.mxu1 %v10554_v0 }
  0x12   :  { %143 = vmatpush1.bf16.msra.mxu0 %v10669_v9  ;;  %193 = vmatpush1.bf16.msra.mxu1 %v10669_v9 }
  0x13   :  { %144 = vmatprep.subr.bf16.mxu0 %v10554_v0  ;;  %194 = vmatprep.subr.bf16.mxu1 %v10554_v0 }
  0x16   :  { %145 = vmatpush1.bf16.msra.mxu0 %v10678_v10  ;;  %195 = vmatpush1.bf16.msra.mxu1 %v10678_v10 }
  0x17   :  { %146 = vmatprep.subr.bf16.mxu0 %v10554_v0  ;;  %196 = vmatprep.subr.bf16.mxu1 %v10554_v0 }
  0x1a   :  { %147 = vmatpush1.bf16.msra.mxu0 %v10687_v11  ;;  %197 = vmatpush1.bf16.msra.mxu1 %v10687_v11 }
  0x1b   :  { %148 = vmatprep.subr.bf16.mxu0 %v10554_v0  ;;  %198 = vmatprep.subr.bf16.mxu1 %v10554_v0 }
  0x1e   :  { %149 = vmatpush1.bf16.msra.mxu0 %v10696_v12  ;;  %199 = vmatpush1.bf16.msra.mxu1 %v10696_v12 }
  0x1f   :  { %150 = vmatprep.subr.bf16.mxu0 %v10554_v0  ;;  %200 = vmatprep.subr.bf16.mxu1 %v10554_v0 }
  0x22   :  { %151 = vmatpush1.bf16.msra.mxu0 %v10705_v13  ;;  %201 = vmatpush1.bf16.msra.mxu1 %v10705_v13 }
  0x23   :  { %152 = vmatprep.subr.bf16.mxu0 %v10554_v0  ;;  %202 = vmatprep.subr.bf16.mxu1 %v10554_v0 }
  0x26   :  { %153 = vmatpush1.bf16.msra.mxu0 %v10716_v15  ;;  %203 = vmatpush1.bf16.msra.mxu1 %v10716_v15 }
  0x27   :  { %235 = vmatprep.subr.bf16.mxu0 %v10554_v0  ;;  %285 = vmatprep.subr.bf16.mxu1 %v10554_v0 }
  0x29   :  { %167 = vmatmul.mubr.bf16.vlgmr.msra.gmra.mrb[0].mxu0 %v8263_v16  ;;  %217 = vmatmul.mubr.bf16.vlgmr.msra.gmra.mrb[0].mxu1 %v8276_v17  ;;  %v10946_v16 = vld [vmem:[%s14515_s4] sm:$0xff]   ;;  %v10954_v17 = vld [vmem:[%s14515_s4 + $0x8] sm:$0xff]  }
  0x2a   :  { %236 = vmatpush1.bf16.msra.mxu0 %v10627_v1  ;;  %286 = vmatpush1.bf16.msra.mxu1 %v10627_v1 }
  0x2b   :  { %237 = vmatprep.subr.bf16.mxu0 %v10554_v0  ;;  %287 = vmatprep.subr.bf16.mxu1 %v10554_v0 }
  0x2c   :  { %8281 = vmatprep.mubr.msk.bf16.mxu0 %vm126_vm0, %v8280_v20  ;;  %8284 = vmatprep.mubr.msk.bf16.mxu1 %vm126_vm0, %v8283_v21  ;;  %v10975_v20 = vld [vmem:[%s14515_s4 + $0x20] sm:$0xff]   ;;  %v10982_v21 = vld [vmem:[%s14515_s4 + $0x28] sm:$0xff]  }
  0x2e   :  { %238 = vmatpush1.bf16.msra.mxu0 %v10634_v2  ;;  %288 = vmatpush1.bf16.msra.mxu1 %v10634_v2 }
  0x2f   :  { %239 = vmatprep.subr.bf16.mxu0 %v10554_v0  ;;  %289 = vmatprep.subr.bf16.mxu1 %v10554_v0 }
  0x32   :  { %240 = vmatpush1.bf16.msra.mxu0 %v10643_v3  ;;  %290 = vmatpush1.bf16.msra.mxu1 %v10643_v3 }
  0x33   :  { %241 = vmatprep.subr.bf16.mxu0 %v10554_v0  ;;  %291 = vmatprep.subr.bf16.mxu1 %v10554_v0 }
  0x36   :  { %242 = vmatpush1.bf16.msra.mxu0 %v10655_v5  ;;  %292 = vmatpush1.bf16.msra.mxu1 %v10655_v5 }
  0x37   :  { %243 = vmatprep.subr.bf16.mxu0 %v10554_v0  ;;  %293 = vmatprep.subr.bf16.mxu1 %v10554_v0 }
  0x3a   :  { %244 = vmatpush1.bf16.msra.mxu0 %v10669_v9  ;;  %294 = vmatpush1.bf16.msra.mxu1 %v10669_v9 }
  0x3b   :  { %245 = vmatprep.subr.bf16.mxu0 %v10554_v0  ;;  %295 = vmatprep.subr.bf16.mxu1 %v10554_v0 }
  0x3e   :  { %246 = vmatpush1.bf16.msra.mxu0 %v10678_v10  ;;  %296 = vmatpush1.bf16.msra.mxu1 %v10678_v10 }
  0x3f   :  { %247 = vmatprep.subr.bf16.mxu0 %v10554_v0  ;;  %297 = vmatprep.subr.bf16.mxu1 %v10554_v0 }
  0x42   :  { %248 = vmatpush1.bf16.msra.mxu0 %v10687_v11  ;;  %298 = vmatpush1.bf16.msra.mxu1 %v10687_v11 }
  0x43   :  { %249 = vmatprep.subr.bf16.mxu0 %v10554_v0  ;;  %299 = vmatprep.subr.bf16.mxu1 %v10554_v0 }
  0x46   :  { %250 = vmatpush1.bf16.msra.mxu0 %v10696_v12  ;;  %300 = vmatpush1.bf16.msra.mxu1 %v10696_v12 }
  0x47   :  { %251 = vmatprep.subr.bf16.mxu0 %v10554_v0  ;;  %301 = vmatprep.subr.bf16.mxu1 %v10554_v0 }
  0x4a   :  { %252 = vmatpush1.bf16.msra.mxu0 %v10705_v13  ;;  %302 = vmatpush1.bf16.msra.mxu1 %v10705_v13 }
  0x4b   :  { %253 = vmatprep.subr.bf16.mxu0 %v10554_v0  ;;  %303 = vmatprep.subr.bf16.mxu1 %v10554_v0 }
  0x4e   :  { %254 = vmatpush1.bf16.msra.mxu0 %v10716_v15  ;;  %304 = vmatpush1.bf16.msra.mxu1 %v10716_v15 }
  0x4f   :  { %363 = vmatprep.subr.bf16.mxu0 %v10554_v0  ;;  %414 = vmatprep.subr.bf16.mxu1 %v10554_v0 }
  0x51   :  { %268 = vmatmul.mubr.bf16.vlgmr.msra.gmra.mrb[4].mxu0 %v8279_v22  ;;  %318 = vmatmul.mubr.bf16.vlgmr.msra.gmra.mrb[4].mxu1 %v8282_v23  ;;  %v10989_v22 = vld [vmem:[%s14515_s4 + $0x30] sm:$0xff]  }
  0x52   :  { %364 = vmatpush1.bf16.msra.mxu0 %v10627_v1  ;;  %415 = vmatpush1.bf16.msra.mxu1 %v10627_v1 }
  0x53   :  { %365 = vmatprep.subr.bf16.mxu0 %v10554_v0  ;;  %416 = vmatprep.subr.bf16.mxu1 %v10554_v0 }
  0x54   :  { %8289 = vmatprep.mubr.msk.bf16.mxu0 %vm126_vm0, %v8288_v26  ;;  %8293 = vmatprep.mubr.msk.bf16.mxu1 %vm126_vm0, %v8292_v27 }
  0x56   :  { %366 = vmatpush1.bf16.msra.mxu0 %v10634_v2  ;;  %417 = vmatpush1.bf16.msra.mxu1 %v10634_v2 }
  0x57   :  { %367 = vmatprep.subr.bf16.mxu0 %v10554_v0  ;;  %418 = vmatprep.subr.bf16.mxu1 %v10554_v0 }
  0x5a   :  { %368 = vmatpush1.bf16.msra.mxu0 %v10643_v3  ;;  %419 = vmatpush1.bf16.msra.mxu1 %v10643_v3 }
  0x5b   :  { %369 = vmatprep.subr.bf16.mxu0 %v10554_v0  ;;  %420 = vmatprep.subr.bf16.mxu1 %v10554_v0 }
  0x5e   :  { %370 = vmatpush1.bf16.msra.mxu0 %v10655_v5  ;;  %421 = vmatpush1.bf16.msra.mxu1 %v10655_v5 }
  0x5f   :  { %371 = vmatprep.subr.bf16.mxu0 %v10554_v0  ;;  %422 = vmatprep.subr.bf16.mxu1 %v10554_v0 }
  0x62   :  { %372 = vmatpush1.bf16.msra.mxu0 %v10669_v9  ;;  %423 = vmatpush1.bf16.msra.mxu1 %v10669_v9 }
  0x63   :  { %373 = vmatprep.subr.bf16.mxu0 %v10554_v0  ;;  %424 = vmatprep.subr.bf16.mxu1 %v10554_v0 }
  0x66   :  { %374 = vmatpush1.bf16.msra.mxu0 %v10678_v10  ;;  %425 = vmatpush1.bf16.msra.mxu1 %v10678_v10 }
  0x67   :  { %375 = vmatprep.subr.bf16.mxu0 %v10554_v0  ;;  %426 = vmatprep.subr.bf16.mxu1 %v10554_v0 }
  0x6a   :  { %376 = vmatpush1.bf16.msra.mxu0 %v10687_v11  ;;  %427 = vmatpush1.bf16.msra.mxu1 %v10687_v11 }
  0x6b   :  { %377 = vmatprep.subr.bf16.mxu0 %v10554_v0  ;;  %428 = vmatprep.subr.bf16.mxu1 %v10554_v0 }
  0x6e   :  { %378 = vmatpush1.bf16.msra.mxu0 %v10696_v12  ;;  %429 = vmatpush1.bf16.msra.mxu1 %v10696_v12 }
  0x6f   :  { %379 = vmatprep.subr.bf16.mxu0 %v10554_v0  ;;  %430 = vmatprep.subr.bf16.mxu1 %v10554_v0 }
  0x72   :  { %380 = vmatpush1.bf16.msra.mxu0 %v10705_v13  ;;  %431 = vmatpush1.bf16.msra.mxu1 %v10705_v13 }
  0x73   :  { %381 = vmatprep.subr.bf16.mxu0 %v10554_v0  ;;  %432 = vmatprep.subr.bf16.mxu1 %v10554_v0 }
  0x76   :  { %382 = vmatpush1.bf16.msra.mxu0 %v10716_v15  ;;  %433 = vmatpush1.bf16.msra.mxu1 %v10716_v15 }
  0x77   :  { %466 = vmatprep.subr.bf16.mxu0 %v10554_v0  ;;  %517 = vmatprep.subr.bf16.mxu1 %v10554_v0 }
  0x79   :  { %396 = vmatmul.mubr.bf16.vlgmr.msra.gmra.mrb[8].mxu0 %v8287_v28  ;;  %447 = vmatmul.mubr.bf16.vlgmr.msra.gmra.mrb[8].mxu1 %v8291_v29 }
  0x7a   :  { %467 = vmatpush1.bf16.msra.mxu0 %v10627_v1  ;;  %518 = vmatpush1.bf16.msra.mxu1 %v10627_v1 }
  0x7b   :  { %468 = vmatprep.subr.bf16.mxu0 %v10554_v0  ;;  %519 = vmatprep.subr.bf16.mxu1 %v10554_v0 }
  0x7c   :  { %8297 = vmatprep.mubr.msk.bf16.mxu0 %vm126_vm0, %v8296_v32  ;;  %8301 = vmatprep.mubr.msk.bf16.mxu1 %vm126_vm0, %v8300_v33  ;;  %v11003_v33 = vld [vmem:[%s14515_s4 + $0x40] sm:$0xff]  }
  0x7e   :  { %469 = vmatpush1.bf16.msra.mxu0 %v10634_v2  ;;  %520 = vmatpush1.bf16.msra.mxu1 %v10634_v2 }
  0x7f   :  { %470 = vmatprep.subr.bf16.mxu0 %v10554_v0  ;;  %521 = vmatprep.subr.bf16.mxu1 %v10554_v0 }
  0x82   :  { %471 = vmatpush1.bf16.msra.mxu0 %v10643_v3  ;;  %522 = vmatpush1.bf16.msra.mxu1 %v10643_v3 }
  0x83   :  { %472 = vmatprep.subr.bf16.mxu0 %v10554_v0  ;;  %523 = vmatprep.subr.bf16.mxu1 %v10554_v0 }
  0x86   :  { %473 = vmatpush1.bf16.msra.mxu0 %v10655_v5  ;;  %524 = vmatpush1.bf16.msra.mxu1 %v10655_v5 }
  0x87   :  { %474 = vmatprep.subr.bf16.mxu0 %v10554_v0  ;;  %525 = vmatprep.subr.bf16.mxu1 %v10554_v0 }
  0x8a   :  { %475 = vmatpush1.bf16.msra.mxu0 %v10669_v9  ;;  %526 = vmatpush1.bf16.msra.mxu1 %v10669_v9 }
  0x8b   :  { %476 = vmatprep.subr.bf16.mxu0 %v10554_v0  ;;  %527 = vmatprep.subr.bf16.mxu1 %v10554_v0 }
  0x8e   :  { %477 = vmatpush1.bf16.msra.mxu0 %v10678_v10  ;;  %528 = vmatpush1.bf16.msra.mxu1 %v10678_v10 }
  0x8f   :  { %478 = vmatprep.subr.bf16.mxu0 %v10554_v0  ;;  %529 = vmatprep.subr.bf16.mxu1 %v10554_v0 }
  0x92   :  { %479 = vmatpush1.bf16.msra.mxu0 %v10687_v11  ;;  %530 = vmatpush1.bf16.msra.mxu1 %v10687_v11  ;;  %v8338_v11 = vld [vmem:[%s14517_s1 + $0x10] sm:$0xff] }
  0x93   :  { %480 = vmatprep.subr.bf16.mxu0 %v10554_v0  ;;  %531 = vmatprep.subr.bf16.mxu1 %v10554_v0 }
  0x96   :  { %481 = vmatpush1.bf16.msra.mxu0 %v10696_v12  ;;  %532 = vmatpush1.bf16.msra.mxu1 %v10696_v12 }
  0x97   :  { %482 = vmatprep.subr.bf16.mxu0 %v10554_v0  ;;  %533 = vmatprep.subr.bf16.mxu1 %v10554_v0 }
  0x9a   :  { %483 = vmatpush1.bf16.msra.mxu0 %v10705_v13  ;;  %534 = vmatpush1.bf16.msra.mxu1 %v10705_v13  ;;  %v8340_v13 = vcombine.high %v8338_v11, %v8338_v11 }
  0x9b   :  { %484 = vmatprep.subr.bf16.mxu0 %v10554_v0  ;;  %535 = vmatprep.subr.bf16.mxu1 %v10554_v0 }
  0x9e   :  { %485 = vmatpush1.bf16.msra.mxu0 %v10716_v15  ;;  %536 = vmatpush1.bf16.msra.mxu1 %v10716_v15 }
  0x9f   :  { %9536 = vmatprep.subr.bf16.mxu1 %v10555_v37  ;;  %9516 = vmatprep.subr.bf16.mxu0 %v10555_v37 }
  0xa1   :  { %499 = vmatmul.mubr.bf16.vlgmr.msra.gmra.mrb[12].mxu0 %v8295_v35  ;;  %550 = vmatmul.mubr.bf16.vlgmr.msra.gmra.mrb[12].mxu1 %v8299_v36  ;;  %v8339_v35 = vcombine.low %v8338_v11, %v8338_v11 }
  0xa2   :  { %9537 = vmatpush3.bf16.msra.mxu1 %v10085_v34  ;;  %9552 = vmatprep.mubr.msk.bf16.mxu1 %vm10556_vm2, %v10555_v37  ;;  %v8346_v34 = vld [vmem:[%s14519_s3 + $0x10] sm:$0xff] }
  0xa3   :  { %9538 = vmatprep.subr.bf16.mxu1 %v10555_v37  ;;  %9532 = vmatprep.mubr.msk.bf16.mxu0 %vm10556_vm2, %v10555_v37  ;;  %v8348_v36 = vcombine.high %v8346_v34, %v8346_v34 }
  0xa4   :  { %9517 = vmatpush3.bf16.msra.mxu0 %v10093_v45 }
  0xa5   :  { %9518 = vmatprep.subr.bf16.mxu0 %v10555_v37 }
  0xa6   :  { %9539 = vmatpush3.bf16.msra.mxu1 %v10086_v38 }
  0xa7   :  { %9540 = vmatprep.subr.bf16.mxu1 %v10555_v37 }
  0xa8   :  { %9519 = vmatpush3.bf16.msra.mxu0 %v10094_v46 }
  0xa9   :  { %9520 = vmatprep.subr.bf16.mxu0 %v10555_v37 }
  0xaa   :  { %9541 = vmatpush3.bf16.msra.mxu1 %v10087_v39 }
  0xab   :  { %9542 = vmatprep.subr.bf16.mxu1 %v10555_v37 }
  0xac   :  { %9521 = vmatpush3.bf16.msra.mxu0 %v10095_v47 }
  0xad   :  { %9522 = vmatprep.subr.bf16.mxu0 %v10555_v37 }
  0xae   :  { %9543 = vmatpush3.bf16.msra.mxu1 %v10088_v40 }
  0xaf   :  { %9544 = vmatprep.subr.bf16.mxu1 %v10555_v37 }
  0xb0   :  { %9523 = vmatpush3.bf16.msra.mxu0 %v10096_v48 }
  0xb1   :  { %9524 = vmatprep.subr.bf16.mxu0 %v10555_v37 }
  0xb2   :  { %9545 = vmatpush3.bf16.msra.mxu1 %v10089_v41 }
  0xb3   :  { %9546 = vmatprep.subr.bf16.mxu1 %v10555_v37 }
  0xb4   :  { %9525 = vmatpush3.bf16.msra.mxu0 %v10097_v49  ;;  %v8334_v49 = vld [vmem:[%s14516_s0 + $0x10] sm:$0xff] }
  0xb5   :  { %9526 = vmatprep.subr.bf16.mxu0 %v10555_v37 }
  0xb6   :  { %9547 = vmatpush3.bf16.msra.mxu1 %v10090_v42 }
  0xb7   :  { %9548 = vmatprep.subr.bf16.mxu1 %v10555_v37 }
  0xb8   :  { %9527 = vmatpush3.bf16.msra.mxu0 %v10098_v50 }
  0xb9   :  { %9528 = vmatprep.subr.bf16.mxu0 %v10555_v37 }
  0xba   :  { %9549 = vmatpush3.bf16.msra.mxu1 %v10091_v43 }
  0xbb   :  { %9550 = vmatprep.subr.bf16.mxu1 %v10555_v37 }
  0xbc   :  { %9529 = vmatpush3.bf16.msra.mxu0 %v10099_v51  ;;  %v8347_v51 = vcombine.low %v8346_v34, %v8346_v34  ;;  %v8382_v34 = vld [vmem:[%s14518_s2 + $0x18] sm:$0xff] }
  0xbd   :  { %9530 = vmatprep.subr.bf16.mxu0 %v10555_v37 }
  0xbe   :  { %9551 = vmatpush3.bf16.msra.mxu1 %v10092_v44 }
  0xbf   :  { %817 = vmatprep.subr.bf16.mxu1 %v10554_v0 }
  0xc0   :  { %9531 = vmatpush3.bf16.msra.mxu0 %v10100_v52  ;;  %v8336_v52 = vcombine.high %v8334_v49, %v8334_v49 }
  0xc1   :  { %766 = vmatprep.subr.bf16.mxu0 %v10554_v0 }
  0xfc   :  { %v168_v53 = vpop.f32.mrb[0].mxu0  ;;  %v218_v54 = vpop.f32.mrb[0].mxu1 }
  0xfd   :  { %v224_v55 = vmax.f32 %v168_v53, %v218_v54  ;;  %v170_v56 = vpop.f32.mrb[1].mxu0  ;;  %v220_v57 = vpop.f32.mrb[1].mxu1  ;;  %v8342_v54 = vld [vmem:[%s14518_s2 + $0x10] sm:$0xff] }
  0xfe   :  { %v171_v58 = vpop.f32.mrb[2].mxu0  ;;  %v221_v59 = vpop.f32.mrb[2].mxu1  ;;  %v8344_v56 = vcombine.high %v8342_v54, %v8342_v54  ;;  %v8343_v57 = vcombine.low %v8342_v54, %v8342_v54  ;;  %v8386_v54 = vld [vmem:[%s14519_s3 + $0x18] sm:$0xff] }
  0xff   :  { %v172_v60 = vpop.f32.mrb[3].mxu0  ;;  %v222_v61 = vpop.f32.mrb[3].mxu1  ;;  %v10109_v58 = vld [vmem:[%s14520_s6 + $0x80] sm:$0xff]   ;;  %v10110_v59 = vld [vmem:[%s14520_s6 + $0x88] sm:$0xff]  }
 0x124   :  { %v269_v62 = vpop.f32.mrb[4].mxu0  ;;  %v319_v63 = vpop.f32.mrb[4].mxu1 }
 0x125   :  { %v325_v1 = vmax.f32 %v269_v62, %v319_v63  ;;  %v271_v2 = vpop.f32.mrb[5].mxu0  ;;  %v321_v3 = vpop.f32.mrb[5].mxu1  ;;  %v10111_v62 = vld [vmem:[%s14520_s6 + $0x90] sm:$0xff]  }
 0x126   :  { %v272_v5 = vpop.f32.mrb[6].mxu0  ;;  %v322_v6 = vpop.f32.mrb[6].mxu1  ;;  %v10112_v2 = vld [vmem:[%s14520_s6 + $0x98] sm:$0xff]   ;;  %v10113_v3 = vld [vmem:[%s14520_s6 + $0xa0] sm:$0xff]  }
 0x127   :  { %v326_v7 = vmax.f32 %v224_v55, %v325_v1  ;;  %v273_v8 = vpop.f32.mrb[7].mxu0  ;;  %v323_v9 = vpop.f32.mrb[7].mxu1  ;;  %v8335_v55 = vcombine.low %v8334_v49, %v8334_v49  ;;  %v10114_v5 = vld [vmem:[%s14520_s6 + $0xa8] sm:$0xff]   ;;  %v10115_v6 = vld [vmem:[%s14520_s6 + $0xb0] sm:$0xff]  }
 0x129   :  { %v333_v10 = vadd.f32 %v10937_v4, %v326_v7  ;;  %v10116_v7 = vld [vmem:[%s14520_s6 + $0xb8] sm:$0xff]  }
 0x12b   :  { %v334_v12 = vmax.f32 %v333_v10, 0.0 }
 0x12d   :  { %v335_v14 = vpack.c.bf16 %v334_v12, %v334_v12  ;;  %v8374_v12 = vld [vmem:[%s14516_s0 + $0x18] sm:$0xff] }
 0x12f   :  { %9553 = vmatmul.mubr.bf16.vlgmr.msra.gmra.mrb[16].mxu1 %v335_v14  ;;  %v8375_v14 = vcombine.low %v8374_v12, %v8374_v12 }
 0x130   :  { %818 = vmatpush1.bf16.msra.mxu1 %v10946_v16  ;;  %8341 = vmatprep.mubr.msk.bf16.mxu1 %vm126_vm0, %v8340_v13  ;;  %v8376_v13 = vcombine.high %v8374_v12, %v8374_v12  ;;  %v8414_v12 = vld [vmem:[%s14516_s0 + $0x20] sm:$0xff] }
 0x131   :  { %819 = vmatprep.subr.bf16.mxu1 %v10554_v0 }
 0x134   :  { %820 = vmatpush1.bf16.msra.mxu1 %v10954_v17 }
 0x135   :  { %821 = vmatprep.subr.bf16.mxu1 %v10554_v0 }
 0x138   :  { %822 = vmatpush1.bf16.msra.mxu1 %v10961_v18 }
 0x139   :  { %823 = vmatprep.subr.bf16.mxu1 %v10554_v0 }
 0x13c   :  { %824 = vmatpush1.bf16.msra.mxu1 %v10968_v19 }
 0x13d   :  { %825 = vmatprep.subr.bf16.mxu1 %v10554_v0 }
 0x140   :  { %826 = vmatpush1.bf16.msra.mxu1 %v10975_v20 }
 0x141   :  { %827 = vmatprep.subr.bf16.mxu1 %v10554_v0 }
 0x144   :  { %828 = vmatpush1.bf16.msra.mxu1 %v10982_v21 }
 0x145   :  { %829 = vmatprep.subr.bf16.mxu1 %v10554_v0 }
 0x148   :  { %830 = vmatpush1.bf16.msra.mxu1 %v10989_v22 }
 0x149   :  { %831 = vmatprep.subr.bf16.mxu1 %v10554_v0 }
 0x14c   :  { %v397_v23 = vpop.f32.mrb[8].mxu0  ;;  %v448_v24 = vpop.f32.mrb[8].mxu1  ;;  %832 = vmatpush1.bf16.msra.mxu1 %v10996_v25 }
 0x14d   :  { %v454_v26 = vmax.f32 %v397_v23, %v448_v24  ;;  %v399_v27 = vpop.f32.mrb[9].mxu0  ;;  %v450_v28 = vpop.f32.mrb[9].mxu1  ;;  %833 = vmatprep.subr.bf16.mxu1 %v10554_v0 }
 0x14e   :  { %v400_v29 = vpop.f32.mrb[10].mxu0  ;;  %v451_v30 = vpop.f32.mrb[10].mxu1 }
 0x14f   :  { %v401_v31 = vpop.f32.mrb[11].mxu0  ;;  %v452_v32 = vpop.f32.mrb[11].mxu1 }
 0x150   :  { %834 = vmatpush1.bf16.msra.mxu1 %v11003_v33 }
 0x151   :  { %835 = vmatprep.subr.bf16.mxu1 %v10554_v0 }
 0x154   :  { %836 = vmatpush1.bf16.msra.mxu1 %v10716_v15 }
 0x155   :  { %920 = vmatprep.subr.bf16.mxu1 %v10554_v0 }
 0x157   :  { %850 = vmatmul.mubr.bf16.vlgmr.msra.gmra.mrb[20].mxu1 %v8339_v35  ;;  %v8384_v35 = vcombine.high %v8382_v34, %v8382_v34 }
 0x158   :  { %921 = vmatpush1.bf16.msra.mxu1 %v10946_v16  ;;  %8349 = vmatprep.mubr.msk.bf16.mxu1 %vm126_vm0, %v8348_v36  ;;  %v8383_v36 = vcombine.low %v8382_v34, %v8382_v34 }
 0x159   :  { %922 = vmatprep.subr.bf16.mxu1 %v10554_v0 }
 0x15c   :  { %923 = vmatpush1.bf16.msra.mxu1 %v10954_v17 }
 0x15d   :  { %924 = vmatprep.subr.bf16.mxu1 %v10554_v0 }
 0x160   :  { %925 = vmatpush1.bf16.msra.mxu1 %v10961_v18 }
 0x161   :  { %926 = vmatprep.subr.bf16.mxu1 %v10554_v0 }
 0x164   :  { %927 = vmatpush1.bf16.msra.mxu1 %v10968_v19 }
 0x165   :  { %928 = vmatprep.subr.bf16.mxu1 %v10554_v0 }
 0x168   :  { %929 = vmatpush1.bf16.msra.mxu1 %v10975_v20 }
 0x169   :  { %930 = vmatprep.subr.bf16.mxu1 %v10554_v0 }
 0x16c   :  { %931 = vmatpush1.bf16.msra.mxu1 %v10982_v21 }
 0x16d   :  { %932 = vmatprep.subr.bf16.mxu1 %v10554_v0 }
 0x170   :  { %933 = vmatpush1.bf16.msra.mxu1 %v10989_v22 }
 0x171   :  { %934 = vmatprep.subr.bf16.mxu1 %v10554_v0 }
 0x174   :  { %v500_v38 = vpop.f32.mrb[12].mxu0  ;;  %v551_v39 = vpop.f32.mrb[12].mxu1  ;;  %935 = vmatpush1.bf16.msra.mxu1 %v10996_v25 }
 0x175   :  { %v557_v40 = vmax.f32 %v500_v38, %v551_v39  ;;  %v502_v41 = vpop.f32.mrb[13].mxu0  ;;  %v553_v42 = vpop.f32.mrb[13].mxu1  ;;  %936 = vmatprep.subr.bf16.mxu1 %v10554_v0 }
 0x176   :  { %v503_v43 = vpop.f32.mrb[14].mxu0  ;;  %v554_v44 = vpop.f32.mrb[14].mxu1 }
 0x177   :  { %v558_v45 = vmax.f32 %v454_v26, %v557_v40  ;;  %v504_v46 = vpop.f32.mrb[15].mxu0  ;;  %v555_v47 = vpop.f32.mrb[15].mxu1 }
 0x178   :  { %937 = vmatpush1.bf16.msra.mxu1 %v11003_v33 }
 0x179   :  { %v559_v48 = vadd.f32 %v10937_v4, %v558_v45  ;;  %938 = vmatprep.subr.bf16.mxu1 %v10554_v0 }
 0x17b   :  { %v560_v50 = vmax.f32 %v559_v48, 0.0 }
 0x17c   :  { %939 = vmatpush1.bf16.msra.mxu1 %v10716_v15 }
 0x17d   :  { %v561_v53 = vpack.c.bf16 %v560_v50, %v560_v50  ;;  %1082 = vmatprep.subr.bf16.mxu1 %v10554_v0  ;;  %v8378_v50 = vld [vmem:[%s14517_s1 + $0x18] sm:$0xff] }
 0x17f   :  { %9533 = vmatmul.mubr.bf16.vlgmr.msra.gmra.mrb[16].mxu0 %v561_v53  ;;  %953 = vmatmul.mubr.bf16.vlgmr.msra.gmra.mrb[24].mxu1 %v8347_v51 }
 0x180   :  { %767 = vmatpush1.bf16.msra.mxu0 %v10946_v16  ;;  %8337 = vmatprep.mubr.msk.bf16.mxu0 %vm126_vm0, %v8336_v52  ;;  %v8380_v52 = vcombine.high %v8378_v50, %v8378_v50 }
 0x181   :  { %768 = vmatprep.subr.bf16.mxu0 %v10554_v0  ;;  %1083 = vmatpush1.bf16.msra.mxu1 %v10946_v16 }
 0x182   :  { %1084 = vmatprep.subr.bf16.mxu1 %v10554_v0  ;;  %8377 = vmatprep.mubr.msk.bf16.mxu1 %vm126_vm0, %v8376_v13  ;;  %v8416_v13 = vcombine.high %v8414_v12, %v8414_v12 }
 0x184   :  { %769 = vmatpush1.bf16.msra.mxu0 %v10954_v17 }
 0x185   :  { %770 = vmatprep.subr.bf16.mxu0 %v10554_v0  ;;  %1085 = vmatpush1.bf16.msra.mxu1 %v10954_v17 }
 0x186   :  { %1086 = vmatprep.subr.bf16.mxu1 %v10554_v0 }
 0x188   :  { %771 = vmatpush1.bf16.msra.mxu0 %v10961_v18 }
 0x189   :  { %772 = vmatprep.subr.bf16.mxu0 %v10554_v0  ;;  %1087 = vmatpush1.bf16.msra.mxu1 %v10961_v18 }
 0x18a   :  { %1088 = vmatprep.subr.bf16.mxu1 %v10554_v0 }
 0x18c   :  { %773 = vmatpush1.bf16.msra.mxu0 %v10968_v19 }
 0x18d   :  { %774 = vmatprep.subr.bf16.mxu0 %v10554_v0  ;;  %1089 = vmatpush1.bf16.msra.mxu1 %v10968_v19 }
 0x18e   :  { %1090 = vmatprep.subr.bf16.mxu1 %v10554_v0 }
 0x190   :  { %775 = vmatpush1.bf16.msra.mxu0 %v10975_v20 }
 0x191   :  { %776 = vmatprep.subr.bf16.mxu0 %v10554_v0  ;;  %1091 = vmatpush1.bf16.msra.mxu1 %v10975_v20 }
 0x192   :  { %1092 = vmatprep.subr.bf16.mxu1 %v10554_v0 }
 0x194   :  { %777 = vmatpush1.bf16.msra.mxu0 %v10982_v21 }
 0x195   :  { %778 = vmatprep.subr.bf16.mxu0 %v10554_v0  ;;  %1093 = vmatpush1.bf16.msra.mxu1 %v10982_v21 }
 0x196   :  { %1094 = vmatprep.subr.bf16.mxu1 %v10554_v0 }
 0x198   :  { %779 = vmatpush1.bf16.msra.mxu0 %v10989_v22 }
 0x199   :  { %780 = vmatprep.subr.bf16.mxu0 %v10554_v0  ;;  %1095 = vmatpush1.bf16.msra.mxu1 %v10989_v22 }
 0x19a   :  { %1096 = vmatprep.subr.bf16.mxu1 %v10554_v0 }
 0x19c   :  { %781 = vmatpush1.bf16.msra.mxu0 %v10996_v25 }
 0x19d   :  { %782 = vmatprep.subr.bf16.mxu0 %v10554_v0  ;;  %1097 = vmatpush1.bf16.msra.mxu1 %v10996_v25 }
 0x19e   :  { %1098 = vmatprep.subr.bf16.mxu1 %v10554_v0 }
 0x1a0   :  { %783 = vmatpush1.bf16.msra.mxu0 %v11003_v33 }
 0x1a1   :  { %784 = vmatprep.subr.bf16.mxu0 %v10554_v0  ;;  %1099 = vmatpush1.bf16.msra.mxu1 %v11003_v33 }
 0x1a2   :  { %1100 = vmatprep.subr.bf16.mxu1 %v10554_v0 }
 0x1a4   :  { %785 = vmatpush1.bf16.msra.mxu0 %v10716_v15 }
 0x1a5   :  { %869 = vmatprep.subr.bf16.mxu0 %v10554_v0  ;;  %1101 = vmatpush1.bf16.msra.mxu1 %v10716_v15 }
 0x1a6   :  { %1185 = vmatprep.subr.bf16.mxu1 %v10554_v0 }
 0x1a7   :  { %799 = vmatmul.mubr.bf16.vlgmr.msra.gmra.mrb[20].mxu0 %v8335_v55  ;;  %v8379_v55 = vcombine.low %v8378_v50, %v8378_v50 }
 0x1a8   :  { %870 = vmatpush1.bf16.msra.mxu0 %v10946_v16  ;;  %8345 = vmatprep.mubr.msk.bf16.mxu0 %vm126_vm0, %v8344_v56  ;;  %v8388_v56 = vcombine.high %v8386_v54, %v8386_v54 }
 0x1a9   :  { %871 = vmatprep.subr.bf16.mxu0 %v10554_v0  ;;  %1115 = vmatmul.mubr.bf16.vlgmr.msra.gmra.mrb[28].mxu1 %v8375_v14  ;;  %v8415_v14 = vcombine.low %v8414_v12, %v8414_v12 }
 0x1aa   :  { %1186 = vmatpush1.bf16.msra.mxu1 %v10946_v16  ;;  %8385 = vmatprep.mubr.msk.bf16.mxu1 %vm126_vm0, %v8384_v35 }
 0x1ab   :  { %1187 = vmatprep.subr.bf16.mxu1 %v10554_v0 }
 0x1ac   :  { %872 = vmatpush1.bf16.msra.mxu0 %v10954_v17 }
 0x1ad   :  { %873 = vmatprep.subr.bf16.mxu0 %v10554_v0 }
 0x1ae   :  { %1188 = vmatpush1.bf16.msra.mxu1 %v10954_v17 }
 0x1af   :  { %1189 = vmatprep.subr.bf16.mxu1 %v10554_v0 }
 0x1b0   :  { %874 = vmatpush1.bf16.msra.mxu0 %v10961_v18 }
 0x1b1   :  { %875 = vmatprep.subr.bf16.mxu0 %v10554_v0 }
 0x1b2   :  { %1190 = vmatpush1.bf16.msra.mxu1 %v10961_v18 }
 0x1b3   :  { %1191 = vmatprep.subr.bf16.mxu1 %v10554_v0 }
 0x1b4   :  { %876 = vmatpush1.bf16.msra.mxu0 %v10968_v19 }
 0x1b5   :  { %877 = vmatprep.subr.bf16.mxu0 %v10554_v0 }
 0x1b6   :  { %1192 = vmatpush1.bf16.msra.mxu1 %v10968_v19 }
 0x1b7   :  { %1193 = vmatprep.subr.bf16.mxu1 %v10554_v0 }
 0x1b8   :  { %878 = vmatpush1.bf16.msra.mxu0 %v10975_v20 }
 0x1b9   :  { %879 = vmatprep.subr.bf16.mxu0 %v10554_v0 }
 0x1ba   :  { %1194 = vmatpush1.bf16.msra.mxu1 %v10975_v20 }
 0x1bb   :  { %1195 = vmatprep.subr.bf16.mxu1 %v10554_v0 }
 0x1bc   :  { %880 = vmatpush1.bf16.msra.mxu0 %v10982_v21 }
 0x1bd   :  { %881 = vmatprep.subr.bf16.mxu0 %v10554_v0 }
 0x1be   :  { %1196 = vmatpush1.bf16.msra.mxu1 %v10982_v21 }
 0x1bf   :  { %1197 = vmatprep.subr.bf16.mxu1 %v10554_v0 }
 0x1c0   :  { %882 = vmatpush1.bf16.msra.mxu0 %v10989_v22 }
 0x1c1   :  { %883 = vmatprep.subr.bf16.mxu0 %v10554_v0 }
 0x1c2   :  { %1198 = vmatpush1.bf16.msra.mxu1 %v10989_v22 }
 0x1c3   :  { %1199 = vmatprep.subr.bf16.mxu1 %v10554_v0 }
 0x1c4   :  { %884 = vmatpush1.bf16.msra.mxu0 %v10996_v25 }
 0x1c5   :  { %885 = vmatprep.subr.bf16.mxu0 %v10554_v0 }
 0x1c6   :  { %1200 = vmatpush1.bf16.msra.mxu1 %v10996_v25 }
 0x1c7   :  { %1201 = vmatprep.subr.bf16.mxu1 %v10554_v0 }
 0x1c8   :  { %886 = vmatpush1.bf16.msra.mxu0 %v11003_v33 }
 0x1c9   :  { %887 = vmatprep.subr.bf16.mxu0 %v10554_v0 }
 0x1ca   :  { %1202 = vmatpush1.bf16.msra.mxu1 %v11003_v33 }
 0x1cb   :  { %1203 = vmatprep.subr.bf16.mxu1 %v10554_v0 }
 0x1cc   :  { %888 = vmatpush1.bf16.msra.mxu0 %v10716_v15 }
 0x1cd   :  { %9556 = vmatprep.subr.bf16.mxu0 %v10555_v37 }
 0x1ce   :  { %1204 = vmatpush1.bf16.msra.mxu1 %v10716_v15 }
 0x1cf   :  { %902 = vmatmul.mubr.bf16.vlgmr.msra.gmra.mrb[24].mxu0 %v8343_v57  ;;  %9576 = vmatprep.subr.bf16.mxu1 %v10555_v37  ;;  %v8387_v57 = vcombine.low %v8386_v54, %v8386_v54 }
 0x1d0   :  { %9572 = vmatprep.mubr.msk.bf16.mxu0 %vm10556_vm2, %v10555_v37  ;;  %9557 = vmatpush3.bf16.msra.mxu0 %v10109_v58 }
 0x1d1   :  { %9558 = vmatprep.subr.bf16.mxu0 %v10555_v37  ;;  %1218 = vmatmul.mubr.bf16.vlgmr.msra.gmra.mrb[32].mxu1 %v8383_v36 }
 0x1d2   :  { %9592 = vmatprep.mubr.msk.bf16.mxu1 %vm10556_vm2, %v10555_v37 }
 0x1d4   :  { %9559 = vmatpush3.bf16.msra.mxu0 %v10110_v59 }
 0x1d5   :  { %9560 = vmatprep.subr.bf16.mxu0 %v10555_v37 }
 0x1d8   :  { %9561 = vmatpush3.bf16.msra.mxu0 %v10111_v62  ;;  %v10125_v62 = vld [vmem:[%s14520_s6 + $0xc0] sm:$0xff]  }
 0x1d9   :  { %9562 = vmatprep.subr.bf16.mxu0 %v10555_v37  ;;  %9577 = vmatpush3.bf16.msra.mxu1 %v10125_v62  ;;  %v10146_v62 = vld [vmem:[%s14520_s6 + $0x128] sm:$0xff]  }
 0x1da   :  { %9578 = vmatprep.subr.bf16.mxu1 %v10555_v37 }
 0x1dc   :  { %9563 = vmatpush3.bf16.msra.mxu0 %v10112_v2  ;;  %v10128_v2 = vld [vmem:[%s14520_s6 + $0xd8] sm:$0xff]  }
 0x1dd   :  { %9564 = vmatprep.subr.bf16.mxu0 %v10555_v37 }
 0x1e0   :  { %9565 = vmatpush3.bf16.msra.mxu0 %v10113_v3  ;;  %v10129_v3 = vld [vmem:[%s14520_s6 + $0xe0] sm:$0xff]  }
 0x1e1   :  { %9566 = vmatprep.subr.bf16.mxu0 %v10555_v37 }
 0x1e4   :  { %9567 = vmatpush3.bf16.msra.mxu0 %v10114_v5  ;;  %v10130_v5 = vld [vmem:[%s14520_s6 + $0xe8] sm:$0xff]  }
 0x1e5   :  { %9568 = vmatprep.subr.bf16.mxu0 %v10555_v37 }
 0x1e8   :  { %9569 = vmatpush3.bf16.msra.mxu0 %v10115_v6 }
 0x1e9   :  { %9570 = vmatprep.subr.bf16.mxu0 %v10555_v37 }
 0x1ec   :  { %9571 = vmatpush3.bf16.msra.mxu0 %v10116_v7 }
 0x1ed   :  { %1133 = vmatprep.subr.bf16.mxu0 %v10554_v0 }
 0x202   :  { %v749_v60 = vpop.f32.mrb[16].mxu1 }
 0x203   :  { %v9554_v61 = vpop.f32.mrb[17].mxu1 }
 0x204   :  { %v752_v63 = vpop.f32.mrb[18].mxu1 }
 0x205   :  { %v9555_v1 = vpop.f32.mrb[19].mxu1  ;;  %v10126_v63 = vld [vmem:[%s14520_s6 + $0xc8] sm:$0xff]  }
 0x206   :  { %9579 = vmatpush3.bf16.msra.mxu1 %v10126_v63  ;;  %v10127_v1 = vld [vmem:[%s14520_s6 + $0xd0] sm:$0xff]  }
 0x207   :  { %9580 = vmatprep.subr.bf16.mxu1 %v10555_v37 }
 0x20a   :  { %9581 = vmatpush3.bf16.msra.mxu1 %v10127_v1 }
 0x20b   :  { %9582 = vmatprep.subr.bf16.mxu1 %v10555_v37 }
 0x20e   :  { %9583 = vmatpush3.bf16.msra.mxu1 %v10128_v2 }
 0x20f   :  { %9584 = vmatprep.subr.bf16.mxu1 %v10555_v37 }
 0x212   :  { %9585 = vmatpush3.bf16.msra.mxu1 %v10129_v3 }
 0x213   :  { %9586 = vmatprep.subr.bf16.mxu1 %v10555_v37 }
 0x216   :  { %9587 = vmatpush3.bf16.msra.mxu1 %v10130_v5  ;;  %v10147_v5 = vld [vmem:[%s14520_s6 + $0x130] sm:$0xff]  }
 0x217   :  { %9588 = vmatprep.subr.bf16.mxu1 %v10555_v37 }
 0x22a   :  { %v851_v8 = vpop.f32.mrb[20].mxu1 }
 0x22b   :  { %v853_v9 = vpop.f32.mrb[21].mxu1 }
 0x22c   :  { %v854_v10 = vpop.f32.mrb[22].mxu1 }
 0x22d   :  { %v855_v11 = vpop.f32.mrb[23].mxu1  ;;  %v10131_v10 = vld [vmem:[%s14520_s6 + $0xf0] sm:$0xff]  }
 0x22e   :  { %9589 = vmatpush3.bf16.msra.mxu1 %v10131_v10  ;;  %v10132_v11 = vld [vmem:[%s14520_s6 + $0xf8] sm:$0xff]  }
 0x22f   :  { %9590 = vmatprep.subr.bf16.mxu1 %v10555_v37 }
 0x232   :  { %9591 = vmatpush3.bf16.msra.mxu1 %v10132_v11 }
 0x233   :  { %1449 = vmatprep.subr.bf16.mxu1 %v10554_v0 }
 0x252   :  { %v661_v23 = vpop.f32.mrb[16].mxu0  ;;  %v954_v24 = vpop.f32.mrb[24].mxu1 }
 0x253   :  { %v11140_v26 = vadd.f32 %v749_v60, %v661_v23  ;;  %v9534_v27 = vpop.f32.mrb[17].mxu0  ;;  %v956_v28 = vpop.f32.mrb[25].mxu1 }
 0x254   :  { %v664_v29 = vpop.f32.mrb[18].mxu0  ;;  %v957_v30 = vpop.f32.mrb[26].mxu1 }
 0x255   :  { %v9535_v31 = vpop.f32.mrb[19].mxu0  ;;  %v958_v32 = vpop.f32.mrb[27].mxu1 }
 0x27a   :  { %v800_v38 = vpop.f32.mrb[20].mxu0 }
 0x27b   :  { %v857_v39 = vmax.f32 %v800_v38, %v851_v8  ;;  %v802_v40 = vpop.f32.mrb[21].mxu0 }
 0x27c   :  { %v803_v41 = vpop.f32.mrb[22].mxu0  ;;  %v11237_v58 = vpop.f32.mrb[28].mxu1 }
 0x27d   :  { %v804_v42 = vpop.f32.mrb[23].mxu0  ;;  %v1118_v59 = vpop.f32.mrb[29].mxu1 }
 0x27e   :  { %v1119_v60 = vpop.f32.mrb[30].mxu1  ;;  %v10143_v59 = vld [vmem:[%s14520_s6 + $0x110] sm:$0xff]  }
 0x27f   :  { %v1120_v61 = vpop.f32.mrb[31].mxu1  ;;  %v10144_v60 = vld [vmem:[%s14520_s6 + $0x118] sm:$0xff]  }
 0x280   :  { %v10145_v61 = vld [vmem:[%s14520_s6 + $0x120] sm:$0xff]  }
 0x2a2   :  { %v903_v43 = vpop.f32.mrb[24].mxu0 }
 0x2a3   :  { %v960_v44 = vmax.f32 %v903_v43, %v954_v24  ;;  %v905_v45 = vpop.f32.mrb[25].mxu0 }
 0x2a4   :  { %v906_v46 = vpop.f32.mrb[26].mxu0  ;;  %v1219_v6 = vpop.f32.mrb[32].mxu1 }
 0x2a5   :  { %v961_v47 = vmax.f32 %v857_v39, %v960_v44  ;;  %v907_v48 = vpop.f32.mrb[27].mxu0  ;;  %v1221_v7 = vpop.f32.mrb[33].mxu1  ;;  %v8418_v46 = vld [vmem:[%s14517_s1 + $0x20] sm:$0xff] }
 0x2a6   :  { %v1222_v8 = vpop.f32.mrb[34].mxu1  ;;  %v8420_v48 = vcombine.high %v8418_v46, %v8418_v46  ;;  %v8419_v50 = vcombine.low %v8418_v46, %v8418_v46  ;;  %v8454_v7 = vld [vmem:[%s14516_s0 + $0x28] sm:$0xff] }
 0x2a7   :  { %v962_v49 = vadd.f32 %v10937_v4, %v961_v47  ;;  %v1223_v9 = vpop.f32.mrb[35].mxu1  ;;  %v8456_v8 = vcombine.high %v8454_v7, %v8454_v7  ;;  %v8466_v46 = vld [vmem:[%s14519_s3 + $0x28] sm:$0xff] }
 0x2a8   :  { %v8455_v9 = vcombine.low %v8454_v7, %v8454_v7 }
 0x2a9   :  { %v963_v51 = vmax.f32 %v962_v49, 0.0 }
 0x2ab   :  { %v964_v53 = vpack.c.bf16 %v963_v51, %v963_v51 }
 0x2ad   :  { %9573 = vmatmul.mubr.bf16.vlgmr.msra.gmra.mrb[28].mxu0 %v964_v53 }
 0x2ae   :  { %1134 = vmatpush1.bf16.msra.mxu0 %v10946_v16  ;;  %8381 = vmatprep.mubr.msk.bf16.mxu0 %vm126_vm0, %v8380_v52 }
 0x2af   :  { %1135 = vmatprep.subr.bf16.mxu0 %v10554_v0 }
 0x2b2   :  { %1136 = vmatpush1.bf16.msra.mxu0 %v10954_v17 }
 0x2b3   :  { %1137 = vmatprep.subr.bf16.mxu0 %v10554_v0 }
 0x2b6   :  { %1138 = vmatpush1.bf16.msra.mxu0 %v10961_v18 }
 0x2b7   :  { %1139 = vmatprep.subr.bf16.mxu0 %v10554_v0 }
 0x2ba   :  { %1140 = vmatpush1.bf16.msra.mxu0 %v10968_v19 }
 0x2bb   :  { %1141 = vmatprep.subr.bf16.mxu0 %v10554_v0 }
 0x2be   :  { %1142 = vmatpush1.bf16.msra.mxu0 %v10975_v20 }
 0x2bf   :  { %1143 = vmatprep.subr.bf16.mxu0 %v10554_v0 }
 0x2c2   :  { %1144 = vmatpush1.bf16.msra.mxu0 %v10982_v21 }
 0x2c3   :  { %1145 = vmatprep.subr.bf16.mxu0 %v10554_v0 }
 0x2c6   :  { %1146 = vmatpush1.bf16.msra.mxu0 %v10989_v22 }
 0x2c7   :  { %1147 = vmatprep.subr.bf16.mxu0 %v10554_v0 }
 0x2ca   :  { %1148 = vmatpush1.bf16.msra.mxu0 %v10996_v25 }
 0x2cb   :  { %1149 = vmatprep.subr.bf16.mxu0 %v10554_v0 }
 0x2ce   :  { %1150 = vmatpush1.bf16.msra.mxu0 %v11003_v33 }
 0x2cf   :  { %1151 = vmatprep.subr.bf16.mxu0 %v10554_v0 }
 0x2d2   :  { %1152 = vmatpush1.bf16.msra.mxu0 %v10716_v15 }
 0x2d3   :  { %1236 = vmatprep.subr.bf16.mxu0 %v10554_v0 }
 0x2d5   :  { %1166 = vmatmul.mubr.bf16.vlgmr.msra.gmra.mrb[32].mxu0 %v8379_v55 }
 0x2d6   :  { %1237 = vmatpush1.bf16.msra.mxu0 %v10946_v16  ;;  %8389 = vmatprep.mubr.msk.bf16.mxu0 %vm126_vm0, %v8388_v56 }
 0x2d7   :  { %1238 = vmatprep.subr.bf16.mxu0 %v10554_v0 }
 0x2da   :  { %1239 = vmatpush1.bf16.msra.mxu0 %v10954_v17 }
 0x2db   :  { %1240 = vmatprep.subr.bf16.mxu0 %v10554_v0 }
 0x2de   :  { %1241 = vmatpush1.bf16.msra.mxu0 %v10961_v18 }
 0x2df   :  { %1242 = vmatprep.subr.bf16.mxu0 %v10554_v0 }
 0x2e2   :  { %1243 = vmatpush1.bf16.msra.mxu0 %v10968_v19 }
 0x2e3   :  { %1244 = vmatprep.subr.bf16.mxu0 %v10554_v0 }
 0x2e6   :  { %1245 = vmatpush1.bf16.msra.mxu0 %v10975_v20 }
 0x2e7   :  { %1246 = vmatprep.subr.bf16.mxu0 %v10554_v0 }
 0x2ea   :  { %1247 = vmatpush1.bf16.msra.mxu0 %v10982_v21 }
 0x2eb   :  { %1248 = vmatprep.subr.bf16.mxu0 %v10554_v0 }
 0x2ee   :  { %1249 = vmatpush1.bf16.msra.mxu0 %v10989_v22 }
 0x2ef   :  { %1250 = vmatprep.subr.bf16.mxu0 %v10554_v0 }
 0x2f2   :  { %1251 = vmatpush1.bf16.msra.mxu0 %v10996_v25 }
 0x2f3   :  { %1252 = vmatprep.subr.bf16.mxu0 %v10554_v0 }
 0x2f6   :  { %1253 = vmatpush1.bf16.msra.mxu0 %v11003_v33 }
 0x2f7   :  { %1254 = vmatprep.subr.bf16.mxu0 %v10554_v0 }
 0x2fa   :  { %1255 = vmatpush1.bf16.msra.mxu0 %v10716_v15 }
 0x2fb   :  { %1398 = vmatprep.subr.bf16.mxu0 %v10554_v0 }
 0x2fd   :  { %1269 = vmatmul.mubr.bf16.vlgmr.msra.gmra.mrb[36].mxu0 %v8387_v57  ;;  %v10141_v57 = vld [vmem:[%s14520_s6 + $0x100] sm:$0xff]  }
 0x2fe   :  { %1399 = vmatpush1.bf16.msra.mxu0 %v10946_v16  ;;  %8417 = vmatprep.mubr.msk.bf16.mxu0 %vm126_vm0, %v8416_v13 }
 0x2ff   :  { %1400 = vmatprep.subr.bf16.mxu0 %v10554_v0 }
 0x302   :  { %1401 = vmatpush1.bf16.msra.mxu0 %v10954_v17 }
 0x303   :  { %1402 = vmatprep.subr.bf16.mxu0 %v10554_v0 }
 0x306   :  { %1403 = vmatpush1.bf16.msra.mxu0 %v10961_v18 }
 0x307   :  { %1404 = vmatprep.subr.bf16.mxu0 %v10554_v0 }
 0x30a   :  { %1405 = vmatpush1.bf16.msra.mxu0 %v10968_v19 }
 0x30b   :  { %1406 = vmatprep.subr.bf16.mxu0 %v10554_v0 }
 0x30e   :  { %1407 = vmatpush1.bf16.msra.mxu0 %v10975_v20 }
 0x30f   :  { %1408 = vmatprep.subr.bf16.mxu0 %v10554_v0 }
 0x312   :  { %1409 = vmatpush1.bf16.msra.mxu0 %v10982_v21 }
 0x313   :  { %1410 = vmatprep.subr.bf16.mxu0 %v10554_v0 }
 0x316   :  { %1411 = vmatpush1.bf16.msra.mxu0 %v10989_v22 }
 0x317   :  { %1412 = vmatprep.subr.bf16.mxu0 %v10554_v0 }
 0x31a   :  { %1413 = vmatpush1.bf16.msra.mxu0 %v10996_v25 }
 0x31b   :  { %1414 = vmatprep.subr.bf16.mxu0 %v10554_v0 }
 0x31e   :  { %1415 = vmatpush1.bf16.msra.mxu0 %v11003_v33 }
 0x31f   :  { %1416 = vmatprep.subr.bf16.mxu0 %v10554_v0 }
 0x322   :  { %1417 = vmatpush1.bf16.msra.mxu0 %v10716_v15 }
 0x323   :  { %1501 = vmatprep.subr.bf16.mxu0 %v10554_v0 }
 0x325   :  { %1431 = vmatmul.mubr.bf16.vlgmr.msra.gmra.mrb[40].mxu0 %v8415_v14 }
 0x326   :  { %1502 = vmatpush1.bf16.msra.mxu0 %v10946_v16 }
 0x327   :  { %1503 = vmatprep.subr.bf16.mxu0 %v10554_v0 }
 0x32a   :  { %1504 = vmatpush1.bf16.msra.mxu0 %v10954_v17 }
 0x32b   :  { %1505 = vmatprep.subr.bf16.mxu0 %v10554_v0 }
 0x32e   :  { %1506 = vmatpush1.bf16.msra.mxu0 %v10961_v18 }
 0x32f   :  { %1507 = vmatprep.subr.bf16.mxu0 %v10554_v0 }
 0x332   :  { %1508 = vmatpush1.bf16.msra.mxu0 %v10968_v19 }
 0x333   :  { %1509 = vmatprep.subr.bf16.mxu0 %v10554_v0 }
 0x336   :  { %1510 = vmatpush1.bf16.msra.mxu0 %v10975_v20 }
 0x337   :  { %1511 = vmatprep.subr.bf16.mxu0 %v10554_v0 }
 0x33a   :  { %1512 = vmatpush1.bf16.msra.mxu0 %v10982_v21 }
 0x33b   :  { %1513 = vmatprep.subr.bf16.mxu0 %v10554_v0 }
 0x33e   :  { %1514 = vmatpush1.bf16.msra.mxu0 %v10989_v22 }
 0x33f   :  { %1515 = vmatprep.subr.bf16.mxu0 %v10554_v0 }
 0x342   :  { %1516 = vmatpush1.bf16.msra.mxu0 %v10996_v25 }
 0x343   :  { %1517 = vmatprep.subr.bf16.mxu0 %v10554_v0 }
 0x346   :  { %1518 = vmatpush1.bf16.msra.mxu0 %v11003_v33 }
 0x347   :  { %1519 = vmatprep.subr.bf16.mxu0 %v10554_v0 }
 0x34a   :  { %1520 = vmatpush1.bf16.msra.mxu0 %v10716_v15 }
 0x34b   :  { %9596 = vmatprep.subr.bf16.mxu0 %v10555_v37 }
 0x380   :  { %v1064_v23 = vpop.f32.mrb[28].mxu0 }
 0x381   :  { %v11276_v24 = vadd.f32 %v1064_v23, %v11140_v26  ;;  %v9574_v27 = vpop.f32.mrb[29].mxu0  ;;  %v8422_v26 = vld [vmem:[%s14518_s2 + $0x20] sm:$0xff] }
 0x382   :  { %v1067_v28 = vpop.f32.mrb[30].mxu0  ;;  %v8424_v30 = vcombine.high %v8422_v26, %v8422_v26  ;;  %v8423_v31 = vcombine.low %v8422_v26, %v8422_v26  ;;  %v11445_v26 = vld [vmem:[%s14521_s5] ss:$0 sm:$0xff] }
 0x383   :  { %v9575_v29 = vpop.f32.mrb[31].mxu0 }
 0x384   :  { %8425 = vmatprep.mubr.msk.bf16.mxu0 %vm126_vm0, %v8424_v30 }
 0x385   :  { %1534 = vmatmul.mubr.bf16.vlgmr.msra.gmra.mrb[44].mxu0 %v8423_v31  ;;  %v8458_v31 = vld [vmem:[%s14517_s1 + $0x28] sm:$0xff] }
 0x386   :  { %9612 = vmatprep.mubr.msk.bf16.mxu0 %vm10556_vm2, %v10555_v37  ;;  %9597 = vmatpush3.bf16.msra.mxu0 %v10141_v57  ;;  %v10161_v57 = vld [vmem:[%s14520_s6 + $0x160] sm:$0xff]  }
 0x387   :  { %9598 = vmatprep.subr.bf16.mxu0 %v10555_v37 }
 0x3a8   :  { %v1167_v32 = vpop.f32.mrb[32].mxu0 }
 0x3a9   :  { %v1173_v34 = vmax.f32 %v11237_v58, %v1167_v32  ;;  %v1169_v35 = vpop.f32.mrb[33].mxu0  ;;  %v10142_v58 = vld [vmem:[%s14520_s6 + $0x108] sm:$0xff]  }
 0x3aa   :  { %v1170_v36 = vpop.f32.mrb[34].mxu0  ;;  %9599 = vmatpush3.bf16.msra.mxu0 %v10142_v58  ;;  %v10162_v58 = vld [vmem:[%s14520_s6 + $0x168] sm:$0xff]  }
 0x3ab   :  { %v1171_v38 = vpop.f32.mrb[35].mxu0  ;;  %9600 = vmatprep.subr.bf16.mxu0 %v10555_v37  ;;  %v11454_v36 = vld [vmem:[%s14515_s4] sm:$0xff]  }
 0x3ac   :  { %v11462_v38 = vld [vmem:[%s14515_s4 + $0x8] sm:$0xff]  }
 0x3ae   :  { %9601 = vmatpush3.bf16.msra.mxu0 %v10143_v59 }
 0x3af   :  { %9602 = vmatprep.subr.bf16.mxu0 %v10555_v37 }
 0x3b2   :  { %9603 = vmatpush3.bf16.msra.mxu0 %v10144_v60 }
 0x3b3   :  { %9604 = vmatprep.subr.bf16.mxu0 %v10555_v37 }
 0x3b6   :  { %9605 = vmatpush3.bf16.msra.mxu0 %v10145_v61 }
 0x3b7   :  { %9606 = vmatprep.subr.bf16.mxu0 %v10555_v37 }
 0x3ba   :  { %9607 = vmatpush3.bf16.msra.mxu0 %v10146_v62 }
 0x3bb   :  { %9608 = vmatprep.subr.bf16.mxu0 %v10555_v37 }
 0x3be   :  { %9609 = vmatpush3.bf16.msra.mxu0 %v10147_v5 }
 0x3bf   :  { %9610 = vmatprep.subr.bf16.mxu0 %v10555_v37 }
 0x3d0   :  { %v1270_v39 = vpop.f32.mrb[36].mxu0 }
 0x3d1   :  { %v1276_v40 = vmax.f32 %v1219_v6, %v1270_v39  ;;  %v1272_v41 = vpop.f32.mrb[37].mxu0  ;;  %v10148_v6 = vld [vmem:[%s14520_s6 + $0x138] sm:$0xff]   ;;  %v11469_v39 = vld [vmem:[%s14515_s4 + $0x10] sm:$0xff]  }
 0x3d2   :  { %v1273_v42 = vpop.f32.mrb[38].mxu0  ;;  %9611 = vmatpush3.bf16.msra.mxu0 %v10148_v6  ;;  %v11483_v41 = vld [vmem:[%s14515_s4 + $0x20] sm:$0xff]  }
 0x3d3   :  { %v1277_v43 = vmax.f32 %v1173_v34, %v1276_v40  ;;  %v1274_v44 = vpop.f32.mrb[39].mxu0  ;;  %1765 = vmatprep.subr.bf16.mxu0 %v10554_v0  ;;  %v8460_v34 = vcombine.high %v8458_v31, %v8458_v31  ;;  %v11476_v40 = vld [vmem:[%s14515_s4 + $0x18] sm:$0xff]   ;;  %v11490_v42 = vld [vmem:[%s14515_s4 + $0x28] sm:$0xff]  }
 0x3d4   :  { %v11504_v44 = vld [vmem:[%s14515_s4 + $0x38] sm:$0xff]  }
 0x3d5   :  { %v1278_v45 = vadd.f32 %v10937_v4, %v1277_v43  ;;  %v8426_v4 = vld [vmem:[%s14519_s3 + $0x20] sm:$0xff]  ;;  %v11497_v43 = vld [vmem:[%s14515_s4 + $0x30] sm:$0xff]  }
 0x3d6   :  { %v8428_v51 = vcombine.high %v8426_v4, %v8426_v4  ;;  %v8427_v52 = vcombine.low %v8426_v4, %v8426_v4 }
 0x3d7   :  { %v1279_v47 = vmax.f32 %v1278_v45, 0.0  ;;  %v11511_v45 = vld [vmem:[%s14515_s4 + $0x40] sm:$0xff]  }
 0x3d9   :  { %v1280_v49 = vpack.c.bf16 %v1279_v47, %v1279_v47  ;;  %v8459_v47 = vcombine.low %v8458_v31, %v8458_v31  ;;  %v8506_v31 = vld [vmem:[%s14519_s3 + $0x30] sm:$0xff] }
 0x3db   :  { %9593 = vmatmul.mubr.bf16.vlgmr.msra.gmra.mrb[36].mxu1 %v1280_v49  ;;  %v8467_v49 = vcombine.low %v8466_v46, %v8466_v46 }
 0x3dc   :  { %1450 = vmatpush1.bf16.msra.mxu1 %v10946_v16  ;;  %8421 = vmatprep.mubr.msk.bf16.mxu1 %vm126_vm0, %v8420_v48  ;;  %v8468_v48 = vcombine.high %v8466_v46, %v8466_v46 }
 0x3dd   :  { %1451 = vmatprep.subr.bf16.mxu1 %v10554_v0 }
 0x3e0   :  { %1452 = vmatpush1.bf16.msra.mxu1 %v10954_v17 }
 0x3e1   :  { %1453 = vmatprep.subr.bf16.mxu1 %v10554_v0 }
 0x3e4   :  { %1454 = vmatpush1.bf16.msra.mxu1 %v10961_v18 }
 0x3e5   :  { %1455 = vmatprep.subr.bf16.mxu1 %v10554_v0 }
 0x3e8   :  { %1456 = vmatpush1.bf16.msra.mxu1 %v10968_v19 }
 0x3e9   :  { %1457 = vmatprep.subr.bf16.mxu1 %v10554_v0 }
 0x3ec   :  { %1458 = vmatpush1.bf16.msra.mxu1 %v10975_v20 }
 0x3ed   :  { %1459 = vmatprep.subr.bf16.mxu1 %v10554_v0 }
 0x3f0   :  { %1460 = vmatpush1.bf16.msra.mxu1 %v10982_v21 }
 0x3f1   :  { %1461 = vmatprep.subr.bf16.mxu1 %v10554_v0 }
 0x3f4   :  { %1462 = vmatpush1.bf16.msra.mxu1 %v10989_v22 }
 0x3f5   :  { %1463 = vmatprep.subr.bf16.mxu1 %v10554_v0 }
 0x3f8   :  { %1464 = vmatpush1.bf16.msra.mxu1 %v10996_v25  ;;  %v11374_v53 = vpop.f32.mrb[40].mxu0 }
 0x3f9   :  { %1465 = vmatprep.subr.bf16.mxu1 %v10554_v0  ;;  %v1434_v54 = vpop.f32.mrb[41].mxu0 }
 0x3fa   :  { %v1435_v55 = vpop.f32.mrb[42].mxu0  ;;  %v10158_v54 = vld [vmem:[%s14520_s6 + $0x148] sm:$0xff]  }
 0x3fb   :  { %v1436_v56 = vpop.f32.mrb[43].mxu0  ;;  %v10159_v55 = vld [vmem:[%s14520_s6 + $0x150] sm:$0xff]  }
 0x3fc   :  { %1466 = vmatpush1.bf16.msra.mxu1 %v11003_v33  ;;  %v10160_v56 = vld [vmem:[%s14520_s6 + $0x158] sm:$0xff]  }
 0x3fd   :  { %1467 = vmatprep.subr.bf16.mxu1 %v10554_v0 }
 0x400   :  { %1468 = vmatpush1.bf16.msra.mxu1 %v10716_v15 }
 0x401   :  { %1552 = vmatprep.subr.bf16.mxu1 %v10554_v0 }
 0x403   :  { %1482 = vmatmul.mubr.bf16.vlgmr.msra.gmra.mrb[40].mxu1 %v8419_v50 }
 0x404   :  { %1553 = vmatpush1.bf16.msra.mxu1 %v10946_v16  ;;  %8429 = vmatprep.mubr.msk.bf16.mxu1 %vm126_vm0, %v8428_v51 }
 0x405   :  { %1554 = vmatprep.subr.bf16.mxu1 %v10554_v0 }
 0x408   :  { %1555 = vmatpush1.bf16.msra.mxu1 %v10954_v17 }
 0x409   :  { %1556 = vmatprep.subr.bf16.mxu1 %v10554_v0 }
 0x40c   :  { %1557 = vmatpush1.bf16.msra.mxu1 %v10961_v18 }
 0x40d   :  { %1558 = vmatprep.subr.bf16.mxu1 %v10554_v0 }
 0x410   :  { %1559 = vmatpush1.bf16.msra.mxu1 %v10968_v19 }
 0x411   :  { %1560 = vmatprep.subr.bf16.mxu1 %v10554_v0 }
 0x414   :  { %1561 = vmatpush1.bf16.msra.mxu1 %v10975_v20 }
 0x415   :  { %1562 = vmatprep.subr.bf16.mxu1 %v10554_v0 }
 0x418   :  { %1563 = vmatpush1.bf16.msra.mxu1 %v10982_v21 }
 0x419   :  { %1564 = vmatprep.subr.bf16.mxu1 %v10554_v0 }
 0x41c   :  { %1565 = vmatpush1.bf16.msra.mxu1 %v10989_v22 }
 0x41d   :  { %1566 = vmatprep.subr.bf16.mxu1 %v10554_v0 }
 0x420   :  { %1567 = vmatpush1.bf16.msra.mxu1 %v10996_v25 }
 0x421   :  { %1568 = vmatprep.subr.bf16.mxu1 %v10554_v0 }
 0x424   :  { %1569 = vmatpush1.bf16.msra.mxu1 %v11003_v33 }
 0x425   :  { %1570 = vmatprep.subr.bf16.mxu1 %v10554_v0 }
 0x428   :  { %1571 = vmatpush1.bf16.msra.mxu1 %v10716_v15 }
 0x429   :  { %1714 = vmatprep.subr.bf16.mxu1 %v10554_v0 }
 0x42b   :  { %1585 = vmatmul.mubr.bf16.vlgmr.msra.gmra.mrb[44].mxu1 %v8427_v52 }
 0x42c   :  { %1715 = vmatpush1.bf16.msra.mxu1 %v10946_v16  ;;  %8457 = vmatprep.mubr.msk.bf16.mxu1 %vm126_vm0, %v8456_v8 }
 0x42d   :  { %1716 = vmatprep.subr.bf16.mxu1 %v10554_v0 }
 0x430   :  { %1717 = vmatpush1.bf16.msra.mxu1 %v10954_v17 }
 0x431   :  { %1718 = vmatprep.subr.bf16.mxu1 %v10554_v0 }
 0x434   :  { %1719 = vmatpush1.bf16.msra.mxu1 %v10961_v18 }
 0x435   :  { %1720 = vmatprep.subr.bf16.mxu1 %v10554_v0 }
 0x438   :  { %1721 = vmatpush1.bf16.msra.mxu1 %v10968_v19 }
 0x439   :  { %1722 = vmatprep.subr.bf16.mxu1 %v10554_v0 }
 0x43c   :  { %1723 = vmatpush1.bf16.msra.mxu1 %v10975_v20 }
 0x43d   :  { %1724 = vmatprep.subr.bf16.mxu1 %v10554_v0 }
 0x440   :  { %1725 = vmatpush1.bf16.msra.mxu1 %v10982_v21 }
 0x441   :  { %1726 = vmatprep.subr.bf16.mxu1 %v10554_v0 }
 0x444   :  { %1727 = vmatpush1.bf16.msra.mxu1 %v10989_v22 }
 0x445   :  { %1728 = vmatprep.subr.bf16.mxu1 %v10554_v0 }
 0x448   :  { %1729 = vmatpush1.bf16.msra.mxu1 %v10996_v25 }
 0x449   :  { %1730 = vmatprep.subr.bf16.mxu1 %v10554_v0 }
 0x44c   :  { %1731 = vmatpush1.bf16.msra.mxu1 %v11003_v33 }
 0x44d   :  { %1732 = vmatprep.subr.bf16.mxu1 %v10554_v0 }
 0x450   :  { %1733 = vmatpush1.bf16.msra.mxu1 %v10716_v15 }
 0x451   :  { %1817 = vmatprep.subr.bf16.mxu1 %v10554_v0 }
 0x453   :  { %1747 = vmatmul.mubr.bf16.vlgmr.msra.gmra.mrb[48].mxu1 %v8455_v9 }
 0x454   :  { %1818 = vmatpush1.bf16.msra.mxu1 %v10946_v16  ;;  %v8462_v16 = vld [vmem:[%s14518_s2 + $0x28] sm:$0xff] }
 0x455   :  { %1819 = vmatprep.subr.bf16.mxu1 %v10554_v0 }
 0x458   :  { %v1535_v63 = vpop.f32.mrb[44].mxu0  ;;  %1820 = vmatpush1.bf16.msra.mxu1 %v10954_v17  ;;  %v8464_v17 = vcombine.high %v8462_v16, %v8462_v16 }
 0x459   :  { %v1537_v1 = vpop.f32.mrb[45].mxu0  ;;  %1821 = vmatprep.subr.bf16.mxu1 %v10554_v0 }
 0x45a   :  { %v1538_v2 = vpop.f32.mrb[46].mxu0  ;;  %8465 = vmatprep.mubr.msk.bf16.mxu1 %vm126_vm0, %v8464_v17  ;;  %v10164_v1 = vld [vmem:[%s14520_s6 + $0x178] sm:$0xff]  }
 0x45b   :  { %v1539_v3 = vpop.f32.mrb[47].mxu0  ;;  %v8494_v2 = vld [vmem:[%s14516_s0 + $0x30] sm:$0xff] }
 0x45c   :  { %1822 = vmatpush1.bf16.msra.mxu1 %v10961_v18  ;;  %v8463_v18 = vcombine.low %v8462_v16, %v8462_v16  ;;  %v8496_v3 = vcombine.high %v8494_v2, %v8494_v2  ;;  %v8495_v5 = vcombine.low %v8494_v2, %v8494_v2 }
 0x45d   :  { %1823 = vmatprep.subr.bf16.mxu1 %v10554_v0 }
 0x460   :  { %1824 = vmatpush1.bf16.msra.mxu1 %v10968_v19 }
 0x461   :  { %1825 = vmatprep.subr.bf16.mxu1 %v10554_v0 }
 0x464   :  { %1826 = vmatpush1.bf16.msra.mxu1 %v10975_v20 }
 0x465   :  { %1827 = vmatprep.subr.bf16.mxu1 %v10554_v0 }
 0x468   :  { %1828 = vmatpush1.bf16.msra.mxu1 %v10982_v21 }
 0x469   :  { %1829 = vmatprep.subr.bf16.mxu1 %v10554_v0 }
 0x46c   :  { %1830 = vmatpush1.bf16.msra.mxu1 %v10989_v22 }
 0x46d   :  { %1831 = vmatprep.subr.bf16.mxu1 %v10554_v0 }
 0x470   :  { %1832 = vmatpush1.bf16.msra.mxu1 %v10996_v25 }
 0x471   :  { %1833 = vmatprep.subr.bf16.mxu1 %v10554_v0 }
 0x474   :  { %1834 = vmatpush1.bf16.msra.mxu1 %v11003_v33 }
 0x475   :  { %1835 = vmatprep.subr.bf16.mxu1 %v10554_v0 }
 0x478   :  { %1836 = vmatpush1.bf16.msra.mxu1 %v10716_v15 }
 0x479   :  { %9616 = vmatprep.subr.bf16.mxu1 %v10555_v37 }
 0x47b   :  { %1850 = vmatmul.mubr.bf16.vlgmr.msra.gmra.mrb[52].mxu1 %v8463_v18 }
 0x47c   :  { %9632 = vmatprep.mubr.msk.bf16.mxu1 %vm10556_vm2, %v10555_v37 }
 0x4ae   :  { %v1380_v10 = vpop.f32.mrb[36].mxu1 }
 0x4af   :  { %v11413_v11 = vadd.f32 %v1380_v10, %v11276_v24  ;;  %v9594_v12 = vpop.f32.mrb[37].mxu1 }
 0x4b0   :  { %v1383_v13 = vpop.f32.mrb[38].mxu1 }
 0x4b1   :  { %v9595_v14 = vpop.f32.mrb[39].mxu1 }
 0x4d6   :  { %v1483_v19 = vpop.f32.mrb[40].mxu1 }
 0x4d7   :  { %v1489_v20 = vmax.f32 %v11374_v53, %v1483_v19  ;;  %v1485_v21 = vpop.f32.mrb[41].mxu1  ;;  %v10157_v53 = vld [vmem:[%s14520_s6 + $0x140] sm:$0xff]  }
 0x4d8   :  { %v1486_v22 = vpop.f32.mrb[42].mxu1  ;;  %9617 = vmatpush3.bf16.msra.mxu1 %v10157_v53  ;;  %v10177_v53 = vld [vmem:[%s14520_s6 + $0x1a0] sm:$0xff]  }
 0x4d9   :  { %v1487_v25 = vpop.f32.mrb[43].mxu1  ;;  %9618 = vmatprep.subr.bf16.mxu1 %v10555_v37 }
 0x4dc   :  { %9619 = vmatpush3.bf16.msra.mxu1 %v10158_v54  ;;  %v10178_v54 = vld [vmem:[%s14520_s6 + $0x1a8] sm:$0xff]  }
 0x4dd   :  { %9620 = vmatprep.subr.bf16.mxu1 %v10555_v37 }
 0x4e0   :  { %9621 = vmatpush3.bf16.msra.mxu1 %v10159_v55 }
 0x4e1   :  { %9622 = vmatprep.subr.bf16.mxu1 %v10555_v37 }
 0x4e4   :  { %9623 = vmatpush3.bf16.msra.mxu1 %v10160_v56 }
 0x4e5   :  { %9624 = vmatprep.subr.bf16.mxu1 %v10555_v37 }
 0x4e8   :  { %9625 = vmatpush3.bf16.msra.mxu1 %v10161_v57 }
 0x4e9   :  { %9626 = vmatprep.subr.bf16.mxu1 %v10555_v37 }
 0x4ec   :  { %9627 = vmatpush3.bf16.msra.mxu1 %v10162_v58 }
 0x4ed   :  { %9628 = vmatprep.subr.bf16.mxu1 %v10555_v37 }
 0x4fe   :  { %v1586_v33 = vpop.f32.mrb[44].mxu1 }
 0x4ff   :  { %v1592_v23 = vmax.f32 %v1535_v63, %v1586_v33  ;;  %v1588_v24 = vpop.f32.mrb[45].mxu1  ;;  %v10163_v63 = vld [vmem:[%s14520_s6 + $0x170] sm:$0xff]  }
 0x500   :  { %v1589_v27 = vpop.f32.mrb[46].mxu1  ;;  %9629 = vmatpush3.bf16.msra.mxu1 %v10163_v63 }
 0x501   :  { %v1593_v28 = vmax.f32 %v1489_v20, %v1592_v23  ;;  %v1590_v29 = vpop.f32.mrb[47].mxu1  ;;  %9630 = vmatprep.subr.bf16.mxu1 %v10555_v37  ;;  %v8498_v27 = vld [vmem:[%s14517_s1 + $0x30] sm:$0xff] }
 0x502   :  { %v8500_v29 = vcombine.high %v8498_v27, %v8498_v27 }
 0x503   :  { %v1594_v30 = vadd.f32 %v11445_v26, %v1593_v28 }
 0x504   :  { %9631 = vmatpush3.bf16.msra.mxu1 %v10164_v1 }
 0x505   :  { %v1595_v32 = vmax.f32 %v1594_v30, 0.0  ;;  %2081 = vmatprep.subr.bf16.mxu1 %v10554_v0 }
 0x507   :  { %v1596_v35 = vpack.c.bf16 %v1595_v32, %v1595_v32  ;;  %v8499_v32 = vcombine.low %v8498_v27, %v8498_v27  ;;  %v8546_v27 = vld [vmem:[%s14519_s3 + $0x38] sm:$0xff] }
 0x509   :  { %9613 = vmatmul.mubr.bf16.vlgmr.msra.gmra.mrb[48].mxu0 %v1596_v35  ;;  %v8507_v35 = vcombine.low %v8506_v31, %v8506_v31 }
 0x50a   :  { %1766 = vmatpush1.bf16.msra.mxu0 %v11454_v36  ;;  %8461 = vmatprep.mubr.msk.bf16.mxu0 %vm126_vm0, %v8460_v34  ;;  %v8508_v34 = vcombine.high %v8506_v31, %v8506_v31 }
 0x50b   :  { %1767 = vmatprep.subr.bf16.mxu0 %v10554_v0 }
 0x50e   :  { %1768 = vmatpush1.bf16.msra.mxu0 %v11462_v38 }
 0x50f   :  { %1769 = vmatprep.subr.bf16.mxu0 %v10554_v0 }
 0x512   :  { %1770 = vmatpush1.bf16.msra.mxu0 %v11469_v39 }
 0x513   :  { %1771 = vmatprep.subr.bf16.mxu0 %v10554_v0 }
 0x516   :  { %1772 = vmatpush1.bf16.msra.mxu0 %v11476_v40 }
 0x517   :  { %1773 = vmatprep.subr.bf16.mxu0 %v10554_v0 }
 0x51a   :  { %1774 = vmatpush1.bf16.msra.mxu0 %v11483_v41 }
 0x51b   :  { %1775 = vmatprep.subr.bf16.mxu0 %v10554_v0 }
 0x51e   :  { %1776 = vmatpush1.bf16.msra.mxu0 %v11490_v42 }
 0x51f   :  { %1777 = vmatprep.subr.bf16.mxu0 %v10554_v0 }
 0x522   :  { %1778 = vmatpush1.bf16.msra.mxu0 %v11497_v43 }
 0x523   :  { %1779 = vmatprep.subr.bf16.mxu0 %v10554_v0 }
 0x526   :  { %1780 = vmatpush1.bf16.msra.mxu0 %v11504_v44  ;;  %v11561_v4 = vpop.f32.mrb[48].mxu1 }
 0x527   :  { %1781 = vmatprep.subr.bf16.mxu0 %v10554_v0  ;;  %v1750_v50 = vpop.f32.mrb[49].mxu1 }
 0x528   :  { %v1751_v51 = vpop.f32.mrb[50].mxu1  ;;  %v10174_v50 = vld [vmem:[%s14520_s6 + $0x188] sm:$0xff]  }
 0x529   :  { %v1752_v52 = vpop.f32.mrb[51].mxu1  ;;  %v10175_v51 = vld [vmem:[%s14520_s6 + $0x190] sm:$0xff]  }
 0x52a   :  { %1782 = vmatpush1.bf16.msra.mxu0 %v11511_v45  ;;  %v10176_v52 = vld [vmem:[%s14520_s6 + $0x198] sm:$0xff]  }
 0x52b   :  { %1783 = vmatprep.subr.bf16.mxu0 %v10554_v0 }
 0x52e   :  { %1784 = vmatpush1.bf16.msra.mxu0 %v10716_v15 }
 0x52f   :  { %1868 = vmatprep.subr.bf16.mxu0 %v10554_v0 }
 0x531   :  { %1798 = vmatmul.mubr.bf16.vlgmr.msra.gmra.mrb[52].mxu0 %v8459_v47 }
 0x532   :  { %1869 = vmatpush1.bf16.msra.mxu0 %v11454_v36  ;;  %8469 = vmatprep.mubr.msk.bf16.mxu0 %vm126_vm0, %v8468_v48 }
 0x533   :  { %1870 = vmatprep.subr.bf16.mxu0 %v10554_v0 }
 0x536   :  { %1871 = vmatpush1.bf16.msra.mxu0 %v11462_v38 }
 0x537   :  { %1872 = vmatprep.subr.bf16.mxu0 %v10554_v0 }
 0x53a   :  { %1873 = vmatpush1.bf16.msra.mxu0 %v11469_v39 }
 0x53b   :  { %1874 = vmatprep.subr.bf16.mxu0 %v10554_v0 }
 0x53e   :  { %1875 = vmatpush1.bf16.msra.mxu0 %v11476_v40 }
 0x53f   :  { %1876 = vmatprep.subr.bf16.mxu0 %v10554_v0 }
 0x542   :  { %1877 = vmatpush1.bf16.msra.mxu0 %v11483_v41 }
 0x543   :  { %1878 = vmatprep.subr.bf16.mxu0 %v10554_v0 }
 0x546   :  { %1879 = vmatpush1.bf16.msra.mxu0 %v11490_v42 }
 0x547   :  { %1880 = vmatprep.subr.bf16.mxu0 %v10554_v0 }
 0x54a   :  { %1881 = vmatpush1.bf16.msra.mxu0 %v11497_v43 }
 0x54b   :  { %1882 = vmatprep.subr.bf16.mxu0 %v10554_v0 }
 0x54e   :  { %1883 = vmatpush1.bf16.msra.mxu0 %v11504_v44  ;;  %v1851_v59 = vpop.f32.mrb[52].mxu1 }
 0x54f   :  { %1884 = vmatprep.subr.bf16.mxu0 %v10554_v0  ;;  %v1853_v60 = vpop.f32.mrb[53].mxu1 }
 0x550   :  { %v1854_v61 = vpop.f32.mrb[54].mxu1  ;;  %v10180_v60 = vld [vmem:[%s14520_s6 + $0x1b8] sm:$0xff]  }
 0x551   :  { %v1855_v62 = vpop.f32.mrb[55].mxu1  ;;  %v8534_v61 = vld [vmem:[%s14516_s0 + $0x38] sm:$0xff] }
 0x552   :  { %1885 = vmatpush1.bf16.msra.mxu0 %v11511_v45  ;;  %v8536_v62 = vcombine.high %v8534_v61, %v8534_v61  ;;  %v8535_v63 = vcombine.low %v8534_v61, %v8534_v61 }
 0x553   :  { %1886 = vmatprep.subr.bf16.mxu0 %v10554_v0 }
 0x556   :  { %1887 = vmatpush1.bf16.msra.mxu0 %v10716_v15 }
 0x557   :  { %2030 = vmatprep.subr.bf16.mxu0 %v10554_v0 }
 0x559   :  { %1901 = vmatmul.mubr.bf16.vlgmr.msra.gmra.mrb[56].mxu0 %v8467_v49 }
 0x55a   :  { %2031 = vmatpush1.bf16.msra.mxu0 %v11454_v36  ;;  %8497 = vmatprep.mubr.msk.bf16.mxu0 %vm126_vm0, %v8496_v3 }
 0x55b   :  { %2032 = vmatprep.subr.bf16.mxu0 %v10554_v0 }
 0x55e   :  { %2033 = vmatpush1.bf16.msra.mxu0 %v11462_v38 }
 0x55f   :  { %2034 = vmatprep.subr.bf16.mxu0 %v10554_v0 }
 0x562   :  { %2035 = vmatpush1.bf16.msra.mxu0 %v11469_v39 }
 0x563   :  { %2036 = vmatprep.subr.bf16.mxu0 %v10554_v0 }
 0x566   :  { %2037 = vmatpush1.bf16.msra.mxu0 %v11476_v40 }
 0x567   :  { %2038 = vmatprep.subr.bf16.mxu0 %v10554_v0 }
 0x56a   :  { %2039 = vmatpush1.bf16.msra.mxu0 %v11483_v41 }
 0x56b   :  { %2040 = vmatprep.subr.bf16.mxu0 %v10554_v0 }
 0x56e   :  { %2041 = vmatpush1.bf16.msra.mxu0 %v11490_v42 }
 0x56f   :  { %2042 = vmatprep.subr.bf16.mxu0 %v10554_v0 }
 0x572   :  { %2043 = vmatpush1.bf16.msra.mxu0 %v11497_v43 }
 0x573   :  { %2044 = vmatprep.subr.bf16.mxu0 %v10554_v0 }
 0x576   :  { %2045 = vmatpush1.bf16.msra.mxu0 %v11504_v44 }
 0x577   :  { %2046 = vmatprep.subr.bf16.mxu0 %v10554_v0 }
 0x57a   :  { %2047 = vmatpush1.bf16.msra.mxu0 %v11511_v45 }
 0x57b   :  { %2048 = vmatprep.subr.bf16.mxu0 %v10554_v0 }
 0x57e   :  { %2049 = vmatpush1.bf16.msra.mxu0 %v10716_v15 }
 0x57f   :  { %2133 = vmatprep.subr.bf16.mxu0 %v10554_v0 }
 0x581   :  { %2063 = vmatmul.mubr.bf16.vlgmr.msra.gmra.mrb[60].mxu0 %v8495_v5 }
 0x582   :  { %2134 = vmatpush1.bf16.msra.mxu0 %v11454_v36 }
 0x583   :  { %2135 = vmatprep.subr.bf16.mxu0 %v10554_v0 }
 0x586   :  { %2136 = vmatpush1.bf16.msra.mxu0 %v11462_v38 }
 0x587   :  { %2137 = vmatprep.subr.bf16.mxu0 %v10554_v0 }
 0x58a   :  { %2138 = vmatpush1.bf16.msra.mxu0 %v11469_v39 }
 0x58b   :  { %2139 = vmatprep.subr.bf16.mxu0 %v10554_v0 }
 0x58e   :  { %2140 = vmatpush1.bf16.msra.mxu0 %v11476_v40 }
 0x58f   :  { %2141 = vmatprep.subr.bf16.mxu0 %v10554_v0 }
 0x592   :  { %2142 = vmatpush1.bf16.msra.mxu0 %v11483_v41 }
 0x593   :  { %2143 = vmatprep.subr.bf16.mxu0 %v10554_v0 }
 0x596   :  { %2144 = vmatpush1.bf16.msra.mxu0 %v11490_v42 }
 0x597   :  { %2145 = vmatprep.subr.bf16.mxu0 %v10554_v0 }
 0x59a   :  { %2146 = vmatpush1.bf16.msra.mxu0 %v11497_v43 }
 0x59b   :  { %2147 = vmatprep.subr.bf16.mxu0 %v10554_v0 }
 0x59e   :  { %2148 = vmatpush1.bf16.msra.mxu0 %v11504_v44 }
 0x59f   :  { %2149 = vmatprep.subr.bf16.mxu0 %v10554_v0 }
 0x5a2   :  { %2150 = vmatpush1.bf16.msra.mxu0 %v11511_v45 }
 0x5a3   :  { %2151 = vmatprep.subr.bf16.mxu0 %v10554_v0 }
 0x5a6   :  { %2152 = vmatpush1.bf16.msra.mxu0 %v10716_v15 }
 0x5a7   :  { %9636 = vmatprep.subr.bf16.mxu0 %v10555_v37 }
 0x5dc   :  { %v1696_v6 = vpop.f32.mrb[48].mxu0 }
 0x5dd   :  { %v11600_v7 = vadd.f32 %v1696_v6, %v11413_v11  ;;  %v9614_v8 = vpop.f32.mrb[49].mxu0  ;;  %v8502_v11 = vld [vmem:[%s14518_s2 + $0x30] sm:$0xff] }
 0x5de   :  { %v1699_v9 = vpop.f32.mrb[50].mxu0  ;;  %v8504_v12 = vcombine.high %v8502_v11, %v8502_v11  ;;  %v8503_v13 = vcombine.low %v8502_v11, %v8502_v11 }
 0x5df   :  { %v9615_v10 = vpop.f32.mrb[51].mxu0 }
 0x5e0   :  { %8505 = vmatprep.mubr.msk.bf16.mxu0 %vm126_vm0, %v8504_v12 }
 0x5e1   :  { %2166 = vmatmul.mubr.bf16.vlgmr.msra.gmra.mrb[64].mxu0 %v8503_v13 }
 0x5e2   :  { %9652 = vmatprep.mubr.msk.bf16.mxu0 %vm10556_vm2, %v10555_v37 }
 0x604   :  { %v1799_v14 = vpop.f32.mrb[52].mxu0 }
 0x605   :  { %v1805_v16 = vmax.f32 %v11561_v4, %v1799_v14  ;;  %v1801_v17 = vpop.f32.mrb[53].mxu0  ;;  %v10173_v4 = vld [vmem:[%s14520_s6 + $0x180] sm:$0xff]  }
 0x606   :  { %v1802_v18 = vpop.f32.mrb[54].mxu0  ;;  %9637 = vmatpush3.bf16.msra.mxu0 %v10173_v4  ;;  %v10193_v4 = vld [vmem:[%s14520_s6 + $0x1e0] sm:$0xff]  }
 0x607   :  { %v1803_v19 = vpop.f32.mrb[55].mxu0  ;;  %9638 = vmatprep.subr.bf16.mxu0 %v10555_v37 }
 0x60a   :  { %9639 = vmatpush3.bf16.msra.mxu0 %v10174_v50  ;;  %v10194_v50 = vld [vmem:[%s14520_s6 + $0x1e8] sm:$0xff]  }
 0x60b   :  { %9640 = vmatprep.subr.bf16.mxu0 %v10555_v37 }
 0x60e   :  { %9641 = vmatpush3.bf16.msra.mxu0 %v10175_v51 }
 0x60f   :  { %9642 = vmatprep.subr.bf16.mxu0 %v10555_v37 }
 0x612   :  { %9643 = vmatpush3.bf16.msra.mxu0 %v10176_v52 }
 0x613   :  { %9644 = vmatprep.subr.bf16.mxu0 %v10555_v37 }
 0x616   :  { %9645 = vmatpush3.bf16.msra.mxu0 %v10177_v53 }
 0x617   :  { %9646 = vmatprep.subr.bf16.mxu0 %v10555_v37 }
 0x61a   :  { %9647 = vmatpush3.bf16.msra.mxu0 %v10178_v54 }
 0x61b   :  { %9648 = vmatprep.subr.bf16.mxu0 %v10555_v37 }
 0x62c   :  { %v1902_v20 = vpop.f32.mrb[56].mxu0 }
 0x62d   :  { %v1908_v21 = vmax.f32 %v1851_v59, %v1902_v20  ;;  %v1904_v22 = vpop.f32.mrb[57].mxu0  ;;  %v10179_v59 = vld [vmem:[%s14520_s6 + $0x1b0] sm:$0xff]  }
 0x62e   :  { %v1905_v25 = vpop.f32.mrb[58].mxu0  ;;  %9649 = vmatpush3.bf16.msra.mxu0 %v10179_v59 }
 0x62f   :  { %v1909_v33 = vmax.f32 %v1805_v16, %v1908_v21  ;;  %v1906_v23 = vpop.f32.mrb[59].mxu0  ;;  %9650 = vmatprep.subr.bf16.mxu0 %v10555_v37  ;;  %v8538_v25 = vld [vmem:[%s14517_s1 + $0x38] sm:$0xff] }
 0x630   :  { %v8540_v23 = vcombine.high %v8538_v25, %v8538_v25 }
 0x631   :  { %v1910_v24 = vadd.f32 %v11445_v26, %v1909_v33 }
 0x632   :  { %9651 = vmatpush3.bf16.msra.mxu0 %v10180_v60 }
 0x633   :  { %v1911_v28 = vmax.f32 %v1910_v24, 0.0  ;;  %2397 = vmatprep.subr.bf16.mxu0 %v10554_v0 }
 0x635   :  { %v1912_v30 = vpack.c.bf16 %v1911_v28, %v1911_v28  ;;  %v8539_v28 = vcombine.low %v8538_v25, %v8538_v25 }
 0x637   :  { %9633 = vmatmul.mubr.bf16.vlgmr.msra.gmra.mrb[56].mxu1 %v1912_v30  ;;  %v8547_v30 = vcombine.low %v8546_v27, %v8546_v27 }
 0x638   :  { %2082 = vmatpush1.bf16.msra.mxu1 %v11454_v36  ;;  %8501 = vmatprep.mubr.msk.bf16.mxu1 %vm126_vm0, %v8500_v29  ;;  %v8548_v29 = vcombine.high %v8546_v27, %v8546_v27 }
 0x639   :  { %2083 = vmatprep.subr.bf16.mxu1 %v10554_v0 }
 0x63c   :  { %2084 = vmatpush1.bf16.msra.mxu1 %v11462_v38 }
 0x63d   :  { %2085 = vmatprep.subr.bf16.mxu1 %v10554_v0 }
 0x640   :  { %2086 = vmatpush1.bf16.msra.mxu1 %v11469_v39 }
 0x641   :  { %2087 = vmatprep.subr.bf16.mxu1 %v10554_v0 }
 0x644   :  { %2088 = vmatpush1.bf16.msra.mxu1 %v11476_v40 }
 0x645   :  { %2089 = vmatprep.subr.bf16.mxu1 %v10554_v0 }
 0x648   :  { %2090 = vmatpush1.bf16.msra.mxu1 %v11483_v41 }
 0x649   :  { %2091 = vmatprep.subr.bf16.mxu1 %v10554_v0 }
 0x64c   :  { %2092 = vmatpush1.bf16.msra.mxu1 %v11490_v42 }
 0x64d   :  { %2093 = vmatprep.subr.bf16.mxu1 %v10554_v0 }
 0x650   :  { %2094 = vmatpush1.bf16.msra.mxu1 %v11497_v43 }
 0x651   :  { %2095 = vmatprep.subr.bf16.mxu1 %v10554_v0 }
 0x654   :  { %2096 = vmatpush1.bf16.msra.mxu1 %v11504_v44  ;;  %v11698_v46 = vpop.f32.mrb[60].mxu0 }
 0x655   :  { %2097 = vmatprep.subr.bf16.mxu1 %v10554_v0  ;;  %v2066_v47 = vpop.f32.mrb[61].mxu0 }
 0x656   :  { %v2067_v48 = vpop.f32.mrb[62].mxu0  ;;  %v10190_v47 = vld [vmem:[%s14520_s6 + $0x1c8] sm:$0xff]  }
 0x657   :  { %v2068_v49 = vpop.f32.mrb[63].mxu0  ;;  %v10191_v48 = vld [vmem:[%s14520_s6 + $0x1d0] sm:$0xff]  }
 0x658   :  { %2098 = vmatpush1.bf16.msra.mxu1 %v11511_v45  ;;  %v10192_v49 = vld [vmem:[%s14520_s6 + $0x1d8] sm:$0xff]  }
 0x659   :  { %2099 = vmatprep.subr.bf16.mxu1 %v10554_v0 }
 0x65c   :  { %2100 = vmatpush1.bf16.msra.mxu1 %v10716_v15 }
 0x65d   :  { %2184 = vmatprep.subr.bf16.mxu1 %v10554_v0 }
 0x65f   :  { %2114 = vmatmul.mubr.bf16.vlgmr.msra.gmra.mrb[60].mxu1 %v8499_v32 }
 0x660   :  { %2185 = vmatpush1.bf16.msra.mxu1 %v11454_v36  ;;  %8509 = vmatprep.mubr.msk.bf16.mxu1 %vm126_vm0, %v8508_v34 }
 0x661   :  { %2186 = vmatprep.subr.bf16.mxu1 %v10554_v0 }
 0x664   :  { %2187 = vmatpush1.bf16.msra.mxu1 %v11462_v38 }
 0x665   :  { %2188 = vmatprep.subr.bf16.mxu1 %v10554_v0 }
 0x668   :  { %2189 = vmatpush1.bf16.msra.mxu1 %v11469_v39 }
 0x669   :  { %2190 = vmatprep.subr.bf16.mxu1 %v10554_v0 }
 0x66c   :  { %2191 = vmatpush1.bf16.msra.mxu1 %v11476_v40 }
 0x66d   :  { %2192 = vmatprep.subr.bf16.mxu1 %v10554_v0 }
 0x670   :  { %2193 = vmatpush1.bf16.msra.mxu1 %v11483_v41 }
 0x671   :  { %2194 = vmatprep.subr.bf16.mxu1 %v10554_v0 }
 0x674   :  { %2195 = vmatpush1.bf16.msra.mxu1 %v11490_v42 }
 0x675   :  { %2196 = vmatprep.subr.bf16.mxu1 %v10554_v0 }
 0x678   :  { %2197 = vmatpush1.bf16.msra.mxu1 %v11497_v43 }
 0x679   :  { %2198 = vmatprep.subr.bf16.mxu1 %v10554_v0 }
 0x67c   :  { %2199 = vmatpush1.bf16.msra.mxu1 %v11504_v44 }
 0x67d   :  { %2200 = vmatprep.subr.bf16.mxu1 %v10554_v0 }
 0x680   :  { %2201 = vmatpush1.bf16.msra.mxu1 %v11511_v45 }
 0x681   :  { %2202 = vmatprep.subr.bf16.mxu1 %v10554_v0 }
 0x684   :  { %2203 = vmatpush1.bf16.msra.mxu1 %v10716_v15 }
 0x685   :  { %2346 = vmatprep.subr.bf16.mxu1 %v10554_v0 }
 0x687   :  { %2217 = vmatmul.mubr.bf16.vlgmr.msra.gmra.mrb[64].mxu1 %v8507_v35 }
 0x688   :  { %2347 = vmatpush1.bf16.msra.mxu1 %v11454_v36  ;;  %8537 = vmatprep.mubr.msk.bf16.mxu1 %vm126_vm0, %v8536_v62 }
 0x689   :  { %2348 = vmatprep.subr.bf16.mxu1 %v10554_v0 }
 0x68c   :  { %2349 = vmatpush1.bf16.msra.mxu1 %v11462_v38 }
 0x68d   :  { %2350 = vmatprep.subr.bf16.mxu1 %v10554_v0 }
 0x690   :  { %2351 = vmatpush1.bf16.msra.mxu1 %v11469_v39 }
 0x691   :  { %2352 = vmatprep.subr.bf16.mxu1 %v10554_v0 }
 0x694   :  { %2353 = vmatpush1.bf16.msra.mxu1 %v11476_v40 }
 0x695   :  { %2354 = vmatprep.subr.bf16.mxu1 %v10554_v0 }
 0x698   :  { %2355 = vmatpush1.bf16.msra.mxu1 %v11483_v41 }
 0x699   :  { %2356 = vmatprep.subr.bf16.mxu1 %v10554_v0 }
 0x69c   :  { %2357 = vmatpush1.bf16.msra.mxu1 %v11490_v42 }
 0x69d   :  { %2358 = vmatprep.subr.bf16.mxu1 %v10554_v0 }
 0x6a0   :  { %2359 = vmatpush1.bf16.msra.mxu1 %v11497_v43 }
 0x6a1   :  { %2360 = vmatprep.subr.bf16.mxu1 %v10554_v0 }
 0x6a4   :  { %2361 = vmatpush1.bf16.msra.mxu1 %v11504_v44 }
 0x6a5   :  { %2362 = vmatprep.subr.bf16.mxu1 %v10554_v0 }
 0x6a8   :  { %2363 = vmatpush1.bf16.msra.mxu1 %v11511_v45 }
 0x6a9   :  { %2364 = vmatprep.subr.bf16.mxu1 %v10554_v0 }
 0x6ac   :  { %2365 = vmatpush1.bf16.msra.mxu1 %v10716_v15 }
 0x6ad   :  { %2449 = vmatprep.subr.bf16.mxu1 %v10554_v0 }
 0x6af   :  { %2379 = vmatmul.mubr.bf16.vlgmr.msra.gmra.mrb[68].mxu1 %v8535_v63 }
 0x6b0   :  { %2450 = vmatpush1.bf16.msra.mxu1 %v11454_v36 }
 0x6b1   :  { %2451 = vmatprep.subr.bf16.mxu1 %v10554_v0 }
 0x6b4   :  { %v2167_v55 = vpop.f32.mrb[64].mxu0  ;;  %2452 = vmatpush1.bf16.msra.mxu1 %v11462_v38 }
 0x6b5   :  { %v2169_v56 = vpop.f32.mrb[65].mxu0  ;;  %2453 = vmatprep.subr.bf16.mxu1 %v10554_v0 }
 0x6b6   :  { %v2170_v57 = vpop.f32.mrb[66].mxu0  ;;  %v10196_v56 = vld [vmem:[%s14520_s6 + $0x1f8] sm:$0xff]  }
 0x6b7   :  { %v2171_v58 = vpop.f32.mrb[67].mxu0  ;;  %v8574_v57 = vld [vmem:[%s14516_s0 + $0x40] sm:$0xff] }
 0x6b8   :  { %2454 = vmatpush1.bf16.msra.mxu1 %v11469_v39  ;;  %v8576_v58 = vcombine.high %v8574_v57, %v8574_v57  ;;  %v8575_v59 = vcombine.low %v8574_v57, %v8574_v57  ;;  %v12060_v57 = vld [vmem:[%s14515_s4 + $0x30] sm:$0xff]  }
 0x6b9   :  { %2455 = vmatprep.subr.bf16.mxu1 %v10554_v0 }
 0x6bc   :  { %2456 = vmatpush1.bf16.msra.mxu1 %v11476_v40 }
 0x6bd   :  { %2457 = vmatprep.subr.bf16.mxu1 %v10554_v0 }
 0x6c0   :  { %2458 = vmatpush1.bf16.msra.mxu1 %v11483_v41 }
 0x6c1   :  { %2459 = vmatprep.subr.bf16.mxu1 %v10554_v0 }
 0x6c4   :  { %2460 = vmatpush1.bf16.msra.mxu1 %v11490_v42 }
 0x6c5   :  { %2461 = vmatprep.subr.bf16.mxu1 %v10554_v0 }
 0x6c8   :  { %2462 = vmatpush1.bf16.msra.mxu1 %v11497_v43 }
 0x6c9   :  { %2463 = vmatprep.subr.bf16.mxu1 %v10554_v0 }
 0x6cc   :  { %2464 = vmatpush1.bf16.msra.mxu1 %v11504_v44 }
 0x6cd   :  { %2465 = vmatprep.subr.bf16.mxu1 %v10554_v0 }
 0x6d0   :  { %2466 = vmatpush1.bf16.msra.mxu1 %v11511_v45 }
 0x6d1   :  { %2467 = vmatprep.subr.bf16.mxu1 %v10554_v0 }
 0x6d4   :  { %2468 = vmatpush1.bf16.msra.mxu1 %v10716_v15 }
 0x6d5   :  { %9656 = vmatprep.subr.bf16.mxu1 %v10555_v37 }
 0x70a   :  { %v2012_v1 = vpop.f32.mrb[56].mxu1 }
 0x70b   :  { %v11737_v2 = vadd.f32 %v2012_v1, %v11600_v7  ;;  %v9634_v3 = vpop.f32.mrb[57].mxu1  ;;  %v8542_v7 = vld [vmem:[%s14518_s2 + $0x38] sm:$0xff] }
 0x70c   :  { %v2015_v5 = vpop.f32.mrb[58].mxu1  ;;  %v8544_v8 = vcombine.high %v8542_v7, %v8542_v7  ;;  %v8543_v9 = vcombine.low %v8542_v7, %v8542_v7 }
 0x70d   :  { %v9635_v6 = vpop.f32.mrb[59].mxu1 }
 0x70e   :  { %8545 = vmatprep.mubr.msk.bf16.mxu1 %vm126_vm0, %v8544_v8 }
 0x70f   :  { %2482 = vmatmul.mubr.bf16.vlgmr.msra.gmra.mrb[72].mxu1 %v8543_v9 }
 0x710   :  { %9672 = vmatprep.mubr.msk.bf16.mxu1 %vm10556_vm2, %v10555_v37 }
 0x732   :  { %v2115_v10 = vpop.f32.mrb[60].mxu1 }
 0x733   :  { %v2121_v11 = vmax.f32 %v11698_v46, %v2115_v10  ;;  %v2117_v12 = vpop.f32.mrb[61].mxu1  ;;  %v10189_v46 = vld [vmem:[%s14520_s6 + $0x1c0] sm:$0xff]  }
 0x734   :  { %v2118_v13 = vpop.f32.mrb[62].mxu1  ;;  %9657 = vmatpush3.bf16.msra.mxu1 %v10189_v46 }
 0x735   :  { %v2119_v14 = vpop.f32.mrb[63].mxu1  ;;  %9658 = vmatprep.subr.bf16.mxu1 %v10555_v37 }
 0x738   :  { %9659 = vmatpush3.bf16.msra.mxu1 %v10190_v47 }
 0x739   :  { %9660 = vmatprep.subr.bf16.mxu1 %v10555_v37 }
 0x73c   :  { %9661 = vmatpush3.bf16.msra.mxu1 %v10191_v48 }
 0x73d   :  { %9662 = vmatprep.subr.bf16.mxu1 %v10555_v37 }
 0x740   :  { %9663 = vmatpush3.bf16.msra.mxu1 %v10192_v49 }
 0x741   :  { %9664 = vmatprep.subr.bf16.mxu1 %v10555_v37 }
 0x744   :  { %9665 = vmatpush3.bf16.msra.mxu1 %v10193_v4 }
 0x745   :  { %9666 = vmatprep.subr.bf16.mxu1 %v10555_v37 }
 0x748   :  { %9667 = vmatpush3.bf16.msra.mxu1 %v10194_v50  ;;  %v12018_v50 = vld [vmem:[%s14515_s4] sm:$0xff]  }
 0x749   :  { %9668 = vmatprep.subr.bf16.mxu1 %v10555_v37 }
 0x75a   :  { %v2218_v16 = vpop.f32.mrb[64].mxu1 }
 0x75b   :  { %v2224_v17 = vmax.f32 %v2167_v55, %v2218_v16  ;;  %v2220_v18 = vpop.f32.mrb[65].mxu1  ;;  %v10195_v55 = vld [vmem:[%s14520_s6 + $0x1f0] sm:$0xff]  }
 0x75c   :  { %v2221_v19 = vpop.f32.mrb[66].mxu1  ;;  %9669 = vmatpush3.bf16.msra.mxu1 %v10195_v55  ;;  %v12046_v55 = vld [vmem:[%s14515_s4 + $0x20] sm:$0xff]  }
 0x75d   :  { %v2225_v20 = vmax.f32 %v2121_v11, %v2224_v17  ;;  %v2222_v21 = vpop.f32.mrb[67].mxu1  ;;  %9670 = vmatprep.subr.bf16.mxu1 %v10555_v37  ;;  %v8578_v19 = vld [vmem:[%s14517_s1 + $0x40] sm:$0xff] }
 0x75e   :  { %v8580_v21 = vcombine.high %v8578_v19, %v8578_v19  ;;  %v8579_v25 = vcombine.low %v8578_v19, %v8578_v19  ;;  %v8626_v19 = vld [vmem:[%s14519_s3 + $0x48] sm:$0xff] }
 0x75f   :  { %v2226_v22 = vadd.f32 %v11445_v26, %v2225_v20 }
 0x760   :  { %9671 = vmatpush3.bf16.msra.mxu1 %v10196_v56  ;;  %v12053_v56 = vld [vmem:[%s14515_s4 + $0x28] sm:$0xff]  }
 0x761   :  { %v2227_v33 = vmax.f32 %v2226_v22, 0.0  ;;  %2713 = vmatprep.subr.bf16.mxu1 %v10554_v0 }
 0x763   :  { %v2228_v24 = vpack.c.bf16 %v2227_v33, %v2227_v33 }
 0x765   :  { %9653 = vmatmul.mubr.bf16.vlgmr.msra.gmra.mrb[68].mxu0 %v2228_v24  ;;  %v10210_v24 = vld [vmem:[%s14520_s6 + $0x228] sm:$0xff]  }
 0x766   :  { %2398 = vmatpush1.bf16.msra.mxu0 %v11454_v36  ;;  %8541 = vmatprep.mubr.msk.bf16.mxu0 %vm126_vm0, %v8540_v23 }
 0x767   :  { %2399 = vmatprep.subr.bf16.mxu0 %v10554_v0 }
 0x76a   :  { %2400 = vmatpush1.bf16.msra.mxu0 %v11462_v38 }
 0x76b   :  { %2401 = vmatprep.subr.bf16.mxu0 %v10554_v0 }
 0x76e   :  { %2402 = vmatpush1.bf16.msra.mxu0 %v11469_v39 }
 0x76f   :  { %2403 = vmatprep.subr.bf16.mxu0 %v10554_v0 }
 0x772   :  { %2404 = vmatpush1.bf16.msra.mxu0 %v11476_v40 }
 0x773   :  { %2405 = vmatprep.subr.bf16.mxu0 %v10554_v0 }
 0x776   :  { %2406 = vmatpush1.bf16.msra.mxu0 %v11483_v41 }
 0x777   :  { %2407 = vmatprep.subr.bf16.mxu0 %v10554_v0 }
 0x77a   :  { %2408 = vmatpush1.bf16.msra.mxu0 %v11490_v42 }
 0x77b   :  { %2409 = vmatprep.subr.bf16.mxu0 %v10554_v0 }
 0x77e   :  { %2410 = vmatpush1.bf16.msra.mxu0 %v11497_v43 }
 0x77f   :  { %2411 = vmatprep.subr.bf16.mxu0 %v10554_v0 }
 0x782   :  { %2412 = vmatpush1.bf16.msra.mxu0 %v11504_v44  ;;  %v11835_v31 = vpop.f32.mrb[68].mxu1 }
 0x783   :  { %2413 = vmatprep.subr.bf16.mxu0 %v10554_v0  ;;  %v2382_v32 = vpop.f32.mrb[69].mxu1 }
 0x784   :  { %v2383_v34 = vpop.f32.mrb[70].mxu1  ;;  %v10212_v32 = vld [vmem:[%s14520_s6 + $0x238] sm:$0xff]  }
 0x785   :  { %v2384_v35 = vpop.f32.mrb[71].mxu1  ;;  %v8614_v34 = vld [vmem:[%s14516_s0 + $0x48] sm:$0xff] }
 0x786   :  { %2414 = vmatpush1.bf16.msra.mxu0 %v11511_v45  ;;  %v8616_v35 = vcombine.high %v8614_v34, %v8614_v34  ;;  %v8615_v46 = vcombine.low %v8614_v34, %v8614_v34 }
 0x787   :  { %2415 = vmatprep.subr.bf16.mxu0 %v10554_v0 }
 0x78a   :  { %2416 = vmatpush1.bf16.msra.mxu0 %v10716_v15 }
 0x78b   :  { %2500 = vmatprep.subr.bf16.mxu0 %v10554_v0 }
 0x78d   :  { %2430 = vmatmul.mubr.bf16.vlgmr.msra.gmra.mrb[72].mxu0 %v8539_v28 }
 0x78e   :  { %2501 = vmatpush1.bf16.msra.mxu0 %v11454_v36  ;;  %8549 = vmatprep.mubr.msk.bf16.mxu0 %vm126_vm0, %v8548_v29 }
 0x78f   :  { %2502 = vmatprep.subr.bf16.mxu0 %v10554_v0 }
 0x792   :  { %2503 = vmatpush1.bf16.msra.mxu0 %v11462_v38 }
 0x793   :  { %2504 = vmatprep.subr.bf16.mxu0 %v10554_v0 }
 0x796   :  { %2505 = vmatpush1.bf16.msra.mxu0 %v11469_v39 }
 0x797   :  { %2506 = vmatprep.subr.bf16.mxu0 %v10554_v0 }
 0x79a   :  { %2507 = vmatpush1.bf16.msra.mxu0 %v11476_v40 }
 0x79b   :  { %2508 = vmatprep.subr.bf16.mxu0 %v10554_v0 }
 0x79e   :  { %2509 = vmatpush1.bf16.msra.mxu0 %v11483_v41 }
 0x79f   :  { %2510 = vmatprep.subr.bf16.mxu0 %v10554_v0 }
 0x7a2   :  { %2511 = vmatpush1.bf16.msra.mxu0 %v11490_v42 }
 0x7a3   :  { %2512 = vmatprep.subr.bf16.mxu0 %v10554_v0 }
 0x7a6   :  { %2513 = vmatpush1.bf16.msra.mxu0 %v11497_v43 }
 0x7a7   :  { %2514 = vmatprep.subr.bf16.mxu0 %v10554_v0 }
 0x7aa   :  { %2515 = vmatpush1.bf16.msra.mxu0 %v11504_v44 }
 0x7ab   :  { %2516 = vmatprep.subr.bf16.mxu0 %v10554_v0 }
 0x7ae   :  { %2517 = vmatpush1.bf16.msra.mxu0 %v11511_v45 }
 0x7af   :  { %2518 = vmatprep.subr.bf16.mxu0 %v10554_v0 }
 0x7b2   :  { %2519 = vmatpush1.bf16.msra.mxu0 %v10716_v15 }
 0x7b3   :  { %2662 = vmatprep.subr.bf16.mxu0 %v10554_v0 }
 0x7b5   :  { %2533 = vmatmul.mubr.bf16.vlgmr.msra.gmra.mrb[76].mxu0 %v8547_v30 }
 0x7b6   :  { %2663 = vmatpush1.bf16.msra.mxu0 %v11454_v36  ;;  %8577 = vmatprep.mubr.msk.bf16.mxu0 %vm126_vm0, %v8576_v58  ;;  %v12067_v58 = vld [vmem:[%s14515_s4 + $0x38] sm:$0xff]  }
 0x7b7   :  { %2664 = vmatprep.subr.bf16.mxu0 %v10554_v0 }
 0x7ba   :  { %2665 = vmatpush1.bf16.msra.mxu0 %v11462_v38 }
 0x7bb   :  { %2666 = vmatprep.subr.bf16.mxu0 %v10554_v0 }
 0x7be   :  { %2667 = vmatpush1.bf16.msra.mxu0 %v11469_v39 }
 0x7bf   :  { %2668 = vmatprep.subr.bf16.mxu0 %v10554_v0 }
 0x7c2   :  { %2669 = vmatpush1.bf16.msra.mxu0 %v11476_v40 }
 0x7c3   :  { %2670 = vmatprep.subr.bf16.mxu0 %v10554_v0 }
 0x7c6   :  { %2671 = vmatpush1.bf16.msra.mxu0 %v11483_v41 }
 0x7c7   :  { %2672 = vmatprep.subr.bf16.mxu0 %v10554_v0 }
 0x7ca   :  { %2673 = vmatpush1.bf16.msra.mxu0 %v11490_v42 }
 0x7cb   :  { %2674 = vmatprep.subr.bf16.mxu0 %v10554_v0 }
 0x7ce   :  { %2675 = vmatpush1.bf16.msra.mxu0 %v11497_v43 }
 0x7cf   :  { %2676 = vmatprep.subr.bf16.mxu0 %v10554_v0 }
 0x7d2   :  { %2677 = vmatpush1.bf16.msra.mxu0 %v11504_v44 }
 0x7d3   :  { %2678 = vmatprep.subr.bf16.mxu0 %v10554_v0 }
 0x7d6   :  { %2679 = vmatpush1.bf16.msra.mxu0 %v11511_v45 }
 0x7d7   :  { %2680 = vmatprep.subr.bf16.mxu0 %v10554_v0 }
 0x7da   :  { %2681 = vmatpush1.bf16.msra.mxu0 %v10716_v15 }
 0x7db   :  { %2765 = vmatprep.subr.bf16.mxu0 %v10554_v0 }
 0x7dd   :  { %2695 = vmatmul.mubr.bf16.vlgmr.msra.gmra.mrb[80].mxu0 %v8575_v59  ;;  %v12074_v59 = vld [vmem:[%s14515_s4 + $0x40] sm:$0xff]  }
 0x7de   :  { %2766 = vmatpush1.bf16.msra.mxu0 %v11454_v36 }
 0x7df   :  { %2767 = vmatprep.subr.bf16.mxu0 %v10554_v0 }
 0x7e2   :  { %v2483_v51 = vpop.f32.mrb[72].mxu1  ;;  %2768 = vmatpush1.bf16.msra.mxu0 %v11462_v38 }
 0x7e3   :  { %v2485_v52 = vpop.f32.mrb[73].mxu1  ;;  %2769 = vmatprep.subr.bf16.mxu0 %v10554_v0 }
 0x7e4   :  { %v2486_v53 = vpop.f32.mrb[74].mxu1  ;;  %v12025_v52 = vld [vmem:[%s14515_s4 + $0x8] sm:$0xff]  }
 0x7e5   :  { %v2487_v54 = vpop.f32.mrb[75].mxu1  ;;  %v12032_v53 = vld [vmem:[%s14515_s4 + $0x10] sm:$0xff]  }
 0x7e6   :  { %2770 = vmatpush1.bf16.msra.mxu0 %v11469_v39  ;;  %v12039_v54 = vld [vmem:[%s14515_s4 + $0x18] sm:$0xff]  }
 0x7e7   :  { %2771 = vmatprep.subr.bf16.mxu0 %v10554_v0 }
 0x7ea   :  { %2772 = vmatpush1.bf16.msra.mxu0 %v11476_v40 }
 0x7eb   :  { %2773 = vmatprep.subr.bf16.mxu0 %v10554_v0 }
 0x7ee   :  { %2774 = vmatpush1.bf16.msra.mxu0 %v11483_v41 }
 0x7ef   :  { %2775 = vmatprep.subr.bf16.mxu0 %v10554_v0 }
 0x7f2   :  { %2776 = vmatpush1.bf16.msra.mxu0 %v11490_v42 }
 0x7f3   :  { %2777 = vmatprep.subr.bf16.mxu0 %v10554_v0 }
 0x7f6   :  { %2778 = vmatpush1.bf16.msra.mxu0 %v11497_v43 }
 0x7f7   :  { %2779 = vmatprep.subr.bf16.mxu0 %v10554_v0 }
 0x7fa   :  { %2780 = vmatpush1.bf16.msra.mxu0 %v11504_v44 }
 0x7fb   :  { %2781 = vmatprep.subr.bf16.mxu0 %v10554_v0 }
 0x7fe   :  { %2782 = vmatpush1.bf16.msra.mxu0 %v11511_v45 }
 0x7ff   :  { %2783 = vmatprep.subr.bf16.mxu0 %v10554_v0 }
 0x802   :  { %2784 = vmatpush1.bf16.msra.mxu0 %v10716_v15 }
 0x803   :  { %9676 = vmatprep.subr.bf16.mxu0 %v10555_v37 }
 0x838   :  { %v2328_v60 = vpop.f32.mrb[68].mxu0 }
 0x839   :  { %v11874_v61 = vadd.f32 %v2328_v60, %v11737_v2  ;;  %v9654_v62 = vpop.f32.mrb[69].mxu0  ;;  %v8582_v2 = vld [vmem:[%s14518_s2 + $0x40] sm:$0xff]  ;;  %v8622_v60 = vld [vmem:[%s14518_s2 + $0x48] sm:$0xff] }
 0x83a   :  { %v2331_v63 = vpop.f32.mrb[70].mxu0  ;;  %v8584_v3 = vcombine.high %v8582_v2, %v8582_v2  ;;  %v8583_v5 = vcombine.low %v8582_v2, %v8582_v2  ;;  %v8623_v62 = vcombine.low %v8622_v60, %v8622_v60 }
 0x83b   :  { %v9655_v1 = vpop.f32.mrb[71].mxu0 }
 0x83c   :  { %8585 = vmatprep.mubr.msk.bf16.mxu0 %vm126_vm0, %v8584_v3 }
 0x83d   :  { %2798 = vmatmul.mubr.bf16.vlgmr.msra.gmra.mrb[84].mxu0 %v8583_v5 }
 0x83e   :  { %9692 = vmatprep.mubr.msk.bf16.mxu0 %vm10556_vm2, %v10555_v37 }
 0x860   :  { %v2431_v6 = vpop.f32.mrb[72].mxu0 }
 0x861   :  { %v2437_v7 = vmax.f32 %v11835_v31, %v2431_v6  ;;  %v2433_v8 = vpop.f32.mrb[73].mxu0  ;;  %v10211_v31 = vld [vmem:[%s14520_s6 + $0x230] sm:$0xff]  }
 0x862   :  { %v2434_v9 = vpop.f32.mrb[74].mxu0 }
 0x863   :  { %v2435_v10 = vpop.f32.mrb[75].mxu0 }
 0x888   :  { %v2534_v11 = vpop.f32.mrb[76].mxu0 }
 0x889   :  { %v2540_v12 = vmax.f32 %v2483_v51, %v2534_v11  ;;  %v2536_v13 = vpop.f32.mrb[77].mxu0 }
 0x88a   :  { %v2537_v14 = vpop.f32.mrb[78].mxu0 }
 0x88b   :  { %v2541_v16 = vmax.f32 %v2437_v7, %v2540_v12  ;;  %v2538_v17 = vpop.f32.mrb[79].mxu0  ;;  %v12091_v12 = vld [vmem:[%s14521_s5] ss:$0 sm:$0xff]  ;;  %v8618_v14 = vld [vmem:[%s14517_s1 + $0x48] sm:$0xff] }
 0x88c   :  { %v8620_v17 = vcombine.high %v8618_v14, %v8618_v14 }
 0x88d   :  { %v2542_v18 = vadd.f32 %v11445_v26, %v2541_v16  ;;  %v8586_v26 = vld [vmem:[%s14519_s3 + $0x40] sm:$0xff] }
 0x88e   :  { %v8588_v33 = vcombine.high %v8586_v26, %v8586_v26  ;;  %v8587_v23 = vcombine.low %v8586_v26, %v8586_v26 }
 0x88f   :  { %v2543_v20 = vmax.f32 %v2542_v18, 0.0 }
 0x891   :  { %v2544_v22 = vpack.c.bf16 %v2543_v20, %v2543_v20  ;;  %v8619_v20 = vcombine.low %v8618_v14, %v8618_v14  ;;  %v8666_v14 = vld [vmem:[%s14519_s3 + $0x50] sm:$0xff] }
 0x893   :  { %9673 = vmatmul.mubr.bf16.vlgmr.msra.gmra.mrb[76].mxu1 %v2544_v22  ;;  %v8627_v22 = vcombine.low %v8626_v19, %v8626_v19 }
 0x894   :  { %2714 = vmatpush1.bf16.msra.mxu1 %v11454_v36  ;;  %8581 = vmatprep.mubr.msk.bf16.mxu1 %vm126_vm0, %v8580_v21  ;;  %v8628_v21 = vcombine.high %v8626_v19, %v8626_v19 }
 0x895   :  { %2715 = vmatprep.subr.bf16.mxu1 %v10554_v0 }
 0x898   :  { %2716 = vmatpush1.bf16.msra.mxu1 %v11462_v38 }
 0x899   :  { %2717 = vmatprep.subr.bf16.mxu1 %v10554_v0 }
 0x89c   :  { %2718 = vmatpush1.bf16.msra.mxu1 %v11469_v39 }
 0x89d   :  { %2719 = vmatprep.subr.bf16.mxu1 %v10554_v0 }
 0x8a0   :  { %2720 = vmatpush1.bf16.msra.mxu1 %v11476_v40 }
 0x8a1   :  { %2721 = vmatprep.subr.bf16.mxu1 %v10554_v0 }
 0x8a4   :  { %2722 = vmatpush1.bf16.msra.mxu1 %v11483_v41 }
 0x8a5   :  { %2723 = vmatprep.subr.bf16.mxu1 %v10554_v0 }
 0x8a8   :  { %2724 = vmatpush1.bf16.msra.mxu1 %v11490_v42 }
 0x8a9   :  { %2725 = vmatprep.subr.bf16.mxu1 %v10554_v0 }
 0x8ac   :  { %2726 = vmatpush1.bf16.msra.mxu1 %v11497_v43 }
 0x8ad   :  { %2727 = vmatprep.subr.bf16.mxu1 %v10554_v0 }
 0x8b0   :  { %2728 = vmatpush1.bf16.msra.mxu1 %v11504_v44 }
 0x8b1   :  { %2729 = vmatprep.subr.bf16.mxu1 %v10554_v0 }
 0x8b4   :  { %2730 = vmatpush1.bf16.msra.mxu1 %v11511_v45 }
 0x8b5   :  { %2731 = vmatprep.subr.bf16.mxu1 %v10554_v0 }
 0x8b8   :  { %2732 = vmatpush1.bf16.msra.mxu1 %v10716_v15 }
 0x8b9   :  { %2816 = vmatprep.subr.bf16.mxu1 %v10554_v0 }
 0x8bb   :  { %2746 = vmatmul.mubr.bf16.vlgmr.msra.gmra.mrb[80].mxu1 %v8579_v25 }
 0x8bc   :  { %2817 = vmatpush1.bf16.msra.mxu1 %v11454_v36  ;;  %8589 = vmatprep.mubr.msk.bf16.mxu1 %vm126_vm0, %v8588_v33 }
 0x8bd   :  { %2818 = vmatprep.subr.bf16.mxu1 %v10554_v0 }
 0x8c0   :  { %2819 = vmatpush1.bf16.msra.mxu1 %v11462_v38 }
 0x8c1   :  { %2820 = vmatprep.subr.bf16.mxu1 %v10554_v0 }
 0x8c4   :  { %2821 = vmatpush1.bf16.msra.mxu1 %v11469_v39 }
 0x8c5   :  { %2822 = vmatprep.subr.bf16.mxu1 %v10554_v0 }
 0x8c8   :  { %2823 = vmatpush1.bf16.msra.mxu1 %v11476_v40 }
 0x8c9   :  { %2824 = vmatprep.subr.bf16.mxu1 %v10554_v0 }
 0x8cc   :  { %2825 = vmatpush1.bf16.msra.mxu1 %v11483_v41 }
 0x8cd   :  { %2826 = vmatprep.subr.bf16.mxu1 %v10554_v0 }
 0x8d0   :  { %2827 = vmatpush1.bf16.msra.mxu1 %v11490_v42 }
 0x8d1   :  { %2828 = vmatprep.subr.bf16.mxu1 %v10554_v0 }
 0x8d4   :  { %2829 = vmatpush1.bf16.msra.mxu1 %v11497_v43 }
 0x8d5   :  { %2830 = vmatprep.subr.bf16.mxu1 %v10554_v0 }
 0x8d8   :  { %2831 = vmatpush1.bf16.msra.mxu1 %v11504_v44 }
 0x8d9   :  { %2832 = vmatprep.subr.bf16.mxu1 %v10554_v0 }
 0x8dc   :  { %2833 = vmatpush1.bf16.msra.mxu1 %v11511_v45 }
 0x8dd   :  { %2834 = vmatprep.subr.bf16.mxu1 %v10554_v0 }
 0x8e0   :  { %2835 = vmatpush1.bf16.msra.mxu1 %v10716_v15 }
 0x8e1   :  { %2978 = vmatprep.subr.bf16.mxu1 %v10554_v0 }
 0x8e3   :  { %2849 = vmatmul.mubr.bf16.vlgmr.msra.gmra.mrb[84].mxu1 %v8587_v23 }
 0x8e4   :  { %2979 = vmatpush1.bf16.msra.mxu1 %v11454_v36  ;;  %v11972_v36 = vpop.f32.mrb[80].mxu0  ;;  %8617 = vmatprep.mubr.msk.bf16.mxu1 %vm126_vm0, %v8616_v35 }
 0x8e5   :  { %2980 = vmatprep.subr.bf16.mxu1 %v10554_v0 }
 0x8e8   :  { %2981 = vmatpush1.bf16.msra.mxu1 %v11462_v38  ;;  %v2698_v38 = vpop.f32.mrb[81].mxu0 }
 0x8e9   :  { %2982 = vmatprep.subr.bf16.mxu1 %v10554_v0  ;;  %v10222_v38 = vld [vmem:[%s14520_s6 + $0x248] sm:$0xff]  }
 0x8ec   :  { %2983 = vmatpush1.bf16.msra.mxu1 %v11469_v39  ;;  %v2699_v39 = vpop.f32.mrb[82].mxu0 }
 0x8ed   :  { %2984 = vmatprep.subr.bf16.mxu1 %v10554_v0  ;;  %v10223_v39 = vld [vmem:[%s14520_s6 + $0x250] sm:$0xff]  }
 0x8f0   :  { %2985 = vmatpush1.bf16.msra.mxu1 %v11476_v40  ;;  %v2700_v40 = vpop.f32.mrb[83].mxu0 }
 0x8f1   :  { %2986 = vmatprep.subr.bf16.mxu1 %v10554_v0  ;;  %v10224_v40 = vld [vmem:[%s14520_s6 + $0x258] sm:$0xff]  }
 0x8f4   :  { %2987 = vmatpush1.bf16.msra.mxu1 %v11483_v41  ;;  %v10205_v41 = vld [vmem:[%s14520_s6 + $0x200] sm:$0xff]  }
 0x8f5   :  { %2988 = vmatprep.subr.bf16.mxu1 %v10554_v0  ;;  %9677 = vmatpush3.bf16.msra.mxu0 %v10205_v41  ;;  %v10225_v41 = vld [vmem:[%s14520_s6 + $0x260] sm:$0xff]  }
 0x8f6   :  { %9678 = vmatprep.subr.bf16.mxu0 %v10555_v37 }
 0x8f8   :  { %2989 = vmatpush1.bf16.msra.mxu1 %v11490_v42  ;;  %v10206_v42 = vld [vmem:[%s14520_s6 + $0x208] sm:$0xff]  }
 0x8f9   :  { %2990 = vmatprep.subr.bf16.mxu1 %v10554_v0  ;;  %9679 = vmatpush3.bf16.msra.mxu0 %v10206_v42  ;;  %v10226_v42 = vld [vmem:[%s14520_s6 + $0x268] sm:$0xff]  }
 0x8fa   :  { %9680 = vmatprep.subr.bf16.mxu0 %v10555_v37 }
 0x8fc   :  { %2991 = vmatpush1.bf16.msra.mxu1 %v11497_v43  ;;  %v10207_v43 = vld [vmem:[%s14520_s6 + $0x210] sm:$0xff]  }
 0x8fd   :  { %2992 = vmatprep.subr.bf16.mxu1 %v10554_v0  ;;  %9681 = vmatpush3.bf16.msra.mxu0 %v10207_v43 }
 0x8fe   :  { %9682 = vmatprep.subr.bf16.mxu0 %v10555_v37 }
 0x900   :  { %2993 = vmatpush1.bf16.msra.mxu1 %v11504_v44  ;;  %v10208_v44 = vld [vmem:[%s14520_s6 + $0x218] sm:$0xff]  }
 0x901   :  { %2994 = vmatprep.subr.bf16.mxu1 %v10554_v0  ;;  %9683 = vmatpush3.bf16.msra.mxu0 %v10208_v44 }
 0x902   :  { %9684 = vmatprep.subr.bf16.mxu0 %v10555_v37 }
 0x904   :  { %2995 = vmatpush1.bf16.msra.mxu1 %v11511_v45  ;;  %v10209_v45 = vld [vmem:[%s14520_s6 + $0x220] sm:$0xff]  }
 0x905   :  { %2996 = vmatprep.subr.bf16.mxu1 %v10554_v0  ;;  %9685 = vmatpush3.bf16.msra.mxu0 %v10209_v45 }
 0x906   :  { %9686 = vmatprep.subr.bf16.mxu0 %v10555_v37 }
 0x908   :  { %2997 = vmatpush1.bf16.msra.mxu1 %v10716_v15 }
 0x909   :  { %3081 = vmatprep.subr.bf16.mxu1 %v10554_v0  ;;  %9687 = vmatpush3.bf16.msra.mxu0 %v10210_v24 }
 0x90a   :  { %9688 = vmatprep.subr.bf16.mxu0 %v10555_v37 }
 0x90b   :  { %3011 = vmatmul.mubr.bf16.vlgmr.msra.gmra.mrb[88].mxu1 %v8615_v46 }
 0x90c   :  { %3082 = vmatpush1.bf16.msra.mxu1 %v12018_v50 }
 0x90d   :  { %9689 = vmatpush3.bf16.msra.mxu0 %v10211_v31  ;;  %3083 = vmatprep.subr.bf16.mxu1 %v10554_v0 }
 0x90e   :  { %9690 = vmatprep.subr.bf16.mxu0 %v10555_v37 }
 0x910   :  { %v11998_v27 = vpop.f32.mrb[84].mxu0  ;;  %3084 = vmatpush1.bf16.msra.mxu1 %v12025_v52 }
 0x911   :  { %v2801_v28 = vpop.f32.mrb[85].mxu0  ;;  %9691 = vmatpush3.bf16.msra.mxu0 %v10212_v32  ;;  %3085 = vmatprep.subr.bf16.mxu1 %v10554_v0 }
 0x912   :  { %v2802_v29 = vpop.f32.mrb[86].mxu0  ;;  %3029 = vmatprep.subr.bf16.mxu0 %v10554_v0  ;;  %v10228_v28 = vld [vmem:[%s14520_s6 + $0x278] sm:$0xff]  }
 0x913   :  { %v2803_v30 = vpop.f32.mrb[87].mxu0  ;;  %v8654_v29 = vld [vmem:[%s14516_s0 + $0x50] sm:$0xff] }
 0x914   :  { %3086 = vmatpush1.bf16.msra.mxu1 %v12032_v53  ;;  %v8656_v30 = vcombine.high %v8654_v29, %v8654_v29  ;;  %v8655_v31 = vcombine.low %v8654_v29, %v8654_v29 }
 0x915   :  { %3087 = vmatprep.subr.bf16.mxu1 %v10554_v0 }
 0x918   :  { %3088 = vmatpush1.bf16.msra.mxu1 %v12039_v54 }
 0x919   :  { %3089 = vmatprep.subr.bf16.mxu1 %v10554_v0 }
 0x91c   :  { %3090 = vmatpush1.bf16.msra.mxu1 %v12046_v55 }
 0x91d   :  { %3091 = vmatprep.subr.bf16.mxu1 %v10554_v0 }
 0x920   :  { %3092 = vmatpush1.bf16.msra.mxu1 %v12053_v56 }
 0x921   :  { %3093 = vmatprep.subr.bf16.mxu1 %v10554_v0 }
 0x924   :  { %3094 = vmatpush1.bf16.msra.mxu1 %v12060_v57 }
 0x925   :  { %3095 = vmatprep.subr.bf16.mxu1 %v10554_v0 }
 0x928   :  { %3096 = vmatpush1.bf16.msra.mxu1 %v12067_v58 }
 0x929   :  { %3097 = vmatprep.subr.bf16.mxu1 %v10554_v0 }
 0x92c   :  { %3098 = vmatpush1.bf16.msra.mxu1 %v12074_v59 }
 0x92d   :  { %3099 = vmatprep.subr.bf16.mxu1 %v10554_v0 }
 0x930   :  { %3100 = vmatpush1.bf16.msra.mxu1 %v10716_v15 }
 0x931   :  { %9696 = vmatprep.subr.bf16.mxu1 %v10555_v37 }
 0x966   :  { %v2644_v47 = vpop.f32.mrb[76].mxu1 }
 0x967   :  { %v12013_v48 = vadd.f32 %v2644_v47, %v11874_v61  ;;  %v9674_v49 = vpop.f32.mrb[77].mxu1  ;;  %v8624_v61 = vcombine.high %v8622_v60, %v8622_v60 }
 0x968   :  { %v2647_v4 = vpop.f32.mrb[78].mxu1 }
 0x969   :  { %v9675_v51 = vpop.f32.mrb[79].mxu1  ;;  %8625 = vmatprep.mubr.msk.bf16.mxu1 %vm126_vm0, %v8624_v61 }
 0x96a   :  { %3114 = vmatmul.mubr.bf16.vlgmr.msra.gmra.mrb[92].mxu1 %v8623_v62 }
 0x96b   :  { %9712 = vmatprep.mubr.msk.bf16.mxu1 %vm10556_vm2, %v10555_v37 }
 0x98e   :  { %v2747_v63 = vpop.f32.mrb[80].mxu1 }
 0x98f   :  { %v2753_v1 = vmax.f32 %v11972_v36, %v2747_v63  ;;  %v2749_v2 = vpop.f32.mrb[81].mxu1  ;;  %v10221_v36 = vld [vmem:[%s14520_s6 + $0x240] sm:$0xff]  }
 0x990   :  { %v2750_v3 = vpop.f32.mrb[82].mxu1  ;;  %9697 = vmatpush3.bf16.msra.mxu1 %v10221_v36  ;;  %v10241_v36 = vld [vmem:[%s14520_s6 + $0x2a0] sm:$0xff]  }
 0x991   :  { %v2751_v5 = vpop.f32.mrb[83].mxu1  ;;  %9698 = vmatprep.subr.bf16.mxu1 %v10555_v37 }
 0x994   :  { %9699 = vmatpush3.bf16.msra.mxu1 %v10222_v38  ;;  %v10242_v38 = vld [vmem:[%s14520_s6 + $0x2a8] sm:$0xff]  }
 0x995   :  { %9700 = vmatprep.subr.bf16.mxu1 %v10555_v37 }
 0x998   :  { %9701 = vmatpush3.bf16.msra.mxu1 %v10223_v39 }
 0x999   :  { %9702 = vmatprep.subr.bf16.mxu1 %v10555_v37 }
 0x99c   :  { %9703 = vmatpush3.bf16.msra.mxu1 %v10224_v40 }
 0x99d   :  { %9704 = vmatprep.subr.bf16.mxu1 %v10555_v37 }
 0x9a0   :  { %9705 = vmatpush3.bf16.msra.mxu1 %v10225_v41 }
 0x9a1   :  { %9706 = vmatprep.subr.bf16.mxu1 %v10555_v37 }
 0x9a4   :  { %9707 = vmatpush3.bf16.msra.mxu1 %v10226_v42 }
 0x9a5   :  { %9708 = vmatprep.subr.bf16.mxu1 %v10555_v37 }
 0x9b6   :  { %v2850_v6 = vpop.f32.mrb[84].mxu1 }
 0x9b7   :  { %v2856_v7 = vmax.f32 %v11998_v27, %v2850_v6  ;;  %v2852_v8 = vpop.f32.mrb[85].mxu1  ;;  %v10227_v27 = vld [vmem:[%s14520_s6 + $0x270] sm:$0xff]  }
 0x9b8   :  { %v2853_v9 = vpop.f32.mrb[86].mxu1  ;;  %9709 = vmatpush3.bf16.msra.mxu1 %v10227_v27 }
 0x9b9   :  { %v2857_v10 = vmax.f32 %v2753_v1, %v2856_v7  ;;  %v2854_v11 = vpop.f32.mrb[87].mxu1  ;;  %9710 = vmatprep.subr.bf16.mxu1 %v10555_v37  ;;  %v8658_v9 = vld [vmem:[%s14517_s1 + $0x50] sm:$0xff] }
 0x9ba   :  { %v8660_v11 = vcombine.high %v8658_v9, %v8658_v9 }
 0x9bb   :  { %v2858_v13 = vadd.f32 %v12091_v12, %v2857_v10 }
 0x9bc   :  { %9711 = vmatpush3.bf16.msra.mxu1 %v10228_v28 }
 0x9bd   :  { %v2859_v16 = vmax.f32 %v2858_v13, 0.0  ;;  %3345 = vmatprep.subr.bf16.mxu1 %v10554_v0 }
 0x9bf   :  { %v2860_v18 = vpack.c.bf16 %v2859_v16, %v2859_v16  ;;  %v8659_v16 = vcombine.low %v8658_v9, %v8658_v9  ;;  %v8706_v9 = vld [vmem:[%s14519_s3 + $0x58] sm:$0xff] }
 0x9c1   :  { %9693 = vmatmul.mubr.bf16.vlgmr.msra.gmra.mrb[88].mxu0 %v2860_v18  ;;  %v8667_v18 = vcombine.low %v8666_v14, %v8666_v14 }
 0x9c2   :  { %3030 = vmatpush1.bf16.msra.mxu0 %v12018_v50  ;;  %8621 = vmatprep.mubr.msk.bf16.mxu0 %vm126_vm0, %v8620_v17  ;;  %v8668_v17 = vcombine.high %v8666_v14, %v8666_v14 }
 0x9c3   :  { %3031 = vmatprep.subr.bf16.mxu0 %v10554_v0 }
 0x9c6   :  { %3032 = vmatpush1.bf16.msra.mxu0 %v12025_v52 }
 0x9c7   :  { %3033 = vmatprep.subr.bf16.mxu0 %v10554_v0 }
 0x9ca   :  { %3034 = vmatpush1.bf16.msra.mxu0 %v12032_v53 }
 0x9cb   :  { %3035 = vmatprep.subr.bf16.mxu0 %v10554_v0 }
 0x9ce   :  { %3036 = vmatpush1.bf16.msra.mxu0 %v12039_v54 }
 0x9cf   :  { %3037 = vmatprep.subr.bf16.mxu0 %v10554_v0 }
 0x9d2   :  { %3038 = vmatpush1.bf16.msra.mxu0 %v12046_v55 }
 0x9d3   :  { %3039 = vmatprep.subr.bf16.mxu0 %v10554_v0 }
 0x9d6   :  { %3040 = vmatpush1.bf16.msra.mxu0 %v12053_v56 }
 0x9d7   :  { %3041 = vmatprep.subr.bf16.mxu0 %v10554_v0 }
 0x9da   :  { %3042 = vmatpush1.bf16.msra.mxu0 %v12060_v57 }
 0x9db   :  { %3043 = vmatprep.subr.bf16.mxu0 %v10554_v0 }
 0x9de   :  { %3044 = vmatpush1.bf16.msra.mxu0 %v12067_v58  ;;  %v12162_v26 = vpop.f32.mrb[88].mxu1 }
 0x9df   :  { %3045 = vmatprep.subr.bf16.mxu0 %v10554_v0  ;;  %v3014_v25 = vpop.f32.mrb[89].mxu1 }
 0x9e0   :  { %v3015_v33 = vpop.f32.mrb[90].mxu1  ;;  %v10238_v25 = vld [vmem:[%s14520_s6 + $0x288] sm:$0xff]  }
 0x9e1   :  { %v3016_v23 = vpop.f32.mrb[91].mxu1  ;;  %v10239_v33 = vld [vmem:[%s14520_s6 + $0x290] sm:$0xff]  }
 0x9e2   :  { %3046 = vmatpush1.bf16.msra.mxu0 %v12074_v59  ;;  %v10240_v23 = vld [vmem:[%s14520_s6 + $0x298] sm:$0xff]  }
 0x9e3   :  { %3047 = vmatprep.subr.bf16.mxu0 %v10554_v0 }
 0x9e6   :  { %3048 = vmatpush1.bf16.msra.mxu0 %v10716_v15 }
 0x9e7   :  { %3132 = vmatprep.subr.bf16.mxu0 %v10554_v0 }
 0x9e9   :  { %3062 = vmatmul.mubr.bf16.vlgmr.msra.gmra.mrb[92].mxu0 %v8619_v20 }
 0x9ea   :  { %3133 = vmatpush1.bf16.msra.mxu0 %v12018_v50  ;;  %8629 = vmatprep.mubr.msk.bf16.mxu0 %vm126_vm0, %v8628_v21 }
 0x9eb   :  { %3134 = vmatprep.subr.bf16.mxu0 %v10554_v0 }
 0x9ee   :  { %3135 = vmatpush1.bf16.msra.mxu0 %v12025_v52 }
 0x9ef   :  { %3136 = vmatprep.subr.bf16.mxu0 %v10554_v0 }
 0x9f2   :  { %3137 = vmatpush1.bf16.msra.mxu0 %v12032_v53 }
 0x9f3   :  { %3138 = vmatprep.subr.bf16.mxu0 %v10554_v0 }
 0x9f6   :  { %3139 = vmatpush1.bf16.msra.mxu0 %v12039_v54 }
 0x9f7   :  { %3140 = vmatprep.subr.bf16.mxu0 %v10554_v0 }
 0x9fa   :  { %3141 = vmatpush1.bf16.msra.mxu0 %v12046_v55 }
 0x9fb   :  { %3142 = vmatprep.subr.bf16.mxu0 %v10554_v0 }
 0x9fe   :  { %3143 = vmatpush1.bf16.msra.mxu0 %v12053_v56 }
 0x9ff   :  { %3144 = vmatprep.subr.bf16.mxu0 %v10554_v0 }
 0xa02   :  { %3145 = vmatpush1.bf16.msra.mxu0 %v12060_v57 }
 0xa03   :  { %3146 = vmatprep.subr.bf16.mxu0 %v10554_v0 }
 0xa06   :  { %3147 = vmatpush1.bf16.msra.mxu0 %v12067_v58 }
 0xa07   :  { %3148 = vmatprep.subr.bf16.mxu0 %v10554_v0 }
 0xa0a   :  { %3149 = vmatpush1.bf16.msra.mxu0 %v12074_v59 }
 0xa0b   :  { %3150 = vmatprep.subr.bf16.mxu0 %v10554_v0 }
 0xa0e   :  { %3151 = vmatpush1.bf16.msra.mxu0 %v10716_v15 }
 0xa0f   :  { %3294 = vmatprep.subr.bf16.mxu0 %v10554_v0 }
 0xa11   :  { %3165 = vmatmul.mubr.bf16.vlgmr.msra.gmra.mrb[96].mxu0 %v8627_v22 }
 0xa12   :  { %3295 = vmatpush1.bf16.msra.mxu0 %v12018_v50  ;;  %8657 = vmatprep.mubr.msk.bf16.mxu0 %vm126_vm0, %v8656_v30 }
 0xa13   :  { %3296 = vmatprep.subr.bf16.mxu0 %v10554_v0 }
 0xa16   :  { %3297 = vmatpush1.bf16.msra.mxu0 %v12025_v52 }
 0xa17   :  { %3298 = vmatprep.subr.bf16.mxu0 %v10554_v0 }
 0xa1a   :  { %3299 = vmatpush1.bf16.msra.mxu0 %v12032_v53 }
 0xa1b   :  { %3300 = vmatprep.subr.bf16.mxu0 %v10554_v0 }
 0xa1e   :  { %3301 = vmatpush1.bf16.msra.mxu0 %v12039_v54 }
 0xa1f   :  { %3302 = vmatprep.subr.bf16.mxu0 %v10554_v0 }
 0xa22   :  { %3303 = vmatpush1.bf16.msra.mxu0 %v12046_v55 }
 0xa23   :  { %3304 = vmatprep.subr.bf16.mxu0 %v10554_v0 }
 0xa26   :  { %3305 = vmatpush1.bf16.msra.mxu0 %v12053_v56 }
 0xa27   :  { %3306 = vmatprep.subr.bf16.mxu0 %v10554_v0 }
 0xa2a   :  { %3307 = vmatpush1.bf16.msra.mxu0 %v12060_v57 }
 0xa2b   :  { %3308 = vmatprep.subr.bf16.mxu0 %v10554_v0 }
 0xa2e   :  { %3309 = vmatpush1.bf16.msra.mxu0 %v12067_v58 }
 0xa2f   :  { %3310 = vmatprep.subr.bf16.mxu0 %v10554_v0 }
 0xa32   :  { %3311 = vmatpush1.bf16.msra.mxu0 %v12074_v59 }
 0xa33   :  { %3312 = vmatprep.subr.bf16.mxu0 %v10554_v0 }
 0xa36   :  { %3313 = vmatpush1.bf16.msra.mxu0 %v10716_v15 }
 0xa37   :  { %3397 = vmatprep.subr.bf16.mxu0 %v10554_v0 }
 0xa39   :  { %3327 = vmatmul.mubr.bf16.vlgmr.msra.gmra.mrb[100].mxu0 %v8655_v31 }
 0xa3a   :  { %3398 = vmatpush1.bf16.msra.mxu0 %v12018_v50 }
 0xa3b   :  { %3399 = vmatprep.subr.bf16.mxu0 %v10554_v0 }
 0xa3d   :  { %v3115_v43 = vpop.f32.mrb[92].mxu1 }
 0xa3e   :  { %v3117_v44 = vpop.f32.mrb[93].mxu1  ;;  %3400 = vmatpush1.bf16.msra.mxu0 %v12025_v52 }
 0xa3f   :  { %v3118_v45 = vpop.f32.mrb[94].mxu1  ;;  %3401 = vmatprep.subr.bf16.mxu0 %v10554_v0  ;;  %v10244_v44 = vld [vmem:[%s14520_s6 + $0x2b8] sm:$0xff]  }
 0xa40   :  { %v3119_v24 = vpop.f32.mrb[95].mxu1  ;;  %v8694_v45 = vld [vmem:[%s14516_s0 + $0x58] sm:$0xff] }
 0xa41   :  { %v8696_v24 = vcombine.high %v8694_v45, %v8694_v45  ;;  %v8695_v27 = vcombine.low %v8694_v45, %v8694_v45 }
 0xa42   :  { %3402 = vmatpush1.bf16.msra.mxu0 %v12032_v53 }
 0xa43   :  { %3403 = vmatprep.subr.bf16.mxu0 %v10554_v0 }
 0xa46   :  { %3404 = vmatpush1.bf16.msra.mxu0 %v12039_v54 }
 0xa47   :  { %3405 = vmatprep.subr.bf16.mxu0 %v10554_v0 }
 0xa4a   :  { %3406 = vmatpush1.bf16.msra.mxu0 %v12046_v55 }
 0xa4b   :  { %3407 = vmatprep.subr.bf16.mxu0 %v10554_v0 }
 0xa4e   :  { %3408 = vmatpush1.bf16.msra.mxu0 %v12053_v56 }
 0xa4f   :  { %3409 = vmatprep.subr.bf16.mxu0 %v10554_v0 }
 0xa52   :  { %3410 = vmatpush1.bf16.msra.mxu0 %v12060_v57 }
 0xa53   :  { %3411 = vmatprep.subr.bf16.mxu0 %v10554_v0 }
 0xa56   :  { %3412 = vmatpush1.bf16.msra.mxu0 %v12067_v58 }
 0xa57   :  { %3413 = vmatprep.subr.bf16.mxu0 %v10554_v0 }
 0xa5a   :  { %3414 = vmatpush1.bf16.msra.mxu0 %v12074_v59 }
 0xa5b   :  { %3415 = vmatprep.subr.bf16.mxu0 %v10554_v0 }
 0xa5e   :  { %3416 = vmatpush1.bf16.msra.mxu0 %v10716_v15 }
 0xa5f   :  { %9716 = vmatprep.subr.bf16.mxu0 %v10555_v37 }
 0xa94   :  { %v2960_v32 = vpop.f32.mrb[88].mxu0 }
 0xa95   :  { %v12201_v34 = vadd.f32 %v2960_v32, %v12013_v48  ;;  %v9694_v35 = vpop.f32.mrb[89].mxu0  ;;  %v8662_v48 = vld [vmem:[%s14518_s2 + $0x50] sm:$0xff] }
 0xa96   :  { %v2963_v46 = vpop.f32.mrb[90].mxu0  ;;  %v8664_v49 = vcombine.high %v8662_v48, %v8662_v48  ;;  %v8663_v4 = vcombine.low %v8662_v48, %v8662_v48 }
 0xa97   :  { %v9695_v47 = vpop.f32.mrb[91].mxu0 }
 0xa98   :  { %8665 = vmatprep.mubr.msk.bf16.mxu0 %vm126_vm0, %v8664_v49 }
 0xa99   :  { %3430 = vmatmul.mubr.bf16.vlgmr.msra.gmra.mrb[104].mxu0 %v8663_v4 }
 0xa9a   :  { %9732 = vmatprep.mubr.msk.bf16.mxu0 %vm10556_vm2, %v10555_v37 }
 0xabc   :  { %v3063_v51 = vpop.f32.mrb[92].mxu0 }
 0xabd   :  { %v3069_v60 = vmax.f32 %v12162_v26, %v3063_v51  ;;  %v3065_v61 = vpop.f32.mrb[93].mxu0  ;;  %v10237_v26 = vld [vmem:[%s14520_s6 + $0x280] sm:$0xff]  }
 0xabe   :  { %v3066_v62 = vpop.f32.mrb[94].mxu0  ;;  %9717 = vmatpush3.bf16.msra.mxu0 %v10237_v26  ;;  %v10257_v26 = vld [vmem:[%s14520_s6 + $0x2e0] sm:$0xff]  }
 0xabf   :  { %v3067_v63 = vpop.f32.mrb[95].mxu0  ;;  %9718 = vmatprep.subr.bf16.mxu0 %v10555_v37 }
 0xac2   :  { %9719 = vmatpush3.bf16.msra.mxu0 %v10238_v25  ;;  %v10258_v25 = vld [vmem:[%s14520_s6 + $0x2e8] sm:$0xff]  }
 0xac3   :  { %9720 = vmatprep.subr.bf16.mxu0 %v10555_v37 }
 0xac6   :  { %9721 = vmatpush3.bf16.msra.mxu0 %v10239_v33 }
 0xac7   :  { %9722 = vmatprep.subr.bf16.mxu0 %v10555_v37 }
 0xaca   :  { %9723 = vmatpush3.bf16.msra.mxu0 %v10240_v23 }
 0xacb   :  { %9724 = vmatprep.subr.bf16.mxu0 %v10555_v37 }
 0xace   :  { %9725 = vmatpush3.bf16.msra.mxu0 %v10241_v36 }
 0xacf   :  { %9726 = vmatprep.subr.bf16.mxu0 %v10555_v37 }
 0xad2   :  { %9727 = vmatpush3.bf16.msra.mxu0 %v10242_v38 }
 0xad3   :  { %9728 = vmatprep.subr.bf16.mxu0 %v10555_v37 }
 0xae4   :  { %v3166_v1 = vpop.f32.mrb[96].mxu0 }
 0xae5   :  { %v3172_v2 = vmax.f32 %v3115_v43, %v3166_v1  ;;  %v3168_v3 = vpop.f32.mrb[97].mxu0  ;;  %v10243_v43 = vld [vmem:[%s14520_s6 + $0x2b0] sm:$0xff]  }
 0xae6   :  { %v3169_v5 = vpop.f32.mrb[98].mxu0  ;;  %9729 = vmatpush3.bf16.msra.mxu0 %v10243_v43 }
 0xae7   :  { %v3173_v6 = vmax.f32 %v3069_v60, %v3172_v2  ;;  %v3170_v7 = vpop.f32.mrb[99].mxu0  ;;  %9730 = vmatprep.subr.bf16.mxu0 %v10555_v37  ;;  %v8698_v5 = vld [vmem:[%s14517_s1 + $0x58] sm:$0xff] }
 0xae8   :  { %v8700_v7 = vcombine.high %v8698_v5, %v8698_v5 }
 0xae9   :  { %v3174_v8 = vadd.f32 %v12091_v12, %v3173_v6 }
 0xaea   :  { %9731 = vmatpush3.bf16.msra.mxu0 %v10244_v44 }
 0xaeb   :  { %v3175_v10 = vmax.f32 %v3174_v8, 0.0  ;;  %3661 = vmatprep.subr.bf16.mxu0 %v10554_v0 }
 0xaed   :  { %v3176_v13 = vpack.c.bf16 %v3175_v10, %v3175_v10  ;;  %v8699_v10 = vcombine.low %v8698_v5, %v8698_v5  ;;  %v12585_v5 = vld [vmem:[%s14515_s4 + $0x38] sm:$0xff]  }
 0xaef   :  { %9713 = vmatmul.mubr.bf16.vlgmr.msra.gmra.mrb[96].mxu1 %v3176_v13  ;;  %v8707_v13 = vcombine.low %v8706_v9, %v8706_v9 }
 0xaf0   :  { %3346 = vmatpush1.bf16.msra.mxu1 %v12018_v50  ;;  %8661 = vmatprep.mubr.msk.bf16.mxu1 %vm126_vm0, %v8660_v11  ;;  %v8708_v11 = vcombine.high %v8706_v9, %v8706_v9 }
 0xaf1   :  { %3347 = vmatprep.subr.bf16.mxu1 %v10554_v0 }
 0xaf4   :  { %3348 = vmatpush1.bf16.msra.mxu1 %v12025_v52 }
 0xaf5   :  { %3349 = vmatprep.subr.bf16.mxu1 %v10554_v0 }
 0xaf8   :  { %3350 = vmatpush1.bf16.msra.mxu1 %v12032_v53 }
 0xaf9   :  { %3351 = vmatprep.subr.bf16.mxu1 %v10554_v0 }
 0xafc   :  { %3352 = vmatpush1.bf16.msra.mxu1 %v12039_v54 }
 0xafd   :  { %3353 = vmatprep.subr.bf16.mxu1 %v10554_v0 }
 0xb00   :  { %3354 = vmatpush1.bf16.msra.mxu1 %v12046_v55 }
 0xb01   :  { %3355 = vmatprep.subr.bf16.mxu1 %v10554_v0 }
 0xb04   :  { %3356 = vmatpush1.bf16.msra.mxu1 %v12053_v56 }
 0xb05   :  { %3357 = vmatprep.subr.bf16.mxu1 %v10554_v0 }
 0xb08   :  { %3358 = vmatpush1.bf16.msra.mxu1 %v12060_v57 }
 0xb09   :  { %3359 = vmatprep.subr.bf16.mxu1 %v10554_v0 }
 0xb0c   :  { %3360 = vmatpush1.bf16.msra.mxu1 %v12067_v58  ;;  %v12299_v19 = vpop.f32.mrb[100].mxu0 }
 0xb0d   :  { %3361 = vmatprep.subr.bf16.mxu1 %v10554_v0  ;;  %v3330_v20 = vpop.f32.mrb[101].mxu0 }
 0xb0e   :  { %v3331_v21 = vpop.f32.mrb[102].mxu0  ;;  %v10254_v20 = vld [vmem:[%s14520_s6 + $0x2c8] sm:$0xff]  }
 0xb0f   :  { %v3332_v22 = vpop.f32.mrb[103].mxu0  ;;  %v10255_v21 = vld [vmem:[%s14520_s6 + $0x2d0] sm:$0xff]  }
 0xb10   :  { %3362 = vmatpush1.bf16.msra.mxu1 %v12074_v59  ;;  %v10256_v22 = vld [vmem:[%s14520_s6 + $0x2d8] sm:$0xff]  }
 0xb11   :  { %3363 = vmatprep.subr.bf16.mxu1 %v10554_v0 }
 0xb14   :  { %3364 = vmatpush1.bf16.msra.mxu1 %v10716_v15 }
 0xb15   :  { %3448 = vmatprep.subr.bf16.mxu1 %v10554_v0 }
 0xb17   :  { %3378 = vmatmul.mubr.bf16.vlgmr.msra.gmra.mrb[100].mxu1 %v8659_v16 }
 0xb18   :  { %3449 = vmatpush1.bf16.msra.mxu1 %v12018_v50  ;;  %8669 = vmatprep.mubr.msk.bf16.mxu1 %vm126_vm0, %v8668_v17 }
 0xb19   :  { %3450 = vmatprep.subr.bf16.mxu1 %v10554_v0 }
 0xb1c   :  { %3451 = vmatpush1.bf16.msra.mxu1 %v12025_v52 }
 0xb1d   :  { %3452 = vmatprep.subr.bf16.mxu1 %v10554_v0 }
 0xb20   :  { %3453 = vmatpush1.bf16.msra.mxu1 %v12032_v53 }
 0xb21   :  { %3454 = vmatprep.subr.bf16.mxu1 %v10554_v0 }
 0xb24   :  { %3455 = vmatpush1.bf16.msra.mxu1 %v12039_v54 }
 0xb25   :  { %3456 = vmatprep.subr.bf16.mxu1 %v10554_v0 }
 0xb28   :  { %3457 = vmatpush1.bf16.msra.mxu1 %v12046_v55 }
 0xb29   :  { %3458 = vmatprep.subr.bf16.mxu1 %v10554_v0 }
 0xb2c   :  { %3459 = vmatpush1.bf16.msra.mxu1 %v12053_v56 }
 0xb2d   :  { %3460 = vmatprep.subr.bf16.mxu1 %v10554_v0 }
 0xb30   :  { %3461 = vmatpush1.bf16.msra.mxu1 %v12060_v57 }
 0xb31   :  { %3462 = vmatprep.subr.bf16.mxu1 %v10554_v0 }
 0xb34   :  { %3463 = vmatpush1.bf16.msra.mxu1 %v12067_v58 }
 0xb35   :  { %3464 = vmatprep.subr.bf16.mxu1 %v10554_v0 }
 0xb38   :  { %3465 = vmatpush1.bf16.msra.mxu1 %v12074_v59 }
 0xb39   :  { %3466 = vmatprep.subr.bf16.mxu1 %v10554_v0 }
 0xb3c   :  { %3467 = vmatpush1.bf16.msra.mxu1 %v10716_v15 }
 0xb3d   :  { %3610 = vmatprep.subr.bf16.mxu1 %v10554_v0 }
 0xb3f   :  { %3481 = vmatmul.mubr.bf16.vlgmr.msra.gmra.mrb[104].mxu1 %v8667_v18 }
 0xb40   :  { %3611 = vmatpush1.bf16.msra.mxu1 %v12018_v50  ;;  %8697 = vmatprep.mubr.msk.bf16.mxu1 %vm126_vm0, %v8696_v24 }
 0xb41   :  { %3612 = vmatprep.subr.bf16.mxu1 %v10554_v0 }
 0xb44   :  { %3613 = vmatpush1.bf16.msra.mxu1 %v12025_v52 }
 0xb45   :  { %3614 = vmatprep.subr.bf16.mxu1 %v10554_v0 }
 0xb48   :  { %3615 = vmatpush1.bf16.msra.mxu1 %v12032_v53 }
 0xb49   :  { %3616 = vmatprep.subr.bf16.mxu1 %v10554_v0 }
 0xb4c   :  { %3617 = vmatpush1.bf16.msra.mxu1 %v12039_v54 }
 0xb4d   :  { %3618 = vmatprep.subr.bf16.mxu1 %v10554_v0 }
 0xb50   :  { %3619 = vmatpush1.bf16.msra.mxu1 %v12046_v55 }
 0xb51   :  { %3620 = vmatprep.subr.bf16.mxu1 %v10554_v0 }
 0xb54   :  { %3621 = vmatpush1.bf16.msra.mxu1 %v12053_v56 }
 0xb55   :  { %3622 = vmatprep.subr.bf16.mxu1 %v10554_v0 }
 0xb58   :  { %3623 = vmatpush1.bf16.msra.mxu1 %v12060_v57 }
 0xb59   :  { %3624 = vmatprep.subr.bf16.mxu1 %v10554_v0 }
 0xb5c   :  { %3625 = vmatpush1.bf16.msra.mxu1 %v12067_v58 }
 0xb5d   :  { %3626 = vmatprep.subr.bf16.mxu1 %v10554_v0 }
 0xb60   :  { %3627 = vmatpush1.bf16.msra.mxu1 %v12074_v59 }
 0xb61   :  { %3628 = vmatprep.subr.bf16.mxu1 %v10554_v0 }
 0xb64   :  { %3629 = vmatpush1.bf16.msra.mxu1 %v10716_v15 }
 0xb65   :  { %3713 = vmatprep.subr.bf16.mxu1 %v10554_v0 }
 0xb67   :  { %3643 = vmatmul.mubr.bf16.vlgmr.msra.gmra.mrb[108].mxu1 %v8695_v27 }
 0xb68   :  { %3714 = vmatpush1.bf16.msra.mxu1 %v12018_v50 }
 0xb69   :  { %3715 = vmatprep.subr.bf16.mxu1 %v10554_v0 }
 0xb6c   :  { %v3431_v39 = vpop.f32.mrb[104].mxu0  ;;  %3716 = vmatpush1.bf16.msra.mxu1 %v12025_v52 }
 0xb6d   :  { %v3433_v40 = vpop.f32.mrb[105].mxu0  ;;  %3717 = vmatprep.subr.bf16.mxu1 %v10554_v0 }
 0xb6e   :  { %v3434_v41 = vpop.f32.mrb[106].mxu0  ;;  %v10260_v40 = vld [vmem:[%s14520_s6 + $0x2f8] sm:$0xff]  }
 0xb6f   :  { %v3435_v42 = vpop.f32.mrb[107].mxu0  ;;  %v8734_v41 = vld [vmem:[%s14516_s0 + $0x60] sm:$0xff] }
 0xb70   :  { %3718 = vmatpush1.bf16.msra.mxu1 %v12032_v53  ;;  %v8736_v42 = vcombine.high %v8734_v41, %v8734_v41  ;;  %v8735_v43 = vcombine.low %v8734_v41, %v8734_v41 }
 0xb71   :  { %3719 = vmatprep.subr.bf16.mxu1 %v10554_v0 }
 0xb74   :  { %3720 = vmatpush1.bf16.msra.mxu1 %v12039_v54 }
 0xb75   :  { %3721 = vmatprep.subr.bf16.mxu1 %v10554_v0 }
 0xb78   :  { %3722 = vmatpush1.bf16.msra.mxu1 %v12046_v55 }
 0xb79   :  { %3723 = vmatprep.subr.bf16.mxu1 %v10554_v0 }
 0xb7c   :  { %3724 = vmatpush1.bf16.msra.mxu1 %v12053_v56 }
 0xb7d   :  { %3725 = vmatprep.subr.bf16.mxu1 %v10554_v0 }
 0xb80   :  { %3726 = vmatpush1.bf16.msra.mxu1 %v12060_v57 }
 0xb81   :  { %3727 = vmatprep.subr.bf16.mxu1 %v10554_v0 }
 0xb84   :  { %3728 = vmatpush1.bf16.msra.mxu1 %v12067_v58 }
 0xb85   :  { %3729 = vmatprep.subr.bf16.mxu1 %v10554_v0 }
 0xb88   :  { %3730 = vmatpush1.bf16.msra.mxu1 %v12074_v59 }
 0xb89   :  { %3731 = vmatprep.subr.bf16.mxu1 %v10554_v0 }
 0xb8c   :  { %3732 = vmatpush1.bf16.msra.mxu1 %v10716_v15 }
 0xb8d   :  { %9736 = vmatprep.subr.bf16.mxu1 %v10555_v37 }
 0xbc2   :  { %v3276_v28 = vpop.f32.mrb[96].mxu1 }
 0xbc3   :  { %v12338_v29 = vadd.f32 %v3276_v28, %v12201_v34  ;;  %v9714_v30 = vpop.f32.mrb[97].mxu1  ;;  %v8702_v34 = vld [vmem:[%s14518_s2 + $0x58] sm:$0xff] }
 0xbc4   :  { %v3279_v31 = vpop.f32.mrb[98].mxu1  ;;  %v8704_v35 = vcombine.high %v8702_v34, %v8702_v34  ;;  %v8703_v46 = vcombine.low %v8702_v34, %v8702_v34 }
 0xbc5   :  { %v9715_v32 = vpop.f32.mrb[99].mxu1 }
 0xbc6   :  { %8705 = vmatprep.mubr.msk.bf16.mxu1 %vm126_vm0, %v8704_v35 }
 0xbc7   :  { %3746 = vmatmul.mubr.bf16.vlgmr.msra.gmra.mrb[112].mxu1 %v8703_v46 }
 0xbc8   :  { %9752 = vmatprep.mubr.msk.bf16.mxu1 %vm10556_vm2, %v10555_v37 }
 0xbea   :  { %v3379_v47 = vpop.f32.mrb[100].mxu1 }
 0xbeb   :  { %v3385_v48 = vmax.f32 %v12299_v19, %v3379_v47  ;;  %v3381_v49 = vpop.f32.mrb[101].mxu1  ;;  %v10253_v19 = vld [vmem:[%s14520_s6 + $0x2c0] sm:$0xff]  }
 0xbec   :  { %v3382_v4 = vpop.f32.mrb[102].mxu1  ;;  %9737 = vmatpush3.bf16.msra.mxu1 %v10253_v19  ;;  %v10274_v19 = vld [vmem:[%s14520_s6 + $0x328] sm:$0xff]  }
 0xbed   :  { %v3383_v51 = vpop.f32.mrb[103].mxu1  ;;  %9738 = vmatprep.subr.bf16.mxu1 %v10555_v37 }
 0xbf0   :  { %9739 = vmatpush3.bf16.msra.mxu1 %v10254_v20 }
 0xbf1   :  { %9740 = vmatprep.subr.bf16.mxu1 %v10555_v37 }
 0xbf4   :  { %9741 = vmatpush3.bf16.msra.mxu1 %v10255_v21 }
 0xbf5   :  { %9742 = vmatprep.subr.bf16.mxu1 %v10555_v37 }
 0xbf8   :  { %9743 = vmatpush3.bf16.msra.mxu1 %v10256_v22 }
 0xbf9   :  { %9744 = vmatprep.subr.bf16.mxu1 %v10555_v37 }
 0xbfc   :  { %9745 = vmatpush3.bf16.msra.mxu1 %v10257_v26 }
 0xbfd   :  { %9746 = vmatprep.subr.bf16.mxu1 %v10555_v37 }
 0xc00   :  { %9747 = vmatpush3.bf16.msra.mxu1 %v10258_v25  ;;  %v10275_v25 = vld [vmem:[%s14520_s6 + $0x330] sm:$0xff]  }
 0xc01   :  { %9748 = vmatprep.subr.bf16.mxu1 %v10555_v37 }
 0xc12   :  { %v3482_v60 = vpop.f32.mrb[104].mxu1 }
 0xc13   :  { %v3488_v61 = vmax.f32 %v3431_v39, %v3482_v60  ;;  %v3484_v62 = vpop.f32.mrb[105].mxu1  ;;  %v10259_v39 = vld [vmem:[%s14520_s6 + $0x2f0] sm:$0xff]  }
 0xc14   :  { %v3485_v63 = vpop.f32.mrb[106].mxu1  ;;  %9749 = vmatpush3.bf16.msra.mxu1 %v10259_v39 }
 0xc15   :  { %v3489_v1 = vmax.f32 %v3385_v48, %v3488_v61  ;;  %v3486_v2 = vpop.f32.mrb[107].mxu1  ;;  %9750 = vmatprep.subr.bf16.mxu1 %v10555_v37  ;;  %v8738_v63 = vld [vmem:[%s14517_s1 + $0x60] sm:$0xff] }
 0xc16   :  { %v8740_v2 = vcombine.high %v8738_v63, %v8738_v63 }
 0xc17   :  { %v3490_v3 = vadd.f32 %v12091_v12, %v3489_v1 }
 0xc18   :  { %9751 = vmatpush3.bf16.msra.mxu1 %v10260_v40 }
 0xc19   :  { %v3491_v6 = vmax.f32 %v3490_v3, 0.0  ;;  %3977 = vmatprep.subr.bf16.mxu1 %v10554_v0 }
 0xc1b   :  { %v3492_v8 = vpack.c.bf16 %v3491_v6, %v3491_v6  ;;  %v12592_v6 = vld [vmem:[%s14515_s4 + $0x40] sm:$0xff]  }
 0xc1d   :  { %9733 = vmatmul.mubr.bf16.vlgmr.msra.gmra.mrb[108].mxu0 %v3492_v8 }
 0xc1e   :  { %3662 = vmatpush1.bf16.msra.mxu0 %v12018_v50  ;;  %8701 = vmatprep.mubr.msk.bf16.mxu0 %vm126_vm0, %v8700_v7 }
 0xc1f   :  { %3663 = vmatprep.subr.bf16.mxu0 %v10554_v0 }
 0xc22   :  { %3664 = vmatpush1.bf16.msra.mxu0 %v12025_v52 }
 0xc23   :  { %3665 = vmatprep.subr.bf16.mxu0 %v10554_v0 }
 0xc26   :  { %3666 = vmatpush1.bf16.msra.mxu0 %v12032_v53 }
 0xc27   :  { %3667 = vmatprep.subr.bf16.mxu0 %v10554_v0 }
 0xc2a   :  { %3668 = vmatpush1.bf16.msra.mxu0 %v12039_v54 }
 0xc2b   :  { %3669 = vmatprep.subr.bf16.mxu0 %v10554_v0 }
 0xc2e   :  { %3670 = vmatpush1.bf16.msra.mxu0 %v12046_v55 }
 0xc2f   :  { %3671 = vmatprep.subr.bf16.mxu0 %v10554_v0 }
 0xc32   :  { %3672 = vmatpush1.bf16.msra.mxu0 %v12053_v56 }
 0xc33   :  { %3673 = vmatprep.subr.bf16.mxu0 %v10554_v0 }
 0xc36   :  { %3674 = vmatpush1.bf16.msra.mxu0 %v12060_v57 }
 0xc37   :  { %3675 = vmatprep.subr.bf16.mxu0 %v10554_v0 }
 0xc3a   :  { %3676 = vmatpush1.bf16.msra.mxu0 %v12067_v58  ;;  %v12436_v14 = vpop.f32.mrb[108].mxu1 }
 0xc3b   :  { %3677 = vmatprep.subr.bf16.mxu0 %v10554_v0  ;;  %v3646_v16 = vpop.f32.mrb[109].mxu1 }
 0xc3c   :  { %v3647_v17 = vpop.f32.mrb[110].mxu1  ;;  %v10271_v16 = vld [vmem:[%s14520_s6 + $0x310] sm:$0xff]  }
 0xc3d   :  { %v3648_v18 = vpop.f32.mrb[111].mxu1  ;;  %v10272_v17 = vld [vmem:[%s14520_s6 + $0x318] sm:$0xff]  }
 0xc3e   :  { %3678 = vmatpush1.bf16.msra.mxu0 %v12074_v59  ;;  %v10273_v18 = vld [vmem:[%s14520_s6 + $0x320] sm:$0xff]  }
 0xc3f   :  { %3679 = vmatprep.subr.bf16.mxu0 %v10554_v0 }
 0xc42   :  { %3680 = vmatpush1.bf16.msra.mxu0 %v10716_v15 }
 0xc43   :  { %3764 = vmatprep.subr.bf16.mxu0 %v10554_v0 }
 0xc45   :  { %3694 = vmatmul.mubr.bf16.vlgmr.msra.gmra.mrb[112].mxu0 %v8699_v10 }
 0xc46   :  { %3765 = vmatpush1.bf16.msra.mxu0 %v12018_v50  ;;  %8709 = vmatprep.mubr.msk.bf16.mxu0 %vm126_vm0, %v8708_v11 }
 0xc47   :  { %3766 = vmatprep.subr.bf16.mxu0 %v10554_v0 }
 0xc4a   :  { %3767 = vmatpush1.bf16.msra.mxu0 %v12025_v52 }
 0xc4b   :  { %3768 = vmatprep.subr.bf16.mxu0 %v10554_v0 }
 0xc4e   :  { %3769 = vmatpush1.bf16.msra.mxu0 %v12032_v53 }
 0xc4f   :  { %3770 = vmatprep.subr.bf16.mxu0 %v10554_v0 }
 0xc52   :  { %3771 = vmatpush1.bf16.msra.mxu0 %v12039_v54 }
 0xc53   :  { %3772 = vmatprep.subr.bf16.mxu0 %v10554_v0 }
 0xc56   :  { %3773 = vmatpush1.bf16.msra.mxu0 %v12046_v55 }
 0xc57   :  { %3774 = vmatprep.subr.bf16.mxu0 %v10554_v0 }
 0xc5a   :  { %3775 = vmatpush1.bf16.msra.mxu0 %v12053_v56 }
 0xc5b   :  { %3776 = vmatprep.subr.bf16.mxu0 %v10554_v0 }
 0xc5e   :  { %3777 = vmatpush1.bf16.msra.mxu0 %v12060_v57 }
 0xc5f   :  { %3778 = vmatprep.subr.bf16.mxu0 %v10554_v0 }
 0xc62   :  { %3779 = vmatpush1.bf16.msra.mxu0 %v12067_v58 }
 0xc63   :  { %3780 = vmatprep.subr.bf16.mxu0 %v10554_v0 }
 0xc66   :  { %3781 = vmatpush1.bf16.msra.mxu0 %v12074_v59 }
 0xc67   :  { %3782 = vmatprep.subr.bf16.mxu0 %v10554_v0 }
 0xc6a   :  { %3783 = vmatpush1.bf16.msra.mxu0 %v10716_v15 }
 0xc6b   :  { %3926 = vmatprep.subr.bf16.mxu0 %v10554_v0 }
 0xc6d   :  { %3797 = vmatmul.mubr.bf16.vlgmr.msra.gmra.mrb[116].mxu0 %v8707_v13  ;;  %v10269_v13 = vld [vmem:[%s14520_s6 + $0x300] sm:$0xff]  }
 0xc6e   :  { %3927 = vmatpush1.bf16.msra.mxu0 %v12018_v50  ;;  %8737 = vmatprep.mubr.msk.bf16.mxu0 %vm126_vm0, %v8736_v42 }
 0xc6f   :  { %3928 = vmatprep.subr.bf16.mxu0 %v10554_v0 }
 0xc72   :  { %3929 = vmatpush1.bf16.msra.mxu0 %v12025_v52 }
 0xc73   :  { %3930 = vmatprep.subr.bf16.mxu0 %v10554_v0 }
 0xc76   :  { %3931 = vmatpush1.bf16.msra.mxu0 %v12032_v53 }
 0xc77   :  { %3932 = vmatprep.subr.bf16.mxu0 %v10554_v0 }
 0xc7a   :  { %3933 = vmatpush1.bf16.msra.mxu0 %v12039_v54 }
 0xc7b   :  { %3934 = vmatprep.subr.bf16.mxu0 %v10554_v0 }
 0xc7e   :  { %3935 = vmatpush1.bf16.msra.mxu0 %v12046_v55 }
 0xc7f   :  { %3936 = vmatprep.subr.bf16.mxu0 %v10554_v0 }
 0xc82   :  { %3937 = vmatpush1.bf16.msra.mxu0 %v12053_v56 }
 0xc83   :  { %3938 = vmatprep.subr.bf16.mxu0 %v10554_v0 }
 0xc86   :  { %3939 = vmatpush1.bf16.msra.mxu0 %v12060_v57 }
 0xc87   :  { %3940 = vmatprep.subr.bf16.mxu0 %v10554_v0 }
 0xc8a   :  { %3941 = vmatpush1.bf16.msra.mxu0 %v12067_v58 }
 0xc8b   :  { %3942 = vmatprep.subr.bf16.mxu0 %v10554_v0 }
 0xc8e   :  { %3943 = vmatpush1.bf16.msra.mxu0 %v12074_v59 }
 0xc8f   :  { %3944 = vmatprep.subr.bf16.mxu0 %v10554_v0 }
 0xc92   :  { %3945 = vmatpush1.bf16.msra.mxu0 %v10716_v15 }
 0xc93   :  { %4029 = vmatprep.subr.bf16.mxu0 %v10554_v0 }
 0xc95   :  { %3959 = vmatmul.mubr.bf16.vlgmr.msra.gmra.mrb[120].mxu0 %v8735_v43 }
 0xc96   :  { %4030 = vmatpush1.bf16.msra.mxu0 %v12018_v50 }
 0xc97   :  { %4031 = vmatprep.subr.bf16.mxu0 %v10554_v0 }
 0xc9a   :  { %v3747_v33 = vpop.f32.mrb[112].mxu1  ;;  %4032 = vmatpush1.bf16.msra.mxu0 %v12025_v52 }
 0xc9b   :  { %v3749_v23 = vpop.f32.mrb[113].mxu1  ;;  %4033 = vmatprep.subr.bf16.mxu0 %v10554_v0 }
 0xc9c   :  { %v3750_v36 = vpop.f32.mrb[114].mxu1  ;;  %v8774_v23 = vld [vmem:[%s14516_s0 + $0x68] sm:$0xff] }
 0xc9d   :  { %v3751_v38 = vpop.f32.mrb[115].mxu1  ;;  %v8776_v36 = vcombine.high %v8774_v23, %v8774_v23 }
 0xc9e   :  { %4034 = vmatpush1.bf16.msra.mxu0 %v12032_v53  ;;  %v8775_v38 = vcombine.low %v8774_v23, %v8774_v23 }
 0xc9f   :  { %4035 = vmatprep.subr.bf16.mxu0 %v10554_v0 }
 0xca2   :  { %4036 = vmatpush1.bf16.msra.mxu0 %v12039_v54 }
 0xca3   :  { %4037 = vmatprep.subr.bf16.mxu0 %v10554_v0 }
 0xca6   :  { %4038 = vmatpush1.bf16.msra.mxu0 %v12046_v55 }
 0xca7   :  { %4039 = vmatprep.subr.bf16.mxu0 %v10554_v0 }
 0xcaa   :  { %4040 = vmatpush1.bf16.msra.mxu0 %v12053_v56 }
 0xcab   :  { %4041 = vmatprep.subr.bf16.mxu0 %v10554_v0 }
 0xcae   :  { %4042 = vmatpush1.bf16.msra.mxu0 %v12060_v57 }
 0xcaf   :  { %4043 = vmatprep.subr.bf16.mxu0 %v10554_v0 }
 0xcb2   :  { %4044 = vmatpush1.bf16.msra.mxu0 %v12067_v58 }
 0xcb3   :  { %4045 = vmatprep.subr.bf16.mxu0 %v10554_v0 }
 0xcb6   :  { %4046 = vmatpush1.bf16.msra.mxu0 %v12074_v59 }
 0xcb7   :  { %4047 = vmatprep.subr.bf16.mxu0 %v10554_v0 }
 0xcba   :  { %4048 = vmatpush1.bf16.msra.mxu0 %v10716_v15 }
 0xcbb   :  { %9756 = vmatprep.subr.bf16.mxu0 %v10555_v37 }
 0xcf0   :  { %v3592_v44 = vpop.f32.mrb[108].mxu0 }
 0xcf1   :  { %v12475_v45 = vadd.f32 %v3592_v44, %v12338_v29  ;;  %v9734_v24 = vpop.f32.mrb[109].mxu0  ;;  %v8742_v29 = vld [vmem:[%s14518_s2 + $0x60] sm:$0xff]  ;;  %v8782_v44 = vld [vmem:[%s14518_s2 + $0x68] sm:$0xff] }
 0xcf2   :  { %v3595_v27 = vpop.f32.mrb[110].mxu0  ;;  %v8744_v30 = vcombine.high %v8742_v29, %v8742_v29  ;;  %v8743_v31 = vcombine.low %v8742_v29, %v8742_v29  ;;  %v8783_v24 = vcombine.low %v8782_v44, %v8782_v44 }
 0xcf3   :  { %v9735_v28 = vpop.f32.mrb[111].mxu0 }
 0xcf4   :  { %8745 = vmatprep.mubr.msk.bf16.mxu0 %vm126_vm0, %v8744_v30 }
 0xcf5   :  { %4062 = vmatmul.mubr.bf16.vlgmr.msra.gmra.mrb[124].mxu0 %v8743_v31 }
 0xcf6   :  { %9772 = vmatprep.mubr.msk.bf16.mxu0 %vm10556_vm2, %v10555_v37  ;;  %9757 = vmatpush3.bf16.msra.mxu0 %v10269_v13  ;;  %v10289_v13 = vld [vmem:[%s14520_s6 + $0x360] sm:$0xff]  }
 0xcf7   :  { %9758 = vmatprep.subr.bf16.mxu0 %v10555_v37 }
 0xd18   :  { %v3695_v32 = vpop.f32.mrb[112].mxu0 }
 0xd19   :  { %v3701_v34 = vmax.f32 %v12436_v14, %v3695_v32  ;;  %v3697_v35 = vpop.f32.mrb[113].mxu0  ;;  %v10270_v14 = vld [vmem:[%s14520_s6 + $0x308] sm:$0xff]  }
 0xd1a   :  { %v3698_v46 = vpop.f32.mrb[114].mxu0  ;;  %9759 = vmatpush3.bf16.msra.mxu0 %v10270_v14  ;;  %v10290_v14 = vld [vmem:[%s14520_s6 + $0x368] sm:$0xff]  }
 0xd1b   :  { %v3699_v47 = vpop.f32.mrb[115].mxu0  ;;  %9760 = vmatprep.subr.bf16.mxu0 %v10555_v37 }
 0xd1e   :  { %9761 = vmatpush3.bf16.msra.mxu0 %v10271_v16 }
 0xd1f   :  { %9762 = vmatprep.subr.bf16.mxu0 %v10555_v37 }
 0xd22   :  { %9763 = vmatpush3.bf16.msra.mxu0 %v10272_v17 }
 0xd23   :  { %9764 = vmatprep.subr.bf16.mxu0 %v10555_v37 }
 0xd26   :  { %9765 = vmatpush3.bf16.msra.mxu0 %v10273_v18 }
 0xd27   :  { %9766 = vmatprep.subr.bf16.mxu0 %v10555_v37 }
 0xd2a   :  { %9767 = vmatpush3.bf16.msra.mxu0 %v10274_v19 }
 0xd2b   :  { %9768 = vmatprep.subr.bf16.mxu0 %v10555_v37 }
 0xd2e   :  { %9769 = vmatpush3.bf16.msra.mxu0 %v10275_v25 }
 0xd2f   :  { %9770 = vmatprep.subr.bf16.mxu0 %v10555_v37 }
 0xd40   :  { %v3798_v48 = vpop.f32.mrb[116].mxu0 }
 0xd41   :  { %v3804_v49 = vmax.f32 %v3747_v33, %v3798_v48  ;;  %v3800_v4 = vpop.f32.mrb[117].mxu0  ;;  %v10276_v33 = vld [vmem:[%s14520_s6 + $0x338] sm:$0xff]  }
 0xd42   :  { %v3801_v51 = vpop.f32.mrb[118].mxu0  ;;  %9771 = vmatpush3.bf16.msra.mxu0 %v10276_v33 }
 0xd43   :  { %v3805_v60 = vmax.f32 %v3701_v34, %v3804_v49  ;;  %v3802_v61 = vpop.f32.mrb[119].mxu0  ;;  %4293 = vmatprep.subr.bf16.mxu0 %v10554_v0  ;;  %v12689_v49 = vld [vmem:[%s14521_s5] ss:$0 sm:$0xff]  ;;  %v8778_v51 = vld [vmem:[%s14517_s1 + $0x68] sm:$0xff] }
 0xd44   :  { %v8780_v61 = vcombine.high %v8778_v51, %v8778_v51 }
 0xd45   :  { %v3806_v62 = vadd.f32 %v12091_v12, %v3805_v60  ;;  %v12578_v12 = vld [vmem:[%s14515_s4 + $0x30] sm:$0xff]  }
 0xd47   :  { %v3807_v1 = vmax.f32 %v3806_v62, 0.0 }
 0xd49   :  { %v3808_v3 = vpack.c.bf16 %v3807_v1, %v3807_v1  ;;  %v8779_v1 = vcombine.low %v8778_v51, %v8778_v51  ;;  %v8826_v51 = vld [vmem:[%s14519_s3 + $0x70] sm:$0xff] }
 0xd4b   :  { %9753 = vmatmul.mubr.bf16.vlgmr.msra.gmra.mrb[116].mxu1 %v3808_v3 }
 0xd4c   :  { %3978 = vmatpush1.bf16.msra.mxu1 %v12018_v50  ;;  %8741 = vmatprep.mubr.msk.bf16.mxu1 %vm126_vm0, %v8740_v2  ;;  %v8746_v50 = vld [vmem:[%s14519_s3 + $0x60] sm:$0xff] }
 0xd4d   :  { %3979 = vmatprep.subr.bf16.mxu1 %v10554_v0  ;;  %v8747_v7 = vcombine.low %v8746_v50, %v8746_v50 }
 0xd50   :  { %3980 = vmatpush1.bf16.msra.mxu1 %v12025_v52  ;;  %v8739_v52 = vcombine.low %v8738_v63, %v8738_v63  ;;  %v8786_v63 = vld [vmem:[%s14519_s3 + $0x68] sm:$0xff] }
 0xd51   :  { %3981 = vmatprep.subr.bf16.mxu1 %v10554_v0  ;;  %v8788_v2 = vcombine.high %v8786_v63, %v8786_v63  ;;  %v8787_v3 = vcombine.low %v8786_v63, %v8786_v63 }
 0xd54   :  { %3982 = vmatpush1.bf16.msra.mxu1 %v12032_v53  ;;  %v8748_v53 = vcombine.high %v8746_v50, %v8746_v50 }
 0xd55   :  { %3983 = vmatprep.subr.bf16.mxu1 %v10554_v0 }
 0xd58   :  { %3984 = vmatpush1.bf16.msra.mxu1 %v12039_v54  ;;  %v12535_v54 = vld [vmem:[%s14515_s4] sm:$0xff]  }
 0xd59   :  { %3985 = vmatprep.subr.bf16.mxu1 %v10554_v0 }
 0xd5c   :  { %3986 = vmatpush1.bf16.msra.mxu1 %v12046_v55  ;;  %v12543_v55 = vld [vmem:[%s14515_s4 + $0x8] sm:$0xff]  }
 0xd5d   :  { %3987 = vmatprep.subr.bf16.mxu1 %v10554_v0 }
 0xd60   :  { %3988 = vmatpush1.bf16.msra.mxu1 %v12053_v56  ;;  %v12550_v56 = vld [vmem:[%s14515_s4 + $0x10] sm:$0xff]  }
 0xd61   :  { %3989 = vmatprep.subr.bf16.mxu1 %v10554_v0 }
 0xd64   :  { %3990 = vmatpush1.bf16.msra.mxu1 %v12060_v57  ;;  %v12557_v57 = vld [vmem:[%s14515_s4 + $0x18] sm:$0xff]  }
 0xd65   :  { %3991 = vmatprep.subr.bf16.mxu1 %v10554_v0 }
 0xd68   :  { %3992 = vmatpush1.bf16.msra.mxu1 %v12067_v58  ;;  %v12564_v58 = vld [vmem:[%s14515_s4 + $0x20] sm:$0xff]   ;;  %v12618_v8 = vpop.f32.mrb[120].mxu0 }
 0xd69   :  { %3993 = vmatprep.subr.bf16.mxu1 %v10554_v0  ;;  %v3962_v9 = vpop.f32.mrb[121].mxu0 }
 0xd6a   :  { %v3963_v10 = vpop.f32.mrb[122].mxu0  ;;  %v10286_v9 = vld [vmem:[%s14520_s6 + $0x348] sm:$0xff]  }
 0xd6b   :  { %v3964_v11 = vpop.f32.mrb[123].mxu0  ;;  %v10287_v10 = vld [vmem:[%s14520_s6 + $0x350] sm:$0xff]  }
 0xd6c   :  { %3994 = vmatpush1.bf16.msra.mxu1 %v12074_v59  ;;  %v12571_v59 = vld [vmem:[%s14515_s4 + $0x28] sm:$0xff]   ;;  %v10288_v11 = vld [vmem:[%s14520_s6 + $0x358] sm:$0xff]  }
 0xd6d   :  { %3995 = vmatprep.subr.bf16.mxu1 %v10554_v0 }
 0xd70   :  { %3996 = vmatpush1.bf16.msra.mxu1 %v10716_v15 }
 0xd71   :  { %4080 = vmatprep.subr.bf16.mxu1 %v10554_v0 }
 0xd73   :  { %4010 = vmatmul.mubr.bf16.vlgmr.msra.gmra.mrb[120].mxu1 %v8739_v52 }
 0xd74   :  { %4081 = vmatpush1.bf16.msra.mxu1 %v12535_v54  ;;  %8749 = vmatprep.mubr.msk.bf16.mxu1 %vm126_vm0, %v8748_v53 }
 0xd75   :  { %4082 = vmatprep.subr.bf16.mxu1 %v10554_v0 }
 0xd78   :  { %4083 = vmatpush1.bf16.msra.mxu1 %v12543_v55 }
 0xd79   :  { %4084 = vmatprep.subr.bf16.mxu1 %v10554_v0 }
 0xd7c   :  { %4085 = vmatpush1.bf16.msra.mxu1 %v12550_v56 }
 0xd7d   :  { %4086 = vmatprep.subr.bf16.mxu1 %v10554_v0 }
 0xd80   :  { %4087 = vmatpush1.bf16.msra.mxu1 %v12557_v57 }
 0xd81   :  { %4088 = vmatprep.subr.bf16.mxu1 %v10554_v0 }
 0xd84   :  { %4089 = vmatpush1.bf16.msra.mxu1 %v12564_v58 }
 0xd85   :  { %4090 = vmatprep.subr.bf16.mxu1 %v10554_v0 }
 0xd88   :  { %4091 = vmatpush1.bf16.msra.mxu1 %v12571_v59 }
 0xd89   :  { %4092 = vmatprep.subr.bf16.mxu1 %v10554_v0 }
 0xd8c   :  { %4093 = vmatpush1.bf16.msra.mxu1 %v12578_v12 }
 0xd8d   :  { %4094 = vmatprep.subr.bf16.mxu1 %v10554_v0 }
 0xd90   :  { %4095 = vmatpush1.bf16.msra.mxu1 %v12585_v5 }
 0xd91   :  { %4096 = vmatprep.subr.bf16.mxu1 %v10554_v0 }
 0xd94   :  { %4097 = vmatpush1.bf16.msra.mxu1 %v12592_v6 }
 0xd95   :  { %4098 = vmatprep.subr.bf16.mxu1 %v10554_v0 }
 0xd98   :  { %4099 = vmatpush1.bf16.msra.mxu1 %v10716_v15 }
 0xd99   :  { %4242 = vmatprep.subr.bf16.mxu1 %v10554_v0 }
 0xd9b   :  { %4113 = vmatmul.mubr.bf16.vlgmr.msra.gmra.mrb[124].mxu1 %v8747_v7 }
 0xd9c   :  { %4243 = vmatpush1.bf16.msra.mxu1 %v12535_v54  ;;  %8777 = vmatprep.mubr.msk.bf16.mxu1 %vm126_vm0, %v8776_v36 }
 0xd9d   :  { %4244 = vmatprep.subr.bf16.mxu1 %v10554_v0 }
 0xda0   :  { %4245 = vmatpush1.bf16.msra.mxu1 %v12543_v55 }
 0xda1   :  { %4246 = vmatprep.subr.bf16.mxu1 %v10554_v0 }
 0xda4   :  { %4247 = vmatpush1.bf16.msra.mxu1 %v12550_v56 }
 0xda5   :  { %4248 = vmatprep.subr.bf16.mxu1 %v10554_v0 }
 0xda8   :  { %4249 = vmatpush1.bf16.msra.mxu1 %v12557_v57 }
 0xda9   :  { %4250 = vmatprep.subr.bf16.mxu1 %v10554_v0 }
 0xdac   :  { %4251 = vmatpush1.bf16.msra.mxu1 %v12564_v58 }
 0xdad   :  { %4252 = vmatprep.subr.bf16.mxu1 %v10554_v0 }
 0xdb0   :  { %4253 = vmatpush1.bf16.msra.mxu1 %v12571_v59 }
 0xdb1   :  { %4254 = vmatprep.subr.bf16.mxu1 %v10554_v0 }
 0xdb4   :  { %4255 = vmatpush1.bf16.msra.mxu1 %v12578_v12 }
 0xdb5   :  { %4256 = vmatprep.subr.bf16.mxu1 %v10554_v0 }
 0xdb8   :  { %4257 = vmatpush1.bf16.msra.mxu1 %v12585_v5 }
 0xdb9   :  { %4258 = vmatprep.subr.bf16.mxu1 %v10554_v0 }
 0xdbc   :  { %4259 = vmatpush1.bf16.msra.mxu1 %v12592_v6 }
 0xdbd   :  { %4260 = vmatprep.subr.bf16.mxu1 %v10554_v0 }
 0xdc0   :  { %4261 = vmatpush1.bf16.msra.mxu1 %v10716_v15 }
 0xdc1   :  { %4345 = vmatprep.subr.bf16.mxu1 %v10554_v0 }
 0xdc3   :  { %4275 = vmatmul.mubr.bf16.vlgmr.msra.gmra.mrb[128].mxu1 %v8775_v38 }
 0xdc4   :  { %4346 = vmatpush1.bf16.msra.mxu1 %v12535_v54 }
 0xdc5   :  { %4347 = vmatprep.subr.bf16.mxu1 %v10554_v0 }
 0xdc8   :  { %v4063_v20 = vpop.f32.mrb[124].mxu0  ;;  %4348 = vmatpush1.bf16.msra.mxu1 %v12543_v55 }
 0xdc9   :  { %v4065_v21 = vpop.f32.mrb[125].mxu0  ;;  %4349 = vmatprep.subr.bf16.mxu1 %v10554_v0 }
 0xdca   :  { %v4066_v22 = vpop.f32.mrb[126].mxu0  ;;  %v10292_v21 = vld [vmem:[%s14520_s6 + $0x378] sm:$0xff]  }
 0xdcb   :  { %v4067_v26 = vpop.f32.mrb[127].mxu0  ;;  %v8814_v22 = vld [vmem:[%s14516_s0 + $0x70] sm:$0xff] }
 0xdcc   :  { %4350 = vmatpush1.bf16.msra.mxu1 %v12550_v56  ;;  %v8816_v26 = vcombine.high %v8814_v22, %v8814_v22  ;;  %v8815_v25 = vcombine.low %v8814_v22, %v8814_v22 }
 0xdcd   :  { %4351 = vmatprep.subr.bf16.mxu1 %v10554_v0 }
 0xdd0   :  { %4352 = vmatpush1.bf16.msra.mxu1 %v12557_v57 }
 0xdd1   :  { %4353 = vmatprep.subr.bf16.mxu1 %v10554_v0 }
 0xdd4   :  { %4354 = vmatpush1.bf16.msra.mxu1 %v12564_v58 }
 0xdd5   :  { %4355 = vmatprep.subr.bf16.mxu1 %v10554_v0 }
 0xdd8   :  { %4356 = vmatpush1.bf16.msra.mxu1 %v12571_v59 }
 0xdd9   :  { %4357 = vmatprep.subr.bf16.mxu1 %v10554_v0 }
 0xddc   :  { %4358 = vmatpush1.bf16.msra.mxu1 %v12578_v12 }
 0xddd   :  { %4359 = vmatprep.subr.bf16.mxu1 %v10554_v0 }
 0xde0   :  { %4360 = vmatpush1.bf16.msra.mxu1 %v12585_v5 }
 0xde1   :  { %4361 = vmatprep.subr.bf16.mxu1 %v10554_v0 }
 0xde4   :  { %4362 = vmatpush1.bf16.msra.mxu1 %v12592_v6 }
 0xde5   :  { %4363 = vmatprep.subr.bf16.mxu1 %v10554_v0 }
 0xde8   :  { %4364 = vmatpush1.bf16.msra.mxu1 %v10716_v15 }
 0xde9   :  { %9776 = vmatprep.subr.bf16.mxu1 %v10555_v37 }
 0xe1e   :  { %v3908_v39 = vpop.f32.mrb[116].mxu1 }
 0xe1f   :  { %v12657_v40 = vadd.f32 %v3908_v39, %v12475_v45  ;;  %v9754_v41 = vpop.f32.mrb[117].mxu1  ;;  %v8784_v45 = vcombine.high %v8782_v44, %v8782_v44 }
 0xe20   :  { %v3911_v42 = vpop.f32.mrb[118].mxu1 }
 0xe21   :  { %v9755_v43 = vpop.f32.mrb[119].mxu1  ;;  %8785 = vmatprep.mubr.msk.bf16.mxu1 %vm126_vm0, %v8784_v45 }
 0xe22   :  { %4378 = vmatmul.mubr.bf16.vlgmr.msra.gmra.mrb[132].mxu1 %v8783_v24 }
 0xe23   :  { %9792 = vmatprep.mubr.msk.bf16.mxu1 %vm10556_vm2, %v10555_v37 }
 0xe46   :  { %v4011_v27 = vpop.f32.mrb[120].mxu1 }
 0xe47   :  { %v4017_v28 = vmax.f32 %v12618_v8, %v4011_v27  ;;  %v4013_v29 = vpop.f32.mrb[121].mxu1  ;;  %v10285_v8 = vld [vmem:[%s14520_s6 + $0x340] sm:$0xff]  }
 0xe48   :  { %v4014_v30 = vpop.f32.mrb[122].mxu1  ;;  %9777 = vmatpush3.bf16.msra.mxu1 %v10285_v8  ;;  %v10305_v8 = vld [vmem:[%s14520_s6 + $0x3a0] sm:$0xff]  }
 0xe49   :  { %v4015_v31 = vpop.f32.mrb[123].mxu1  ;;  %9778 = vmatprep.subr.bf16.mxu1 %v10555_v37 }
 0xe4c   :  { %9779 = vmatpush3.bf16.msra.mxu1 %v10286_v9  ;;  %v10306_v9 = vld [vmem:[%s14520_s6 + $0x3a8] sm:$0xff]  }
 0xe4d   :  { %9780 = vmatprep.subr.bf16.mxu1 %v10555_v37 }
 0xe50   :  { %9781 = vmatpush3.bf16.msra.mxu1 %v10287_v10 }
 0xe51   :  { %9782 = vmatprep.subr.bf16.mxu1 %v10555_v37 }
 0xe54   :  { %9783 = vmatpush3.bf16.msra.mxu1 %v10288_v11 }
 0xe55   :  { %9784 = vmatprep.subr.bf16.mxu1 %v10555_v37 }
 0xe58   :  { %9785 = vmatpush3.bf16.msra.mxu1 %v10289_v13 }
 0xe59   :  { %9786 = vmatprep.subr.bf16.mxu1 %v10555_v37 }
 0xe5c   :  { %9787 = vmatpush3.bf16.msra.mxu1 %v10290_v14 }
 0xe5d   :  { %9788 = vmatprep.subr.bf16.mxu1 %v10555_v37 }
 0xe6e   :  { %v4114_v32 = vpop.f32.mrb[124].mxu1 }
 0xe6f   :  { %v4120_v34 = vmax.f32 %v4063_v20, %v4114_v32  ;;  %v4116_v35 = vpop.f32.mrb[125].mxu1  ;;  %v10291_v20 = vld [vmem:[%s14520_s6 + $0x370] sm:$0xff]  }
 0xe70   :  { %v4117_v46 = vpop.f32.mrb[126].mxu1  ;;  %9789 = vmatpush3.bf16.msra.mxu1 %v10291_v20 }
 0xe71   :  { %v4121_v47 = vmax.f32 %v4017_v28, %v4120_v34  ;;  %v4118_v48 = vpop.f32.mrb[127].mxu1  ;;  %9790 = vmatprep.subr.bf16.mxu1 %v10555_v37  ;;  %v8818_v46 = vld [vmem:[%s14517_s1 + $0x70] sm:$0xff] }
 0xe72   :  { %v8820_v48 = vcombine.high %v8818_v46, %v8818_v46 }
 0xe73   :  { %v4122_v4 = vadd.f32 %v12689_v49, %v4121_v47 }
 0xe74   :  { %9791 = vmatpush3.bf16.msra.mxu1 %v10292_v21 }
 0xe75   :  { %v4123_v60 = vmax.f32 %v4122_v4, 0.0  ;;  %4609 = vmatprep.subr.bf16.mxu1 %v10554_v0 }
 0xe77   :  { %v4124_v62 = vpack.c.bf16 %v4123_v60, %v4123_v60  ;;  %v8819_v60 = vcombine.low %v8818_v46, %v8818_v46  ;;  %v8866_v46 = vld [vmem:[%s14519_s3 + $0x78] sm:$0xff] }
 0xe79   :  { %9773 = vmatmul.mubr.bf16.vlgmr.msra.gmra.mrb[128].mxu0 %v4124_v62  ;;  %v8827_v62 = vcombine.low %v8826_v51, %v8826_v51 }
 0xe7a   :  { %4294 = vmatpush1.bf16.msra.mxu0 %v12535_v54  ;;  %8781 = vmatprep.mubr.msk.bf16.mxu0 %vm126_vm0, %v8780_v61  ;;  %v8828_v61 = vcombine.high %v8826_v51, %v8826_v51  ;;  %v10322_v51 = vld [vmem:[%s14520_s6 + $0x3e8] sm:$0xff]  }
 0xe7b   :  { %4295 = vmatprep.subr.bf16.mxu0 %v10554_v0 }
 0xe7e   :  { %4296 = vmatpush1.bf16.msra.mxu0 %v12543_v55 }
 0xe7f   :  { %4297 = vmatprep.subr.bf16.mxu0 %v10554_v0 }
 0xe82   :  { %4298 = vmatpush1.bf16.msra.mxu0 %v12550_v56 }
 0xe83   :  { %4299 = vmatprep.subr.bf16.mxu0 %v10554_v0 }
 0xe86   :  { %4300 = vmatpush1.bf16.msra.mxu0 %v12557_v57 }
 0xe87   :  { %4301 = vmatprep.subr.bf16.mxu0 %v10554_v0 }
 0xe8a   :  { %4302 = vmatpush1.bf16.msra.mxu0 %v12564_v58 }
 0xe8b   :  { %4303 = vmatprep.subr.bf16.mxu0 %v10554_v0 }
 0xe8e   :  { %4304 = vmatpush1.bf16.msra.mxu0 %v12571_v59 }
 0xe8f   :  { %4305 = vmatprep.subr.bf16.mxu0 %v10554_v0 }
 0xe92   :  { %4306 = vmatpush1.bf16.msra.mxu0 %v12578_v12 }
 0xe93   :  { %4307 = vmatprep.subr.bf16.mxu0 %v10554_v0 }
 0xe96   :  { %4308 = vmatpush1.bf16.msra.mxu0 %v12585_v5  ;;  %v12760_v50 = vpop.f32.mrb[128].mxu1 }
 0xe97   :  { %4309 = vmatprep.subr.bf16.mxu0 %v10554_v0  ;;  %v4278_v52 = vpop.f32.mrb[129].mxu1 }
 0xe98   :  { %v4279_v53 = vpop.f32.mrb[130].mxu1  ;;  %v10302_v52 = vld [vmem:[%s14520_s6 + $0x388] sm:$0xff]  }
 0xe99   :  { %v4280_v7 = vpop.f32.mrb[131].mxu1  ;;  %v10303_v53 = vld [vmem:[%s14520_s6 + $0x390] sm:$0xff]  }
 0xe9a   :  { %4310 = vmatpush1.bf16.msra.mxu0 %v12592_v6  ;;  %v10304_v7 = vld [vmem:[%s14520_s6 + $0x398] sm:$0xff]  }
 0xe9b   :  { %4311 = vmatprep.subr.bf16.mxu0 %v10554_v0 }
 0xe9e   :  { %4312 = vmatpush1.bf16.msra.mxu0 %v10716_v15 }
 0xe9f   :  { %4396 = vmatprep.subr.bf16.mxu0 %v10554_v0 }
 0xea1   :  { %4326 = vmatmul.mubr.bf16.vlgmr.msra.gmra.mrb[132].mxu0 %v8779_v1 }
 0xea2   :  { %4397 = vmatpush1.bf16.msra.mxu0 %v12535_v54  ;;  %8789 = vmatprep.mubr.msk.bf16.mxu0 %vm126_vm0, %v8788_v2 }
 0xea3   :  { %4398 = vmatprep.subr.bf16.mxu0 %v10554_v0 }
 0xea6   :  { %4399 = vmatpush1.bf16.msra.mxu0 %v12543_v55 }
 0xea7   :  { %4400 = vmatprep.subr.bf16.mxu0 %v10554_v0 }
 0xeaa   :  { %4401 = vmatpush1.bf16.msra.mxu0 %v12550_v56 }
 0xeab   :  { %4402 = vmatprep.subr.bf16.mxu0 %v10554_v0 }
 0xeae   :  { %4403 = vmatpush1.bf16.msra.mxu0 %v12557_v57 }
 0xeaf   :  { %4404 = vmatprep.subr.bf16.mxu0 %v10554_v0 }
 0xeb2   :  { %4405 = vmatpush1.bf16.msra.mxu0 %v12564_v58 }
 0xeb3   :  { %4406 = vmatprep.subr.bf16.mxu0 %v10554_v0 }
 0xeb6   :  { %4407 = vmatpush1.bf16.msra.mxu0 %v12571_v59 }
 0xeb7   :  { %4408 = vmatprep.subr.bf16.mxu0 %v10554_v0 }
 0xeba   :  { %4409 = vmatpush1.bf16.msra.mxu0 %v12578_v12 }
 0xebb   :  { %4410 = vmatprep.subr.bf16.mxu0 %v10554_v0 }
 0xebe   :  { %4411 = vmatpush1.bf16.msra.mxu0 %v12585_v5 }
 0xebf   :  { %4412 = vmatprep.subr.bf16.mxu0 %v10554_v0 }
 0xec2   :  { %4413 = vmatpush1.bf16.msra.mxu0 %v12592_v6 }
 0xec3   :  { %4414 = vmatprep.subr.bf16.mxu0 %v10554_v0 }
 0xec6   :  { %4415 = vmatpush1.bf16.msra.mxu0 %v10716_v15 }
 0xec7   :  { %4558 = vmatprep.subr.bf16.mxu0 %v10554_v0 }
 0xec9   :  { %4429 = vmatmul.mubr.bf16.vlgmr.msra.gmra.mrb[136].mxu0 %v8787_v3 }
 0xeca   :  { %4559 = vmatpush1.bf16.msra.mxu0 %v12535_v54  ;;  %8817 = vmatprep.mubr.msk.bf16.mxu0 %vm126_vm0, %v8816_v26 }
 0xecb   :  { %4560 = vmatprep.subr.bf16.mxu0 %v10554_v0 }
 0xece   :  { %4561 = vmatpush1.bf16.msra.mxu0 %v12543_v55 }
 0xecf   :  { %4562 = vmatprep.subr.bf16.mxu0 %v10554_v0 }
 0xed2   :  { %4563 = vmatpush1.bf16.msra.mxu0 %v12550_v56 }
 0xed3   :  { %4564 = vmatprep.subr.bf16.mxu0 %v10554_v0 }
 0xed6   :  { %4565 = vmatpush1.bf16.msra.mxu0 %v12557_v57 }
 0xed7   :  { %4566 = vmatprep.subr.bf16.mxu0 %v10554_v0 }
 0xeda   :  { %4567 = vmatpush1.bf16.msra.mxu0 %v12564_v58 }
 0xedb   :  { %4568 = vmatprep.subr.bf16.mxu0 %v10554_v0 }
 0xede   :  { %4569 = vmatpush1.bf16.msra.mxu0 %v12571_v59 }
 0xedf   :  { %4570 = vmatprep.subr.bf16.mxu0 %v10554_v0 }
 0xee2   :  { %4571 = vmatpush1.bf16.msra.mxu0 %v12578_v12 }
 0xee3   :  { %4572 = vmatprep.subr.bf16.mxu0 %v10554_v0 }
 0xee6   :  { %4573 = vmatpush1.bf16.msra.mxu0 %v12585_v5 }
 0xee7   :  { %4574 = vmatprep.subr.bf16.mxu0 %v10554_v0 }
 0xeea   :  { %4575 = vmatpush1.bf16.msra.mxu0 %v12592_v6 }
 0xeeb   :  { %4576 = vmatprep.subr.bf16.mxu0 %v10554_v0 }
 0xeee   :  { %4577 = vmatpush1.bf16.msra.mxu0 %v10716_v15 }
 0xeef   :  { %4661 = vmatprep.subr.bf16.mxu0 %v10554_v0 }
 0xef1   :  { %4591 = vmatmul.mubr.bf16.vlgmr.msra.gmra.mrb[140].mxu0 %v8815_v25 }
 0xef2   :  { %4662 = vmatpush1.bf16.msra.mxu0 %v12535_v54 }
 0xef3   :  { %4663 = vmatprep.subr.bf16.mxu0 %v10554_v0 }
 0xef5   :  { %v4379_v16 = vpop.f32.mrb[132].mxu1 }
 0xef6   :  { %v4381_v17 = vpop.f32.mrb[133].mxu1  ;;  %4664 = vmatpush1.bf16.msra.mxu0 %v12543_v55 }
 0xef7   :  { %v4382_v18 = vpop.f32.mrb[134].mxu1  ;;  %4665 = vmatprep.subr.bf16.mxu0 %v10554_v0  ;;  %v10308_v17 = vld [vmem:[%s14520_s6 + $0x3b8] sm:$0xff]  }
 0xef8   :  { %v4383_v19 = vpop.f32.mrb[135].mxu1  ;;  %v8854_v18 = vld [vmem:[%s14516_s0 + $0x78] sm:$0xff] }
 0xef9   :  { %v8856_v19 = vcombine.high %v8854_v18, %v8854_v18  ;;  %v8855_v20 = vcombine.low %v8854_v18, %v8854_v18  ;;  %v13115_v18 = vld [vmem:[%s14515_s4 + $0x28] sm:$0xff]  }
 0xefa   :  { %4666 = vmatpush1.bf16.msra.mxu0 %v12550_v56 }
 0xefb   :  { %4667 = vmatprep.subr.bf16.mxu0 %v10554_v0 }
 0xefe   :  { %4668 = vmatpush1.bf16.msra.mxu0 %v12557_v57 }
 0xeff   :  { %4669 = vmatprep.subr.bf16.mxu0 %v10554_v0 }
 0xf02   :  { %4670 = vmatpush1.bf16.msra.mxu0 %v12564_v58 }
 0xf03   :  { %4671 = vmatprep.subr.bf16.mxu0 %v10554_v0 }
 0xf06   :  { %4672 = vmatpush1.bf16.msra.mxu0 %v12571_v59 }
 0xf07   :  { %4673 = vmatprep.subr.bf16.mxu0 %v10554_v0 }
 0xf0a   :  { %4674 = vmatpush1.bf16.msra.mxu0 %v12578_v12 }
 0xf0b   :  { %4675 = vmatprep.subr.bf16.mxu0 %v10554_v0 }
 0xf0e   :  { %4676 = vmatpush1.bf16.msra.mxu0 %v12585_v5 }
 0xf0f   :  { %4677 = vmatprep.subr.bf16.mxu0 %v10554_v0 }
 0xf12   :  { %4678 = vmatpush1.bf16.msra.mxu0 %v12592_v6 }
 0xf13   :  { %4679 = vmatprep.subr.bf16.mxu0 %v10554_v0 }
 0xf16   :  { %4680 = vmatpush1.bf16.msra.mxu0 %v10716_v15 }
 0xf17   :  { %9796 = vmatprep.subr.bf16.mxu0 %v10555_v37 }
 0xf4c   :  { %v4224_v33 = vpop.f32.mrb[128].mxu0 }
 0xf4d   :  { %v12799_v23 = vadd.f32 %v4224_v33, %v12657_v40  ;;  %v9774_v36 = vpop.f32.mrb[129].mxu0  ;;  %v8822_v40 = vld [vmem:[%s14518_s2 + $0x70] sm:$0xff] }
 0xf4e   :  { %v4227_v38 = vpop.f32.mrb[130].mxu0  ;;  %v8824_v41 = vcombine.high %v8822_v40, %v8822_v40  ;;  %v8823_v42 = vcombine.low %v8822_v40, %v8822_v40 }
 0xf4f   :  { %v9775_v39 = vpop.f32.mrb[131].mxu0 }
 0xf50   :  { %8825 = vmatprep.mubr.msk.bf16.mxu0 %vm126_vm0, %v8824_v41 }
 0xf51   :  { %4694 = vmatmul.mubr.bf16.vlgmr.msra.gmra.mrb[144].mxu0 %v8823_v42 }
 0xf52   :  { %9812 = vmatprep.mubr.msk.bf16.mxu0 %vm10556_vm2, %v10555_v37 }
 0xf74   :  { %v4327_v43 = vpop.f32.mrb[132].mxu0 }
 0xf75   :  { %v4333_v44 = vmax.f32 %v12760_v50, %v4327_v43  ;;  %v4329_v45 = vpop.f32.mrb[133].mxu0  ;;  %v10301_v50 = vld [vmem:[%s14520_s6 + $0x380] sm:$0xff]  }
 0xf76   :  { %v4330_v24 = vpop.f32.mrb[134].mxu0  ;;  %9797 = vmatpush3.bf16.msra.mxu0 %v10301_v50 }
 0xf77   :  { %v4331_v27 = vpop.f32.mrb[135].mxu0  ;;  %9798 = vmatprep.subr.bf16.mxu0 %v10555_v37 }
 0xf7a   :  { %9799 = vmatpush3.bf16.msra.mxu0 %v10302_v52 }
 0xf7b   :  { %9800 = vmatprep.subr.bf16.mxu0 %v10555_v37 }
 0xf7e   :  { %9801 = vmatpush3.bf16.msra.mxu0 %v10303_v53 }
 0xf7f   :  { %9802 = vmatprep.subr.bf16.mxu0 %v10555_v37 }
 0xf82   :  { %9803 = vmatpush3.bf16.msra.mxu0 %v10304_v7 }
 0xf83   :  { %9804 = vmatprep.subr.bf16.mxu0 %v10555_v37 }
 0xf86   :  { %9805 = vmatpush3.bf16.msra.mxu0 %v10305_v8 }
 0xf87   :  { %9806 = vmatprep.subr.bf16.mxu0 %v10555_v37 }
 0xf8a   :  { %9807 = vmatpush3.bf16.msra.mxu0 %v10306_v9 }
 0xf8b   :  { %9808 = vmatprep.subr.bf16.mxu0 %v10555_v37 }
 0xf9c   :  { %v4430_v28 = vpop.f32.mrb[136].mxu0 }
 0xf9d   :  { %v4436_v29 = vmax.f32 %v4379_v16, %v4430_v28  ;;  %v4432_v30 = vpop.f32.mrb[137].mxu0  ;;  %v10307_v16 = vld [vmem:[%s14520_s6 + $0x3b0] sm:$0xff]  }
 0xf9e   :  { %v4433_v31 = vpop.f32.mrb[138].mxu0  ;;  %9809 = vmatpush3.bf16.msra.mxu0 %v10307_v16  ;;  %v13101_v16 = vld [vmem:[%s14515_s4 + $0x18] sm:$0xff]  }
 0xf9f   :  { %v4437_v32 = vmax.f32 %v4333_v44, %v4436_v29  ;;  %v4434_v34 = vpop.f32.mrb[139].mxu0  ;;  %9810 = vmatprep.subr.bf16.mxu0 %v10555_v37  ;;  %v8858_v31 = vld [vmem:[%s14517_s1 + $0x78] sm:$0xff] }
 0xfa0   :  { %v8860_v34 = vcombine.high %v8858_v31, %v8858_v31 }
 0xfa1   :  { %v4438_v35 = vadd.f32 %v12689_v49, %v4437_v32 }
 0xfa2   :  { %9811 = vmatpush3.bf16.msra.mxu0 %v10308_v17  ;;  %v13108_v17 = vld [vmem:[%s14515_s4 + $0x20] sm:$0xff]  }
 0xfa3   :  { %v4439_v47 = vmax.f32 %v4438_v35, 0.0  ;;  %4925 = vmatprep.subr.bf16.mxu0 %v10554_v0 }
 0xfa5   :  { %v4440_v4 = vpack.c.bf16 %v4439_v47, %v4439_v47  ;;  %v8859_v47 = vcombine.low %v8858_v31, %v8858_v31 }
 0xfa7   :  { %9793 = vmatmul.mubr.bf16.vlgmr.msra.gmra.mrb[136].mxu1 %v4440_v4  ;;  %v8867_v4 = vcombine.low %v8866_v46, %v8866_v46 }
 0xfa8   :  { %4610 = vmatpush1.bf16.msra.mxu1 %v12535_v54  ;;  %8821 = vmatprep.mubr.msk.bf16.mxu1 %vm126_vm0, %v8820_v48  ;;  %v8868_v48 = vcombine.high %v8866_v46, %v8866_v46 }
 0xfa9   :  { %4611 = vmatprep.subr.bf16.mxu1 %v10554_v0 }
 0xfac   :  { %4612 = vmatpush1.bf16.msra.mxu1 %v12543_v55 }
 0xfad   :  { %4613 = vmatprep.subr.bf16.mxu1 %v10554_v0 }
 0xfb0   :  { %4614 = vmatpush1.bf16.msra.mxu1 %v12550_v56 }
 0xfb1   :  { %4615 = vmatprep.subr.bf16.mxu1 %v10554_v0 }
 0xfb4   :  { %4616 = vmatpush1.bf16.msra.mxu1 %v12557_v57 }
 0xfb5   :  { %4617 = vmatprep.subr.bf16.mxu1 %v10554_v0 }
 0xfb8   :  { %4618 = vmatpush1.bf16.msra.mxu1 %v12564_v58 }
 0xfb9   :  { %4619 = vmatprep.subr.bf16.mxu1 %v10554_v0 }
 0xfbc   :  { %4620 = vmatpush1.bf16.msra.mxu1 %v12571_v59 }
 0xfbd   :  { %4621 = vmatprep.subr.bf16.mxu1 %v10554_v0 }
 0xfc0   :  { %4622 = vmatpush1.bf16.msra.mxu1 %v12578_v12 }
 0xfc1   :  { %4623 = vmatprep.subr.bf16.mxu1 %v10554_v0 }
 0xfc4   :  { %4624 = vmatpush1.bf16.msra.mxu1 %v12585_v5  ;;  %v12897_v63 = vpop.f32.mrb[140].mxu0 }
 0xfc5   :  { %4625 = vmatprep.subr.bf16.mxu1 %v10554_v0  ;;  %v4594_v1 = vpop.f32.mrb[141].mxu0 }
 0xfc6   :  { %v4595_v2 = vpop.f32.mrb[142].mxu0  ;;  %v10323_v1 = vld [vmem:[%s14520_s6 + $0x3f0] sm:$0xff]  }
 0xfc7   :  { %v4596_v3 = vpop.f32.mrb[143].mxu0  ;;  %v10324_v2 = vld [vmem:[%s14520_s6 + $0x3f8] sm:$0xff]  }
 0xfc8   :  { %4626 = vmatpush1.bf16.msra.mxu1 %v12592_v6  ;;  %v8894_v3 = vld [vmem:[%s14516_s0 + $0x80] sm:$0xff] }
 0xfc9   :  { %4627 = vmatprep.subr.bf16.mxu1 %v10554_v0  ;;  %v8896_v50 = vcombine.high %v8894_v3, %v8894_v3  ;;  %v8895_v52 = vcombine.low %v8894_v3, %v8894_v3 }
 0xfcc   :  { %4628 = vmatpush1.bf16.msra.mxu1 %v10716_v15 }
 0xfcd   :  { %4712 = vmatprep.subr.bf16.mxu1 %v10554_v0 }
 0xfcf   :  { %4642 = vmatmul.mubr.bf16.vlgmr.msra.gmra.mrb[140].mxu1 %v8819_v60 }
 0xfd0   :  { %4713 = vmatpush1.bf16.msra.mxu1 %v12535_v54  ;;  %8829 = vmatprep.mubr.msk.bf16.mxu1 %vm126_vm0, %v8828_v61 }
 0xfd1   :  { %4714 = vmatprep.subr.bf16.mxu1 %v10554_v0 }
 0xfd4   :  { %4715 = vmatpush1.bf16.msra.mxu1 %v12543_v55 }
 0xfd5   :  { %4716 = vmatprep.subr.bf16.mxu1 %v10554_v0 }
 0xfd8   :  { %4717 = vmatpush1.bf16.msra.mxu1 %v12550_v56 }
 0xfd9   :  { %4718 = vmatprep.subr.bf16.mxu1 %v10554_v0 }
 0xfdc   :  { %4719 = vmatpush1.bf16.msra.mxu1 %v12557_v57 }
 0xfdd   :  { %4720 = vmatprep.subr.bf16.mxu1 %v10554_v0 }
 0xfe0   :  { %4721 = vmatpush1.bf16.msra.mxu1 %v12564_v58 }
 0xfe1   :  { %4722 = vmatprep.subr.bf16.mxu1 %v10554_v0 }
 0xfe4   :  { %4723 = vmatpush1.bf16.msra.mxu1 %v12571_v59 }
 0xfe5   :  { %4724 = vmatprep.subr.bf16.mxu1 %v10554_v0 }
 0xfe8   :  { %4725 = vmatpush1.bf16.msra.mxu1 %v12578_v12 }
 0xfe9   :  { %4726 = vmatprep.subr.bf16.mxu1 %v10554_v0 }
 0xfec   :  { %4727 = vmatpush1.bf16.msra.mxu1 %v12585_v5 }
 0xfed   :  { %4728 = vmatprep.subr.bf16.mxu1 %v10554_v0 }
 0xff0   :  { %4729 = vmatpush1.bf16.msra.mxu1 %v12592_v6 }
 0xff1   :  { %4730 = vmatprep.subr.bf16.mxu1 %v10554_v0 }
 0xff4   :  { %4731 = vmatpush1.bf16.msra.mxu1 %v10716_v15 }
 0xff5   :  { %4874 = vmatprep.subr.bf16.mxu1 %v10554_v0 }
 0xff7   :  { %4745 = vmatmul.mubr.bf16.vlgmr.msra.gmra.mrb[144].mxu1 %v8827_v62 }
 0xff8   :  { %4875 = vmatpush1.bf16.msra.mxu1 %v12535_v54  ;;  %8857 = vmatprep.mubr.msk.bf16.mxu1 %vm126_vm0, %v8856_v19  ;;  %v13122_v19 = vld [vmem:[%s14515_s4 + $0x30] sm:$0xff]  }
 0xff9   :  { %4876 = vmatprep.subr.bf16.mxu1 %v10554_v0 }
 0xffc   :  { %4877 = vmatpush1.bf16.msra.mxu1 %v12543_v55 }
 0xffd   :  { %4878 = vmatprep.subr.bf16.mxu1 %v10554_v0 }
0x1000   :  { %4879 = vmatpush1.bf16.msra.mxu1 %v12550_v56 }
0x1001   :  { %4880 = vmatprep.subr.bf16.mxu1 %v10554_v0 }
0x1004   :  { %4881 = vmatpush1.bf16.msra.mxu1 %v12557_v57 }
0x1005   :  { %4882 = vmatprep.subr.bf16.mxu1 %v10554_v0 }
0x1008   :  { %4883 = vmatpush1.bf16.msra.mxu1 %v12564_v58 }
0x1009   :  { %4884 = vmatprep.subr.bf16.mxu1 %v10554_v0 }
0x100c   :  { %4885 = vmatpush1.bf16.msra.mxu1 %v12571_v59 }
0x100d   :  { %4886 = vmatprep.subr.bf16.mxu1 %v10554_v0 }
0x1010   :  { %4887 = vmatpush1.bf16.msra.mxu1 %v12578_v12 }
0x1011   :  { %4888 = vmatprep.subr.bf16.mxu1 %v10554_v0 }
0x1014   :  { %4889 = vmatpush1.bf16.msra.mxu1 %v12585_v5 }
0x1015   :  { %4890 = vmatprep.subr.bf16.mxu1 %v10554_v0 }
0x1018   :  { %4891 = vmatpush1.bf16.msra.mxu1 %v12592_v6 }
0x1019   :  { %4892 = vmatprep.subr.bf16.mxu1 %v10554_v0 }
0x101c   :  { %4893 = vmatpush1.bf16.msra.mxu1 %v10716_v15 }
0x101d   :  { %4977 = vmatprep.subr.bf16.mxu1 %v10554_v0 }
0x101f   :  { %4907 = vmatmul.mubr.bf16.vlgmr.msra.gmra.mrb[148].mxu1 %v8855_v20  ;;  %v13129_v20 = vld [vmem:[%s14515_s4 + $0x38] sm:$0xff]  }
0x1020   :  { %4978 = vmatpush1.bf16.msra.mxu1 %v12535_v54 }
0x1021   :  { %4979 = vmatprep.subr.bf16.mxu1 %v10554_v0 }
0x1024   :  { %v4695_v10 = vpop.f32.mrb[144].mxu0  ;;  %4980 = vmatpush1.bf16.msra.mxu1 %v12543_v55 }
0x1025   :  { %v4697_v11 = vpop.f32.mrb[145].mxu0  ;;  %4981 = vmatprep.subr.bf16.mxu1 %v10554_v0 }
0x1026   :  { %v4698_v13 = vpop.f32.mrb[146].mxu0 }
0x1027   :  { %v4699_v14 = vpop.f32.mrb[147].mxu0  ;;  %v13087_v13 = vld [vmem:[%s14515_s4 + $0x8] sm:$0xff]  }
0x1028   :  { %4982 = vmatpush1.bf16.msra.mxu1 %v12550_v56  ;;  %v13094_v14 = vld [vmem:[%s14515_s4 + $0x10] sm:$0xff]  }
0x1029   :  { %4983 = vmatprep.subr.bf16.mxu1 %v10554_v0 }
0x102c   :  { %4984 = vmatpush1.bf16.msra.mxu1 %v12557_v57 }
0x102d   :  { %4985 = vmatprep.subr.bf16.mxu1 %v10554_v0 }
0x1030   :  { %4986 = vmatpush1.bf16.msra.mxu1 %v12564_v58 }
0x1031   :  { %4987 = vmatprep.subr.bf16.mxu1 %v10554_v0 }
0x1034   :  { %4988 = vmatpush1.bf16.msra.mxu1 %v12571_v59 }
0x1035   :  { %4989 = vmatprep.subr.bf16.mxu1 %v10554_v0 }
0x1038   :  { %4990 = vmatpush1.bf16.msra.mxu1 %v12578_v12 }
0x1039   :  { %4991 = vmatprep.subr.bf16.mxu1 %v10554_v0 }
0x103c   :  { %4992 = vmatpush1.bf16.msra.mxu1 %v12585_v5 }
0x103d   :  { %4993 = vmatprep.subr.bf16.mxu1 %v10554_v0 }
0x1040   :  { %4994 = vmatpush1.bf16.msra.mxu1 %v12592_v6 }
0x1041   :  { %4995 = vmatprep.subr.bf16.mxu1 %v10554_v0 }
0x1044   :  { %4996 = vmatpush1.bf16.msra.mxu1 %v10716_v15 }
0x1045   :  { %9816 = vmatprep.subr.bf16.mxu1 %v10555_v37 }
0x107a   :  { %v4540_v21 = vpop.f32.mrb[136].mxu1 }
0x107b   :  { %v12936_v22 = vadd.f32 %v4540_v21, %v12799_v23  ;;  %v9794_v26 = vpop.f32.mrb[137].mxu1  ;;  %v8862_v23 = vld [vmem:[%s14518_s2 + $0x78] sm:$0xff]  ;;  %v13136_v21 = vld [vmem:[%s14515_s4 + $0x40] sm:$0xff]  }
0x107c   :  { %v4543_v25 = vpop.f32.mrb[138].mxu1  ;;  %v8864_v36 = vcombine.high %v8862_v23, %v8862_v23  ;;  %v8863_v38 = vcombine.low %v8862_v23, %v8862_v23 }
0x107d   :  { %v9795_v33 = vpop.f32.mrb[139].mxu1 }
0x107e   :  { %8865 = vmatprep.mubr.msk.bf16.mxu1 %vm126_vm0, %v8864_v36 }
0x107f   :  { %5010 = vmatmul.mubr.bf16.vlgmr.msra.gmra.mrb[152].mxu1 %v8863_v38 }
0x1080   :  { %9832 = vmatprep.mubr.msk.bf16.mxu1 %vm10556_vm2, %v10555_v37 }
0x10a2   :  { %v4643_v39 = vpop.f32.mrb[140].mxu1 }
0x10a3   :  { %v4649_v40 = vmax.f32 %v12897_v63, %v4643_v39  ;;  %v4645_v41 = vpop.f32.mrb[141].mxu1 }
0x10a4   :  { %v4646_v42 = vpop.f32.mrb[142].mxu1 }
0x10a5   :  { %v4647_v43 = vpop.f32.mrb[143].mxu1 }
0x10ca   :  { %v4746_v44 = vpop.f32.mrb[144].mxu1 }
0x10cb   :  { %v4752_v45 = vmax.f32 %v4695_v10, %v4746_v44  ;;  %v4748_v24 = vpop.f32.mrb[145].mxu1  ;;  %v13080_v10 = vld [vmem:[%s14515_s4] sm:$0xff]  }
0x10cc   :  { %v4749_v27 = vpop.f32.mrb[146].mxu1 }
0x10cd   :  { %v4753_v28 = vmax.f32 %v4649_v40, %v4752_v45  ;;  %v4750_v29 = vpop.f32.mrb[147].mxu1  ;;  %v8898_v27 = vld [vmem:[%s14517_s1 + $0x80] sm:$0xff] }
0x10ce   :  { %v8900_v29 = vcombine.high %v8898_v27, %v8898_v27  ;;  %v8899_v31 = vcombine.low %v8898_v27, %v8898_v27  ;;  %v8946_v27 = vld [vmem:[%s14519_s3 + $0x88] sm:$0xff] }
0x10cf   :  { %v4754_v30 = vadd.f32 %v12689_v49, %v4753_v28 }
0x10d1   :  { %v4755_v32 = vmax.f32 %v4754_v30, 0.0 }
0x10d3   :  { %v4756_v35 = vpack.c.bf16 %v4755_v32, %v4755_v32 }
0x10d5   :  { %9813 = vmatmul.mubr.bf16.vlgmr.msra.gmra.mrb[148].mxu0 %v4756_v35 }
0x10d6   :  { %4926 = vmatpush1.bf16.msra.mxu0 %v12535_v54  ;;  %8861 = vmatprep.mubr.msk.bf16.mxu0 %vm126_vm0, %v8860_v34 }
0x10d7   :  { %4927 = vmatprep.subr.bf16.mxu0 %v10554_v0 }
0x10da   :  { %4928 = vmatpush1.bf16.msra.mxu0 %v12543_v55 }
0x10db   :  { %4929 = vmatprep.subr.bf16.mxu0 %v10554_v0 }
0x10de   :  { %4930 = vmatpush1.bf16.msra.mxu0 %v12550_v56 }
0x10df   :  { %4931 = vmatprep.subr.bf16.mxu0 %v10554_v0 }
0x10e2   :  { %4932 = vmatpush1.bf16.msra.mxu0 %v12557_v57 }
0x10e3   :  { %4933 = vmatprep.subr.bf16.mxu0 %v10554_v0 }
0x10e6   :  { %4934 = vmatpush1.bf16.msra.mxu0 %v12564_v58 }
0x10e7   :  { %4935 = vmatprep.subr.bf16.mxu0 %v10554_v0 }
0x10ea   :  { %4936 = vmatpush1.bf16.msra.mxu0 %v12571_v59 }
0x10eb   :  { %4937 = vmatprep.subr.bf16.mxu0 %v10554_v0 }
0x10ee   :  { %4938 = vmatpush1.bf16.msra.mxu0 %v12578_v12 }
0x10ef   :  { %4939 = vmatprep.subr.bf16.mxu0 %v10554_v0 }
0x10f2   :  { %4940 = vmatpush1.bf16.msra.mxu0 %v12585_v5 }
0x10f3   :  { %4941 = vmatprep.subr.bf16.mxu0 %v10554_v0 }
0x10f6   :  { %4942 = vmatpush1.bf16.msra.mxu0 %v12592_v6 }
0x10f7   :  { %4943 = vmatprep.subr.bf16.mxu0 %v10554_v0 }
0x10fa   :  { %4944 = vmatpush1.bf16.msra.mxu0 %v10716_v15 }
0x10fb   :  { %5028 = vmatprep.subr.bf16.mxu0 %v10554_v0 }
0x10fd   :  { %4958 = vmatmul.mubr.bf16.vlgmr.msra.gmra.mrb[152].mxu0 %v8859_v47 }
0x10fe   :  { %5029 = vmatpush1.bf16.msra.mxu0 %v12535_v54  ;;  %8869 = vmatprep.mubr.msk.bf16.mxu0 %vm126_vm0, %v8868_v48 }
0x10ff   :  { %5030 = vmatprep.subr.bf16.mxu0 %v10554_v0 }
0x1102   :  { %5031 = vmatpush1.bf16.msra.mxu0 %v12543_v55 }
0x1103   :  { %5032 = vmatprep.subr.bf16.mxu0 %v10554_v0 }
0x1106   :  { %5033 = vmatpush1.bf16.msra.mxu0 %v12550_v56 }
0x1107   :  { %5034 = vmatprep.subr.bf16.mxu0 %v10554_v0 }
0x110a   :  { %5035 = vmatpush1.bf16.msra.mxu0 %v12557_v57 }
0x110b   :  { %5036 = vmatprep.subr.bf16.mxu0 %v10554_v0 }
0x110e   :  { %5037 = vmatpush1.bf16.msra.mxu0 %v12564_v58 }
0x110f   :  { %5038 = vmatprep.subr.bf16.mxu0 %v10554_v0 }
0x1112   :  { %5039 = vmatpush1.bf16.msra.mxu0 %v12571_v59 }
0x1113   :  { %5040 = vmatprep.subr.bf16.mxu0 %v10554_v0 }
0x1116   :  { %5041 = vmatpush1.bf16.msra.mxu0 %v12578_v12 }
0x1117   :  { %5042 = vmatprep.subr.bf16.mxu0 %v10554_v0 }
0x111a   :  { %5043 = vmatpush1.bf16.msra.mxu0 %v12585_v5 }
0x111b   :  { %5044 = vmatprep.subr.bf16.mxu0 %v10554_v0 }
0x111e   :  { %5045 = vmatpush1.bf16.msra.mxu0 %v12592_v6 }
0x111f   :  { %5046 = vmatprep.subr.bf16.mxu0 %v10554_v0 }
0x1122   :  { %5047 = vmatpush1.bf16.msra.mxu0 %v10716_v15 }
0x1123   :  { %5190 = vmatprep.subr.bf16.mxu0 %v10554_v0 }
0x1125   :  { %5061 = vmatmul.mubr.bf16.vlgmr.msra.gmra.mrb[156].mxu0 %v8867_v4  ;;  %v10333_v4 = vld [vmem:[%s14520_s6 + $0x400] sm:$0xff]  }
0x1126   :  { %5191 = vmatpush1.bf16.msra.mxu0 %v12535_v54  ;;  %v13034_v54 = vpop.f32.mrb[148].mxu1  ;;  %8897 = vmatprep.mubr.msk.bf16.mxu0 %vm126_vm0, %v8896_v50 }
0x1127   :  { %5192 = vmatprep.subr.bf16.mxu0 %v10554_v0 }
0x112a   :  { %5193 = vmatpush1.bf16.msra.mxu0 %v12543_v55  ;;  %v4910_v55 = vpop.f32.mrb[149].mxu1 }
0x112b   :  { %5194 = vmatprep.subr.bf16.mxu0 %v10554_v0  ;;  %v10335_v55 = vld [vmem:[%s14520_s6 + $0x410] sm:$0xff]  }
0x112e   :  { %5195 = vmatpush1.bf16.msra.mxu0 %v12550_v56  ;;  %v4911_v56 = vpop.f32.mrb[150].mxu1 }
0x112f   :  { %5196 = vmatprep.subr.bf16.mxu0 %v10554_v0  ;;  %v10336_v56 = vld [vmem:[%s14520_s6 + $0x418] sm:$0xff]  }
0x1132   :  { %5197 = vmatpush1.bf16.msra.mxu0 %v12557_v57  ;;  %v4912_v57 = vpop.f32.mrb[151].mxu1 }
0x1133   :  { %5198 = vmatprep.subr.bf16.mxu0 %v10554_v0  ;;  %v10337_v57 = vld [vmem:[%s14520_s6 + $0x420] sm:$0xff]  }
0x1136   :  { %5199 = vmatpush1.bf16.msra.mxu0 %v12564_v58  ;;  %v10317_v58 = vld [vmem:[%s14520_s6 + $0x3c0] sm:$0xff]  }
0x1137   :  { %5200 = vmatprep.subr.bf16.mxu0 %v10554_v0  ;;  %9817 = vmatpush3.bf16.msra.mxu1 %v10317_v58  ;;  %v10338_v58 = vld [vmem:[%s14520_s6 + $0x428] sm:$0xff]  }
0x1138   :  { %9818 = vmatprep.subr.bf16.mxu1 %v10555_v37 }
0x113a   :  { %5201 = vmatpush1.bf16.msra.mxu0 %v12571_v59  ;;  %v10318_v59 = vld [vmem:[%s14520_s6 + $0x3c8] sm:$0xff]  }
0x113b   :  { %5202 = vmatprep.subr.bf16.mxu0 %v10554_v0  ;;  %9819 = vmatpush3.bf16.msra.mxu1 %v10318_v59 }
0x113c   :  { %9820 = vmatprep.subr.bf16.mxu1 %v10555_v37 }
0x113e   :  { %5203 = vmatpush1.bf16.msra.mxu0 %v12578_v12  ;;  %v10319_v12 = vld [vmem:[%s14520_s6 + $0x3d0] sm:$0xff]  }
0x113f   :  { %5204 = vmatprep.subr.bf16.mxu0 %v10554_v0  ;;  %9821 = vmatpush3.bf16.msra.mxu1 %v10319_v12 }
0x1140   :  { %9822 = vmatprep.subr.bf16.mxu1 %v10555_v37 }
0x1142   :  { %5205 = vmatpush1.bf16.msra.mxu0 %v12585_v5  ;;  %v10320_v5 = vld [vmem:[%s14520_s6 + $0x3d8] sm:$0xff]  }
0x1143   :  { %5206 = vmatprep.subr.bf16.mxu0 %v10554_v0  ;;  %9823 = vmatpush3.bf16.msra.mxu1 %v10320_v5 }
0x1144   :  { %9824 = vmatprep.subr.bf16.mxu1 %v10555_v37 }
0x1146   :  { %5207 = vmatpush1.bf16.msra.mxu0 %v12592_v6  ;;  %v10321_v6 = vld [vmem:[%s14520_s6 + $0x3e0] sm:$0xff]  }
0x1147   :  { %5208 = vmatprep.subr.bf16.mxu0 %v10554_v0  ;;  %9825 = vmatpush3.bf16.msra.mxu1 %v10321_v6 }
0x1148   :  { %9826 = vmatprep.subr.bf16.mxu1 %v10555_v37 }
0x114a   :  { %5209 = vmatpush1.bf16.msra.mxu0 %v10716_v15 }
0x114b   :  { %5293 = vmatprep.subr.bf16.mxu0 %v10554_v0  ;;  %9827 = vmatpush3.bf16.msra.mxu1 %v10322_v51  ;;  %v10339_v51 = vld [vmem:[%s14520_s6 + $0x430] sm:$0xff]  }
0x114c   :  { %9828 = vmatprep.subr.bf16.mxu1 %v10555_v37 }
0x114d   :  { %5223 = vmatmul.mubr.bf16.vlgmr.msra.gmra.mrb[160].mxu0 %v8895_v52 }
0x114e   :  { %5294 = vmatpush1.bf16.msra.mxu0 %v13080_v10 }
0x114f   :  { %9829 = vmatpush3.bf16.msra.mxu1 %v10323_v1  ;;  %5295 = vmatprep.subr.bf16.mxu0 %v10554_v0 }
0x1150   :  { %9830 = vmatprep.subr.bf16.mxu1 %v10555_v37 }
0x1152   :  { %v13060_v60 = vpop.f32.mrb[152].mxu1  ;;  %5296 = vmatpush1.bf16.msra.mxu0 %v13087_v13 }
0x1153   :  { %v5013_v61 = vpop.f32.mrb[153].mxu1  ;;  %9831 = vmatpush3.bf16.msra.mxu1 %v10324_v2  ;;  %5297 = vmatprep.subr.bf16.mxu0 %v10554_v0 }
0x1154   :  { %v5014_v62 = vpop.f32.mrb[154].mxu1  ;;  %5241 = vmatprep.subr.bf16.mxu1 %v10554_v0  ;;  %v8934_v61 = vld [vmem:[%s14516_s0 + $0x88] sm:$0xff] }
0x1155   :  { %v5015_v63 = vpop.f32.mrb[155].mxu1  ;;  %v8936_v62 = vcombine.high %v8934_v61, %v8934_v61 }
0x1156   :  { %5298 = vmatpush1.bf16.msra.mxu0 %v13094_v14  ;;  %v8935_v63 = vcombine.low %v8934_v61, %v8934_v61 }
0x1157   :  { %5299 = vmatprep.subr.bf16.mxu0 %v10554_v0 }
0x115a   :  { %5300 = vmatpush1.bf16.msra.mxu0 %v13101_v16 }
0x115b   :  { %5301 = vmatprep.subr.bf16.mxu0 %v10554_v0 }
0x115e   :  { %5302 = vmatpush1.bf16.msra.mxu0 %v13108_v17 }
0x115f   :  { %5303 = vmatprep.subr.bf16.mxu0 %v10554_v0 }
0x1162   :  { %5304 = vmatpush1.bf16.msra.mxu0 %v13115_v18 }
0x1163   :  { %5305 = vmatprep.subr.bf16.mxu0 %v10554_v0 }
0x1166   :  { %5306 = vmatpush1.bf16.msra.mxu0 %v13122_v19 }
0x1167   :  { %5307 = vmatprep.subr.bf16.mxu0 %v10554_v0 }
0x116a   :  { %5308 = vmatpush1.bf16.msra.mxu0 %v13129_v20 }
0x116b   :  { %5309 = vmatprep.subr.bf16.mxu0 %v10554_v0 }
0x116e   :  { %5310 = vmatpush1.bf16.msra.mxu0 %v13136_v21 }
0x116f   :  { %5311 = vmatprep.subr.bf16.mxu0 %v10554_v0 }
0x1172   :  { %5312 = vmatpush1.bf16.msra.mxu0 %v10716_v15 }
0x1173   :  { %9836 = vmatprep.subr.bf16.mxu0 %v10555_v37 }
0x11a8   :  { %v4856_v53 = vpop.f32.mrb[148].mxu0 }
0x11a9   :  { %v13075_v7 = vadd.f32 %v4856_v53, %v12936_v22  ;;  %v9814_v8 = vpop.f32.mrb[149].mxu0  ;;  %v8902_v22 = vld [vmem:[%s14518_s2 + $0x80] sm:$0xff]  ;;  %v8942_v53 = vld [vmem:[%s14518_s2 + $0x88] sm:$0xff] }
0x11aa   :  { %v4859_v9 = vpop.f32.mrb[150].mxu0  ;;  %v8904_v26 = vcombine.high %v8902_v22, %v8902_v22  ;;  %v8903_v25 = vcombine.low %v8902_v22, %v8902_v22  ;;  %v8943_v8 = vcombine.low %v8942_v53, %v8942_v53 }
0x11ab   :  { %v9815_v11 = vpop.f32.mrb[151].mxu0 }
0x11ac   :  { %8905 = vmatprep.mubr.msk.bf16.mxu0 %vm126_vm0, %v8904_v26 }
0x11ad   :  { %5326 = vmatmul.mubr.bf16.vlgmr.msra.gmra.mrb[164].mxu0 %v8903_v25 }
0x11ae   :  { %9852 = vmatprep.mubr.msk.bf16.mxu0 %vm10556_vm2, %v10555_v37  ;;  %9837 = vmatpush3.bf16.msra.mxu0 %v10333_v4  ;;  %v10353_v4 = vld [vmem:[%s14520_s6 + $0x460] sm:$0xff]  }
0x11af   :  { %9838 = vmatprep.subr.bf16.mxu0 %v10555_v37 }
0x11d0   :  { %v4959_v33 = vpop.f32.mrb[152].mxu0 }
0x11d1   :  { %v4965_v23 = vmax.f32 %v13034_v54, %v4959_v33  ;;  %v4961_v36 = vpop.f32.mrb[153].mxu0  ;;  %v10334_v54 = vld [vmem:[%s14520_s6 + $0x408] sm:$0xff]  }
0x11d2   :  { %v4962_v38 = vpop.f32.mrb[154].mxu0  ;;  %9839 = vmatpush3.bf16.msra.mxu0 %v10334_v54  ;;  %v10354_v54 = vld [vmem:[%s14520_s6 + $0x468] sm:$0xff]  }
0x11d3   :  { %v4963_v39 = vpop.f32.mrb[155].mxu0  ;;  %9840 = vmatprep.subr.bf16.mxu0 %v10555_v37 }
0x11d6   :  { %9841 = vmatpush3.bf16.msra.mxu0 %v10335_v55 }
0x11d7   :  { %9842 = vmatprep.subr.bf16.mxu0 %v10555_v37 }
0x11da   :  { %9843 = vmatpush3.bf16.msra.mxu0 %v10336_v56 }
0x11db   :  { %9844 = vmatprep.subr.bf16.mxu0 %v10555_v37 }
0x11de   :  { %9845 = vmatpush3.bf16.msra.mxu0 %v10337_v57 }
0x11df   :  { %9846 = vmatprep.subr.bf16.mxu0 %v10555_v37 }
0x11e2   :  { %9847 = vmatpush3.bf16.msra.mxu0 %v10338_v58 }
0x11e3   :  { %9848 = vmatprep.subr.bf16.mxu0 %v10555_v37 }
0x11e6   :  { %9849 = vmatpush3.bf16.msra.mxu0 %v10339_v51 }
0x11e7   :  { %9850 = vmatprep.subr.bf16.mxu0 %v10555_v37 }
0x11f8   :  { %v5062_v40 = vpop.f32.mrb[156].mxu0 }
0x11f9   :  { %v5068_v41 = vmax.f32 %v13060_v60, %v5062_v40  ;;  %v5064_v42 = vpop.f32.mrb[157].mxu0  ;;  %v10340_v60 = vld [vmem:[%s14520_s6 + $0x438] sm:$0xff]  }
0x11fa   :  { %v5065_v43 = vpop.f32.mrb[158].mxu0  ;;  %9851 = vmatpush3.bf16.msra.mxu0 %v10340_v60 }
0x11fb   :  { %v5069_v44 = vmax.f32 %v4965_v23, %v5068_v41  ;;  %v5066_v45 = vpop.f32.mrb[159].mxu0  ;;  %5557 = vmatprep.subr.bf16.mxu0 %v10554_v0  ;;  %v13290_v41 = vld [vmem:[%s14521_s5] ss:$0 sm:$0xff]  ;;  %v8938_v43 = vld [vmem:[%s14517_s1 + $0x88] sm:$0xff] }
0x11fc   :  { %v8940_v45 = vcombine.high %v8938_v43, %v8938_v43 }
0x11fd   :  { %v5070_v24 = vadd.f32 %v12689_v49, %v5069_v44  ;;  %v8906_v49 = vld [vmem:[%s14519_s3 + $0x80] sm:$0xff] }
0x11fe   :  { %v8908_v32 = vcombine.high %v8906_v49, %v8906_v49  ;;  %v8907_v34 = vcombine.low %v8906_v49, %v8906_v49 }
0x11ff   :  { %v5071_v28 = vmax.f32 %v5070_v24, 0.0 }
0x1201   :  { %v5072_v30 = vpack.c.bf16 %v5071_v28, %v5071_v28  ;;  %v8939_v28 = vcombine.low %v8938_v43, %v8938_v43  ;;  %v8986_v43 = vld [vmem:[%s14519_s3 + $0x90] sm:$0xff] }
0x1203   :  { %9833 = vmatmul.mubr.bf16.vlgmr.msra.gmra.mrb[156].mxu1 %v5072_v30  ;;  %v8947_v30 = vcombine.low %v8946_v27, %v8946_v27 }
0x1204   :  { %5242 = vmatpush1.bf16.msra.mxu1 %v13080_v10  ;;  %8901 = vmatprep.mubr.msk.bf16.mxu1 %vm126_vm0, %v8900_v29  ;;  %v8948_v29 = vcombine.high %v8946_v27, %v8946_v27 }
0x1205   :  { %5243 = vmatprep.subr.bf16.mxu1 %v10554_v0 }
0x1208   :  { %5244 = vmatpush1.bf16.msra.mxu1 %v13087_v13 }
0x1209   :  { %5245 = vmatprep.subr.bf16.mxu1 %v10554_v0 }
0x120c   :  { %5246 = vmatpush1.bf16.msra.mxu1 %v13094_v14 }
0x120d   :  { %5247 = vmatprep.subr.bf16.mxu1 %v10554_v0 }
0x1210   :  { %5248 = vmatpush1.bf16.msra.mxu1 %v13101_v16 }
0x1211   :  { %5249 = vmatprep.subr.bf16.mxu1 %v10554_v0 }
0x1214   :  { %5250 = vmatpush1.bf16.msra.mxu1 %v13108_v17 }
0x1215   :  { %5251 = vmatprep.subr.bf16.mxu1 %v10554_v0 }
0x1218   :  { %5252 = vmatpush1.bf16.msra.mxu1 %v13115_v18 }
0x1219   :  { %5253 = vmatprep.subr.bf16.mxu1 %v10554_v0 }
0x121c   :  { %5254 = vmatpush1.bf16.msra.mxu1 %v13122_v19 }
0x121d   :  { %5255 = vmatprep.subr.bf16.mxu1 %v10554_v0 }
0x1220   :  { %5256 = vmatpush1.bf16.msra.mxu1 %v13129_v20  ;;  %v13219_v35 = vpop.f32.mrb[160].mxu0 }
0x1221   :  { %5257 = vmatprep.subr.bf16.mxu1 %v10554_v0  ;;  %v5226_v46 = vpop.f32.mrb[161].mxu0 }
0x1222   :  { %v5227_v47 = vpop.f32.mrb[162].mxu0  ;;  %v10350_v46 = vld [vmem:[%s14520_s6 + $0x448] sm:$0xff]  }
0x1223   :  { %v5228_v48 = vpop.f32.mrb[163].mxu0  ;;  %v10351_v47 = vld [vmem:[%s14520_s6 + $0x450] sm:$0xff]  }
0x1224   :  { %5258 = vmatpush1.bf16.msra.mxu1 %v13136_v21  ;;  %v10352_v48 = vld [vmem:[%s14520_s6 + $0x458] sm:$0xff]  }
0x1225   :  { %5259 = vmatprep.subr.bf16.mxu1 %v10554_v0 }
0x1228   :  { %5260 = vmatpush1.bf16.msra.mxu1 %v10716_v15 }
0x1229   :  { %5344 = vmatprep.subr.bf16.mxu1 %v10554_v0 }
0x122b   :  { %5274 = vmatmul.mubr.bf16.vlgmr.msra.gmra.mrb[160].mxu1 %v8899_v31 }
0x122c   :  { %5345 = vmatpush1.bf16.msra.mxu1 %v13080_v10  ;;  %8909 = vmatprep.mubr.msk.bf16.mxu1 %vm126_vm0, %v8908_v32 }
0x122d   :  { %5346 = vmatprep.subr.bf16.mxu1 %v10554_v0 }
0x1230   :  { %5347 = vmatpush1.bf16.msra.mxu1 %v13087_v13 }
0x1231   :  { %5348 = vmatprep.subr.bf16.mxu1 %v10554_v0 }
0x1234   :  { %5349 = vmatpush1.bf16.msra.mxu1 %v13094_v14 }
0x1235   :  { %5350 = vmatprep.subr.bf16.mxu1 %v10554_v0 }
0x1238   :  { %5351 = vmatpush1.bf16.msra.mxu1 %v13101_v16 }
0x1239   :  { %5352 = vmatprep.subr.bf16.mxu1 %v10554_v0 }
0x123c   :  { %5353 = vmatpush1.bf16.msra.mxu1 %v13108_v17 }
0x123d   :  { %5354 = vmatprep.subr.bf16.mxu1 %v10554_v0 }
0x1240   :  { %5355 = vmatpush1.bf16.msra.mxu1 %v13115_v18 }
0x1241   :  { %5356 = vmatprep.subr.bf16.mxu1 %v10554_v0 }
0x1244   :  { %5357 = vmatpush1.bf16.msra.mxu1 %v13122_v19 }
0x1245   :  { %5358 = vmatprep.subr.bf16.mxu1 %v10554_v0 }
0x1248   :  { %5359 = vmatpush1.bf16.msra.mxu1 %v13129_v20 }
0x1249   :  { %5360 = vmatprep.subr.bf16.mxu1 %v10554_v0 }
0x124c   :  { %5361 = vmatpush1.bf16.msra.mxu1 %v13136_v21 }
0x124d   :  { %5362 = vmatprep.subr.bf16.mxu1 %v10554_v0 }
0x1250   :  { %5363 = vmatpush1.bf16.msra.mxu1 %v10716_v15 }
0x1251   :  { %5506 = vmatprep.subr.bf16.mxu1 %v10554_v0 }
0x1253   :  { %5377 = vmatmul.mubr.bf16.vlgmr.msra.gmra.mrb[164].mxu1 %v8907_v34 }
0x1254   :  { %5507 = vmatpush1.bf16.msra.mxu1 %v13080_v10  ;;  %8937 = vmatprep.mubr.msk.bf16.mxu1 %vm126_vm0, %v8936_v62 }
0x1255   :  { %5508 = vmatprep.subr.bf16.mxu1 %v10554_v0 }
0x1258   :  { %5509 = vmatpush1.bf16.msra.mxu1 %v13087_v13 }
0x1259   :  { %5510 = vmatprep.subr.bf16.mxu1 %v10554_v0 }
0x125c   :  { %5511 = vmatpush1.bf16.msra.mxu1 %v13094_v14 }
0x125d   :  { %5512 = vmatprep.subr.bf16.mxu1 %v10554_v0 }
0x1260   :  { %5513 = vmatpush1.bf16.msra.mxu1 %v13101_v16 }
0x1261   :  { %5514 = vmatprep.subr.bf16.mxu1 %v10554_v0 }
0x1264   :  { %5515 = vmatpush1.bf16.msra.mxu1 %v13108_v17 }
0x1265   :  { %5516 = vmatprep.subr.bf16.mxu1 %v10554_v0 }
0x1268   :  { %5517 = vmatpush1.bf16.msra.mxu1 %v13115_v18 }
0x1269   :  { %5518 = vmatprep.subr.bf16.mxu1 %v10554_v0 }
0x126c   :  { %5519 = vmatpush1.bf16.msra.mxu1 %v13122_v19 }
0x126d   :  { %5520 = vmatprep.subr.bf16.mxu1 %v10554_v0 }
0x1270   :  { %5521 = vmatpush1.bf16.msra.mxu1 %v13129_v20 }
0x1271   :  { %5522 = vmatprep.subr.bf16.mxu1 %v10554_v0 }
0x1274   :  { %5523 = vmatpush1.bf16.msra.mxu1 %v13136_v21 }
0x1275   :  { %5524 = vmatprep.subr.bf16.mxu1 %v10554_v0 }
0x1278   :  { %5525 = vmatpush1.bf16.msra.mxu1 %v10716_v15 }
0x1279   :  { %5609 = vmatprep.subr.bf16.mxu1 %v10554_v0 }
0x127b   :  { %5539 = vmatmul.mubr.bf16.vlgmr.msra.gmra.mrb[168].mxu1 %v8935_v63 }
0x127c   :  { %5610 = vmatpush1.bf16.msra.mxu1 %v13080_v10 }
0x127d   :  { %5611 = vmatprep.subr.bf16.mxu1 %v10554_v0 }
0x1280   :  { %v5327_v59 = vpop.f32.mrb[164].mxu0  ;;  %5612 = vmatpush1.bf16.msra.mxu1 %v13087_v13 }
0x1281   :  { %v5329_v12 = vpop.f32.mrb[165].mxu0  ;;  %5613 = vmatprep.subr.bf16.mxu1 %v10554_v0 }
0x1282   :  { %v5330_v5 = vpop.f32.mrb[166].mxu0  ;;  %v10356_v12 = vld [vmem:[%s14520_s6 + $0x478] sm:$0xff]  }
0x1283   :  { %v5331_v6 = vpop.f32.mrb[167].mxu0  ;;  %v8974_v5 = vld [vmem:[%s14516_s0 + $0x90] sm:$0xff] }
0x1284   :  { %5614 = vmatpush1.bf16.msra.mxu1 %v13094_v14  ;;  %v8976_v6 = vcombine.high %v8974_v5, %v8974_v5  ;;  %v8975_v51 = vcombine.low %v8974_v5, %v8974_v5 }
0x1285   :  { %5615 = vmatprep.subr.bf16.mxu1 %v10554_v0 }
0x1288   :  { %5616 = vmatpush1.bf16.msra.mxu1 %v13101_v16 }
0x1289   :  { %5617 = vmatprep.subr.bf16.mxu1 %v10554_v0 }
0x128c   :  { %5618 = vmatpush1.bf16.msra.mxu1 %v13108_v17 }
0x128d   :  { %5619 = vmatprep.subr.bf16.mxu1 %v10554_v0 }
0x1290   :  { %5620 = vmatpush1.bf16.msra.mxu1 %v13115_v18 }
0x1291   :  { %5621 = vmatprep.subr.bf16.mxu1 %v10554_v0 }
0x1294   :  { %5622 = vmatpush1.bf16.msra.mxu1 %v13122_v19 }
0x1295   :  { %5623 = vmatprep.subr.bf16.mxu1 %v10554_v0 }
0x1298   :  { %5624 = vmatpush1.bf16.msra.mxu1 %v13129_v20 }
0x1299   :  { %5625 = vmatprep.subr.bf16.mxu1 %v10554_v0 }
0x129c   :  { %5626 = vmatpush1.bf16.msra.mxu1 %v13136_v21 }
0x129d   :  { %5627 = vmatprep.subr.bf16.mxu1 %v10554_v0 }
0x12a0   :  { %5628 = vmatpush1.bf16.msra.mxu1 %v10716_v15 }
0x12a1   :  { %9856 = vmatprep.subr.bf16.mxu1 %v10555_v37 }
0x12d6   :  { %v5172_v1 = vpop.f32.mrb[156].mxu1 }
0x12d7   :  { %v13258_v2 = vadd.f32 %v5172_v1, %v13075_v7  ;;  %v9834_v3 = vpop.f32.mrb[157].mxu1  ;;  %v8944_v7 = vcombine.high %v8942_v53, %v8942_v53 }
0x12d8   :  { %v5175_v50 = vpop.f32.mrb[158].mxu1 }
0x12d9   :  { %v9835_v52 = vpop.f32.mrb[159].mxu1  ;;  %8945 = vmatprep.mubr.msk.bf16.mxu1 %vm126_vm0, %v8944_v7 }
0x12da   :  { %5642 = vmatmul.mubr.bf16.vlgmr.msra.gmra.mrb[172].mxu1 %v8943_v8 }
0x12db   :  { %9872 = vmatprep.mubr.msk.bf16.mxu1 %vm10556_vm2, %v10555_v37 }
0x12fe   :  { %v5275_v9 = vpop.f32.mrb[160].mxu1 }
0x12ff   :  { %v5281_v11 = vmax.f32 %v13219_v35, %v5275_v9  ;;  %v5277_v22 = vpop.f32.mrb[161].mxu1  ;;  %v10349_v35 = vld [vmem:[%s14520_s6 + $0x440] sm:$0xff]  }
0x1300   :  { %v5278_v26 = vpop.f32.mrb[162].mxu1  ;;  %9857 = vmatpush3.bf16.msra.mxu1 %v10349_v35  ;;  %v10369_v35 = vld [vmem:[%s14520_s6 + $0x4a0] sm:$0xff]  }
0x1301   :  { %v5279_v25 = vpop.f32.mrb[163].mxu1  ;;  %9858 = vmatprep.subr.bf16.mxu1 %v10555_v37 }
0x1304   :  { %9859 = vmatpush3.bf16.msra.mxu1 %v10350_v46  ;;  %v10370_v46 = vld [vmem:[%s14520_s6 + $0x4a8] sm:$0xff]  }
0x1305   :  { %9860 = vmatprep.subr.bf16.mxu1 %v10555_v37 }
0x1308   :  { %9861 = vmatpush3.bf16.msra.mxu1 %v10351_v47 }
0x1309   :  { %9862 = vmatprep.subr.bf16.mxu1 %v10555_v37 }
0x130c   :  { %9863 = vmatpush3.bf16.msra.mxu1 %v10352_v48 }
0x130d   :  { %9864 = vmatprep.subr.bf16.mxu1 %v10555_v37 }
0x1310   :  { %9865 = vmatpush3.bf16.msra.mxu1 %v10353_v4 }
0x1311   :  { %9866 = vmatprep.subr.bf16.mxu1 %v10555_v37 }
0x1314   :  { %9867 = vmatpush3.bf16.msra.mxu1 %v10354_v54 }
0x1315   :  { %9868 = vmatprep.subr.bf16.mxu1 %v10555_v37 }
0x1326   :  { %v5378_v33 = vpop.f32.mrb[164].mxu1 }
0x1327   :  { %v5384_v23 = vmax.f32 %v5327_v59, %v5378_v33  ;;  %v5380_v36 = vpop.f32.mrb[165].mxu1  ;;  %v10355_v59 = vld [vmem:[%s14520_s6 + $0x470] sm:$0xff]  }
0x1328   :  { %v5381_v38 = vpop.f32.mrb[166].mxu1  ;;  %9869 = vmatpush3.bf16.msra.mxu1 %v10355_v59 }
0x1329   :  { %v5385_v39 = vmax.f32 %v5281_v11, %v5384_v23  ;;  %v5382_v40 = vpop.f32.mrb[167].mxu1  ;;  %9870 = vmatprep.subr.bf16.mxu1 %v10555_v37  ;;  %v8978_v38 = vld [vmem:[%s14517_s1 + $0x90] sm:$0xff] }
0x132a   :  { %v8980_v40 = vcombine.high %v8978_v38, %v8978_v38 }
0x132b   :  { %v5386_v42 = vadd.f32 %v13290_v41, %v5385_v39 }
0x132c   :  { %9871 = vmatpush3.bf16.msra.mxu1 %v10356_v12 }
0x132d   :  { %v5387_v44 = vmax.f32 %v5386_v42, 0.0  ;;  %5873 = vmatprep.subr.bf16.mxu1 %v10554_v0 }
0x132f   :  { %v5388_v24 = vpack.c.bf16 %v5387_v44, %v5387_v44  ;;  %v8979_v44 = vcombine.low %v8978_v38, %v8978_v38  ;;  %v13640_v38 = vld [vmem:[%s14515_s4 + $0x30] sm:$0xff]  }
0x1331   :  { %9853 = vmatmul.mubr.bf16.vlgmr.msra.gmra.mrb[168].mxu0 %v5388_v24  ;;  %v8987_v24 = vcombine.low %v8986_v43, %v8986_v43 }
0x1332   :  { %5558 = vmatpush1.bf16.msra.mxu0 %v13080_v10  ;;  %8941 = vmatprep.mubr.msk.bf16.mxu0 %vm126_vm0, %v8940_v45  ;;  %v8988_v45 = vcombine.high %v8986_v43, %v8986_v43 }
0x1333   :  { %5559 = vmatprep.subr.bf16.mxu0 %v10554_v0 }
0x1336   :  { %5560 = vmatpush1.bf16.msra.mxu0 %v13087_v13 }
0x1337   :  { %5561 = vmatprep.subr.bf16.mxu0 %v10554_v0 }
0x133a   :  { %5562 = vmatpush1.bf16.msra.mxu0 %v13094_v14 }
0x133b   :  { %5563 = vmatprep.subr.bf16.mxu0 %v10554_v0 }
0x133e   :  { %5564 = vmatpush1.bf16.msra.mxu0 %v13101_v16 }
0x133f   :  { %5565 = vmatprep.subr.bf16.mxu0 %v10554_v0 }
0x1342   :  { %5566 = vmatpush1.bf16.msra.mxu0 %v13108_v17 }
0x1343   :  { %5567 = vmatprep.subr.bf16.mxu0 %v10554_v0 }
0x1346   :  { %5568 = vmatpush1.bf16.msra.mxu0 %v13115_v18 }
0x1347   :  { %5569 = vmatprep.subr.bf16.mxu0 %v10554_v0 }
0x134a   :  { %5570 = vmatpush1.bf16.msra.mxu0 %v13122_v19 }
0x134b   :  { %5571 = vmatprep.subr.bf16.mxu0 %v10554_v0 }
0x134e   :  { %5572 = vmatpush1.bf16.msra.mxu0 %v13129_v20  ;;  %v13361_v49 = vpop.f32.mrb[168].mxu1 }
0x134f   :  { %5573 = vmatprep.subr.bf16.mxu0 %v10554_v0  ;;  %v5542_v31 = vpop.f32.mrb[169].mxu1 }
0x1350   :  { %v5543_v32 = vpop.f32.mrb[170].mxu1  ;;  %v10366_v31 = vld [vmem:[%s14520_s6 + $0x488] sm:$0xff]  }
0x1351   :  { %v5544_v34 = vpop.f32.mrb[171].mxu1  ;;  %v10367_v32 = vld [vmem:[%s14520_s6 + $0x490] sm:$0xff]  }
0x1352   :  { %5574 = vmatpush1.bf16.msra.mxu0 %v13136_v21  ;;  %v10368_v34 = vld [vmem:[%s14520_s6 + $0x498] sm:$0xff]  }
0x1353   :  { %5575 = vmatprep.subr.bf16.mxu0 %v10554_v0 }
0x1356   :  { %5576 = vmatpush1.bf16.msra.mxu0 %v10716_v15 }
0x1357   :  { %5660 = vmatprep.subr.bf16.mxu0 %v10554_v0 }
0x1359   :  { %5590 = vmatmul.mubr.bf16.vlgmr.msra.gmra.mrb[172].mxu0 %v8939_v28 }
0x135a   :  { %5661 = vmatpush1.bf16.msra.mxu0 %v13080_v10  ;;  %8949 = vmatprep.mubr.msk.bf16.mxu0 %vm126_vm0, %v8948_v29 }
0x135b   :  { %5662 = vmatprep.subr.bf16.mxu0 %v10554_v0 }
0x135e   :  { %5663 = vmatpush1.bf16.msra.mxu0 %v13087_v13 }
0x135f   :  { %5664 = vmatprep.subr.bf16.mxu0 %v10554_v0 }
0x1362   :  { %5665 = vmatpush1.bf16.msra.mxu0 %v13094_v14 }
0x1363   :  { %5666 = vmatprep.subr.bf16.mxu0 %v10554_v0 }
0x1366   :  { %5667 = vmatpush1.bf16.msra.mxu0 %v13101_v16 }
0x1367   :  { %5668 = vmatprep.subr.bf16.mxu0 %v10554_v0 }
0x136a   :  { %5669 = vmatpush1.bf16.msra.mxu0 %v13108_v17 }
0x136b   :  { %5670 = vmatprep.subr.bf16.mxu0 %v10554_v0 }
0x136e   :  { %5671 = vmatpush1.bf16.msra.mxu0 %v13115_v18 }
0x136f   :  { %5672 = vmatprep.subr.bf16.mxu0 %v10554_v0 }
0x1372   :  { %5673 = vmatpush1.bf16.msra.mxu0 %v13122_v19 }
0x1373   :  { %5674 = vmatprep.subr.bf16.mxu0 %v10554_v0 }
0x1376   :  { %5675 = vmatpush1.bf16.msra.mxu0 %v13129_v20 }
0x1377   :  { %5676 = vmatprep.subr.bf16.mxu0 %v10554_v0 }
0x137a   :  { %5677 = vmatpush1.bf16.msra.mxu0 %v13136_v21 }
0x137b   :  { %5678 = vmatprep.subr.bf16.mxu0 %v10554_v0 }
0x137e   :  { %5679 = vmatpush1.bf16.msra.mxu0 %v10716_v15 }
0x137f   :  { %5822 = vmatprep.subr.bf16.mxu0 %v10554_v0 }
0x1381   :  { %5693 = vmatmul.mubr.bf16.vlgmr.msra.gmra.mrb[176].mxu0 %v8947_v30 }
0x1382   :  { %5823 = vmatpush1.bf16.msra.mxu0 %v13080_v10  ;;  %8977 = vmatprep.mubr.msk.bf16.mxu0 %vm126_vm0, %v8976_v6 }
0x1383   :  { %5824 = vmatprep.subr.bf16.mxu0 %v10554_v0 }
0x1386   :  { %5825 = vmatpush1.bf16.msra.mxu0 %v13087_v13 }
0x1387   :  { %5826 = vmatprep.subr.bf16.mxu0 %v10554_v0 }
0x138a   :  { %5827 = vmatpush1.bf16.msra.mxu0 %v13094_v14 }
0x138b   :  { %5828 = vmatprep.subr.bf16.mxu0 %v10554_v0 }
0x138e   :  { %5829 = vmatpush1.bf16.msra.mxu0 %v13101_v16 }
0x138f   :  { %5830 = vmatprep.subr.bf16.mxu0 %v10554_v0 }
0x1392   :  { %5831 = vmatpush1.bf16.msra.mxu0 %v13108_v17 }
0x1393   :  { %5832 = vmatprep.subr.bf16.mxu0 %v10554_v0 }
0x1396   :  { %5833 = vmatpush1.bf16.msra.mxu0 %v13115_v18 }
0x1397   :  { %5834 = vmatprep.subr.bf16.mxu0 %v10554_v0 }
0x139a   :  { %5835 = vmatpush1.bf16.msra.mxu0 %v13122_v19 }
0x139b   :  { %5836 = vmatprep.subr.bf16.mxu0 %v10554_v0 }
0x139e   :  { %5837 = vmatpush1.bf16.msra.mxu0 %v13129_v20 }
0x139f   :  { %5838 = vmatprep.subr.bf16.mxu0 %v10554_v0 }
0x13a2   :  { %5839 = vmatpush1.bf16.msra.mxu0 %v13136_v21 }
0x13a3   :  { %5840 = vmatprep.subr.bf16.mxu0 %v10554_v0 }
0x13a6   :  { %5841 = vmatpush1.bf16.msra.mxu0 %v10716_v15 }
0x13a7   :  { %5925 = vmatprep.subr.bf16.mxu0 %v10554_v0 }
0x13a9   :  { %5855 = vmatmul.mubr.bf16.vlgmr.msra.gmra.mrb[180].mxu0 %v8975_v51 }
0x13aa   :  { %5926 = vmatpush1.bf16.msra.mxu0 %v13080_v10 }
0x13ab   :  { %5927 = vmatprep.subr.bf16.mxu0 %v10554_v0 }
0x13ad   :  { %v5643_v55 = vpop.f32.mrb[172].mxu1 }
0x13ae   :  { %v5645_v56 = vpop.f32.mrb[173].mxu1  ;;  %5928 = vmatpush1.bf16.msra.mxu0 %v13087_v13 }
0x13af   :  { %v5646_v57 = vpop.f32.mrb[174].mxu1  ;;  %5929 = vmatprep.subr.bf16.mxu0 %v10554_v0  ;;  %v10372_v56 = vld [vmem:[%s14520_s6 + $0x4b8] sm:$0xff]  }
0x13b0   :  { %v5647_v58 = vpop.f32.mrb[175].mxu1  ;;  %v9014_v57 = vld [vmem:[%s14516_s0 + $0x98] sm:$0xff] }
0x13b1   :  { %v9016_v58 = vcombine.high %v9014_v57, %v9014_v57  ;;  %v9015_v59 = vcombine.low %v9014_v57, %v9014_v57 }
0x13b2   :  { %5930 = vmatpush1.bf16.msra.mxu0 %v13094_v14 }
0x13b3   :  { %5931 = vmatprep.subr.bf16.mxu0 %v10554_v0 }
0x13b6   :  { %5932 = vmatpush1.bf16.msra.mxu0 %v13101_v16 }
0x13b7   :  { %5933 = vmatprep.subr.bf16.mxu0 %v10554_v0 }
0x13ba   :  { %5934 = vmatpush1.bf16.msra.mxu0 %v13108_v17 }
0x13bb   :  { %5935 = vmatprep.subr.bf16.mxu0 %v10554_v0 }
0x13be   :  { %5936 = vmatpush1.bf16.msra.mxu0 %v13115_v18 }
0x13bf   :  { %5937 = vmatprep.subr.bf16.mxu0 %v10554_v0 }
0x13c2   :  { %5938 = vmatpush1.bf16.msra.mxu0 %v13122_v19 }
0x13c3   :  { %5939 = vmatprep.subr.bf16.mxu0 %v10554_v0 }
0x13c6   :  { %5940 = vmatpush1.bf16.msra.mxu0 %v13129_v20 }
0x13c7   :  { %5941 = vmatprep.subr.bf16.mxu0 %v10554_v0 }
0x13ca   :  { %5942 = vmatpush1.bf16.msra.mxu0 %v13136_v21 }
0x13cb   :  { %5943 = vmatprep.subr.bf16.mxu0 %v10554_v0 }
0x13ce   :  { %5944 = vmatpush1.bf16.msra.mxu0 %v10716_v15 }
0x13cf   :  { %9876 = vmatprep.subr.bf16.mxu0 %v10555_v37 }
0x1404   :  { %v5488_v60 = vpop.f32.mrb[168].mxu0 }
0x1405   :  { %v13400_v61 = vadd.f32 %v5488_v60, %v13258_v2  ;;  %v9854_v62 = vpop.f32.mrb[169].mxu0  ;;  %v8982_v2 = vld [vmem:[%s14518_s2 + $0x90] sm:$0xff] }
0x1406   :  { %v5491_v63 = vpop.f32.mrb[170].mxu0  ;;  %v8984_v3 = vcombine.high %v8982_v2, %v8982_v2  ;;  %v8983_v50 = vcombine.low %v8982_v2, %v8982_v2 }
0x1407   :  { %v9855_v1 = vpop.f32.mrb[171].mxu0 }
0x1408   :  { %8985 = vmatprep.mubr.msk.bf16.mxu0 %vm126_vm0, %v8984_v3 }
0x1409   :  { %5958 = vmatmul.mubr.bf16.vlgmr.msra.gmra.mrb[184].mxu0 %v8983_v50 }
0x140a   :  { %9892 = vmatprep.mubr.msk.bf16.mxu0 %vm10556_vm2, %v10555_v37 }
0x142c   :  { %v5591_v52 = vpop.f32.mrb[172].mxu0 }
0x142d   :  { %v5597_v53 = vmax.f32 %v13361_v49, %v5591_v52  ;;  %v5593_v7 = vpop.f32.mrb[173].mxu0  ;;  %v10365_v49 = vld [vmem:[%s14520_s6 + $0x480] sm:$0xff]  }
0x142e   :  { %v5594_v8 = vpop.f32.mrb[174].mxu0  ;;  %9877 = vmatpush3.bf16.msra.mxu0 %v10365_v49  ;;  %v10385_v49 = vld [vmem:[%s14520_s6 + $0x4e0] sm:$0xff]  }
0x142f   :  { %v5595_v9 = vpop.f32.mrb[175].mxu0  ;;  %9878 = vmatprep.subr.bf16.mxu0 %v10555_v37 }
0x1432   :  { %9879 = vmatpush3.bf16.msra.mxu0 %v10366_v31  ;;  %v10386_v31 = vld [vmem:[%s14520_s6 + $0x4e8] sm:$0xff]  }
0x1433   :  { %9880 = vmatprep.subr.bf16.mxu0 %v10555_v37 }
0x1436   :  { %9881 = vmatpush3.bf16.msra.mxu0 %v10367_v32 }
0x1437   :  { %9882 = vmatprep.subr.bf16.mxu0 %v10555_v37 }
0x143a   :  { %9883 = vmatpush3.bf16.msra.mxu0 %v10368_v34 }
0x143b   :  { %9884 = vmatprep.subr.bf16.mxu0 %v10555_v37 }
0x143e   :  { %9885 = vmatpush3.bf16.msra.mxu0 %v10369_v35 }
0x143f   :  { %9886 = vmatprep.subr.bf16.mxu0 %v10555_v37 }
0x1442   :  { %9887 = vmatpush3.bf16.msra.mxu0 %v10370_v46 }
0x1443   :  { %9888 = vmatprep.subr.bf16.mxu0 %v10555_v37 }
0x1454   :  { %v5694_v11 = vpop.f32.mrb[176].mxu0 }
0x1455   :  { %v5700_v22 = vmax.f32 %v5643_v55, %v5694_v11  ;;  %v5696_v26 = vpop.f32.mrb[177].mxu0  ;;  %v10371_v55 = vld [vmem:[%s14520_s6 + $0x4b0] sm:$0xff]  }
0x1456   :  { %v5697_v25 = vpop.f32.mrb[178].mxu0  ;;  %9889 = vmatpush3.bf16.msra.mxu0 %v10371_v55 }
0x1457   :  { %v5701_v33 = vmax.f32 %v5597_v53, %v5700_v22  ;;  %v5698_v23 = vpop.f32.mrb[179].mxu0  ;;  %9890 = vmatprep.subr.bf16.mxu0 %v10555_v37  ;;  %v9018_v25 = vld [vmem:[%s14517_s1 + $0x98] sm:$0xff] }
0x1458   :  { %v9020_v23 = vcombine.high %v9018_v25, %v9018_v25 }
0x1459   :  { %v5702_v36 = vadd.f32 %v13290_v41, %v5701_v33 }
0x145a   :  { %9891 = vmatpush3.bf16.msra.mxu0 %v10372_v56 }
0x145b   :  { %v5703_v39 = vmax.f32 %v5702_v36, 0.0  ;;  %6189 = vmatprep.subr.bf16.mxu0 %v10554_v0 }
0x145d   :  { %v5704_v42 = vpack.c.bf16 %v5703_v39, %v5703_v39  ;;  %v13647_v39 = vld [vmem:[%s14515_s4 + $0x38] sm:$0xff]  }
0x145f   :  { %9873 = vmatmul.mubr.bf16.vlgmr.msra.gmra.mrb[176].mxu1 %v5704_v42 }
0x1460   :  { %5874 = vmatpush1.bf16.msra.mxu1 %v13080_v10  ;;  %8981 = vmatprep.mubr.msk.bf16.mxu1 %vm126_vm0, %v8980_v40  ;;  %v13654_v40 = vld [vmem:[%s14515_s4 + $0x40] sm:$0xff]  }
0x1461   :  { %5875 = vmatprep.subr.bf16.mxu1 %v10554_v0 }
0x1464   :  { %5876 = vmatpush1.bf16.msra.mxu1 %v13087_v13 }
0x1465   :  { %5877 = vmatprep.subr.bf16.mxu1 %v10554_v0 }
0x1468   :  { %5878 = vmatpush1.bf16.msra.mxu1 %v13094_v14 }
0x1469   :  { %5879 = vmatprep.subr.bf16.mxu1 %v10554_v0 }
0x146c   :  { %5880 = vmatpush1.bf16.msra.mxu1 %v13101_v16 }
0x146d   :  { %5881 = vmatprep.subr.bf16.mxu1 %v10554_v0 }
0x1470   :  { %5882 = vmatpush1.bf16.msra.mxu1 %v13108_v17 }
0x1471   :  { %5883 = vmatprep.subr.bf16.mxu1 %v10554_v0 }
0x1474   :  { %5884 = vmatpush1.bf16.msra.mxu1 %v13115_v18 }
0x1475   :  { %5885 = vmatprep.subr.bf16.mxu1 %v10554_v0 }
0x1478   :  { %5886 = vmatpush1.bf16.msra.mxu1 %v13122_v19 }
0x1479   :  { %5887 = vmatprep.subr.bf16.mxu1 %v10554_v0 }
0x147c   :  { %5888 = vmatpush1.bf16.msra.mxu1 %v13129_v20  ;;  %v13498_v27 = vpop.f32.mrb[180].mxu0 }
0x147d   :  { %5889 = vmatprep.subr.bf16.mxu1 %v10554_v0  ;;  %v5858_v28 = vpop.f32.mrb[181].mxu0 }
0x147e   :  { %v5859_v29 = vpop.f32.mrb[182].mxu0  ;;  %v10382_v28 = vld [vmem:[%s14520_s6 + $0x4c8] sm:$0xff]  }
0x147f   :  { %v5860_v30 = vpop.f32.mrb[183].mxu0  ;;  %v10383_v29 = vld [vmem:[%s14520_s6 + $0x4d0] sm:$0xff]  }
0x1480   :  { %5890 = vmatpush1.bf16.msra.mxu1 %v13136_v21  ;;  %v10384_v30 = vld [vmem:[%s14520_s6 + $0x4d8] sm:$0xff]  }
0x1481   :  { %5891 = vmatprep.subr.bf16.mxu1 %v10554_v0 }
0x1484   :  { %5892 = vmatpush1.bf16.msra.mxu1 %v10716_v15 }
0x1485   :  { %5976 = vmatprep.subr.bf16.mxu1 %v10554_v0 }
0x1487   :  { %5906 = vmatmul.mubr.bf16.vlgmr.msra.gmra.mrb[180].mxu1 %v8979_v44 }
0x1488   :  { %5977 = vmatpush1.bf16.msra.mxu1 %v13080_v10  ;;  %8989 = vmatprep.mubr.msk.bf16.mxu1 %vm126_vm0, %v8988_v45 }
0x1489   :  { %5978 = vmatprep.subr.bf16.mxu1 %v10554_v0 }
0x148c   :  { %5979 = vmatpush1.bf16.msra.mxu1 %v13087_v13 }
0x148d   :  { %5980 = vmatprep.subr.bf16.mxu1 %v10554_v0 }
0x1490   :  { %5981 = vmatpush1.bf16.msra.mxu1 %v13094_v14 }
0x1491   :  { %5982 = vmatprep.subr.bf16.mxu1 %v10554_v0 }
0x1494   :  { %5983 = vmatpush1.bf16.msra.mxu1 %v13101_v16 }
0x1495   :  { %5984 = vmatprep.subr.bf16.mxu1 %v10554_v0 }
0x1498   :  { %5985 = vmatpush1.bf16.msra.mxu1 %v13108_v17 }
0x1499   :  { %5986 = vmatprep.subr.bf16.mxu1 %v10554_v0 }
0x149c   :  { %5987 = vmatpush1.bf16.msra.mxu1 %v13115_v18 }
0x149d   :  { %5988 = vmatprep.subr.bf16.mxu1 %v10554_v0 }
0x14a0   :  { %5989 = vmatpush1.bf16.msra.mxu1 %v13122_v19 }
0x14a1   :  { %5990 = vmatprep.subr.bf16.mxu1 %v10554_v0 }
0x14a4   :  { %5991 = vmatpush1.bf16.msra.mxu1 %v13129_v20 }
0x14a5   :  { %5992 = vmatprep.subr.bf16.mxu1 %v10554_v0 }
0x14a8   :  { %5993 = vmatpush1.bf16.msra.mxu1 %v13136_v21 }
0x14a9   :  { %5994 = vmatprep.subr.bf16.mxu1 %v10554_v0 }
0x14ac   :  { %5995 = vmatpush1.bf16.msra.mxu1 %v10716_v15 }
0x14ad   :  { %6138 = vmatprep.subr.bf16.mxu1 %v10554_v0 }
0x14af   :  { %6009 = vmatmul.mubr.bf16.vlgmr.msra.gmra.mrb[184].mxu1 %v8987_v24 }
0x14b0   :  { %6139 = vmatpush1.bf16.msra.mxu1 %v13080_v10  ;;  %9017 = vmatprep.mubr.msk.bf16.mxu1 %vm126_vm0, %v9016_v58 }
0x14b1   :  { %6140 = vmatprep.subr.bf16.mxu1 %v10554_v0 }
0x14b4   :  { %6141 = vmatpush1.bf16.msra.mxu1 %v13087_v13 }
0x14b5   :  { %6142 = vmatprep.subr.bf16.mxu1 %v10554_v0 }
0x14b8   :  { %6143 = vmatpush1.bf16.msra.mxu1 %v13094_v14 }
0x14b9   :  { %6144 = vmatprep.subr.bf16.mxu1 %v10554_v0 }
0x14bc   :  { %6145 = vmatpush1.bf16.msra.mxu1 %v13101_v16 }
0x14bd   :  { %6146 = vmatprep.subr.bf16.mxu1 %v10554_v0 }
0x14c0   :  { %6147 = vmatpush1.bf16.msra.mxu1 %v13108_v17 }
0x14c1   :  { %6148 = vmatprep.subr.bf16.mxu1 %v10554_v0 }
0x14c4   :  { %6149 = vmatpush1.bf16.msra.mxu1 %v13115_v18 }
0x14c5   :  { %6150 = vmatprep.subr.bf16.mxu1 %v10554_v0 }
0x14c8   :  { %6151 = vmatpush1.bf16.msra.mxu1 %v13122_v19 }
0x14c9   :  { %6152 = vmatprep.subr.bf16.mxu1 %v10554_v0 }
0x14cc   :  { %6153 = vmatpush1.bf16.msra.mxu1 %v13129_v20 }
0x14cd   :  { %6154 = vmatprep.subr.bf16.mxu1 %v10554_v0 }
0x14d0   :  { %6155 = vmatpush1.bf16.msra.mxu1 %v13136_v21 }
0x14d1   :  { %6156 = vmatprep.subr.bf16.mxu1 %v10554_v0 }
0x14d4   :  { %6157 = vmatpush1.bf16.msra.mxu1 %v10716_v15 }
0x14d5   :  { %6241 = vmatprep.subr.bf16.mxu1 %v10554_v0 }
0x14d7   :  { %6171 = vmatmul.mubr.bf16.vlgmr.msra.gmra.mrb[188].mxu1 %v9015_v59 }
0x14d8   :  { %6242 = vmatpush1.bf16.msra.mxu1 %v13080_v10 }
0x14d9   :  { %6243 = vmatprep.subr.bf16.mxu1 %v10554_v0 }
0x14dc   :  { %v5959_v47 = vpop.f32.mrb[184].mxu0  ;;  %6244 = vmatpush1.bf16.msra.mxu1 %v13087_v13 }
0x14dd   :  { %v5961_v48 = vpop.f32.mrb[185].mxu0  ;;  %6245 = vmatprep.subr.bf16.mxu1 %v10554_v0 }
0x14de   :  { %v5962_v4 = vpop.f32.mrb[186].mxu0  ;;  %v10388_v48 = vld [vmem:[%s14520_s6 + $0x4f8] sm:$0xff]  }
0x14df   :  { %v5963_v54 = vpop.f32.mrb[187].mxu0  ;;  %v9054_v4 = vld [vmem:[%s14516_s0 + $0xa0] sm:$0xff] }
0x14e0   :  { %6246 = vmatpush1.bf16.msra.mxu1 %v13094_v14  ;;  %v9056_v54 = vcombine.high %v9054_v4, %v9054_v4  ;;  %v9055_v55 = vcombine.low %v9054_v4, %v9054_v4 }
0x14e1   :  { %6247 = vmatprep.subr.bf16.mxu1 %v10554_v0 }
0x14e4   :  { %6248 = vmatpush1.bf16.msra.mxu1 %v13101_v16 }
0x14e5   :  { %6249 = vmatprep.subr.bf16.mxu1 %v10554_v0 }
0x14e8   :  { %6250 = vmatpush1.bf16.msra.mxu1 %v13108_v17 }
0x14e9   :  { %6251 = vmatprep.subr.bf16.mxu1 %v10554_v0 }
0x14ec   :  { %6252 = vmatpush1.bf16.msra.mxu1 %v13115_v18 }
0x14ed   :  { %6253 = vmatprep.subr.bf16.mxu1 %v10554_v0 }
0x14f0   :  { %6254 = vmatpush1.bf16.msra.mxu1 %v13122_v19 }
0x14f1   :  { %6255 = vmatprep.subr.bf16.mxu1 %v10554_v0 }
0x14f4   :  { %6256 = vmatpush1.bf16.msra.mxu1 %v13129_v20 }
0x14f5   :  { %6257 = vmatprep.subr.bf16.mxu1 %v10554_v0 }
0x14f8   :  { %6258 = vmatpush1.bf16.msra.mxu1 %v13136_v21 }
0x14f9   :  { %6259 = vmatprep.subr.bf16.mxu1 %v10554_v0 }
0x14fc   :  { %6260 = vmatpush1.bf16.msra.mxu1 %v10716_v15 }
0x14fd   :  { %9896 = vmatprep.subr.bf16.mxu1 %v10555_v37 }
0x1532   :  { %v5804_v12 = vpop.f32.mrb[176].mxu1 }
0x1533   :  { %v13537_v5 = vadd.f32 %v5804_v12, %v13400_v61  ;;  %v9874_v6 = vpop.f32.mrb[177].mxu1  ;;  %v9022_v61 = vld [vmem:[%s14518_s2 + $0x98] sm:$0xff] }
0x1534   :  { %v5807_v51 = vpop.f32.mrb[178].mxu1  ;;  %v9024_v62 = vcombine.high %v9022_v61, %v9022_v61  ;;  %v9023_v63 = vcombine.low %v9022_v61, %v9022_v61 }
0x1535   :  { %v9875_v60 = vpop.f32.mrb[179].mxu1 }
0x1536   :  { %9025 = vmatprep.mubr.msk.bf16.mxu1 %vm126_vm0, %v9024_v62 }
0x1537   :  { %6274 = vmatmul.mubr.bf16.vlgmr.msra.gmra.mrb[192].mxu1 %v9023_v63 }
0x1538   :  { %9912 = vmatprep.mubr.msk.bf16.mxu1 %vm10556_vm2, %v10555_v37 }
0x155a   :  { %v5907_v1 = vpop.f32.mrb[180].mxu1 }
0x155b   :  { %v5913_v2 = vmax.f32 %v13498_v27, %v5907_v1  ;;  %v5909_v3 = vpop.f32.mrb[181].mxu1  ;;  %v10381_v27 = vld [vmem:[%s14520_s6 + $0x4c0] sm:$0xff]  }
0x155c   :  { %v5910_v50 = vpop.f32.mrb[182].mxu1  ;;  %9897 = vmatpush3.bf16.msra.mxu1 %v10381_v27  ;;  %v10402_v27 = vld [vmem:[%s14520_s6 + $0x528] sm:$0xff]  }
0x155d   :  { %v5911_v52 = vpop.f32.mrb[183].mxu1  ;;  %9898 = vmatprep.subr.bf16.mxu1 %v10555_v37 }
0x1560   :  { %9899 = vmatpush3.bf16.msra.mxu1 %v10382_v28 }
0x1561   :  { %9900 = vmatprep.subr.bf16.mxu1 %v10555_v37 }
0x1564   :  { %9901 = vmatpush3.bf16.msra.mxu1 %v10383_v29 }
0x1565   :  { %9902 = vmatprep.subr.bf16.mxu1 %v10555_v37 }
0x1568   :  { %9903 = vmatpush3.bf16.msra.mxu1 %v10384_v30 }
0x1569   :  { %9904 = vmatprep.subr.bf16.mxu1 %v10555_v37 }
0x156c   :  { %9905 = vmatpush3.bf16.msra.mxu1 %v10385_v49 }
0x156d   :  { %9906 = vmatprep.subr.bf16.mxu1 %v10555_v37 }
0x1570   :  { %9907 = vmatpush3.bf16.msra.mxu1 %v10386_v31  ;;  %v10403_v31 = vld [vmem:[%s14520_s6 + $0x530] sm:$0xff]  }
0x1571   :  { %9908 = vmatprep.subr.bf16.mxu1 %v10555_v37 }
0x1582   :  { %v6010_v53 = vpop.f32.mrb[184].mxu1 }
0x1583   :  { %v6016_v7 = vmax.f32 %v5959_v47, %v6010_v53  ;;  %v6012_v8 = vpop.f32.mrb[185].mxu1  ;;  %v10387_v47 = vld [vmem:[%s14520_s6 + $0x4f0] sm:$0xff]  }
0x1584   :  { %v6013_v9 = vpop.f32.mrb[186].mxu1  ;;  %9909 = vmatpush3.bf16.msra.mxu1 %v10387_v47 }
0x1585   :  { %v6017_v11 = vmax.f32 %v5913_v2, %v6016_v7  ;;  %v6014_v22 = vpop.f32.mrb[187].mxu1  ;;  %9910 = vmatprep.subr.bf16.mxu1 %v10555_v37  ;;  %v9058_v9 = vld [vmem:[%s14517_s1 + $0xa0] sm:$0xff] }
0x1586   :  { %v9060_v22 = vcombine.high %v9058_v9, %v9058_v9 }
0x1587   :  { %v6018_v26 = vadd.f32 %v13290_v41, %v6017_v11 }
0x1588   :  { %9911 = vmatpush3.bf16.msra.mxu1 %v10388_v48 }
0x1589   :  { %v6019_v33 = vmax.f32 %v6018_v26, 0.0  ;;  %6505 = vmatprep.subr.bf16.mxu1 %v10554_v0 }
0x158b   :  { %v6020_v36 = vpack.c.bf16 %v6019_v33, %v6019_v33 }
0x158d   :  { %9893 = vmatmul.mubr.bf16.vlgmr.msra.gmra.mrb[188].mxu0 %v6020_v36 }
0x158e   :  { %6190 = vmatpush1.bf16.msra.mxu0 %v13080_v10  ;;  %9021 = vmatprep.mubr.msk.bf16.mxu0 %vm126_vm0, %v9020_v23  ;;  %v9026_v10 = vld [vmem:[%s14519_s3 + $0x98] sm:$0xff] }
0x158f   :  { %6191 = vmatprep.subr.bf16.mxu0 %v10554_v0  ;;  %v9027_v42 = vcombine.low %v9026_v10, %v9026_v10 }
0x1592   :  { %6192 = vmatpush1.bf16.msra.mxu0 %v13087_v13  ;;  %v9019_v13 = vcombine.low %v9018_v25, %v9018_v25  ;;  %v9059_v25 = vcombine.low %v9058_v9, %v9058_v9  ;;  %v9106_v9 = vld [vmem:[%s14519_s3 + $0xa8] sm:$0xff] }
0x1593   :  { %6193 = vmatprep.subr.bf16.mxu0 %v10554_v0 }
0x1596   :  { %6194 = vmatpush1.bf16.msra.mxu0 %v13094_v14  ;;  %v9028_v14 = vcombine.high %v9026_v10, %v9026_v10 }
0x1597   :  { %6195 = vmatprep.subr.bf16.mxu0 %v10554_v0 }
0x159a   :  { %6196 = vmatpush1.bf16.msra.mxu0 %v13101_v16  ;;  %v13597_v16 = vld [vmem:[%s14515_s4] sm:$0xff]  }
0x159b   :  { %6197 = vmatprep.subr.bf16.mxu0 %v10554_v0 }
0x159e   :  { %6198 = vmatpush1.bf16.msra.mxu0 %v13108_v17  ;;  %v13605_v17 = vld [vmem:[%s14515_s4 + $0x8] sm:$0xff]  }
0x159f   :  { %6199 = vmatprep.subr.bf16.mxu0 %v10554_v0 }
0x15a2   :  { %6200 = vmatpush1.bf16.msra.mxu0 %v13115_v18  ;;  %v13612_v18 = vld [vmem:[%s14515_s4 + $0x10] sm:$0xff]  }
0x15a3   :  { %6201 = vmatprep.subr.bf16.mxu0 %v10554_v0 }
0x15a6   :  { %6202 = vmatpush1.bf16.msra.mxu0 %v13122_v19  ;;  %v13619_v19 = vld [vmem:[%s14515_s4 + $0x18] sm:$0xff]  }
0x15a7   :  { %6203 = vmatprep.subr.bf16.mxu0 %v10554_v0 }
0x15aa   :  { %6204 = vmatpush1.bf16.msra.mxu0 %v13129_v20  ;;  %v13626_v20 = vld [vmem:[%s14515_s4 + $0x20] sm:$0xff]   ;;  %v13680_v43 = vpop.f32.mrb[188].mxu1 }
0x15ab   :  { %6205 = vmatprep.subr.bf16.mxu0 %v10554_v0  ;;  %v6174_v44 = vpop.f32.mrb[189].mxu1 }
0x15ac   :  { %v6175_v45 = vpop.f32.mrb[190].mxu1  ;;  %v10399_v44 = vld [vmem:[%s14520_s6 + $0x510] sm:$0xff]  }
0x15ad   :  { %v6176_v24 = vpop.f32.mrb[191].mxu1  ;;  %v10400_v45 = vld [vmem:[%s14520_s6 + $0x518] sm:$0xff]  }
0x15ae   :  { %6206 = vmatpush1.bf16.msra.mxu0 %v13136_v21  ;;  %v13633_v21 = vld [vmem:[%s14515_s4 + $0x28] sm:$0xff]   ;;  %v10401_v24 = vld [vmem:[%s14520_s6 + $0x520] sm:$0xff]  }
0x15af   :  { %6207 = vmatprep.subr.bf16.mxu0 %v10554_v0 }
0x15b2   :  { %6208 = vmatpush1.bf16.msra.mxu0 %v10716_v15 }
0x15b3   :  { %6292 = vmatprep.subr.bf16.mxu0 %v10554_v0 }
0x15b5   :  { %6222 = vmatmul.mubr.bf16.vlgmr.msra.gmra.mrb[192].mxu0 %v9019_v13 }
0x15b6   :  { %6293 = vmatpush1.bf16.msra.mxu0 %v13597_v16  ;;  %9029 = vmatprep.mubr.msk.bf16.mxu0 %vm126_vm0, %v9028_v14 }
0x15b7   :  { %6294 = vmatprep.subr.bf16.mxu0 %v10554_v0 }
0x15ba   :  { %6295 = vmatpush1.bf16.msra.mxu0 %v13605_v17 }
0x15bb   :  { %6296 = vmatprep.subr.bf16.mxu0 %v10554_v0 }
0x15be   :  { %6297 = vmatpush1.bf16.msra.mxu0 %v13612_v18 }
0x15bf   :  { %6298 = vmatprep.subr.bf16.mxu0 %v10554_v0 }
0x15c2   :  { %6299 = vmatpush1.bf16.msra.mxu0 %v13619_v19 }
0x15c3   :  { %6300 = vmatprep.subr.bf16.mxu0 %v10554_v0 }
0x15c6   :  { %6301 = vmatpush1.bf16.msra.mxu0 %v13626_v20 }
0x15c7   :  { %6302 = vmatprep.subr.bf16.mxu0 %v10554_v0 }
0x15ca   :  { %6303 = vmatpush1.bf16.msra.mxu0 %v13633_v21 }
0x15cb   :  { %6304 = vmatprep.subr.bf16.mxu0 %v10554_v0 }
0x15ce   :  { %6305 = vmatpush1.bf16.msra.mxu0 %v13640_v38 }
0x15cf   :  { %6306 = vmatprep.subr.bf16.mxu0 %v10554_v0 }
0x15d2   :  { %6307 = vmatpush1.bf16.msra.mxu0 %v13647_v39 }
0x15d3   :  { %6308 = vmatprep.subr.bf16.mxu0 %v10554_v0 }
0x15d6   :  { %6309 = vmatpush1.bf16.msra.mxu0 %v13654_v40 }
0x15d7   :  { %6310 = vmatprep.subr.bf16.mxu0 %v10554_v0 }
0x15da   :  { %6311 = vmatpush1.bf16.msra.mxu0 %v10716_v15 }
0x15db   :  { %6454 = vmatprep.subr.bf16.mxu0 %v10554_v0 }
0x15dd   :  { %6325 = vmatmul.mubr.bf16.vlgmr.msra.gmra.mrb[196].mxu0 %v9027_v42  ;;  %v10397_v42 = vld [vmem:[%s14520_s6 + $0x500] sm:$0xff]  }
0x15de   :  { %6455 = vmatpush1.bf16.msra.mxu0 %v13597_v16  ;;  %9057 = vmatprep.mubr.msk.bf16.mxu0 %vm126_vm0, %v9056_v54 }
0x15df   :  { %6456 = vmatprep.subr.bf16.mxu0 %v10554_v0 }
0x15e2   :  { %6457 = vmatpush1.bf16.msra.mxu0 %v13605_v17 }
0x15e3   :  { %6458 = vmatprep.subr.bf16.mxu0 %v10554_v0 }
0x15e6   :  { %6459 = vmatpush1.bf16.msra.mxu0 %v13612_v18 }
0x15e7   :  { %6460 = vmatprep.subr.bf16.mxu0 %v10554_v0 }
0x15ea   :  { %6461 = vmatpush1.bf16.msra.mxu0 %v13619_v19 }
0x15eb   :  { %6462 = vmatprep.subr.bf16.mxu0 %v10554_v0 }
0x15ee   :  { %6463 = vmatpush1.bf16.msra.mxu0 %v13626_v20 }
0x15ef   :  { %6464 = vmatprep.subr.bf16.mxu0 %v10554_v0 }
0x15f2   :  { %6465 = vmatpush1.bf16.msra.mxu0 %v13633_v21 }
0x15f3   :  { %6466 = vmatprep.subr.bf16.mxu0 %v10554_v0 }
0x15f6   :  { %6467 = vmatpush1.bf16.msra.mxu0 %v13640_v38 }
0x15f7   :  { %6468 = vmatprep.subr.bf16.mxu0 %v10554_v0 }
0x15fa   :  { %6469 = vmatpush1.bf16.msra.mxu0 %v13647_v39 }
0x15fb   :  { %6470 = vmatprep.subr.bf16.mxu0 %v10554_v0 }
0x15fe   :  { %6471 = vmatpush1.bf16.msra.mxu0 %v13654_v40 }
0x15ff   :  { %6472 = vmatprep.subr.bf16.mxu0 %v10554_v0 }
0x1602   :  { %6473 = vmatpush1.bf16.msra.mxu0 %v10716_v15 }
0x1603   :  { %6557 = vmatprep.subr.bf16.mxu0 %v10554_v0 }
0x1605   :  { %6487 = vmatmul.mubr.bf16.vlgmr.msra.gmra.mrb[200].mxu0 %v9055_v55 }
0x1606   :  { %6558 = vmatpush1.bf16.msra.mxu0 %v13597_v16 }
0x1607   :  { %6559 = vmatprep.subr.bf16.mxu0 %v10554_v0 }
0x160a   :  { %v6275_v32 = vpop.f32.mrb[192].mxu1  ;;  %6560 = vmatpush1.bf16.msra.mxu0 %v13605_v17 }
0x160b   :  { %v6277_v34 = vpop.f32.mrb[193].mxu1  ;;  %6561 = vmatprep.subr.bf16.mxu0 %v10554_v0 }
0x160c   :  { %v6278_v35 = vpop.f32.mrb[194].mxu1  ;;  %v9094_v34 = vld [vmem:[%s14516_s0 + $0xa8] sm:$0xff] }
0x160d   :  { %v6279_v46 = vpop.f32.mrb[195].mxu1  ;;  %v9096_v35 = vcombine.high %v9094_v34, %v9094_v34 }
0x160e   :  { %6562 = vmatpush1.bf16.msra.mxu0 %v13612_v18  ;;  %v9095_v46 = vcombine.low %v9094_v34, %v9094_v34 }
0x160f   :  { %6563 = vmatprep.subr.bf16.mxu0 %v10554_v0 }
0x1612   :  { %6564 = vmatpush1.bf16.msra.mxu0 %v13619_v19 }
0x1613   :  { %6565 = vmatprep.subr.bf16.mxu0 %v10554_v0 }
0x1616   :  { %6566 = vmatpush1.bf16.msra.mxu0 %v13626_v20 }
0x1617   :  { %6567 = vmatprep.subr.bf16.mxu0 %v10554_v0 }
0x161a   :  { %6568 = vmatpush1.bf16.msra.mxu0 %v13633_v21 }
0x161b   :  { %6569 = vmatprep.subr.bf16.mxu0 %v10554_v0 }
0x161e   :  { %6570 = vmatpush1.bf16.msra.mxu0 %v13640_v38 }
0x161f   :  { %6571 = vmatprep.subr.bf16.mxu0 %v10554_v0 }
0x1622   :  { %6572 = vmatpush1.bf16.msra.mxu0 %v13647_v39 }
0x1623   :  { %6573 = vmatprep.subr.bf16.mxu0 %v10554_v0 }
0x1626   :  { %6574 = vmatpush1.bf16.msra.mxu0 %v13654_v40 }
0x1627   :  { %6575 = vmatprep.subr.bf16.mxu0 %v10554_v0 }
0x162a   :  { %6576 = vmatpush1.bf16.msra.mxu0 %v10716_v15 }
0x162b   :  { %9916 = vmatprep.subr.bf16.mxu0 %v10555_v37 }
0x1660   :  { %v6120_v56 = vpop.f32.mrb[188].mxu0 }
0x1661   :  { %v13719_v57 = vadd.f32 %v6120_v56, %v13537_v5  ;;  %v9894_v58 = vpop.f32.mrb[189].mxu0  ;;  %v9062_v5 = vld [vmem:[%s14518_s2 + $0xa0] sm:$0xff]  ;;  %v9102_v56 = vld [vmem:[%s14518_s2 + $0xa8] sm:$0xff] }
0x1662   :  { %v6123_v59 = vpop.f32.mrb[190].mxu0  ;;  %v9064_v6 = vcombine.high %v9062_v5, %v9062_v5  ;;  %v9063_v51 = vcombine.low %v9062_v5, %v9062_v5  ;;  %v9103_v58 = vcombine.low %v9102_v56, %v9102_v56 }
0x1663   :  { %v9895_v12 = vpop.f32.mrb[191].mxu0 }
0x1664   :  { %9065 = vmatprep.mubr.msk.bf16.mxu0 %vm126_vm0, %v9064_v6 }
0x1665   :  { %6590 = vmatmul.mubr.bf16.vlgmr.msra.gmra.mrb[204].mxu0 %v9063_v51 }
0x1666   :  { %9932 = vmatprep.mubr.msk.bf16.mxu0 %vm10556_vm2, %v10555_v37  ;;  %9917 = vmatpush3.bf16.msra.mxu0 %v10397_v42  ;;  %v10417_v42 = vld [vmem:[%s14520_s6 + $0x560] sm:$0xff]  }
0x1667   :  { %9918 = vmatprep.subr.bf16.mxu0 %v10555_v37 }
0x1688   :  { %v6223_v60 = vpop.f32.mrb[192].mxu0 }
0x1689   :  { %v6229_v61 = vmax.f32 %v13680_v43, %v6223_v60  ;;  %v6225_v62 = vpop.f32.mrb[193].mxu0  ;;  %v10398_v43 = vld [vmem:[%s14520_s6 + $0x508] sm:$0xff]  }
0x168a   :  { %v6226_v63 = vpop.f32.mrb[194].mxu0  ;;  %9919 = vmatpush3.bf16.msra.mxu0 %v10398_v43  ;;  %v10418_v43 = vld [vmem:[%s14520_s6 + $0x568] sm:$0xff]  }
0x168b   :  { %v6227_v1 = vpop.f32.mrb[195].mxu0  ;;  %9920 = vmatprep.subr.bf16.mxu0 %v10555_v37 }
0x168e   :  { %9921 = vmatpush3.bf16.msra.mxu0 %v10399_v44 }
0x168f   :  { %9922 = vmatprep.subr.bf16.mxu0 %v10555_v37 }
0x1692   :  { %9923 = vmatpush3.bf16.msra.mxu0 %v10400_v45 }
0x1693   :  { %9924 = vmatprep.subr.bf16.mxu0 %v10555_v37 }
0x1696   :  { %9925 = vmatpush3.bf16.msra.mxu0 %v10401_v24 }
0x1697   :  { %9926 = vmatprep.subr.bf16.mxu0 %v10555_v37 }
0x169a   :  { %9927 = vmatpush3.bf16.msra.mxu0 %v10402_v27 }
0x169b   :  { %9928 = vmatprep.subr.bf16.mxu0 %v10555_v37 }
0x169e   :  { %9929 = vmatpush3.bf16.msra.mxu0 %v10403_v31 }
0x169f   :  { %9930 = vmatprep.subr.bf16.mxu0 %v10555_v37 }
0x16b0   :  { %v6326_v2 = vpop.f32.mrb[196].mxu0 }
0x16b1   :  { %v6332_v3 = vmax.f32 %v6275_v32, %v6326_v2  ;;  %v6328_v50 = vpop.f32.mrb[197].mxu0  ;;  %v10404_v32 = vld [vmem:[%s14520_s6 + $0x538] sm:$0xff]  }
0x16b2   :  { %v6329_v52 = vpop.f32.mrb[198].mxu0  ;;  %9931 = vmatpush3.bf16.msra.mxu0 %v10404_v32 }
0x16b3   :  { %v6333_v53 = vmax.f32 %v6229_v61, %v6332_v3  ;;  %v6330_v7 = vpop.f32.mrb[199].mxu0  ;;  %6821 = vmatprep.subr.bf16.mxu0 %v10554_v0  ;;  %v13888_v3 = vld [vmem:[%s14521_s5] ss:$0 sm:$0xff]  ;;  %v9098_v52 = vld [vmem:[%s14517_s1 + $0xa8] sm:$0xff] }
0x16b4   :  { %v9100_v7 = vcombine.high %v9098_v52, %v9098_v52 }
0x16b5   :  { %v6334_v8 = vadd.f32 %v13290_v41, %v6333_v53  ;;  %v9066_v41 = vld [vmem:[%s14519_s3 + $0xa0] sm:$0xff] }
0x16b6   :  { %v9068_v33 = vcombine.high %v9066_v41, %v9066_v41  ;;  %v9067_v23 = vcombine.low %v9066_v41, %v9066_v41 }
0x16b7   :  { %v6335_v11 = vmax.f32 %v6334_v8, 0.0 }
0x16b9   :  { %v6336_v26 = vpack.c.bf16 %v6335_v11, %v6335_v11  ;;  %v9099_v11 = vcombine.low %v9098_v52, %v9098_v52  ;;  %v9146_v52 = vld [vmem:[%s14519_s3 + $0xb0] sm:$0xff] }
0x16bb   :  { %9913 = vmatmul.mubr.bf16.vlgmr.msra.gmra.mrb[196].mxu1 %v6336_v26  ;;  %v9107_v26 = vcombine.low %v9106_v9, %v9106_v9 }
0x16bc   :  { %6506 = vmatpush1.bf16.msra.mxu1 %v13597_v16  ;;  %9061 = vmatprep.mubr.msk.bf16.mxu1 %vm126_vm0, %v9060_v22  ;;  %v9108_v22 = vcombine.high %v9106_v9, %v9106_v9  ;;  %v10434_v9 = vld [vmem:[%s14520_s6 + $0x5a8] sm:$0xff]  }
0x16bd   :  { %6507 = vmatprep.subr.bf16.mxu1 %v10554_v0 }
0x16c0   :  { %6508 = vmatpush1.bf16.msra.mxu1 %v13605_v17 }
0x16c1   :  { %6509 = vmatprep.subr.bf16.mxu1 %v10554_v0 }
0x16c4   :  { %6510 = vmatpush1.bf16.msra.mxu1 %v13612_v18 }
0x16c5   :  { %6511 = vmatprep.subr.bf16.mxu1 %v10554_v0 }
0x16c8   :  { %6512 = vmatpush1.bf16.msra.mxu1 %v13619_v19 }
0x16c9   :  { %6513 = vmatprep.subr.bf16.mxu1 %v10554_v0 }
0x16cc   :  { %6514 = vmatpush1.bf16.msra.mxu1 %v13626_v20 }
0x16cd   :  { %6515 = vmatprep.subr.bf16.mxu1 %v10554_v0 }
0x16d0   :  { %6516 = vmatpush1.bf16.msra.mxu1 %v13633_v21 }
0x16d1   :  { %6517 = vmatprep.subr.bf16.mxu1 %v10554_v0 }
0x16d4   :  { %6518 = vmatpush1.bf16.msra.mxu1 %v13640_v38 }
0x16d5   :  { %6519 = vmatprep.subr.bf16.mxu1 %v10554_v0 }
0x16d8   :  { %6520 = vmatpush1.bf16.msra.mxu1 %v13647_v39  ;;  %v13817_v36 = vpop.f32.mrb[200].mxu0 }
0x16d9   :  { %6521 = vmatprep.subr.bf16.mxu1 %v10554_v0  ;;  %v6490_v10 = vpop.f32.mrb[201].mxu0 }
0x16da   :  { %v6491_v13 = vpop.f32.mrb[202].mxu0  ;;  %v10414_v10 = vld [vmem:[%s14520_s6 + $0x548] sm:$0xff]  }
0x16db   :  { %v6492_v14 = vpop.f32.mrb[203].mxu0  ;;  %v10415_v13 = vld [vmem:[%s14520_s6 + $0x550] sm:$0xff]  }
0x16dc   :  { %6522 = vmatpush1.bf16.msra.mxu1 %v13654_v40  ;;  %v10416_v14 = vld [vmem:[%s14520_s6 + $0x558] sm:$0xff]  }
0x16dd   :  { %6523 = vmatprep.subr.bf16.mxu1 %v10554_v0 }
0x16e0   :  { %6524 = vmatpush1.bf16.msra.mxu1 %v10716_v15 }
0x16e1   :  { %6608 = vmatprep.subr.bf16.mxu1 %v10554_v0 }
0x16e3   :  { %6538 = vmatmul.mubr.bf16.vlgmr.msra.gmra.mrb[200].mxu1 %v9059_v25 }
0x16e4   :  { %6609 = vmatpush1.bf16.msra.mxu1 %v13597_v16  ;;  %9069 = vmatprep.mubr.msk.bf16.mxu1 %vm126_vm0, %v9068_v33 }
0x16e5   :  { %6610 = vmatprep.subr.bf16.mxu1 %v10554_v0 }
0x16e8   :  { %6611 = vmatpush1.bf16.msra.mxu1 %v13605_v17 }
0x16e9   :  { %6612 = vmatprep.subr.bf16.mxu1 %v10554_v0 }
0x16ec   :  { %6613 = vmatpush1.bf16.msra.mxu1 %v13612_v18 }
0x16ed   :  { %6614 = vmatprep.subr.bf16.mxu1 %v10554_v0 }
0x16f0   :  { %6615 = vmatpush1.bf16.msra.mxu1 %v13619_v19 }
0x16f1   :  { %6616 = vmatprep.subr.bf16.mxu1 %v10554_v0 }
0x16f4   :  { %6617 = vmatpush1.bf16.msra.mxu1 %v13626_v20 }
0x16f5   :  { %6618 = vmatprep.subr.bf16.mxu1 %v10554_v0 }
0x16f8   :  { %6619 = vmatpush1.bf16.msra.mxu1 %v13633_v21 }
0x16f9   :  { %6620 = vmatprep.subr.bf16.mxu1 %v10554_v0 }
0x16fc   :  { %6621 = vmatpush1.bf16.msra.mxu1 %v13640_v38 }
0x16fd   :  { %6622 = vmatprep.subr.bf16.mxu1 %v10554_v0 }
0x1700   :  { %6623 = vmatpush1.bf16.msra.mxu1 %v13647_v39 }
0x1701   :  { %6624 = vmatprep.subr.bf16.mxu1 %v10554_v0 }
0x1704   :  { %6625 = vmatpush1.bf16.msra.mxu1 %v13654_v40 }
0x1705   :  { %6626 = vmatprep.subr.bf16.mxu1 %v10554_v0 }
0x1708   :  { %6627 = vmatpush1.bf16.msra.mxu1 %v10716_v15 }
0x1709   :  { %6770 = vmatprep.subr.bf16.mxu1 %v10554_v0 }
0x170b   :  { %6641 = vmatmul.mubr.bf16.vlgmr.msra.gmra.mrb[204].mxu1 %v9067_v23 }
0x170c   :  { %6771 = vmatpush1.bf16.msra.mxu1 %v13597_v16  ;;  %9097 = vmatprep.mubr.msk.bf16.mxu1 %vm126_vm0, %v9096_v35 }
0x170d   :  { %6772 = vmatprep.subr.bf16.mxu1 %v10554_v0 }
0x1710   :  { %6773 = vmatpush1.bf16.msra.mxu1 %v13605_v17 }
0x1711   :  { %6774 = vmatprep.subr.bf16.mxu1 %v10554_v0 }
0x1714   :  { %6775 = vmatpush1.bf16.msra.mxu1 %v13612_v18 }
0x1715   :  { %6776 = vmatprep.subr.bf16.mxu1 %v10554_v0 }
0x1718   :  { %6777 = vmatpush1.bf16.msra.mxu1 %v13619_v19 }
0x1719   :  { %6778 = vmatprep.subr.bf16.mxu1 %v10554_v0 }
0x171c   :  { %6779 = vmatpush1.bf16.msra.mxu1 %v13626_v20 }
0x171d   :  { %6780 = vmatprep.subr.bf16.mxu1 %v10554_v0 }
0x1720   :  { %6781 = vmatpush1.bf16.msra.mxu1 %v13633_v21 }
0x1721   :  { %6782 = vmatprep.subr.bf16.mxu1 %v10554_v0 }
0x1724   :  { %6783 = vmatpush1.bf16.msra.mxu1 %v13640_v38 }
0x1725   :  { %6784 = vmatprep.subr.bf16.mxu1 %v10554_v0 }
0x1728   :  { %6785 = vmatpush1.bf16.msra.mxu1 %v13647_v39 }
0x1729   :  { %6786 = vmatprep.subr.bf16.mxu1 %v10554_v0 }
0x172c   :  { %6787 = vmatpush1.bf16.msra.mxu1 %v13654_v40 }
0x172d   :  { %6788 = vmatprep.subr.bf16.mxu1 %v10554_v0 }
0x1730   :  { %6789 = vmatpush1.bf16.msra.mxu1 %v10716_v15 }
0x1731   :  { %6873 = vmatprep.subr.bf16.mxu1 %v10554_v0 }
0x1733   :  { %6803 = vmatmul.mubr.bf16.vlgmr.msra.gmra.mrb[208].mxu1 %v9095_v46 }
0x1734   :  { %6874 = vmatpush1.bf16.msra.mxu1 %v13597_v16 }
0x1735   :  { %6875 = vmatprep.subr.bf16.mxu1 %v10554_v0 }
0x1738   :  { %v6591_v28 = vpop.f32.mrb[204].mxu0  ;;  %6876 = vmatpush1.bf16.msra.mxu1 %v13605_v17 }
0x1739   :  { %v6593_v29 = vpop.f32.mrb[205].mxu0  ;;  %6877 = vmatprep.subr.bf16.mxu1 %v10554_v0 }
0x173a   :  { %v6594_v30 = vpop.f32.mrb[206].mxu0  ;;  %v10420_v29 = vld [vmem:[%s14520_s6 + $0x578] sm:$0xff]  }
0x173b   :  { %v6595_v49 = vpop.f32.mrb[207].mxu0  ;;  %v9134_v30 = vld [vmem:[%s14516_s0 + $0xb0] sm:$0xff] }
0x173c   :  { %6878 = vmatpush1.bf16.msra.mxu1 %v13612_v18  ;;  %v9136_v49 = vcombine.high %v9134_v30, %v9134_v30  ;;  %v9135_v31 = vcombine.low %v9134_v30, %v9134_v30  ;;  %v14177_v30 = vld [vmem:[%s14515_s4 + $0x28] sm:$0xff]  }
0x173d   :  { %6879 = vmatprep.subr.bf16.mxu1 %v10554_v0 }
0x1740   :  { %6880 = vmatpush1.bf16.msra.mxu1 %v13619_v19 }
0x1741   :  { %6881 = vmatprep.subr.bf16.mxu1 %v10554_v0 }
0x1744   :  { %6882 = vmatpush1.bf16.msra.mxu1 %v13626_v20 }
0x1745   :  { %6883 = vmatprep.subr.bf16.mxu1 %v10554_v0 }
0x1748   :  { %6884 = vmatpush1.bf16.msra.mxu1 %v13633_v21 }
0x1749   :  { %6885 = vmatprep.subr.bf16.mxu1 %v10554_v0 }
0x174c   :  { %6886 = vmatpush1.bf16.msra.mxu1 %v13640_v38 }
0x174d   :  { %6887 = vmatprep.subr.bf16.mxu1 %v10554_v0 }
0x1750   :  { %6888 = vmatpush1.bf16.msra.mxu1 %v13647_v39 }
0x1751   :  { %6889 = vmatprep.subr.bf16.mxu1 %v10554_v0 }
0x1754   :  { %6890 = vmatpush1.bf16.msra.mxu1 %v13654_v40 }
0x1755   :  { %6891 = vmatprep.subr.bf16.mxu1 %v10554_v0 }
0x1758   :  { %6892 = vmatpush1.bf16.msra.mxu1 %v10716_v15 }
0x1759   :  { %9936 = vmatprep.subr.bf16.mxu1 %v10555_v37 }
0x178e   :  { %v6436_v47 = vpop.f32.mrb[196].mxu1 }
0x178f   :  { %v13856_v48 = vadd.f32 %v6436_v47, %v13719_v57  ;;  %v9914_v4 = vpop.f32.mrb[197].mxu1  ;;  %v9104_v57 = vcombine.high %v9102_v56, %v9102_v56 }
0x1790   :  { %v6439_v54 = vpop.f32.mrb[198].mxu1 }
0x1791   :  { %v9915_v55 = vpop.f32.mrb[199].mxu1  ;;  %9105 = vmatprep.mubr.msk.bf16.mxu1 %vm126_vm0, %v9104_v57 }
0x1792   :  { %6906 = vmatmul.mubr.bf16.vlgmr.msra.gmra.mrb[212].mxu1 %v9103_v58 }
0x1793   :  { %9952 = vmatprep.mubr.msk.bf16.mxu1 %vm10556_vm2, %v10555_v37 }
0x17b6   :  { %v6539_v59 = vpop.f32.mrb[200].mxu1 }
0x17b7   :  { %v6545_v12 = vmax.f32 %v13817_v36, %v6539_v59  ;;  %v6541_v5 = vpop.f32.mrb[201].mxu1  ;;  %v10413_v36 = vld [vmem:[%s14520_s6 + $0x540] sm:$0xff]  }
0x17b8   :  { %v6542_v6 = vpop.f32.mrb[202].mxu1  ;;  %9937 = vmatpush3.bf16.msra.mxu1 %v10413_v36 }
0x17b9   :  { %v6543_v51 = vpop.f32.mrb[203].mxu1  ;;  %9938 = vmatprep.subr.bf16.mxu1 %v10555_v37 }
0x17bc   :  { %9939 = vmatpush3.bf16.msra.mxu1 %v10414_v10 }
0x17bd   :  { %9940 = vmatprep.subr.bf16.mxu1 %v10555_v37 }
0x17c0   :  { %9941 = vmatpush3.bf16.msra.mxu1 %v10415_v13 }
0x17c1   :  { %9942 = vmatprep.subr.bf16.mxu1 %v10555_v37 }
0x17c4   :  { %9943 = vmatpush3.bf16.msra.mxu1 %v10416_v14 }
0x17c5   :  { %9944 = vmatprep.subr.bf16.mxu1 %v10555_v37 }
0x17c8   :  { %9945 = vmatpush3.bf16.msra.mxu1 %v10417_v42 }
0x17c9   :  { %9946 = vmatprep.subr.bf16.mxu1 %v10555_v37 }
0x17cc   :  { %9947 = vmatpush3.bf16.msra.mxu1 %v10418_v43 }
0x17cd   :  { %9948 = vmatprep.subr.bf16.mxu1 %v10555_v37 }
0x17de   :  { %v6642_v60 = vpop.f32.mrb[204].mxu1 }
0x17df   :  { %v6648_v61 = vmax.f32 %v6591_v28, %v6642_v60  ;;  %v6644_v62 = vpop.f32.mrb[205].mxu1  ;;  %v10419_v28 = vld [vmem:[%s14520_s6 + $0x570] sm:$0xff]  }
0x17e0   :  { %v6645_v63 = vpop.f32.mrb[206].mxu1  ;;  %9949 = vmatpush3.bf16.msra.mxu1 %v10419_v28  ;;  %v14163_v28 = vld [vmem:[%s14515_s4 + $0x18] sm:$0xff]  }
0x17e1   :  { %v6649_v1 = vmax.f32 %v6545_v12, %v6648_v61  ;;  %v6646_v2 = vpop.f32.mrb[207].mxu1  ;;  %9950 = vmatprep.subr.bf16.mxu1 %v10555_v37  ;;  %v9138_v63 = vld [vmem:[%s14517_s1 + $0xb0] sm:$0xff] }
0x17e2   :  { %v9140_v2 = vcombine.high %v9138_v63, %v9138_v63 }
0x17e3   :  { %v6650_v50 = vadd.f32 %v13888_v3, %v6649_v1 }
0x17e4   :  { %9951 = vmatpush3.bf16.msra.mxu1 %v10420_v29  ;;  %v14170_v29 = vld [vmem:[%s14515_s4 + $0x20] sm:$0xff]  }
0x17e5   :  { %v6651_v53 = vmax.f32 %v6650_v50, 0.0  ;;  %7137 = vmatprep.subr.bf16.mxu1 %v10554_v0 }
0x17e7   :  { %v6652_v8 = vpack.c.bf16 %v6651_v53, %v6651_v53  ;;  %v9139_v53 = vcombine.low %v9138_v63, %v9138_v63  ;;  %v9186_v63 = vld [vmem:[%s14519_s3 + $0xb8] sm:$0xff] }
0x17e9   :  { %9933 = vmatmul.mubr.bf16.vlgmr.msra.gmra.mrb[208].mxu0 %v6652_v8  ;;  %v9147_v8 = vcombine.low %v9146_v52, %v9146_v52 }
0x17ea   :  { %6822 = vmatpush1.bf16.msra.mxu0 %v13597_v16  ;;  %9101 = vmatprep.mubr.msk.bf16.mxu0 %vm126_vm0, %v9100_v7  ;;  %v9148_v7 = vcombine.high %v9146_v52, %v9146_v52 }
0x17eb   :  { %6823 = vmatprep.subr.bf16.mxu0 %v10554_v0 }
0x17ee   :  { %6824 = vmatpush1.bf16.msra.mxu0 %v13605_v17 }
0x17ef   :  { %6825 = vmatprep.subr.bf16.mxu0 %v10554_v0 }
0x17f2   :  { %6826 = vmatpush1.bf16.msra.mxu0 %v13612_v18 }
0x17f3   :  { %6827 = vmatprep.subr.bf16.mxu0 %v10554_v0 }
0x17f6   :  { %6828 = vmatpush1.bf16.msra.mxu0 %v13619_v19 }
0x17f7   :  { %6829 = vmatprep.subr.bf16.mxu0 %v10554_v0 }
0x17fa   :  { %6830 = vmatpush1.bf16.msra.mxu0 %v13626_v20 }
0x17fb   :  { %6831 = vmatprep.subr.bf16.mxu0 %v10554_v0 }
0x17fe   :  { %6832 = vmatpush1.bf16.msra.mxu0 %v13633_v21 }
0x17ff   :  { %6833 = vmatprep.subr.bf16.mxu0 %v10554_v0 }
0x1802   :  { %6834 = vmatpush1.bf16.msra.mxu0 %v13640_v38 }
0x1803   :  { %6835 = vmatprep.subr.bf16.mxu0 %v10554_v0 }
0x1806   :  { %6836 = vmatpush1.bf16.msra.mxu0 %v13647_v39  ;;  %v13959_v41 = vpop.f32.mrb[208].mxu1 }
0x1807   :  { %6837 = vmatprep.subr.bf16.mxu0 %v10554_v0  ;;  %v6806_v25 = vpop.f32.mrb[209].mxu1 }
0x1808   :  { %v6807_v33 = vpop.f32.mrb[210].mxu1  ;;  %v10435_v25 = vld [vmem:[%s14520_s6 + $0x5b0] sm:$0xff]  }
0x1809   :  { %v6808_v23 = vpop.f32.mrb[211].mxu1  ;;  %v10436_v33 = vld [vmem:[%s14520_s6 + $0x5b8] sm:$0xff]  }
0x180a   :  { %6838 = vmatpush1.bf16.msra.mxu0 %v13654_v40  ;;  %v9174_v23 = vld [vmem:[%s14516_s0 + $0xb8] sm:$0xff] }
0x180b   :  { %6839 = vmatprep.subr.bf16.mxu0 %v10554_v0  ;;  %v9176_v36 = vcombine.high %v9174_v23, %v9174_v23  ;;  %v9175_v10 = vcombine.low %v9174_v23, %v9174_v23 }
0x180e   :  { %6840 = vmatpush1.bf16.msra.mxu0 %v10716_v15 }
0x180f   :  { %6924 = vmatprep.subr.bf16.mxu0 %v10554_v0 }
0x1811   :  { %6854 = vmatmul.mubr.bf16.vlgmr.msra.gmra.mrb[212].mxu0 %v9099_v11 }
0x1812   :  { %6925 = vmatpush1.bf16.msra.mxu0 %v13597_v16  ;;  %9109 = vmatprep.mubr.msk.bf16.mxu0 %vm126_vm0, %v9108_v22 }
0x1813   :  { %6926 = vmatprep.subr.bf16.mxu0 %v10554_v0 }
0x1816   :  { %6927 = vmatpush1.bf16.msra.mxu0 %v13605_v17 }
0x1817   :  { %6928 = vmatprep.subr.bf16.mxu0 %v10554_v0 }
0x181a   :  { %6929 = vmatpush1.bf16.msra.mxu0 %v13612_v18 }
0x181b   :  { %6930 = vmatprep.subr.bf16.mxu0 %v10554_v0 }
0x181e   :  { %6931 = vmatpush1.bf16.msra.mxu0 %v13619_v19 }
0x181f   :  { %6932 = vmatprep.subr.bf16.mxu0 %v10554_v0 }
0x1822   :  { %6933 = vmatpush1.bf16.msra.mxu0 %v13626_v20 }
0x1823   :  { %6934 = vmatprep.subr.bf16.mxu0 %v10554_v0 }
0x1826   :  { %6935 = vmatpush1.bf16.msra.mxu0 %v13633_v21 }
0x1827   :  { %6936 = vmatprep.subr.bf16.mxu0 %v10554_v0 }
0x182a   :  { %6937 = vmatpush1.bf16.msra.mxu0 %v13640_v38 }
0x182b   :  { %6938 = vmatprep.subr.bf16.mxu0 %v10554_v0 }
0x182e   :  { %6939 = vmatpush1.bf16.msra.mxu0 %v13647_v39 }
0x182f   :  { %6940 = vmatprep.subr.bf16.mxu0 %v10554_v0 }
0x1832   :  { %6941 = vmatpush1.bf16.msra.mxu0 %v13654_v40 }
0x1833   :  { %6942 = vmatprep.subr.bf16.mxu0 %v10554_v0 }
0x1836   :  { %6943 = vmatpush1.bf16.msra.mxu0 %v10716_v15 }
0x1837   :  { %7086 = vmatprep.subr.bf16.mxu0 %v10554_v0 }
0x1839   :  { %6957 = vmatmul.mubr.bf16.vlgmr.msra.gmra.mrb[216].mxu0 %v9107_v26 }
0x183a   :  { %7087 = vmatpush1.bf16.msra.mxu0 %v13597_v16  ;;  %9137 = vmatprep.mubr.msk.bf16.mxu0 %vm126_vm0, %v9136_v49  ;;  %v14184_v49 = vld [vmem:[%s14515_s4 + $0x30] sm:$0xff]  }
0x183b   :  { %7088 = vmatprep.subr.bf16.mxu0 %v10554_v0 }
0x183e   :  { %7089 = vmatpush1.bf16.msra.mxu0 %v13605_v17 }
0x183f   :  { %7090 = vmatprep.subr.bf16.mxu0 %v10554_v0 }
0x1842   :  { %7091 = vmatpush1.bf16.msra.mxu0 %v13612_v18 }
0x1843   :  { %7092 = vmatprep.subr.bf16.mxu0 %v10554_v0 }
0x1846   :  { %7093 = vmatpush1.bf16.msra.mxu0 %v13619_v19 }
0x1847   :  { %7094 = vmatprep.subr.bf16.mxu0 %v10554_v0 }
0x184a   :  { %7095 = vmatpush1.bf16.msra.mxu0 %v13626_v20 }
0x184b   :  { %7096 = vmatprep.subr.bf16.mxu0 %v10554_v0 }
0x184e   :  { %7097 = vmatpush1.bf16.msra.mxu0 %v13633_v21 }
0x184f   :  { %7098 = vmatprep.subr.bf16.mxu0 %v10554_v0 }
0x1852   :  { %7099 = vmatpush1.bf16.msra.mxu0 %v13640_v38 }
0x1853   :  { %7100 = vmatprep.subr.bf16.mxu0 %v10554_v0 }
0x1856   :  { %7101 = vmatpush1.bf16.msra.mxu0 %v13647_v39 }
0x1857   :  { %7102 = vmatprep.subr.bf16.mxu0 %v10554_v0 }
0x185a   :  { %7103 = vmatpush1.bf16.msra.mxu0 %v13654_v40 }
0x185b   :  { %7104 = vmatprep.subr.bf16.mxu0 %v10554_v0 }
0x185e   :  { %7105 = vmatpush1.bf16.msra.mxu0 %v10716_v15 }
0x185f   :  { %7189 = vmatprep.subr.bf16.mxu0 %v10554_v0 }
0x1861   :  { %7119 = vmatmul.mubr.bf16.vlgmr.msra.gmra.mrb[220].mxu0 %v9135_v31  ;;  %v14191_v31 = vld [vmem:[%s14515_s4 + $0x38] sm:$0xff]  }
0x1862   :  { %7190 = vmatpush1.bf16.msra.mxu0 %v13597_v16 }
0x1863   :  { %7191 = vmatprep.subr.bf16.mxu0 %v10554_v0 }
0x1865   :  { %v6907_v44 = vpop.f32.mrb[212].mxu1 }
0x1866   :  { %v6909_v45 = vpop.f32.mrb[213].mxu1  ;;  %7192 = vmatpush1.bf16.msra.mxu0 %v13605_v17 }
0x1867   :  { %v6910_v24 = vpop.f32.mrb[214].mxu1  ;;  %7193 = vmatprep.subr.bf16.mxu0 %v10554_v0 }
0x1868   :  { %v6911_v27 = vpop.f32.mrb[215].mxu1  ;;  %v14149_v24 = vld [vmem:[%s14515_s4 + $0x8] sm:$0xff]  }
0x1869   :  { %v14156_v27 = vld [vmem:[%s14515_s4 + $0x10] sm:$0xff]  }
0x186a   :  { %7194 = vmatpush1.bf16.msra.mxu0 %v13612_v18 }
0x186b   :  { %7195 = vmatprep.subr.bf16.mxu0 %v10554_v0 }
0x186e   :  { %7196 = vmatpush1.bf16.msra.mxu0 %v13619_v19 }
0x186f   :  { %7197 = vmatprep.subr.bf16.mxu0 %v10554_v0 }
0x1872   :  { %7198 = vmatpush1.bf16.msra.mxu0 %v13626_v20 }
0x1873   :  { %7199 = vmatprep.subr.bf16.mxu0 %v10554_v0 }
0x1876   :  { %7200 = vmatpush1.bf16.msra.mxu0 %v13633_v21 }
0x1877   :  { %7201 = vmatprep.subr.bf16.mxu0 %v10554_v0 }
0x187a   :  { %7202 = vmatpush1.bf16.msra.mxu0 %v13640_v38 }
0x187b   :  { %7203 = vmatprep.subr.bf16.mxu0 %v10554_v0 }
0x187e   :  { %7204 = vmatpush1.bf16.msra.mxu0 %v13647_v39 }
0x187f   :  { %7205 = vmatprep.subr.bf16.mxu0 %v10554_v0 }
0x1882   :  { %7206 = vmatpush1.bf16.msra.mxu0 %v13654_v40 }
0x1883   :  { %7207 = vmatprep.subr.bf16.mxu0 %v10554_v0 }
0x1886   :  { %7208 = vmatpush1.bf16.msra.mxu0 %v10716_v15 }
0x1887   :  { %9956 = vmatprep.subr.bf16.mxu0 %v10555_v37 }
0x18bc   :  { %v6752_v32 = vpop.f32.mrb[208].mxu0 }
0x18bd   :  { %v13998_v34 = vadd.f32 %v6752_v32, %v13856_v48  ;;  %v9934_v35 = vpop.f32.mrb[209].mxu0  ;;  %v9142_v48 = vld [vmem:[%s14518_s2 + $0xb0] sm:$0xff]  ;;  %v14198_v32 = vld [vmem:[%s14515_s4 + $0x40] sm:$0xff]  }
0x18be   :  { %v6755_v46 = vpop.f32.mrb[210].mxu0  ;;  %v9144_v4 = vcombine.high %v9142_v48, %v9142_v48  ;;  %v9143_v54 = vcombine.low %v9142_v48, %v9142_v48 }
0x18bf   :  { %v9935_v47 = vpop.f32.mrb[211].mxu0 }
0x18c0   :  { %9145 = vmatprep.mubr.msk.bf16.mxu0 %vm126_vm0, %v9144_v4 }
0x18c1   :  { %7222 = vmatmul.mubr.bf16.vlgmr.msra.gmra.mrb[224].mxu0 %v9143_v54 }
0x18c2   :  { %9972 = vmatprep.mubr.msk.bf16.mxu0 %vm10556_vm2, %v10555_v37 }
0x18e4   :  { %v6855_v55 = vpop.f32.mrb[212].mxu0 }
0x18e5   :  { %v6861_v56 = vmax.f32 %v13959_v41, %v6855_v55  ;;  %v6857_v57 = vpop.f32.mrb[213].mxu0 }
0x18e6   :  { %v6858_v58 = vpop.f32.mrb[214].mxu0 }
0x18e7   :  { %v6859_v59 = vpop.f32.mrb[215].mxu0 }
0x190c   :  { %v6958_v12 = vpop.f32.mrb[216].mxu0 }
0x190d   :  { %v6964_v5 = vmax.f32 %v6907_v44, %v6958_v12  ;;  %v6960_v6 = vpop.f32.mrb[217].mxu0  ;;  %v14142_v44 = vld [vmem:[%s14515_s4] sm:$0xff]  }
0x190e   :  { %v6961_v51 = vpop.f32.mrb[218].mxu0 }
0x190f   :  { %v6965_v60 = vmax.f32 %v6861_v56, %v6964_v5  ;;  %v6962_v61 = vpop.f32.mrb[219].mxu0  ;;  %v9178_v51 = vld [vmem:[%s14517_s1 + $0xb8] sm:$0xff] }
0x1910   :  { %v9180_v61 = vcombine.high %v9178_v51, %v9178_v51 }
0x1911   :  { %v6966_v62 = vadd.f32 %v13888_v3, %v6965_v60 }
0x1913   :  { %v6967_v1 = vmax.f32 %v6966_v62, 0.0 }
0x1915   :  { %v6968_v50 = vpack.c.bf16 %v6967_v1, %v6967_v1  ;;  %v9179_v1 = vcombine.low %v9178_v51, %v9178_v51 }
0x1917   :  { %9953 = vmatmul.mubr.bf16.vlgmr.msra.gmra.mrb[216].mxu1 %v6968_v50  ;;  %v9187_v50 = vcombine.low %v9186_v63, %v9186_v63 }
0x1918   :  { %7138 = vmatpush1.bf16.msra.mxu1 %v13597_v16  ;;  %9141 = vmatprep.mubr.msk.bf16.mxu1 %vm126_vm0, %v9140_v2  ;;  %v9188_v2 = vcombine.high %v9186_v63, %v9186_v63 }
0x1919   :  { %7139 = vmatprep.subr.bf16.mxu1 %v10554_v0 }
0x191c   :  { %7140 = vmatpush1.bf16.msra.mxu1 %v13605_v17 }
0x191d   :  { %7141 = vmatprep.subr.bf16.mxu1 %v10554_v0 }
0x1920   :  { %7142 = vmatpush1.bf16.msra.mxu1 %v13612_v18 }
0x1921   :  { %7143 = vmatprep.subr.bf16.mxu1 %v10554_v0 }
0x1924   :  { %7144 = vmatpush1.bf16.msra.mxu1 %v13619_v19 }
0x1925   :  { %7145 = vmatprep.subr.bf16.mxu1 %v10554_v0 }
0x1928   :  { %7146 = vmatpush1.bf16.msra.mxu1 %v13626_v20 }
0x1929   :  { %7147 = vmatprep.subr.bf16.mxu1 %v10554_v0 }
0x192c   :  { %7148 = vmatpush1.bf16.msra.mxu1 %v13633_v21 }
0x192d   :  { %7149 = vmatprep.subr.bf16.mxu1 %v10554_v0 }
0x1930   :  { %7150 = vmatpush1.bf16.msra.mxu1 %v13640_v38 }
0x1931   :  { %7151 = vmatprep.subr.bf16.mxu1 %v10554_v0 }
0x1934   :  { %7152 = vmatpush1.bf16.msra.mxu1 %v13647_v39 }
0x1935   :  { %7153 = vmatprep.subr.bf16.mxu1 %v10554_v0 }
0x1938   :  { %7154 = vmatpush1.bf16.msra.mxu1 %v13654_v40 }
0x1939   :  { %7155 = vmatprep.subr.bf16.mxu1 %v10554_v0 }
0x193c   :  { %7156 = vmatpush1.bf16.msra.mxu1 %v10716_v15 }
0x193d   :  { %7240 = vmatprep.subr.bf16.mxu1 %v10554_v0 }
0x193f   :  { %7170 = vmatmul.mubr.bf16.vlgmr.msra.gmra.mrb[220].mxu1 %v9139_v53 }
0x1940   :  { %7241 = vmatpush1.bf16.msra.mxu1 %v13597_v16  ;;  %9149 = vmatprep.mubr.msk.bf16.mxu1 %vm126_vm0, %v9148_v7 }
0x1941   :  { %7242 = vmatprep.subr.bf16.mxu1 %v10554_v0 }
0x1944   :  { %7243 = vmatpush1.bf16.msra.mxu1 %v13605_v17 }
0x1945   :  { %7244 = vmatprep.subr.bf16.mxu1 %v10554_v0 }
0x1948   :  { %7245 = vmatpush1.bf16.msra.mxu1 %v13612_v18 }
0x1949   :  { %7246 = vmatprep.subr.bf16.mxu1 %v10554_v0 }
0x194c   :  { %7247 = vmatpush1.bf16.msra.mxu1 %v13619_v19 }
0x194d   :  { %7248 = vmatprep.subr.bf16.mxu1 %v10554_v0 }
0x1950   :  { %7249 = vmatpush1.bf16.msra.mxu1 %v13626_v20 }
0x1951   :  { %7250 = vmatprep.subr.bf16.mxu1 %v10554_v0 }
0x1954   :  { %7251 = vmatpush1.bf16.msra.mxu1 %v13633_v21 }
0x1955   :  { %7252 = vmatprep.subr.bf16.mxu1 %v10554_v0 }
0x1958   :  { %7253 = vmatpush1.bf16.msra.mxu1 %v13640_v38 }
0x1959   :  { %7254 = vmatprep.subr.bf16.mxu1 %v10554_v0 }
0x195c   :  { %7255 = vmatpush1.bf16.msra.mxu1 %v13647_v39 }
0x195d   :  { %7256 = vmatprep.subr.bf16.mxu1 %v10554_v0 }
0x1960   :  { %7257 = vmatpush1.bf16.msra.mxu1 %v13654_v40 }
0x1961   :  { %7258 = vmatprep.subr.bf16.mxu1 %v10554_v0 }
0x1964   :  { %7259 = vmatpush1.bf16.msra.mxu1 %v10716_v15 }
0x1965   :  { %7402 = vmatprep.subr.bf16.mxu1 %v10554_v0 }
0x1967   :  { %7273 = vmatmul.mubr.bf16.vlgmr.msra.gmra.mrb[224].mxu1 %v9147_v8 }
0x1968   :  { %7403 = vmatpush1.bf16.msra.mxu1 %v13597_v16  ;;  %v14096_v16 = vpop.f32.mrb[220].mxu0  ;;  %9177 = vmatprep.mubr.msk.bf16.mxu1 %vm126_vm0, %v9176_v36 }
0x1969   :  { %7404 = vmatprep.subr.bf16.mxu1 %v10554_v0 }
0x196c   :  { %7405 = vmatpush1.bf16.msra.mxu1 %v13605_v17  ;;  %v7122_v17 = vpop.f32.mrb[221].mxu0 }
0x196d   :  { %7406 = vmatprep.subr.bf16.mxu1 %v10554_v0  ;;  %v10446_v17 = vld [vmem:[%s14520_s6 + $0x5c8] sm:$0xff]  }
0x1970   :  { %7407 = vmatpush1.bf16.msra.mxu1 %v13612_v18  ;;  %v7123_v18 = vpop.f32.mrb[222].mxu0 }
0x1971   :  { %7408 = vmatprep.subr.bf16.mxu1 %v10554_v0  ;;  %v10447_v18 = vld [vmem:[%s14520_s6 + $0x5d0] sm:$0xff]  }
0x1974   :  { %7409 = vmatpush1.bf16.msra.mxu1 %v13619_v19  ;;  %v7124_v19 = vpop.f32.mrb[223].mxu0 }
0x1975   :  { %7410 = vmatprep.subr.bf16.mxu1 %v10554_v0  ;;  %v10448_v19 = vld [vmem:[%s14520_s6 + $0x5d8] sm:$0xff]  }
0x1978   :  { %7411 = vmatpush1.bf16.msra.mxu1 %v13626_v20  ;;  %v10429_v20 = vld [vmem:[%s14520_s6 + $0x580] sm:$0xff]  }
0x1979   :  { %7412 = vmatprep.subr.bf16.mxu1 %v10554_v0  ;;  %9957 = vmatpush3.bf16.msra.mxu0 %v10429_v20  ;;  %v10449_v20 = vld [vmem:[%s14520_s6 + $0x5e0] sm:$0xff]  }
0x197a   :  { %9958 = vmatprep.subr.bf16.mxu0 %v10555_v37 }
0x197c   :  { %7413 = vmatpush1.bf16.msra.mxu1 %v13633_v21  ;;  %v10430_v21 = vld [vmem:[%s14520_s6 + $0x588] sm:$0xff]  }
0x197d   :  { %7414 = vmatprep.subr.bf16.mxu1 %v10554_v0  ;;  %9959 = vmatpush3.bf16.msra.mxu0 %v10430_v21  ;;  %v10450_v21 = vld [vmem:[%s14520_s6 + $0x5e8] sm:$0xff]  }
0x197e   :  { %9960 = vmatprep.subr.bf16.mxu0 %v10555_v37 }
0x1980   :  { %7415 = vmatpush1.bf16.msra.mxu1 %v13640_v38  ;;  %v10431_v38 = vld [vmem:[%s14520_s6 + $0x590] sm:$0xff]  }
0x1981   :  { %7416 = vmatprep.subr.bf16.mxu1 %v10554_v0  ;;  %9961 = vmatpush3.bf16.msra.mxu0 %v10431_v38 }
0x1982   :  { %9962 = vmatprep.subr.bf16.mxu0 %v10555_v37 }
0x1984   :  { %7417 = vmatpush1.bf16.msra.mxu1 %v13647_v39  ;;  %v10432_v39 = vld [vmem:[%s14520_s6 + $0x598] sm:$0xff]  }
0x1985   :  { %7418 = vmatprep.subr.bf16.mxu1 %v10554_v0  ;;  %9963 = vmatpush3.bf16.msra.mxu0 %v10432_v39 }
0x1986   :  { %9964 = vmatprep.subr.bf16.mxu0 %v10555_v37 }
0x1988   :  { %7419 = vmatpush1.bf16.msra.mxu1 %v13654_v40  ;;  %v10433_v40 = vld [vmem:[%s14520_s6 + $0x5a0] sm:$0xff]  }
0x1989   :  { %7420 = vmatprep.subr.bf16.mxu1 %v10554_v0  ;;  %9965 = vmatpush3.bf16.msra.mxu0 %v10433_v40 }
0x198a   :  { %9966 = vmatprep.subr.bf16.mxu0 %v10555_v37 }
0x198c   :  { %7421 = vmatpush1.bf16.msra.mxu1 %v10716_v15 }
0x198d   :  { %7505 = vmatprep.subr.bf16.mxu1 %v10554_v0  ;;  %9967 = vmatpush3.bf16.msra.mxu0 %v10434_v9 }
0x198e   :  { %9968 = vmatprep.subr.bf16.mxu0 %v10555_v37 }
0x198f   :  { %7435 = vmatmul.mubr.bf16.vlgmr.msra.gmra.mrb[228].mxu1 %v9175_v10 }
0x1990   :  { %7506 = vmatpush1.bf16.msra.mxu1 %v14142_v44 }
0x1991   :  { %9969 = vmatpush3.bf16.msra.mxu0 %v10435_v25  ;;  %7507 = vmatprep.subr.bf16.mxu1 %v10554_v0 }
0x1992   :  { %9970 = vmatprep.subr.bf16.mxu0 %v10555_v37 }
0x1994   :  { %v14122_v11 = vpop.f32.mrb[224].mxu0  ;;  %7508 = vmatpush1.bf16.msra.mxu1 %v14149_v24 }
0x1995   :  { %v7225_v22 = vpop.f32.mrb[225].mxu0  ;;  %9971 = vmatpush3.bf16.msra.mxu0 %v10436_v33  ;;  %7509 = vmatprep.subr.bf16.mxu1 %v10554_v0 }
0x1996   :  { %v7226_v26 = vpop.f32.mrb[226].mxu0  ;;  %7453 = vmatprep.subr.bf16.mxu0 %v10554_v0  ;;  %v10452_v22 = vld [vmem:[%s14520_s6 + $0x5f8] sm:$0xff]  }
0x1997   :  { %v7227_v41 = vpop.f32.mrb[227].mxu0  ;;  %v9214_v26 = vld [vmem:[%s14516_s0 + $0xc0] sm:$0xff] }
0x1998   :  { %7510 = vmatpush1.bf16.msra.mxu1 %v14156_v27  ;;  %v9216_v41 = vcombine.high %v9214_v26, %v9214_v26  ;;  %v9215_v25 = vcombine.low %v9214_v26, %v9214_v26 }
0x1999   :  { %7511 = vmatprep.subr.bf16.mxu1 %v10554_v0 }
0x199c   :  { %7512 = vmatpush1.bf16.msra.mxu1 %v14163_v28 }
0x199d   :  { %7513 = vmatprep.subr.bf16.mxu1 %v10554_v0 }
0x19a0   :  { %7514 = vmatpush1.bf16.msra.mxu1 %v14170_v29 }
0x19a1   :  { %7515 = vmatprep.subr.bf16.mxu1 %v10554_v0 }
0x19a4   :  { %7516 = vmatpush1.bf16.msra.mxu1 %v14177_v30 }
0x19a5   :  { %7517 = vmatprep.subr.bf16.mxu1 %v10554_v0 }
0x19a8   :  { %7518 = vmatpush1.bf16.msra.mxu1 %v14184_v49 }
0x19a9   :  { %7519 = vmatprep.subr.bf16.mxu1 %v10554_v0 }
0x19ac   :  { %7520 = vmatpush1.bf16.msra.mxu1 %v14191_v31 }
0x19ad   :  { %7521 = vmatprep.subr.bf16.mxu1 %v10554_v0 }
0x19b0   :  { %7522 = vmatpush1.bf16.msra.mxu1 %v14198_v32 }
0x19b1   :  { %7523 = vmatprep.subr.bf16.mxu1 %v10554_v0 }
0x19b4   :  { %7524 = vmatpush1.bf16.msra.mxu1 %v10716_v15 }
0x19b5   :  { %9976 = vmatprep.subr.bf16.mxu1 %v10555_v37 }
0x19ea   :  { %v7068_v13 = vpop.f32.mrb[216].mxu1 }
0x19eb   :  { %v14137_v14 = vadd.f32 %v7068_v13, %v13998_v34  ;;  %v9954_v42 = vpop.f32.mrb[217].mxu1  ;;  %v9182_v34 = vld [vmem:[%s14518_s2 + $0xb8] sm:$0xff] }
0x19ec   :  { %v7071_v43 = vpop.f32.mrb[218].mxu1  ;;  %v9184_v35 = vcombine.high %v9182_v34, %v9182_v34  ;;  %v9183_v46 = vcombine.low %v9182_v34, %v9182_v34 }
0x19ed   :  { %v9955_v45 = vpop.f32.mrb[219].mxu1 }
0x19ee   :  { %9185 = vmatprep.mubr.msk.bf16.mxu1 %vm126_vm0, %v9184_v35 }
0x19ef   :  { %7538 = vmatmul.mubr.bf16.vlgmr.msra.gmra.mrb[232].mxu1 %v9183_v46 }
0x19f0   :  { %9992 = vmatprep.mubr.msk.bf16.mxu1 %vm10556_vm2, %v10555_v37 }
0x1a12   :  { %v7171_v47 = vpop.f32.mrb[220].mxu1 }
0x1a13   :  { %v7177_v48 = vmax.f32 %v14096_v16, %v7171_v47  ;;  %v7173_v4 = vpop.f32.mrb[221].mxu1  ;;  %v10445_v16 = vld [vmem:[%s14520_s6 + $0x5c0] sm:$0xff]  }
0x1a14   :  { %v7174_v54 = vpop.f32.mrb[222].mxu1  ;;  %9977 = vmatpush3.bf16.msra.mxu1 %v10445_v16  ;;  %v10473_v16 = vld [vmem:[%s14522_s8 + $0x20] sm:$0xff]  }
0x1a15   :  { %v7175_v55 = vpop.f32.mrb[223].mxu1  ;;  %9978 = vmatprep.subr.bf16.mxu1 %v10555_v37 }
0x1a18   :  { %9979 = vmatpush3.bf16.msra.mxu1 %v10446_v17  ;;  %v10474_v17 = vld [vmem:[%s14522_s8 + $0x28] sm:$0xff]  }
0x1a19   :  { %9980 = vmatprep.subr.bf16.mxu1 %v10555_v37 }
0x1a1c   :  { %9981 = vmatpush3.bf16.msra.mxu1 %v10447_v18 }
0x1a1d   :  { %9982 = vmatprep.subr.bf16.mxu1 %v10555_v37 }
0x1a20   :  { %9983 = vmatpush3.bf16.msra.mxu1 %v10448_v19 }
0x1a21   :  { %9984 = vmatprep.subr.bf16.mxu1 %v10555_v37 }
0x1a24   :  { %9985 = vmatpush3.bf16.msra.mxu1 %v10449_v20 }
0x1a25   :  { %9986 = vmatprep.subr.bf16.mxu1 %v10555_v37 }
0x1a28   :  { %9987 = vmatpush3.bf16.msra.mxu1 %v10450_v21 }
0x1a29   :  { %9988 = vmatprep.subr.bf16.mxu1 %v10555_v37 }
0x1a3a   :  { %v7274_v56 = vpop.f32.mrb[224].mxu1 }
0x1a3b   :  { %v7280_v57 = vmax.f32 %v14122_v11, %v7274_v56  ;;  %v7276_v58 = vpop.f32.mrb[225].mxu1  ;;  %v10451_v11 = vld [vmem:[%s14520_s6 + $0x5f0] sm:$0xff]  }
0x1a3c   :  { %v7277_v59 = vpop.f32.mrb[226].mxu1  ;;  %9989 = vmatpush3.bf16.msra.mxu1 %v10451_v11 }
0x1a3d   :  { %v7281_v12 = vmax.f32 %v7177_v48, %v7280_v57  ;;  %v7278_v5 = vpop.f32.mrb[227].mxu1  ;;  %9990 = vmatprep.subr.bf16.mxu1 %v10555_v37  ;;  %v9218_v59 = vld [vmem:[%s14517_s1 + $0xc0] sm:$0xff] }
0x1a3e   :  { %v9220_v5 = vcombine.high %v9218_v59, %v9218_v59  ;;  %v9219_v51 = vcombine.low %v9218_v59, %v9218_v59 }
0x1a3f   :  { %v7282_v6 = vadd.f32 %v13888_v3, %v7281_v12 }
0x1a40   :  { %9991 = vmatpush3.bf16.msra.mxu1 %v10452_v22 }
0x1a41   :  { %v7283_v60 = vmax.f32 %v7282_v6, 0.0  ;;  %7769 = vmatprep.subr.bf16.mxu1 %v10554_v0 }
0x1a43   :  { %v7284_v62 = vpack.c.bf16 %v7283_v60, %v7283_v60 }
0x1a45   :  { %9973 = vmatmul.mubr.bf16.vlgmr.msra.gmra.mrb[228].mxu0 %v7284_v62 }
0x1a46   :  { %7454 = vmatpush1.bf16.msra.mxu0 %v14142_v44  ;;  %9181 = vmatprep.mubr.msk.bf16.mxu0 %vm126_vm0, %v9180_v61  ;;  %v10466_v61 = vld [vmem:[%s14520_s6 + $0x628] sm:$0xff]  }
0x1a47   :  { %7455 = vmatprep.subr.bf16.mxu0 %v10554_v0 }
0x1a4a   :  { %7456 = vmatpush1.bf16.msra.mxu0 %v14149_v24 }
0x1a4b   :  { %7457 = vmatprep.subr.bf16.mxu0 %v10554_v0 }
0x1a4e   :  { %7458 = vmatpush1.bf16.msra.mxu0 %v14156_v27 }
0x1a4f   :  { %7459 = vmatprep.subr.bf16.mxu0 %v10554_v0 }
0x1a52   :  { %7460 = vmatpush1.bf16.msra.mxu0 %v14163_v28 }
0x1a53   :  { %7461 = vmatprep.subr.bf16.mxu0 %v10554_v0 }
0x1a56   :  { %7462 = vmatpush1.bf16.msra.mxu0 %v14170_v29 }
0x1a57   :  { %7463 = vmatprep.subr.bf16.mxu0 %v10554_v0 }
0x1a5a   :  { %7464 = vmatpush1.bf16.msra.mxu0 %v14177_v30 }
0x1a5b   :  { %7465 = vmatprep.subr.bf16.mxu0 %v10554_v0 }
0x1a5e   :  { %7466 = vmatpush1.bf16.msra.mxu0 %v14184_v49 }
0x1a5f   :  { %7467 = vmatprep.subr.bf16.mxu0 %v10554_v0 }
0x1a62   :  { %7468 = vmatpush1.bf16.msra.mxu0 %v14191_v31  ;;  %v14281_v52 = vpop.f32.mrb[228].mxu1 }
0x1a63   :  { %7469 = vmatprep.subr.bf16.mxu0 %v10554_v0  ;;  %v7438_v53 = vpop.f32.mrb[229].mxu1 }
0x1a64   :  { %v7439_v7 = vpop.f32.mrb[230].mxu1  ;;  %v10470_v53 = vld [vmem:[%s14522_s8 + $0x8] sm:$0xff]  }
0x1a65   :  { %v7440_v8 = vpop.f32.mrb[231].mxu1  ;;  %v10471_v7 = vld [vmem:[%s14522_s8 + $0x10] sm:$0xff]  }
0x1a66   :  { %7470 = vmatpush1.bf16.msra.mxu0 %v14198_v32  ;;  %v10472_v8 = vld [vmem:[%s14522_s8 + $0x18] sm:$0xff]  }
0x1a67   :  { %7471 = vmatprep.subr.bf16.mxu0 %v10554_v0 }
0x1a6a   :  { %7472 = vmatpush1.bf16.msra.mxu0 %v10716_v15 }
0x1a6b   :  { %7556 = vmatprep.subr.bf16.mxu0 %v10554_v0 }
0x1a6d   :  { %7486 = vmatmul.mubr.bf16.vlgmr.msra.gmra.mrb[232].mxu0 %v9179_v1 }
0x1a6e   :  { %7557 = vmatpush1.bf16.msra.mxu0 %v14142_v44  ;;  %9189 = vmatprep.mubr.msk.bf16.mxu0 %vm126_vm0, %v9188_v2  ;;  %v10467_v2 = vld [vmem:[%s14520_s6 + $0x630] sm:$0xff]  }
0x1a6f   :  { %7558 = vmatprep.subr.bf16.mxu0 %v10554_v0 }
0x1a72   :  { %7559 = vmatpush1.bf16.msra.mxu0 %v14149_v24 }
0x1a73   :  { %7560 = vmatprep.subr.bf16.mxu0 %v10554_v0 }
0x1a76   :  { %7561 = vmatpush1.bf16.msra.mxu0 %v14156_v27 }
0x1a77   :  { %7562 = vmatprep.subr.bf16.mxu0 %v10554_v0 }
0x1a7a   :  { %7563 = vmatpush1.bf16.msra.mxu0 %v14163_v28 }
0x1a7b   :  { %7564 = vmatprep.subr.bf16.mxu0 %v10554_v0 }
0x1a7e   :  { %7565 = vmatpush1.bf16.msra.mxu0 %v14170_v29 }
0x1a7f   :  { %7566 = vmatprep.subr.bf16.mxu0 %v10554_v0 }
0x1a82   :  { %7567 = vmatpush1.bf16.msra.mxu0 %v14177_v30 }
0x1a83   :  { %7568 = vmatprep.subr.bf16.mxu0 %v10554_v0 }
0x1a86   :  { %7569 = vmatpush1.bf16.msra.mxu0 %v14184_v49 }
0x1a87   :  { %7570 = vmatprep.subr.bf16.mxu0 %v10554_v0 }
0x1a8a   :  { %7571 = vmatpush1.bf16.msra.mxu0 %v14191_v31 }
0x1a8b   :  { %7572 = vmatprep.subr.bf16.mxu0 %v10554_v0 }
0x1a8e   :  { %7573 = vmatpush1.bf16.msra.mxu0 %v14198_v32 }
0x1a8f   :  { %7574 = vmatprep.subr.bf16.mxu0 %v10554_v0 }
0x1a92   :  { %7575 = vmatpush1.bf16.msra.mxu0 %v10716_v15 }
0x1a93   :  { %7718 = vmatprep.subr.bf16.mxu0 %v10554_v0 }
0x1a95   :  { %7589 = vmatmul.mubr.bf16.vlgmr.msra.gmra.mrb[236].mxu0 %v9187_v50  ;;  %v10468_v50 = vld [vmem:[%s14520_s6 + $0x638] sm:$0xff]  }
0x1a96   :  { %7719 = vmatpush1.bf16.msra.mxu0 %v14142_v44  ;;  %9217 = vmatprep.mubr.msk.bf16.mxu0 %vm126_vm0, %v9216_v41 }
0x1a97   :  { %7720 = vmatprep.subr.bf16.mxu0 %v10554_v0 }
0x1a9a   :  { %7721 = vmatpush1.bf16.msra.mxu0 %v14149_v24 }
0x1a9b   :  { %7722 = vmatprep.subr.bf16.mxu0 %v10554_v0 }
0x1a9e   :  { %7723 = vmatpush1.bf16.msra.mxu0 %v14156_v27 }
0x1a9f   :  { %7724 = vmatprep.subr.bf16.mxu0 %v10554_v0 }
0x1aa2   :  { %7725 = vmatpush1.bf16.msra.mxu0 %v14163_v28 }
0x1aa3   :  { %7726 = vmatprep.subr.bf16.mxu0 %v10554_v0 }
0x1aa6   :  { %7727 = vmatpush1.bf16.msra.mxu0 %v14170_v29 }
0x1aa7   :  { %7728 = vmatprep.subr.bf16.mxu0 %v10554_v0 }
0x1aaa   :  { %7729 = vmatpush1.bf16.msra.mxu0 %v14177_v30 }
0x1aab   :  { %7730 = vmatprep.subr.bf16.mxu0 %v10554_v0 }
0x1aae   :  { %7731 = vmatpush1.bf16.msra.mxu0 %v14184_v49 }
0x1aaf   :  { %7732 = vmatprep.subr.bf16.mxu0 %v10554_v0 }
0x1ab2   :  { %7733 = vmatpush1.bf16.msra.mxu0 %v14191_v31 }
0x1ab3   :  { %7734 = vmatprep.subr.bf16.mxu0 %v10554_v0 }
0x1ab6   :  { %7735 = vmatpush1.bf16.msra.mxu0 %v14198_v32 }
0x1ab7   :  { %7736 = vmatprep.subr.bf16.mxu0 %v10554_v0 }
0x1aba   :  { %7737 = vmatpush1.bf16.msra.mxu0 %v10716_v15 }
0x1abb   :  { %7821 = vmatprep.subr.bf16.mxu0 %v10554_v0 }
0x1abd   :  { %7751 = vmatmul.mubr.bf16.vlgmr.msra.gmra.mrb[240].mxu0 %v9215_v25 }
0x1abe   :  { %7822 = vmatpush1.bf16.msra.mxu0 %v14142_v44 }
0x1abf   :  { %7823 = vmatprep.subr.bf16.mxu0 %v10554_v0 }
0x1ac2   :  { %v7539_v38 = vpop.f32.mrb[232].mxu1  ;;  %7824 = vmatpush1.bf16.msra.mxu0 %v14149_v24 }
0x1ac3   :  { %v7541_v39 = vpop.f32.mrb[233].mxu1  ;;  %7825 = vmatprep.subr.bf16.mxu0 %v10554_v0 }
0x1ac4   :  { %v7542_v40 = vpop.f32.mrb[234].mxu1 }
0x1ac5   :  { %v7543_v9 = vpop.f32.mrb[235].mxu1 }
0x1ac6   :  { %7826 = vmatpush1.bf16.msra.mxu0 %v14156_v27 }
0x1ac7   :  { %7827 = vmatprep.subr.bf16.mxu0 %v10554_v0 }
0x1aca   :  { %7828 = vmatpush1.bf16.msra.mxu0 %v14163_v28 }
0x1acb   :  { %7829 = vmatprep.subr.bf16.mxu0 %v10554_v0 }
0x1ace   :  { %7830 = vmatpush1.bf16.msra.mxu0 %v14170_v29 }
0x1acf   :  { %7831 = vmatprep.subr.bf16.mxu0 %v10554_v0 }
0x1ad2   :  { %7832 = vmatpush1.bf16.msra.mxu0 %v14177_v30 }
0x1ad3   :  { %7833 = vmatprep.subr.bf16.mxu0 %v10554_v0 }
0x1ad6   :  { %7834 = vmatpush1.bf16.msra.mxu0 %v14184_v49 }
0x1ad7   :  { %7835 = vmatprep.subr.bf16.mxu0 %v10554_v0 }
0x1ada   :  { %7836 = vmatpush1.bf16.msra.mxu0 %v14191_v31 }
0x1adb   :  { %7837 = vmatprep.subr.bf16.mxu0 %v10554_v0 }
0x1ade   :  { %7838 = vmatpush1.bf16.msra.mxu0 %v14198_v32 }
0x1adf   :  { %7839 = vmatprep.subr.bf16.mxu0 %v10554_v0 }
0x1ae2   :  { %7840 = vmatpush1.bf16.msra.mxu0 %v10716_v15 }
0x1ae3   :  { %9996 = vmatprep.subr.bf16.mxu0 %v10555_v37 }
0x1b18   :  { %v7384_v33 = vpop.f32.mrb[228].mxu0 }
0x1b19   :  { %v14320_v23 = vadd.f32 %v7384_v33, %v14137_v14  ;;  %v9974_v36 = vpop.f32.mrb[229].mxu0  ;;  %v9222_v14 = vld [vmem:[%s14518_s2 + $0xc0] sm:$0xff] }
0x1b1a   :  { %v7387_v10 = vpop.f32.mrb[230].mxu0  ;;  %v9224_v42 = vcombine.high %v9222_v14, %v9222_v14  ;;  %v9223_v43 = vcombine.low %v9222_v14, %v9222_v14 }
0x1b1b   :  { %v9975_v13 = vpop.f32.mrb[231].mxu0 }
0x1b1c   :  { %9225 = vmatprep.mubr.msk.bf16.mxu0 %vm126_vm0, %v9224_v42  ;;  %v10553_v13 = vld [vmem:[%s14521_s5] ss:$0 sm:$0xff] }
0x1b1d   :  { %7854 = vmatmul.mubr.bf16.vlgmr.msra.gmra.mrb[244].mxu0 %v9223_v43  ;;  %v10475_v43 = vld [vmem:[%s14522_s8 + $0x30] sm:$0xff]  }
0x1b1e   :  { %10012 = vmatprep.mubr.msk.bf16.mxu0 %vm10556_vm2, %v10555_v37 }
0x1b40   :  { %v7487_v45 = vpop.f32.mrb[232].mxu0 }
0x1b41   :  { %v7493_v34 = vmax.f32 %v14281_v52, %v7487_v45  ;;  %v7489_v35 = vpop.f32.mrb[233].mxu0  ;;  %v10469_v52 = vld [vmem:[%s14522_s8] sm:$0xff]   ;;  %v10476_v45 = vld [vmem:[%s14522_s8 + $0x38] sm:$0xff]  }
0x1b42   :  { %v7490_v46 = vpop.f32.mrb[234].mxu0  ;;  %v10478_v35 = vld [vmem:[%s14523_s10 + $0x8] sm:$0xff]  }
0x1b43   :  { %v7491_v47 = vpop.f32.mrb[235].mxu0  ;;  %v10479_v46 = vld [vmem:[%s14523_s10 + $0x10] sm:$0xff]  }
0x1b44   :  { %v10480_v47 = vld [vmem:[%s14523_s10 + $0x18] sm:$0xff]  }
0x1b68   :  { %v7590_v48 = vpop.f32.mrb[236].mxu0 }
0x1b69   :  { %v7596_v4 = vmax.f32 %v7539_v38, %v7590_v48  ;;  %v7592_v54 = vpop.f32.mrb[237].mxu0  ;;  %v10481_v48 = vld [vmem:[%s14523_s10 + $0x20] sm:$0xff]  }
0x1b6a   :  { %v7593_v55 = vpop.f32.mrb[238].mxu0 }
0x1b6b   :  { %v7597_v56 = vmax.f32 %v7493_v34, %v7596_v4  ;;  %v7594_v57 = vpop.f32.mrb[239].mxu0  ;;  %v10477_v34 = vld [vmem:[%s14523_s10] sm:$0xff]   ;;  %v10482_v4 = vld [vmem:[%s14523_s10 + $0x28] sm:$0xff]  }
0x1b6c   :  { %v9254_v55 = vld [vmem:[%s14524_s7] ss:$0 sm:$0xff] }
0x1b6d   :  { %v7598_v58 = vadd.f32 %v13888_v3, %v7597_v56  ;;  %v9226_v3 = vld [vmem:[%s14519_s3 + $0xc0] sm:$0xff] }
0x1b6e   :  { %v9228_v60 = vcombine.high %v9226_v3, %v9226_v3 }
0x1b6f   :  { %v7599_v12 = vmax.f32 %v7598_v58, 0.0 }
0x1b71   :  { %v7600_v6 = vpack.c.bf16 %v7599_v12, %v7599_v12 }
0x1b73   :  { %9993 = vmatmul.mubr.bf16.vlgmr.msra.gmra.mrb[236].mxu1 %v7600_v6 }
0x1b74   :  { %7770 = vmatpush1.bf16.msra.mxu1 %v14142_v44  ;;  %9221 = vmatprep.mubr.msk.bf16.mxu1 %vm126_vm0, %v9220_v5 }
0x1b75   :  { %7771 = vmatprep.subr.bf16.mxu1 %v10554_v0 }
0x1b78   :  { %7772 = vmatpush1.bf16.msra.mxu1 %v14149_v24 }
0x1b79   :  { %7773 = vmatprep.subr.bf16.mxu1 %v10554_v0 }
0x1b7c   :  { %7774 = vmatpush1.bf16.msra.mxu1 %v14156_v27 }
0x1b7d   :  { %7775 = vmatprep.subr.bf16.mxu1 %v10554_v0 }
0x1b80   :  { %7776 = vmatpush1.bf16.msra.mxu1 %v14163_v28 }
0x1b81   :  { %7777 = vmatprep.subr.bf16.mxu1 %v10554_v0 }
0x1b84   :  { %7778 = vmatpush1.bf16.msra.mxu1 %v14170_v29 }
0x1b85   :  { %7779 = vmatprep.subr.bf16.mxu1 %v10554_v0 }
0x1b88   :  { %7780 = vmatpush1.bf16.msra.mxu1 %v14177_v30 }
0x1b89   :  { %7781 = vmatprep.subr.bf16.mxu1 %v10554_v0 }
0x1b8c   :  { %7782 = vmatpush1.bf16.msra.mxu1 %v14184_v49 }
0x1b8d   :  { %7783 = vmatprep.subr.bf16.mxu1 %v10554_v0 }
0x1b90   :  { %7784 = vmatpush1.bf16.msra.mxu1 %v14191_v31 }
0x1b91   :  { %7785 = vmatprep.subr.bf16.mxu1 %v10554_v0 }
0x1b94   :  { %7786 = vmatpush1.bf16.msra.mxu1 %v14198_v32 }
0x1b95   :  { %7787 = vmatprep.subr.bf16.mxu1 %v10554_v0 }
0x1b98   :  { %7788 = vmatpush1.bf16.msra.mxu1 %v10716_v15 }
0x1b99   :  { %7872 = vmatprep.subr.bf16.mxu1 %v10554_v0 }
0x1b9b   :  { %7802 = vmatmul.mubr.bf16.vlgmr.msra.gmra.mrb[240].mxu1 %v9219_v51  ;;  %v10484_v51 = vld [vmem:[%s14523_s10 + $0x38] sm:$0xff]  }
0x1b9c   :  { %7873 = vmatpush1.bf16.msra.mxu1 %v14142_v44  ;;  %9229 = vmatprep.mubr.msk.bf16.mxu1 %vm126_vm0, %v9228_v60  ;;  %v9227_v44 = vcombine.low %v9226_v3, %v9226_v3  ;;  %v10483_v3 = vld [vmem:[%s14523_s10 + $0x30] sm:$0xff]   ;;  %v9255_v60 = vld [vmem:[%s14525_s9] ss:$0 sm:$0xff] }
0x1b9d   :  { %7874 = vmatprep.subr.bf16.mxu1 %v10554_v0 }
0x1ba0   :  { %7875 = vmatpush1.bf16.msra.mxu1 %v14149_v24  ;;  %v14400_v24 = vpop.f32.mrb[240].mxu0 }
0x1ba1   :  { %7876 = vmatprep.subr.bf16.mxu1 %v10554_v0 }
0x1ba4   :  { %7877 = vmatpush1.bf16.msra.mxu1 %v14156_v27  ;;  %v7754_v27 = vpop.f32.mrb[241].mxu0 }
0x1ba5   :  { %7878 = vmatprep.subr.bf16.mxu1 %v10554_v0 }
0x1ba8   :  { %7879 = vmatpush1.bf16.msra.mxu1 %v14163_v28  ;;  %v7755_v28 = vpop.f32.mrb[242].mxu0 }
0x1ba9   :  { %7880 = vmatprep.subr.bf16.mxu1 %v10554_v0 }
0x1bac   :  { %7881 = vmatpush1.bf16.msra.mxu1 %v14170_v29  ;;  %v7756_v29 = vpop.f32.mrb[243].mxu0 }
0x1bad   :  { %7882 = vmatprep.subr.bf16.mxu1 %v10554_v0 }
0x1bb0   :  { %7883 = vmatpush1.bf16.msra.mxu1 %v14177_v30  ;;  %v10461_v30 = vld [vmem:[%s14520_s6 + $0x600] sm:$0xff]  }
0x1bb1   :  { %7884 = vmatprep.subr.bf16.mxu1 %v10554_v0  ;;  %9997 = vmatpush3.bf16.msra.mxu0 %v10461_v30 }
0x1bb2   :  { %9998 = vmatprep.subr.bf16.mxu0 %v10555_v37 }
0x1bb4   :  { %7885 = vmatpush1.bf16.msra.mxu1 %v14184_v49  ;;  %v10464_v49 = vld [vmem:[%s14520_s6 + $0x618] sm:$0xff]  }
0x1bb5   :  { %7886 = vmatprep.subr.bf16.mxu1 %v10554_v0 }
0x1bb8   :  { %7887 = vmatpush1.bf16.msra.mxu1 %v14191_v31  ;;  %v10465_v31 = vld [vmem:[%s14520_s6 + $0x620] sm:$0xff]  }
0x1bb9   :  { %7888 = vmatprep.subr.bf16.mxu1 %v10554_v0 }
0x1bbc   :  { %7889 = vmatpush1.bf16.msra.mxu1 %v14198_v32 }
0x1bbd   :  { %7890 = vmatprep.subr.bf16.mxu1 %v10554_v0  ;;  %v10462_v0 = vld [vmem:[%s14520_s6 + $0x608] sm:$0xff]  }
0x1bbe   :  { %9999 = vmatpush3.bf16.msra.mxu0 %v10462_v0 }
0x1bbf   :  { %10000 = vmatprep.subr.bf16.mxu0 %v10555_v37 }
0x1bc0   :  { %7891 = vmatpush1.bf16.msra.mxu1 %v10716_v15  ;;  %v10463_v15 = vld [vmem:[%s14520_s6 + $0x610] sm:$0xff]  }
0x1bc1   :  { %10016 = vmatprep.subr.bf16.mxu1 %v10555_v37 }
0x1bc2   :  { %10001 = vmatpush3.bf16.msra.mxu0 %v10463_v15 }
0x1bc3   :  { %7905 = vmatmul.mubr.bf16.vlgmr.msra.gmra.mrb[244].mxu1 %v9227_v44  ;;  %10002 = vmatprep.subr.bf16.mxu0 %v10555_v37 }
0x1bc4   :  { %10032 = vmatprep.mubr.msk.bf16.mxu1 %vm10556_vm2, %v10555_v37  ;;  %10017 = vmatpush3.bf16.msra.mxu1 %v10469_v52 }
0x1bc5   :  { %10018 = vmatprep.subr.bf16.mxu1 %v10555_v37 }
0x1bc6   :  { %10003 = vmatpush3.bf16.msra.mxu0 %v10464_v49 }
0x1bc7   :  { %10004 = vmatprep.subr.bf16.mxu0 %v10555_v37 }
0x1bc8   :  { %10019 = vmatpush3.bf16.msra.mxu1 %v10470_v53 }
0x1bc9   :  { %10020 = vmatprep.subr.bf16.mxu1 %v10555_v37 }
0x1bca   :  { %10005 = vmatpush3.bf16.msra.mxu0 %v10465_v31 }
0x1bcb   :  { %10006 = vmatprep.subr.bf16.mxu0 %v10555_v37 }
0x1bcc   :  { %10021 = vmatpush3.bf16.msra.mxu1 %v10471_v7 }
0x1bcd   :  { %10022 = vmatprep.subr.bf16.mxu1 %v10555_v37 }
0x1bce   :  { %10007 = vmatpush3.bf16.msra.mxu0 %v10466_v61 }
0x1bcf   :  { %10008 = vmatprep.subr.bf16.mxu0 %v10555_v37 }
0x1bd0   :  { %10023 = vmatpush3.bf16.msra.mxu1 %v10472_v8 }
0x1bd1   :  { %10024 = vmatprep.subr.bf16.mxu1 %v10555_v37 }
0x1bd2   :  { %10009 = vmatpush3.bf16.msra.mxu0 %v10467_v2 }
0x1bd3   :  { %10010 = vmatprep.subr.bf16.mxu0 %v10555_v37 }
0x1bd4   :  { %10025 = vmatpush3.bf16.msra.mxu1 %v10473_v16 }
0x1bd5   :  { %10026 = vmatprep.subr.bf16.mxu1 %v10555_v37 }
0x1bd6   :  { %10011 = vmatpush3.bf16.msra.mxu0 %v10468_v50 }
0x1bd7   :  { %10036 = vmatprep.subr.bf16.mxu0 %v10555_v37 }
0x1bd8   :  { %10027 = vmatpush3.bf16.msra.mxu1 %v10474_v17 }
0x1bd9   :  { %10028 = vmatprep.subr.bf16.mxu1 %v10555_v37 }
0x1bdc   :  { %10029 = vmatpush3.bf16.msra.mxu1 %v10475_v43 }
0x1bdd   :  { %10030 = vmatprep.subr.bf16.mxu1 %v10555_v37 }
0x1be0   :  { %10031 = vmatpush3.bf16.msra.mxu1 %v10476_v45 }
0x1bf0   :  { %v7855_v32 = vpop.f32.mrb[244].mxu0 }
0x1bf1   :  { %v7857_v62 = vpop.f32.mrb[245].mxu0 }
0x1bf2   :  { %v7858_v63 = vpop.f32.mrb[246].mxu0 }
0x1bf3   :  { %v7859_v1 = vpop.f32.mrb[247].mxu0 }
0x1c46   :  { %v7700_v18 = vpop.f32.mrb[236].mxu1 }
0x1c47   :  { %v7706_v19 = vadd.f32 %v7700_v18, %v14320_v23  ;;  %v9994_v20 = vpop.f32.mrb[237].mxu1 }
0x1c48   :  { %v7703_v21 = vpop.f32.mrb[238].mxu1 }
0x1c49   :  { %v9995_v38 = vpop.f32.mrb[239].mxu1 }
0x1c6e   :  { %v7803_v39 = vpop.f32.mrb[240].mxu1 }
0x1c6f   :  { %v7809_v40 = vmax.f32 %v14400_v24, %v7803_v39  ;;  %v7805_v9 = vpop.f32.mrb[241].mxu1 }
0x1c70   :  { %v7806_v11 = vpop.f32.mrb[242].mxu1 }
0x1c71   :  { %v7807_v22 = vpop.f32.mrb[243].mxu1 }
0x1c96   :  { %v7906_v26 = vpop.f32.mrb[244].mxu1 }
0x1c97   :  { %v7912_v41 = vmax.f32 %v7855_v32, %v7906_v26  ;;  %v7908_v25 = vpop.f32.mrb[245].mxu1 }
0x1c98   :  { %v7909_v33 = vpop.f32.mrb[246].mxu1 }
0x1c99   :  { %v7913_v36 = vmax.f32 %v7809_v40, %v7912_v41  ;;  %v7910_v10 = vpop.f32.mrb[247].mxu1 }
0x1c9b   :  { %v7914_v23 = vadd.f32 %v10553_v13, %v7913_v36 }
0x1c9d   :  { %v7915_v14 = vmax.f32 %v7914_v23, 0.0 }
0x1c9f   :  { %v7916_v42 = vpack.c.bf16 %v7915_v14, %v7915_v14 }
0x1ca1   :  { %10013 = vmatmul.mubr.bf16.vlgmr.msra.gmra.mrb[248].mxu0 %v7916_v42 }
0x1ca2   :  { %10052 = vmatprep.mubr.msk.bf16.mxu0 %vm10556_vm2, %v10555_v37  ;;  %10037 = vmatpush3.bf16.msra.mxu0 %v10477_v34 }
0x1ca3   :  { %10038 = vmatprep.subr.bf16.mxu0 %v10555_v37 }
0x1ca6   :  { %10039 = vmatpush3.bf16.msra.mxu0 %v10478_v35 }
0x1ca7   :  { %10040 = vmatprep.subr.bf16.mxu0 %v10555_v37 }
0x1caa   :  { %10041 = vmatpush3.bf16.msra.mxu0 %v10479_v46 }
0x1cab   :  { %10042 = vmatprep.subr.bf16.mxu0 %v10555_v37 }
0x1cae   :  { %10043 = vmatpush3.bf16.msra.mxu0 %v10480_v47 }
0x1caf   :  { %10044 = vmatprep.subr.bf16.mxu0 %v10555_v37 }
0x1cb2   :  { %10045 = vmatpush3.bf16.msra.mxu0 %v10481_v48 }
0x1cb3   :  { %10046 = vmatprep.subr.bf16.mxu0 %v10555_v37 }
0x1cb6   :  { %10047 = vmatpush3.bf16.msra.mxu0 %v10482_v4 }
0x1cb7   :  { %10048 = vmatprep.subr.bf16.mxu0 %v10555_v37 }
0x1cba   :  { %10049 = vmatpush3.bf16.msra.mxu0 %v10483_v3 }
0x1cbb   :  { %10050 = vmatprep.subr.bf16.mxu0 %v10555_v37  ;;  %v9264_v37 = vld [vmem:[%s14526_s11] ss:$0 sm:$0xff] }
0x1cbe   :  { %10051 = vmatpush3.bf16.msra.mxu0 %v10484_v51 }
0x1d74   :  { %v8016_v54 = vpop.f32.mrb[248].mxu0 }
0x1d75   :  { %v8022_v56 = vadd.f32 %v8016_v54, %v7706_v19  ;;  %v10014_v57 = vpop.f32.mrb[249].mxu0 }
0x1d76   :  { %v8019_v58 = vpop.f32.mrb[250].mxu0 }
0x1d77   :  { %v8030_v59 = vadd.f32 %v9254_v55, %v8022_v56  ;;  %v10015_v12 = vpop.f32.mrb[251].mxu0 }
0x1d79   :  { %v8031_v5 = vmax.f32 %v8030_v59, 0.0 }
0x1d7b   :  { %v8032_v6 = vpack.c.bf16 %v8031_v5, %v8031_v5 }
0x1d7d   :  { %10033 = vmatmul.mubr.bf16.vlgmr.msra.gmra.mrb[248].mxu1 %v8032_v6 }
0x1e50   :  { %v8138_v44 = vpop.f32.mrb[248].mxu1 }
0x1e51   :  { %v8139_v24 = vadd.f32 %v9255_v60, %v8138_v44  ;;  %v10034_v27 = vpop.f32.mrb[249].mxu1 }
0x1e52   :  { %v8141_v28 = vpop.f32.mrb[250].mxu1 }
0x1e53   :  { %v8144_v29 = vmax.f32 %v8139_v24, 0.0  ;;  %v10035_v30 = vpop.f32.mrb[251].mxu1 }
0x1e55   :  { %v8145_v0 = vpack.c.bf16 %v8144_v29, %v8144_v29 }
0x1e57   :  { %10053 = vmatmul.mubr.bf16.vlgmr.msra.gmra.mrb[252].mxu0 %v8145_v0 }
0x1f2a   :  { %v8251_v15 = vpop.f32.mrb[252].mxu0 }
0x1f2b   :  { %v8252_v49 = vadd.f32 %v9264_v37, %v8251_v15  ;;  %v10054_v31 = vpop.f32.mrb[253].mxu0 }
0x1f2c   :  { %v8254_v32 = vpop.f32.mrb[254].mxu0 }
0x1f2d   :  { %8258 = vst.msk [vmem:[%s14527_s12] sm:$0xff] %vm8257_vm3, %v8252_v49  ;;  %v10055_v61 = vpop.f32.mrb[255].mxu0 }

</bundles_post_ra>
